<compile_context>
chip_gen: v7x
topology: tpu7x:2x2x1
jax: 0.10.0
libtpu: 0.0.40
codegen_flags: <defaults>
</compile_context>

<pallas_src>
import jax
import jax.numpy as jnp
from jax.experimental import pallas as pl
from jax.experimental.pallas import tpu as pltpu


def _basic_block_kernel(x_ref, w1_ref, s1_ref, b1_ref, w2_ref, s2_ref, b2_ref,
                        out_ref, xpad_ref, mid_ref):
    # x_ref   : (1, H, W, Cp)   input block, channels padded to Cp (compute dtype)
    # w*_ref  : (9*Cp, Cp)      im2col conv weights, row k = (dy*3+dx)*Cp + ci
    # s*/b*   : (1, Cp)         folded eval-mode BatchNorm scale / bias (f32)
    # out_ref : (1, H, W, Cp)   f32 output block
    # xpad_ref, mid_ref : VMEM scratch (H+2, W+2, Cp) with 1-pixel zero border
    _, H, W, Cp = out_ref.shape
    cdt = xpad_ref.dtype

    # Re-zero only the 1-pixel border each step (interior is fully overwritten
    # every step).  We deliberately do NOT rely on "zero once at program_id==0":
    # under 'parallel' grid semantics / megacore each core has its own scratch
    # and may never execute step 0.
    zrow = jnp.zeros((1, W + 2, Cp), cdt)
    zcol = jnp.zeros((H, 1, Cp), cdt)
    for ref in (xpad_ref, mid_ref):
        ref[0:1, :, :] = zrow
        ref[H + 1:H + 2, :, :] = zrow
        ref[1:H + 1, 0:1, :] = zcol
        ref[1:H + 1, W + 1:W + 2, :] = zcol

    x = x_ref[0]                                     # (H, W, Cp), compute dtype
    xpad_ref[1:H + 1, 1:W + 1, :] = x                # single interior store

    def conv3x3(src_ref, w_ref):
        # im2col: 9 shifted (H, W, Cp) windows -> (H*W, 9*Cp) slab, then one
        # K = 9*Cp MXU matmul with f32 accumulation.
        taps = [src_ref[dy:dy + H, dx:dx + W, :]
                for dy in range(3) for dx in range(3)]
        slab = jnp.concatenate(taps, axis=2).reshape(H * W, 9 * Cp)
        return jnp.dot(slab, w_ref[...], preferred_element_type=jnp.float32)

    # ---- conv1 + bn1 + relu (f32 epilogue) ----
    acc1 = conv3x3(xpad_ref, w1_ref)                 # (H*W, Cp) f32
    h1 = jnp.maximum(acc1 * s1_ref[...] + b1_ref[...], 0.0)
    mid_ref[1:H + 1, 1:W + 1, :] = h1.reshape(H, W, Cp).astype(cdt)

    # ---- conv2 + bn2 + residual add + relu (f32 epilogue) ----
    acc2 = conv3x3(mid_ref, w2_ref)                  # (H*W, Cp) f32
    o = acc2 * s2_ref[...] + b2_ref[...]
    o = jnp.maximum(o.reshape(H, W, Cp) + x.astype(jnp.float32), 0.0)
    out_ref[0] = o.astype(out_ref.dtype)


def basic_block(x_nchw, w1_hwio, w2_hwio, s1, b1, s2, b2,
                compute_dtype=jnp.bfloat16):
    """x_nchw: (N, C, H, W); conv weights HWIO (3, 3, C, C); returns NCHW f32."""
    N, Cin, H, W = x_nchw.shape
    C = w1_hwio.shape[-1]
    assert Cin == C, "downsample=None -> identity residual needs inplanes == planes"

    LANE = 128
    Cp = ((C + LANE - 1) // LANE) * LANE             # lane-dense channel dim
    itemsize = jnp.dtype(compute_dtype).itemsize

    # NHWC, channels zero-padded to Cp, cast to the MXU compute dtype.
    x = jnp.transpose(x_nchw, (0, 2, 3, 1)).astype(jnp.float32)
    x = jnp.pad(x, ((0, 0), (0, 0), (0, 0), (0, Cp - C))).astype(compute_dtype)

    def pack_w(w):
        wp = jnp.pad(w.astype(jnp.float32),
                     ((0, 0), (0, 0), (0, Cp - C), (0, Cp - C)))
        return wp.reshape(9 * Cp, Cp).astype(compute_dtype)

    def pack_v(v):
        return jnp.pad(v.astype(jnp.float32).reshape(1, C), ((0, 0), (0, Cp - C)))

    w1p, w2p = pack_w(w1_hwio), pack_w(w2_hwio)
    s1p, b1p, s2p, b2p = pack_v(s1), pack_v(b1), pack_v(s2), pack_v(b2)

    # Per-block VMEM footprint -> explicit scoped-VMEM limit (v7x has 64 MiB).
    in_blk = H * W * Cp * itemsize
    out_blk = H * W * Cp * 4
    w_bytes = 2 * 9 * Cp * Cp * itemsize
    scr = 2 * (H + 2) * (W + 2) * Cp * itemsize
    tmp = 2 * H * W * 9 * Cp * itemsize + 2 * H * W * Cp * 4   # im2col slabs + acc
    vmem_limit = min(int(2 * (in_blk + out_blk) + w_bytes + scr + tmp) + (16 << 20),
                     64 * 1024 * 1024)

    out_nhwc = pl.pallas_call(
        _basic_block_kernel,
        out_shape=jax.ShapeDtypeStruct((N, H, W, Cp), jnp.float32),
        grid_spec=pltpu.PrefetchScalarGridSpec(
            num_scalar_prefetch=0,
            # TODO(synk): for large feature maps (early ResNet layers on v7x),
            # add an H-tile grid axis with a 1-row halo via the padded scratch.
            grid=(N,),
            in_specs=[
                pl.BlockSpec((1, H, W, Cp), lambda n: (n, 0, 0, 0)),
                pl.BlockSpec((9 * Cp, Cp), lambda n: (0, 0)),   # held resident
                pl.BlockSpec((1, Cp), lambda n: (0, 0)),
                pl.BlockSpec((1, Cp), lambda n: (0, 0)),
                pl.BlockSpec((9 * Cp, Cp), lambda n: (0, 0)),
                pl.BlockSpec((1, Cp), lambda n: (0, 0)),
                pl.BlockSpec((1, Cp), lambda n: (0, 0)),
            ],
            out_specs=pl.BlockSpec((1, H, W, Cp), lambda n: (n, 0, 0, 0)),
            scratch_shapes=[pltpu.VMEM((H + 2, W + 2, Cp), compute_dtype),
                            pltpu.VMEM((H + 2, W + 2, Cp), compute_dtype)],
        ),
        compiler_params=pltpu.CompilerParams(
            dimension_semantics=("parallel",),
            vmem_limit_bytes=vmem_limit),
    )(x, w1p, s1p, b1p, w2p, s2p, b2p)

    out = out_nhwc[..., :C]                          # strip channel padding
    return jnp.transpose(out, (0, 3, 1, 2))          # back to NCHW


def _reference_basic_block(x_nchw, w1_hwio, w2_hwio, s1, b1, s2, b2,
                           compute_dtype=jnp.bfloat16):
    """Pure-JAX reference with matching mixed precision (bf16 matmul inputs,
    f32 accumulation and f32 epilogue) for verification."""
    x = jnp.transpose(x_nchw, (0, 2, 3, 1)).astype(jnp.float32)
    xc = x.astype(compute_dtype)

    def conv3x3(h, w):
        return jax.lax.conv_general_dilated(
            h.astype(compute_dtype), w.astype(compute_dtype),
            window_strides=(1, 1), padding="SAME",
            dimension_numbers=("NHWC", "HWIO", "NHWC"),
            preferred_element_type=jnp.float32)

    o = conv3x3(xc, w1_hwio) * s1 + b1
    o = jnp.maximum(o, 0.0)
    o = conv3x3(o, w2_hwio) * s2 + b2
    o = jnp.maximum(o + xc.astype(jnp.float32), 0.0)
    return jnp.transpose(o, (0, 3, 1, 2))


if __name__ == "__main__":
    # Small, BasicBlock-consistent shapes: inplanes == planes (identity residual).
    N, C, H, W = 2, 8, 16, 16
    key = jax.random.PRNGKey(0)
    kx, kw1, kw2, kg1, kb1, km1, kv1, kg2, kb2, km2, kv2 = jax.random.split(key, 11)

    x = jax.random.normal(kx, (N, C, H, W), dtype=jnp.float32)

    # conv weights (HWIO), deterministic
    w1 = 0.1 * jax.random.normal(kw1, (3, 3, C, C), dtype=jnp.float32)
    w2 = 0.1 * jax.random.normal(kw2, (3, 3, C, C), dtype=jnp.float32)

    # eval-mode BatchNorm parameters, folded into scale/bias
    eps = 1e-5
    g1 = 1.0 + 0.1 * jax.random.normal(kg1, (C,), dtype=jnp.float32)
    be1 = 0.1 * jax.random.normal(kb1, (C,), dtype=jnp.float32)
    m1 = 0.1 * jax.random.normal(km1, (C,), dtype=jnp.float32)
    v1 = 1.0 + 0.5 * jax.random.uniform(kv1, (C,), dtype=jnp.float32)
    g2 = 1.0 + 0.1 * jax.random.normal(kg2, (C,), dtype=jnp.float32)
    be2 = 0.1 * jax.random.normal(kb2, (C,), dtype=jnp.float32)
    m2 = 0.1 * jax.random.normal(km2, (C,), dtype=jnp.float32)
    v2 = 1.0 + 0.5 * jax.random.uniform(kv2, (C,), dtype=jnp.float32)

    s1 = g1 / jnp.sqrt(v1 + eps)
    b1 = be1 - m1 * s1
    s2 = g2 / jnp.sqrt(v2 + eps)
    b2 = be2 - m2 * s2
    # TODO(synk): training-mode BatchNorm (per-batch statistics) not implemented;
    # eval-mode BN is folded into per-channel scale/bias.

    out = jax.block_until_ready(basic_block(x, w1, w2, s1, b1, s2, b2))
    ref = jax.block_until_ready(_reference_basic_block(x, w1, w2, s1, b1, s2, b2))

    if not jnp.allclose(out, ref, atol=2e-3, rtol=2e-3):
        err = float(jnp.max(jnp.abs(out - ref)))
        raise AssertionError(
            f"Pallas BasicBlock output mismatch vs JAX reference (max |err|={err})")

    print("KERNEL_OK")
</pallas_src>

<mosaic_0001>
module attributes {stable_mosaic.version = 11 : i64} {
  func.func @_basic_block_kernel(%arg0: i32, %arg1: memref<1x16x16x128xbf16, #tpu.memory_space<vmem>>, %arg2: memref<1152x128xbf16, #tpu.memory_space<vmem>>, %arg3: memref<1x128xf32, #tpu.memory_space<vmem>>, %arg4: memref<1x128xf32, #tpu.memory_space<vmem>>, %arg5: memref<1152x128xbf16, #tpu.memory_space<vmem>>, %arg6: memref<1x128xf32, #tpu.memory_space<vmem>>, %arg7: memref<1x128xf32, #tpu.memory_space<vmem>>, %arg8: memref<1x16x16x128xf32, #tpu.memory_space<vmem>>, %arg9: memref<18x18x128xbf16, #tpu.memory_space<vmem>>, %arg10: memref<18x18x128xbf16, #tpu.memory_space<vmem>>) attributes {dimension_semantics = [#tpu.dimension_semantics<parallel>], iteration_bounds = array<i64: 2>, scalar_prefetch = 0 : i64, scratch_operands = 2 : i64, tpu.core_type = #tpu.core_type<tc>, window_params = [{transform_indices = @transform_0, window_bounds = array<i64: 1, 16, 16, 128>}, {pipeline_mode = #tpu.pipeline_mode<synchronous>, transform_indices = @transform_1, window_bounds = array<i64: 1152, 128>}, {pipeline_mode = #tpu.pipeline_mode<synchronous>, transform_indices = @transform_2, window_bounds = array<i64: 1, 128>}, {pipeline_mode = #tpu.pipeline_mode<synchronous>, transform_indices = @transform_3, window_bounds = array<i64: 1, 128>}, {pipeline_mode = #tpu.pipeline_mode<synchronous>, transform_indices = @transform_4, window_bounds = array<i64: 1152, 128>}, {pipeline_mode = #tpu.pipeline_mode<synchronous>, transform_indices = @transform_5, window_bounds = array<i64: 1, 128>}, {pipeline_mode = #tpu.pipeline_mode<synchronous>, transform_indices = @transform_6, window_bounds = array<i64: 1, 128>}, {transform_indices = @transform_7, window_bounds = array<i64: 1, 16, 16, 128>}]} {
    %cst = arith.constant 0.000000e+00 : bf16
    %0 = vector.broadcast %cst : bf16 to vector<1x18x128xbf16>
    %cst_0 = arith.constant 0.000000e+00 : bf16
    %1 = vector.broadcast %cst_0 : bf16 to vector<16x1x128xbf16>
    %c0 = arith.constant 0 : index
    %c0_1 = arith.constant 0 : index
    %c0_2 = arith.constant 0 : index
    %2 = vector.load %arg9[%c0, %c0_1, %c0_2] : memref<18x18x128xbf16, #tpu.memory_space<vmem>>, vector<1x18x128xbf16>
    tpu.vector_store %arg9[%c0, %c0_1, %c0_2], %0 {strides = array<i32>} : memref<18x18x128xbf16, #tpu.memory_space<vmem>>, vector<1x18x128xbf16>,
    %c17 = arith.constant 17 : index
    %c0_3 = arith.constant 0 : index
    %c0_4 = arith.constant 0 : index
    %3 = vector.load %arg9[%c17, %c0_3, %c0_4] : memref<18x18x128xbf16, #tpu.memory_space<vmem>>, vector<1x18x128xbf16>
    tpu.vector_store %arg9[%c17, %c0_3, %c0_4], %0 {strides = array<i32>} : memref<18x18x128xbf16, #tpu.memory_space<vmem>>, vector<1x18x128xbf16>,
    %c1 = arith.constant 1 : index
    %c0_5 = arith.constant 0 : index
    %c0_6 = arith.constant 0 : index
    %4 = vector.load %arg9[%c1, %c0_5, %c0_6] : memref<18x18x128xbf16, #tpu.memory_space<vmem>>, vector<16x1x128xbf16>
    tpu.vector_store %arg9[%c1, %c0_5, %c0_6], %1 {strides = array<i32>} : memref<18x18x128xbf16, #tpu.memory_space<vmem>>, vector<16x1x128xbf16>,
    %c1_7 = arith.constant 1 : index
    %c17_8 = arith.constant 17 : index
    %c0_9 = arith.constant 0 : index
    %5 = vector.load %arg9[%c1_7, %c17_8, %c0_9] : memref<18x18x128xbf16, #tpu.memory_space<vmem>>, vector<16x1x128xbf16>
    tpu.vector_store %arg9[%c1_7, %c17_8, %c0_9], %1 {strides = array<i32>} : memref<18x18x128xbf16, #tpu.memory_space<vmem>>, vector<16x1x128xbf16>,
    %c0_10 = arith.constant 0 : index
    %c0_11 = arith.constant 0 : index
    %c0_12 = arith.constant 0 : index
    %6 = vector.load %arg10[%c0_10, %c0_11, %c0_12] : memref<18x18x128xbf16, #tpu.memory_space<vmem>>, vector<1x18x128xbf16>
    tpu.vector_store %arg10[%c0_10, %c0_11, %c0_12], %0 {strides = array<i32>} : memref<18x18x128xbf16, #tpu.memory_space<vmem>>, vector<1x18x128xbf16>,
    %c17_13 = arith.constant 17 : index
    %c0_14 = arith.constant 0 : index
    %c0_15 = arith.constant 0 : index
    %7 = vector.load %arg10[%c17_13, %c0_14, %c0_15] : memref<18x18x128xbf16, #tpu.memory_space<vmem>>, vector<1x18x128xbf16>
    tpu.vector_store %arg10[%c17_13, %c0_14, %c0_15], %0 {strides = array<i32>} : memref<18x18x128xbf16, #tpu.memory_space<vmem>>, vector<1x18x128xbf16>,
    %c1_16 = arith.constant 1 : index
    %c0_17 = arith.constant 0 : index
    %c0_18 = arith.constant 0 : index
    %8 = vector.load %arg10[%c1_16, %c0_17, %c0_18] : memref<18x18x128xbf16, #tpu.memory_space<vmem>>, vector<16x1x128xbf16>
    tpu.vector_store %arg10[%c1_16, %c0_17, %c0_18], %1 {strides = array<i32>} : memref<18x18x128xbf16, #tpu.memory_space<vmem>>, vector<16x1x128xbf16>,
    %c1_19 = arith.constant 1 : index
    %c17_20 = arith.constant 17 : index
    %c0_21 = arith.constant 0 : index
    %9 = vector.load %arg10[%c1_19, %c17_20, %c0_21] : memref<18x18x128xbf16, #tpu.memory_space<vmem>>, vector<16x1x128xbf16>
    tpu.vector_store %arg10[%c1_19, %c17_20, %c0_21], %1 {strides = array<i32>} : memref<18x18x128xbf16, #tpu.memory_space<vmem>>, vector<16x1x128xbf16>,
    %c0_22 = arith.constant 0 : index
    %c0_23 = arith.constant 0 : index
    %c0_24 = arith.constant 0 : index
    %c0_25 = arith.constant 0 : index
    %10 = vector.load %arg1[%c0_22, %c0_23, %c0_24, %c0_25] : memref<1x16x16x128xbf16, #tpu.memory_space<vmem>>, vector<1x16x16x128xbf16>
    %11 = vector.shape_cast %10 : vector<1x16x16x128xbf16> to vector<16x16x128xbf16>
    %c1_26 = arith.constant 1 : index
    %c1_27 = arith.constant 1 : index
    %c0_28 = arith.constant 0 : index
    %12 = vector.load %arg9[%c1_26, %c1_27, %c0_28] : memref<18x18x128xbf16, #tpu.memory_space<vmem>>, vector<16x16x128xbf16>
    tpu.vector_store %arg9[%c1_26, %c1_27, %c0_28], %11 {strides = array<i32>} : memref<18x18x128xbf16, #tpu.memory_space<vmem>>, vector<16x16x128xbf16>,
    %c0_29 = arith.constant 0 : index
    %c0_30 = arith.constant 0 : index
    %c0_31 = arith.constant 0 : index
    %13 = vector.load %arg9[%c0_29, %c0_30, %c0_31] : memref<18x18x128xbf16, #tpu.memory_space<vmem>>, vector<16x16x128xbf16>
    %c0_32 = arith.constant 0 : index
    %c1_33 = arith.constant 1 : index
    %c0_34 = arith.constant 0 : index
    %14 = vector.load %arg9[%c0_32, %c1_33, %c0_34] : memref<18x18x128xbf16, #tpu.memory_space<vmem>>, vector<16x16x128xbf16>
    %c0_35 = arith.constant 0 : index
    %c2 = arith.constant 2 : index
    %c0_36 = arith.constant 0 : index
    %15 = vector.load %arg9[%c0_35, %c2, %c0_36] : memref<18x18x128xbf16, #tpu.memory_space<vmem>>, vector<16x16x128xbf16>
    %c1_37 = arith.constant 1 : index
    %c0_38 = arith.constant 0 : index
    %c0_39 = arith.constant 0 : index
    %16 = vector.load %arg9[%c1_37, %c0_38, %c0_39] : memref<18x18x128xbf16, #tpu.memory_space<vmem>>, vector<16x16x128xbf16>
    %c1_40 = arith.constant 1 : index
    %c1_41 = arith.constant 1 : index
    %c0_42 = arith.constant 0 : index
    %17 = vector.load %arg9[%c1_40, %c1_41, %c0_42] : memref<18x18x128xbf16, #tpu.memory_space<vmem>>, vector<16x16x128xbf16>
    %c1_43 = arith.constant 1 : index
    %c2_44 = arith.constant 2 : index
    %c0_45 = arith.constant 0 : index
    %18 = vector.load %arg9[%c1_43, %c2_44, %c0_45] : memref<18x18x128xbf16, #tpu.memory_space<vmem>>, vector<16x16x128xbf16>
    %c2_46 = arith.constant 2 : index
    %c0_47 = arith.constant 0 : index
    %c0_48 = arith.constant 0 : index
    %19 = vector.load %arg9[%c2_46, %c0_47, %c0_48] : memref<18x18x128xbf16, #tpu.memory_space<vmem>>, vector<16x16x128xbf16>
    %c2_49 = arith.constant 2 : index
    %c1_50 = arith.constant 1 : index
    %c0_51 = arith.constant 0 : index
    %20 = vector.load %arg9[%c2_49, %c1_50, %c0_51] : memref<18x18x128xbf16, #tpu.memory_space<vmem>>, vector<16x16x128xbf16>
    %c2_52 = arith.constant 2 : index
    %c2_53 = arith.constant 2 : index
    %c0_54 = arith.constant 0 : index
    %21 = vector.load %arg9[%c2_52, %c2_53, %c0_54] : memref<18x18x128xbf16, #tpu.memory_space<vmem>>, vector<16x16x128xbf16>
    %22 = tpu.concatenate %13, %14, %15, %16, %17, %18, %19, %20, %21 in 2 : vector<16x16x128xbf16>, vector<16x16x128xbf16>, vector<16x16x128xbf16>, vector<16x16x128xbf16>, vector<16x16x128xbf16>, vector<16x16x128xbf16>, vector<16x16x128xbf16>, vector<16x16x128xbf16>, vector<16x16x128xbf16> -> vector<16x16x1152xbf16>
    %23 = vector.shape_cast %22 : vector<16x16x1152xbf16> to vector<256x1152xbf16>
    %c0_55 = arith.constant 0 : index
    %c0_56 = arith.constant 0 : index
    %24 = vector.load %arg2[%c0_55, %c0_56] : memref<1152x128xbf16, #tpu.memory_space<vmem>>, vector<1152x128xbf16>
    %cst_57 = arith.constant dense<0.000000e+00> : vector<256x128xf32>
    %25 = tpu.matmul %23, %24, %cst_57 {dimension_numbers = #tpu.dot_dimension_numbers<[1], [0], [0], [1], [0, 0, 1, 1], [], []>} : vector<256x1152xbf16>, vector<1152x128xbf16>, vector<256x128xf32> -> vector<256x128xf32>
    %c0_58 = arith.constant 0 : index
    %c0_59 = arith.constant 0 : index
    %26 = vector.load %arg3[%c0_58, %c0_59] : memref<1x128xf32, #tpu.memory_space<vmem>>, vector<1x128xf32>
    %27 = vector.broadcast %26 : vector<1x128xf32> to vector<256x128xf32>
    %28 = arith.mulf %25, %27 : vector<256x128xf32>
    %c0_60 = arith.constant 0 : index
    %c0_61 = arith.constant 0 : index
    %29 = vector.load %arg4[%c0_60, %c0_61] : memref<1x128xf32, #tpu.memory_space<vmem>>, vector<1x128xf32>
    %30 = vector.broadcast %29 : vector<1x128xf32> to vector<256x128xf32>
    %31 = arith.addf %28, %30 : vector<256x128xf32>
    %cst_62 = arith.constant 0.000000e+00 : f32
    %32 = vector.broadcast %cst_62 : f32 to vector<256x128xf32>
    %33 = arith.maximumf %31, %32 : vector<256x128xf32>
    %34 = vector.shape_cast %33 : vector<256x128xf32> to vector<16x16x128xf32>
    %35 = arith.truncf %34 : vector<16x16x128xf32> to vector<16x16x128xbf16>
    %c1_63 = arith.constant 1 : index
    %c1_64 = arith.constant 1 : index
    %c0_65 = arith.constant 0 : index
    %36 = vector.load %arg10[%c1_63, %c1_64, %c0_65] : memref<18x18x128xbf16, #tpu.memory_space<vmem>>, vector<16x16x128xbf16>
    tpu.vector_store %arg10[%c1_63, %c1_64, %c0_65], %35 {strides = array<i32>} : memref<18x18x128xbf16, #tpu.memory_space<vmem>>, vector<16x16x128xbf16>,
    %c0_66 = arith.constant 0 : index
    %c0_67 = arith.constant 0 : index
    %c0_68 = arith.constant 0 : index
    %37 = vector.load %arg10[%c0_66, %c0_67, %c0_68] : memref<18x18x128xbf16, #tpu.memory_space<vmem>>, vector<16x16x128xbf16>
    %c0_69 = arith.constant 0 : index
    %c1_70 = arith.constant 1 : index
    %c0_71 = arith.constant 0 : index
    %38 = vector.load %arg10[%c0_69, %c1_70, %c0_71] : memref<18x18x128xbf16, #tpu.memory_space<vmem>>, vector<16x16x128xbf16>
    %c0_72 = arith.constant 0 : index
    %c2_73 = arith.constant 2 : index
    %c0_74 = arith.constant 0 : index
    %39 = vector.load %arg10[%c0_72, %c2_73, %c0_74] : memref<18x18x128xbf16, #tpu.memory_space<vmem>>, vector<16x16x128xbf16>
    %c1_75 = arith.constant 1 : index
    %c0_76 = arith.constant 0 : index
    %c0_77 = arith.constant 0 : index
    %40 = vector.load %arg10[%c1_75, %c0_76, %c0_77] : memref<18x18x128xbf16, #tpu.memory_space<vmem>>, vector<16x16x128xbf16>
    %c1_78 = arith.constant 1 : index
    %c1_79 = arith.constant 1 : index
    %c0_80 = arith.constant 0 : index
    %41 = vector.load %arg10[%c1_78, %c1_79, %c0_80] : memref<18x18x128xbf16, #tpu.memory_space<vmem>>, vector<16x16x128xbf16>
    %c1_81 = arith.constant 1 : index
    %c2_82 = arith.constant 2 : index
    %c0_83 = arith.constant 0 : index
    %42 = vector.load %arg10[%c1_81, %c2_82, %c0_83] : memref<18x18x128xbf16, #tpu.memory_space<vmem>>, vector<16x16x128xbf16>
    %c2_84 = arith.constant 2 : index
    %c0_85 = arith.constant 0 : index
    %c0_86 = arith.constant 0 : index
    %43 = vector.load %arg10[%c2_84, %c0_85, %c0_86] : memref<18x18x128xbf16, #tpu.memory_space<vmem>>, vector<16x16x128xbf16>
    %c2_87 = arith.constant 2 : index
    %c1_88 = arith.constant 1 : index
    %c0_89 = arith.constant 0 : index
    %44 = vector.load %arg10[%c2_87, %c1_88, %c0_89] : memref<18x18x128xbf16, #tpu.memory_space<vmem>>, vector<16x16x128xbf16>
    %c2_90 = arith.constant 2 : index
    %c2_91 = arith.constant 2 : index
    %c0_92 = arith.constant 0 : index
    %45 = vector.load %arg10[%c2_90, %c2_91, %c0_92] : memref<18x18x128xbf16, #tpu.memory_space<vmem>>, vector<16x16x128xbf16>
    %46 = tpu.concatenate %37, %38, %39, %40, %41, %42, %43, %44, %45 in 2 : vector<16x16x128xbf16>, vector<16x16x128xbf16>, vector<16x16x128xbf16>, vector<16x16x128xbf16>, vector<16x16x128xbf16>, vector<16x16x128xbf16>, vector<16x16x128xbf16>, vector<16x16x128xbf16>, vector<16x16x128xbf16> -> vector<16x16x1152xbf16>
    %47 = vector.shape_cast %46 : vector<16x16x1152xbf16> to vector<256x1152xbf16>
    %c0_93 = arith.constant 0 : index
    %c0_94 = arith.constant 0 : index
    %48 = vector.load %arg5[%c0_93, %c0_94] : memref<1152x128xbf16, #tpu.memory_space<vmem>>, vector<1152x128xbf16>
    %cst_95 = arith.constant dense<0.000000e+00> : vector<256x128xf32>
    %49 = tpu.matmul %47, %48, %cst_95 {dimension_numbers = #tpu.dot_dimension_numbers<[1], [0], [0], [1], [0, 0, 1, 1], [], []>} : vector<256x1152xbf16>, vector<1152x128xbf16>, vector<256x128xf32> -> vector<256x128xf32>
    %c0_96 = arith.constant 0 : index
    %c0_97 = arith.constant 0 : index
    %50 = vector.load %arg6[%c0_96, %c0_97] : memref<1x128xf32, #tpu.memory_space<vmem>>, vector<1x128xf32>
    %51 = vector.broadcast %50 : vector<1x128xf32> to vector<256x128xf32>
    %52 = arith.mulf %49, %51 : vector<256x128xf32>
    %c0_98 = arith.constant 0 : index
    %c0_99 = arith.constant 0 : index
    %53 = vector.load %arg7[%c0_98, %c0_99] : memref<1x128xf32, #tpu.memory_space<vmem>>, vector<1x128xf32>
    %54 = vector.broadcast %53 : vector<1x128xf32> to vector<256x128xf32>
    %55 = arith.addf %52, %54 : vector<256x128xf32>
    %56 = vector.shape_cast %55 : vector<256x128xf32> to vector<16x16x128xf32>
    %57 = arith.extf %11 : vector<16x16x128xbf16> to vector<16x16x128xf32>
    %58 = arith.addf %56, %57 : vector<16x16x128xf32>
    %cst_100 = arith.constant 0.000000e+00 : f32
    %59 = vector.broadcast %cst_100 : f32 to vector<16x16x128xf32>
    %60 = arith.maximumf %58, %59 : vector<16x16x128xf32>
    %c0_101 = arith.constant 0 : index
    %c0_102 = arith.constant 0 : index
    %c0_103 = arith.constant 0 : index
    %c0_104 = arith.constant 0 : index
    %61 = vector.load %arg8[%c0_101, %c0_102, %c0_103, %c0_104] : memref<1x16x16x128xf32, #tpu.memory_space<vmem>>, vector<1x16x16x128xf32>
    %62 = vector.shape_cast %61 : vector<1x16x16x128xf32> to vector<16x16x128xf32>
    %63 = vector.shape_cast %60 : vector<16x16x128xf32> to vector<1x16x16x128xf32>
    tpu.vector_store %arg8[%c0_101, %c0_102, %c0_103, %c0_104], %63 {strides = array<i32>} : memref<1x16x16x128xf32, #tpu.memory_space<vmem>>, vector<1x16x16x128xf32>,
    return
  }
  func.func @transform_0(%arg0: i32) -> (i32, i32, i32, i32) {
    %c0_i32 = arith.constant 0 : i32
    %c0_i32_0 = arith.constant 0 : i32
    %c0_i32_1 = arith.constant 0 : i32
    %c0_i32_2 = arith.constant 0 : i32
    return %arg0, %c0_i32, %c0_i32_0, %c0_i32_1 : i32, i32, i32, i32
  }
  func.func @transform_1(%arg0: i32) -> (i32, i32) {
    %c0_i32 = arith.constant 0 : i32
    %c0_i32_0 = arith.constant 0 : i32
    %c0_i32_1 = arith.constant 0 : i32
    return %c0_i32, %c0_i32_0 : i32, i32
  }
  func.func @transform_2(%arg0: i32) -> (i32, i32) {
    %c0_i32 = arith.constant 0 : i32
    %c0_i32_0 = arith.constant 0 : i32
    %c0_i32_1 = arith.constant 0 : i32
    return %c0_i32, %c0_i32_0 : i32, i32
  }
  func.func @transform_3(%arg0: i32) -> (i32, i32) {
    %c0_i32 = arith.constant 0 : i32
    %c0_i32_0 = arith.constant 0 : i32
    %c0_i32_1 = arith.constant 0 : i32
    return %c0_i32, %c0_i32_0 : i32, i32
  }
  func.func @transform_4(%arg0: i32) -> (i32, i32) {
    %c0_i32 = arith.constant 0 : i32
    %c0_i32_0 = arith.constant 0 : i32
    %c0_i32_1 = arith.constant 0 : i32
    return %c0_i32, %c0_i32_0 : i32, i32
  }
  func.func @transform_5(%arg0: i32) -> (i32, i32) {
    %c0_i32 = arith.constant 0 : i32
    %c0_i32_0 = arith.constant 0 : i32
    %c0_i32_1 = arith.constant 0 : i32
    return %c0_i32, %c0_i32_0 : i32, i32
  }
  func.func @transform_6(%arg0: i32) -> (i32, i32) {
    %c0_i32 = arith.constant 0 : i32
    %c0_i32_0 = arith.constant 0 : i32
    %c0_i32_1 = arith.constant 0 : i32
    return %c0_i32, %c0_i32_0 : i32, i32
  }
  func.func @transform_7(%arg0: i32) -> (i32, i32, i32, i32) {
    %c0_i32 = arith.constant 0 : i32
    %c0_i32_0 = arith.constant 0 : i32
    %c0_i32_1 = arith.constant 0 : i32
    %c0_i32_2 = arith.constant 0 : i32
    return %arg0, %c0_i32, %c0_i32_0, %c0_i32_1 : i32, i32, i32, i32
  }
}

</mosaic_0001>

<bundles_post_ra>
// kernel: tpu_custom_call.1
= control target key start
LH: loop header
LB: loop body
LE: loop exit
PB: predicated region body
PF: predicated region fallthrough
CT: control target
= control target key end

     0   :  { %12 = vsyncpa [#allocation5], 0  ;;  %s13109_s0 = inlined_call_operand.hbm [shape: bf16[2,16,16,128], index: 0, kind: input, shape index: {}]   ;;  %s13110_s1 = inlined_call_operand.hbm [shape: bf16[1152,128], index: 1, kind: input, shape index: {}]   ;;  %s13111_s2 = inlined_call_operand.vmem [shape: f32[1,128], index: 2, kind: input, shape index: {}]   ;;  %s13112_s3 = inlined_call_operand.vmem [shape: f32[1,128], index: 3, kind: input, shape index: {}]   ;;  %s13113_s4 = inlined_call_operand.hbm [shape: bf16[1152,128], index: 4, kind: input, shape index: {}]   ;;  %s13114_s5 = inlined_call_operand.vmem [shape: f32[1,128], index: 5, kind: input, shape index: {}]   ;;  %s13115_s6 = inlined_call_operand.vmem [shape: f32[1,128], index: 6, kind: input, shape index: {}]   ;;  %s13116_s7 = inlined_call_operand.hbm [shape: f32[2,16,16,128], index: 7, kind: output, shape index: {}]  }
   0x1   :  { %14 = vsyncpa [#allocation5 + $0x1], 0 }
   0x2   :  { %15 = vsyncpa [#allocation8], 0 }
   0x3   :  { %16 = vsyncpa [#allocation6], 0 }
   0x4   :  { %18 = vsyncpa [#allocation6 + $0x1], 0  ;;  %s10229_s24 = smov 0   ;;  %s10231_s25 = smov 0  }
   0x5   :  { %s10233_s26 = smov 0   ;;  %s10235_s27 = smov 0  }
   0x6 LB: > { %s10250_s28 = sadd.s32 4294967295, %s10178_s27   ;;  %s7892_s29 = sadd.s32 4294967294, %s10178_s27   ;;  %s10178_s27 = sphi %s10235_s27, %s13301_s27   ;;  %s10174_s26 = sphi %s10233_s26, %s13300_s26   ;;  %s10170_s25 = sphi %s10231_s25, %s13299_s25   ;;  %s10166_s24 = sphi %s10229_s24, %s13298_s24  }
   0x7   : > { %p44_p0 = scmp.ne.s32.totalorder %s10170_s25, %s10166_s24  ;;  %p13117_p1 = scmp.eq.s32.totalorder %s10250_s28, 0 }
   0x8   : > { %p200_p3 = scmp.eq.s32.totalorder %s7892_s29, 1  ;;  %p7893_p5 = scmp.ge.s32.totalorder %s10178_s27, 1 }
   0x9   : > { %p10259_p4 = por %p13117_p1, %p44_p0  ;;  %p207_p7 = scmp.lt.s32.totalorder %s10178_s27, 3 }
   0xa   : > { %p10264_p6 = por %p200_p3, %p44_p0  ;;  %s10180_s10 = smov [#allocation7]  }
   0xb   : > { %s13158_s30 = scalar_select %p10259_p4, 1, 0 }
   0xc   : > { %s13159_s8 = scalar_select %p10264_p6, 1, 0 }
   0xd   : > { %p10269_p8 = pnand %p7893_p5, %p207_p7  ;;  %s219_s11 = sshll.u32 %s10180_s10, 4  ;;  %s10273_s11 = int_to_ptr.vmem [resolvable:$true] %s219_s11 }
   0xe   : > { %s10181_s13 = smov [#allocation9]   ;;  %s10022_s17 = scalar_lea.hbm %s13110_s1, 9216 }
   0xf   : > { %p9464_p9 = pneg %p10269_p8  ;;  %s238_s14 = sshll.u32 %s10181_s13, 4  ;;  %s10284_s14 = int_to_ptr.vmem [resolvable:$true] %s238_s14 }
  0x10   : > { %p10023_p12 = scmp.ne.s32.totalorder %s13110_s1, %s10022_s17  ;;  %p10029_p5 = scmp.lt.u32.totalorder %s10022_s17, %s13110_s1 }
  0x11   : > { %p10280_p11 = pnand %p9464_p9, %p13117_p1 }
  0x13   : > { %p10024_p13 = pneg %p10280_p11 }
  0x15   : > { %p10025_p0 = pnand %p10024_p13, %p10023_p12 }
  0x17   : > { %p10026_p3 = pneg %p10025_p0 }
  0x19   : > { %p10031_p7 = pnand %p10029_p5, %p10026_p3 }
  0x1b   : > { %10034 = shalt.err (!%p10031_p7)
}
  0x1c   : > { %s10035_s22 = scalar_lea.vmem %s10273_s11, 9216  ;;  %p10043_p2 = scmp.lt.s32.totalorder %s10273_s11, %s10273_s11 }
  0x1d   : > { %p10036_p9 = scmp.ne.s32.totalorder %s10273_s11, %s10035_s22  ;;  %p10044_p12 = scmp.lt.s32.totalorder %s10035_s22, %s10035_s22 }
  0x1f   : > { %p10038_p10 = pnand %p10036_p9, %p10024_p13  ;;  %p10045_p0 = por %p10044_p12, %p10043_p2 }
  0x21   : > { %p10039_p1 = pneg %p10038_p10 }
  0x23   : > { %p10046_p6 = pnand %p10045_p0, %p10039_p1 }
  0x25   : > { %10049 = shalt.err (!%p10046_p6)
}
  0x26   : > { %s13118_s23 = smov 64   ;;  %s10183_s29 = smov 4  }
  0x27   : > { %9467 = dma.hbm_to_vmem [thread:$0]  (!%p10280_p11), %s13110_s1, 9216, %s10273_s11, [#allocation8], %s13118_s23, %s13118_s23, %s10183_s29  }
  0x28   : > { %s10050_s17 = scalar_lea.hbm %s13113_s4, 9216 }
  0x29   : > { %p10051_p1 = scmp.ne.s32.totalorder %s13113_s4, %s10050_s17  ;;  %p10057_p10 = scmp.lt.u32.totalorder %s10050_s17, %s13113_s4 }
  0x2b   : > { %p10053_p2 = pnand %p10051_p1, %p10024_p13 }
  0x2d   : > { %p10054_p6 = pneg %p10053_p2 }
  0x2f   : > { %p10059_p3 = pnand %p10057_p10, %p10054_p6 }
  0x31   : > { %10062 = shalt.err (!%p10059_p3)
}
  0x32   : > { %s10063_s11 = scalar_lea.vmem %s10284_s14, 9216  ;;  %p10071_p12 = scmp.lt.s32.totalorder %s10284_s14, %s10284_s14 }
  0x33   : > { %p10064_p5 = scmp.ne.s32.totalorder %s10284_s14, %s10063_s11  ;;  %p10072_p0 = scmp.lt.s32.totalorder %s10063_s11, %s10063_s11 }
  0x35   : > { %p10066_p7 = pnand %p10064_p5, %p10024_p13  ;;  %p10073_p1 = por %p10072_p0, %p10071_p12 }
  0x37   : > { %p10067_p9 = pneg %p10066_p7 }
  0x39   : > { %p10074_p2 = pnand %p10073_p1, %p10067_p9 }
  0x3b   : > { %10077 = shalt.err (!%p10074_p2)
}
  0x3c   : > { %9470 = dma.hbm_to_vmem [thread:$0]  (!%p10280_p11), %s13113_s4, 9216, %s10284_s14, [#allocation8], %s13118_s23, %s13118_s23, %s10183_s29  }
  0x3d   : > { %s10345_s12 = sadd.s32 1, %s10178_s27   ;;  %s31_s13 = sadd.s32 1, %s10174_s26 }
  0x3e   : > { %s28_s15 = ssub.s32 %s10178_s27, %s10345_s12  ;;  %p38_p13 = scmp.ne.s32.totalorder %s10174_s26, %s10170_s25 }
  0x3f   : > { %p29_p6 = scmp.eq.s32.totalorder %s28_s15, 0  ;;  %p39_p10 = scmp.eq.s32.totalorder %s10178_s27, 0 }
  0x40   : > { %p13162_p3 = scmp.eq.s32.totalorder %s10250_s28, 1  ;;  %p9481_p7 = scmp.lt.s32.totalorder %s10178_s27, 2 }
  0x41   : > { %s10361_s17 = scalar_select %p29_p6, %s10174_s26, %s31_s13  }
  0x42   : > { %p10355_p5 = por %p13162_p3, %p38_p13  ;;  %p40_p9 = por %p39_p10, %p38_p13 }
  0x43   : > { %s258_s18 = sand.u32 1, %s10174_s26   ;;  %s8378_s14 = sshll.u32 %s10178_s27, 11 }
  0x44   : > { %s13163_s16 = scalar_select %p10355_p5, 1, 0 }
  0x45   : > { %s7897_s19 = sshll.u32 %s258_s18, 7  ;;  %s10368_s11 = scalar_lea.hbm %s13109_s0, %s8378_s14 }
  0x46   : > { %s262_s22 = scalar_lea.vmem [#allocation4], %s7897_s19  ;;  %p10372_p11 = pnand %p9481_p7, %p40_p9 }
  0x47   : > { %s269_s10 = sshll.u32 %s262_s22, 4  ;;  %s10376_s15 = scalar_lea.sflag [#allocation5], %s258_s18  ;;  %s10370_s10 = int_to_ptr.vmem [resolvable:$true] %s269_s10 }
  0x48   : > { %s10078_s23 = scalar_lea.hbm %s10368_s11, 2048  ;;  %p10080_p0 = pneg %p10372_p11 }
  0x49   : > { %p10079_p12 = scmp.ne.s32.totalorder %s10368_s11, %s10078_s23  ;;  %s10083_s20 = scalar_lea.hbm %s13109_s0, 4096 }
  0x4a   : > { %p10084_p13 = scmp.lt.u32.totalorder %s10368_s11, %s13109_s0  ;;  %p10085_p6 = scmp.lt.u32.totalorder %s10083_s20, %s10078_s23 }
  0x4b   : > { %p10081_p1 = pnand %p10080_p0, %p10079_p12  ;;  %p10087_p3 = scmp.lt.u32.totalorder %s10078_s23, %s10368_s11 }
  0x4c   : > { %p10086_p10 = por %p10085_p6, %p10084_p13 }
  0x4d   : > { %p10082_p2 = pneg %p10081_p1 }
  0x4e   : > { %p10088_p7 = por %p10087_p3, %p10086_p10 }
  0x50   : > { %p10089_p9 = pnand %p10088_p7, %p10082_p2 }
  0x52   : > { %10092 = shalt.err (!%p10089_p9)
}
  0x53   : > { %s10093_s18 = scalar_lea.vmem %s10370_s10, 2048  ;;  %s10184_s19 = smov [#allocation4]  }
  0x54   : > { %p10094_p12 = scmp.ne.s32.totalorder %s10370_s10, %s10093_s18  ;;  %s10098_s14 = sshll.u32 %s10184_s19, 4  ;;  %s10099_s14 = int_to_ptr.vmem [resolvable:$false] %s10098_s14 }
  0x55   : > { %s10100_s21 = scalar_lea.vmem %s10099_s14, 4096  ;;  %p10101_p4 = scmp.lt.s32.totalorder %s10370_s10, %s10099_s14 }
  0x56   : > { %p10096_p1 = pnand %p10094_p12, %p10080_p0  ;;  %p10102_p13 = scmp.lt.s32.totalorder %s10100_s21, %s10093_s18 }
  0x58   : > { %p10097_p5 = pneg %p10096_p1  ;;  %p10103_p6 = por %p10102_p13, %p10101_p4 }
  0x5a   : > { %p10104_p10 = pnand %p10103_p6, %p10097_p5 }
  0x5c   : > { %10107 = shalt.err (!%p10104_p10)
}
  0x5d   : > { %s13165_s23 = smov 64   ;;  %281 = sbr.rel (%p10269_p8) target bundleno = 1263 (0x4ef), region = 48 }
  0x5e   : > { %9474 = dma.hbm_to_vmem [thread:$0]  (!%p10372_p11), %s10368_s11, 2048, %s10370_s10, %s10376_s15, %s13165_s23, %s13165_s23, %s10183_s29  }
  0x64   : > { %s10410_s20 = sand.u32 1, %s10170_s25   ;;  %p13166_p4 = scmp.ne.s32.totalorder %s13158_s30, 0 }
  0x65   : > { %s7901_s22 = sshll.u32 %s10410_s20, 7  ;;  %s284_s18 = scalar_lea.sflag [#allocation5], %s10410_s20 }
  0x66   : > { %s10414_s19 = scalar_lea.vmem [#allocation4], %s7901_s22 }
  0x67   : > { %10153 = dma.done.wait (%p13166_p4), %s284_s18, 2048  }
  0x68   : > { %10155 = vsyncadd (%p13166_p4), %s284_s18, 4294965248  ;;  %p13167_p5 = scmp.eq.s32.totalorder %s10250_s28, 0 }
  0x6a   : > { %10157 = dma.done.wait (%p13167_p5), [#allocation8], 18432   ;;  %p13168_p8 = pmov %p13167_p5 }
  0x6b   : > { %v10185_v0 = vmov 0   ;;  %v9524_v1 = vld [vmem:[#allocation7 + $0x40] sm:$0xff]   ;;  %v9528_v5 = vld [vmem:[#allocation7 + $0x48] sm:$0xff]   ;;  %v9532_v9 = vld [vmem:[#allocation7 + $0x50] sm:$0xff]   ;;  %vm336_vm0 = vsmask.f32 256 }
  0x6c   : > { %10159 = vsyncadd (%p13168_p8), [#allocation8], 4294948864  ;;  %327 = vst [vmem:[#allocation2] sm:$0xf] %v10185_v0  ;;  %v9525_v2 = vld [vmem:[#allocation7 + $0xc0] sm:$0xff]   ;;  %8412 = vmatprep.subr.bf16.mxu0 %v9524_v1  ;;  %v9529_v6 = vld [vmem:[#allocation7 + $0xc8] sm:$0xff]  }
  0x6d   : > { %328 = vst [vmem:[#allocation2 + $0x4] sm:$0xf] %v10185_v0  ;;  %329 = vst [vmem:[#allocation2 + $0x8] sm:$0x1] %v10185_v0  ;;  %v9526_v3 = vld [vmem:[#allocation7] sm:$0xff]   ;;  %8524 = vmatprep.subr.bf16.mxu1 %v9525_v2  ;;  %v9530_v7 = vld [vmem:[#allocation7 + $0x8] sm:$0xff]  }
  0x6e   : > { %331 = vst [vmem:[#allocation2 + $0xcc] sm:$0xf] %v10185_v0  ;;  %332 = vst [vmem:[#allocation2 + $0xd0] sm:$0xf] %v10185_v0  ;;  %v9527_v4 = vld [vmem:[#allocation7 + $0x80] sm:$0xff]   ;;  %8413 = vmatpush3.bf16.msra.mxu0 %v9526_v3  ;;  %v9531_v8 = vld [vmem:[#allocation7 + $0x88] sm:$0xff]  }
  0x6f   : > { %333 = vst [vmem:[#allocation2 + $0xd4] sm:$0x1] %v10185_v0  ;;  %436 = vst [vmem:[#allocation3] sm:$0xf] %v10185_v0  ;;  %8525 = vmatpush3.bf16.msra.mxu1 %v9527_v4  ;;  %8414 = vmatprep.subr.bf16.mxu0 %v9528_v5  ;;  %v9533_v10 = vld [vmem:[#allocation7 + $0xd0] sm:$0xff]   ;;  %v9536_v13 = vld [vmem:[#allocation7 + $0x58] sm:$0xff]  }
  0x70   : > { %437 = vst [vmem:[#allocation3 + $0x4] sm:$0xf] %v10185_v0  ;;  %438 = vst [vmem:[#allocation3 + $0x8] sm:$0x1] %v10185_v0  ;;  %8526 = vmatprep.subr.bf16.mxu1 %v9529_v6  ;;  %v9534_v11 = vld [vmem:[#allocation7 + $0x10] sm:$0xff]   ;;  %v9537_v14 = vld [vmem:[#allocation7 + $0xd8] sm:$0xff]  }
  0x71   : > { %440 = vst [vmem:[#allocation3 + $0xcc] sm:$0xf] %v10185_v0  ;;  %441 = vst [vmem:[#allocation3 + $0xd0] sm:$0xf] %v10185_v0  ;;  %v9535_v12 = vld [vmem:[#allocation7 + $0x90] sm:$0xff]   ;;  %v9538_v15 = vld [vmem:[#allocation7 + $0x18] sm:$0xff]  }
  0x72   : > { %442 = vst [vmem:[#allocation3 + $0xd4] sm:$0x1] %v10185_v0  ;;  %8415 = vmatpush3.bf16.msra.mxu0 %v9530_v7  ;;  %v9539_v16 = vld [vmem:[#allocation7 + $0x98] sm:$0xff]   ;;  %v9540_v17 = vld [vmem:[#allocation7 + $0x60] sm:$0xff]   ;;  %v9544_v21 = vld [vmem:[#allocation7 + $0x68] sm:$0xff]   ;;  %vm335_vm1 = vcmask 1040384  }
  0x73   : > { %8527 = vmatpush3.bf16.msra.mxu1 %v9531_v8  ;;  %8416 = vmatprep.subr.bf16.mxu0 %v9532_v9  ;;  %v9541_v18 = vld [vmem:[#allocation7 + $0xe0] sm:$0xff]   ;;  %v9545_v22 = vld [vmem:[#allocation7 + $0xe8] sm:$0xff]   ;;  %vm10426_vm2 = vmand %vm335_vm1, %vm336_vm0  ;;  %v13169_v25 = vmov 0  ;;  %vm386_vm3 = vsmask.f32 7938  ;;  %v13172_v54 = vmov 0 }
  0x74   : > { %8528 = vmatprep.subr.bf16.mxu1 %v9533_v10  ;;  %v9542_v19 = vld [vmem:[#allocation7 + $0x20] sm:$0xff]   ;;  %v9546_v23 = vld [vmem:[#allocation7 + $0x28] sm:$0xff]   ;;  %v13170_v25 = vsel %vm10426_vm2, 4294967295, %v13169_v25  ;;  %v9548_v26 = vld [vmem:[#allocation7 + $0x70] sm:$0xff]   ;;  %vm572_vm4 = vsmask.f32 4368 }
  0x75   : > { %v9543_v20 = vld [vmem:[#allocation7 + $0xa0] sm:$0xff]   ;;  %v9547_v24 = vld [vmem:[#allocation7 + $0xa8] sm:$0xff]   ;;  %13171 = vst [vmem:[#allocation14_spill] sm:$0xff] %v13170_v25  ;;  %v9549_v27 = vld [vmem:[#allocation7 + $0xf0] sm:$0xff]   ;;  %vm1345_vm5 = vsmask.f32 7424 }
  0x76   : > { %8417 = vmatpush3.bf16.msra.mxu0 %v9534_v11  ;;  %v9550_v28 = vld [vmem:[#allocation7 + $0x30] sm:$0xff]   ;;  %v9552_v30 = vld [vmem:[#allocation7 + $0x78] sm:$0xff]   ;;  %v9561_v39 = vld [vmem:[#allocation7 + $0x140] sm:$0xff]   ;;  %vm894_vm7 = vcmask 1043456   ;;  %v13175_v59 = vmov 0  ;;  %v13178_v2 = vmov 0 }
  0x77   : > { %8529 = vmatpush3.bf16.msra.mxu1 %v9535_v12  ;;  %8418 = vmatprep.subr.bf16.mxu0 %v9536_v13  ;;  %v9551_v29 = vld [vmem:[#allocation7 + $0xb0] sm:$0xff]   ;;  %v9553_v31 = vld [vmem:[#allocation7 + $0xf8] sm:$0xff]   ;;  %v540_v41 = vld [vmem:[%s10414_s19] sm:$0xf]  ;;  %vm1602_vm10 = vcmask 1046528   ;;  %s7904_s30 = sshll.u32 %s10410_s20, 8 }
  0x78   : > { %8530 = vmatprep.subr.bf16.mxu1 %v9537_v14  ;;  %v9554_v32 = vld [vmem:[#allocation7 + $0x38] sm:$0xff]   ;;  %v1008_v34 = vld [vmem:[#allocation2] sm:$0xf]  ;;  %v1009_v35 = vld [vmem:[#allocation2 + $0x4] sm:$0xf]  ;;  %v575_v46 = vshrl.u32 %v540_v41, 16 }
  0x79   : > { %v9555_v33 = vld [vmem:[#allocation7 + $0xb8] sm:$0xff]   ;;  %v7905_v36 = vcombine.low %v1008_v34, %v1009_v35  ;;  %v541_v42 = vld [vmem:[%s10414_s19 + $0x4] sm:$0xf]  ;;  %v1056_v47 = vld [vmem:[#allocation2] sm:$0xe]  ;;  %v578_v48 = vshll.u32 %v540_v41, 16 }
  0x7a   : > { %8419 = vmatpush3.bf16.msra.mxu0 %v9538_v15  ;;  %v10430_v37 = vld [vmem:[#allocation2 + $0x8] ss:$0 sps:$4 sm:$0x11]   ;;  %v338_v38 = vld [vmem:[#allocation2 + $0xc] sm:$0x1]  ;;  %v583_v49 = vshrl.u32 %v541_v42, 16  ;;  %v7937_v51 = vcombine.low %v1056_v47, %v1009_v35  ;;  %vm10439_vm6 = vmand %vm335_vm1, %vm386_vm3 }
  0x7b   : > { %8531 = vmatpush3.bf16.msra.mxu1 %v9539_v16  ;;  %8420 = vmatprep.subr.bf16.mxu0 %v9540_v17  ;;  %v339_v40 = vsel %vm10426_vm2, 0, %v338_v38  ;;  %v1347_v43 = vshrl.u32 %v7905_v36, 16  ;;  %v1349_v44 = vshll.u32 %v7905_v36, 16  ;;  %v1354_v45 = vshll.u32 %v10430_v37, 16  ;;  %v9562_v57 = vld [vmem:[#allocation7 + $0x100] sm:$0xff]   ;;  %vm10447_vm8 = vmor %vm336_vm0, %vm572_vm4  ;;  %v9573_v12 = vld [vmem:[#allocation7 + $0x148] sm:$0xff]  }
  0x7c   : > { %8532 = vmatprep.subr.bf16.mxu1 %v9541_v18  ;;  %340 = vst [vmem:[#allocation2 + $0xc] sm:$0x1] %v339_v40  ;;  %v586_v50 = vshll.u32 %v541_v42, 16  ;;  %v13173_v54 = vsel %vm10439_vm6, 4294967295, %v13172_v54  ;;  %v577_v55 = vrot.slane %v575_v46, 7  ;;  %v10443_v56 = vrot.slane %v583_v49, 7  ;;  %vm10454_vm9 = vmand %vm894_vm7, %vm386_vm3 }
  0x7d   : > { %v1351_v52 = vrot.slane %v1349_v44, 1  ;;  %v1356_v53 = vrot.slane %v1354_v45, 1  ;;  %13174 = vst [vmem:[#allocation15_spill] sm:$0xff] %v13173_v54  ;;  %v13176_v59 = vsel %vm10447_vm8, 4294967295, %v13175_v59  ;;  %v1604_v62 = vrot.slane %v10430_v37, 1  ;;  %v9574_v18 = vld [vmem:[#allocation7 + $0x108] sm:$0xff]  }
  0x7e   : > { %8421 = vmatpush3.bf16.msra.mxu0 %v9542_v19  ;;  %13177 = vst [vmem:[#allocation16_spill] sm:$0xff] %v13176_v59  ;;  %v580_v60 = vor.u32 %v578_v48, %v577_v55  ;;  %v581_v61 = vrot.slane %v577_v55, 4  ;;  %v388_v63 = vld [vmem:[#allocation2 + $0x14] sm:$0x1]  ;;  %v341_v0 = vld [vmem:[#allocation2 + $0x18] sm:$0x1]  ;;  %v588_v1 = vor.u32 %v586_v50, %v10443_v56 }
  0x7f   : > { %8533 = vmatpush3.bf16.msra.mxu1 %v9543_v20  ;;  %8422 = vmatprep.subr.bf16.mxu0 %v9544_v21  ;;  %v1352_v58 = vor.u32 %v1351_v52, %v1347_v43  ;;  %v13179_v2 = vsel %vm10454_vm9, 4294967295, %v13178_v2  ;;  %v10458_v3 = vrot.slane %v7937_v51, 1  ;;  %v389_v4 = vsel %vm10439_vm6, 0, %v388_v63  ;;  %v542_v5 = vld [vmem:[%s10414_s19 + $0x8] sm:$0xf]  ;;  %v9586_v38 = vld [vmem:[#allocation7 + $0x110] sm:$0xff]  }
  0x80   : > { %8534 = vmatprep.subr.bf16.mxu1 %v9545_v22  ;;  %13180 = vst [vmem:[#allocation17_spill] sm:$0xff] %v13179_v2  ;;  %v543_v6 = vld [vmem:[%s10414_s19 + $0xc] sm:$0xf]  ;;  %390 = vst [vmem:[#allocation2 + $0x14] sm:$0x1] %v389_v4  ;;  %v342_v8 = vsel %vm10426_vm2, 0, %v341_v0  ;;  %v589_v13 = vsel %vm10447_vm8, %v581_v61, %v588_v1 }
  0x81   : > { %v1357_v7 = vsel %vm1345_vm5, %v1352_v58, %v1356_v53  ;;  %v592_v9 = vshrl.u32 %v542_v5, 16  ;;  %v595_v10 = vshll.u32 %v542_v5, 16  ;;  %v391_v11 = vld [vmem:[#allocation2 + $0x20] sm:$0x1]  ;;  %343 = vst [vmem:[#allocation2 + $0x18] sm:$0x1] %v342_v8  ;;  %v1605_v4 = vsel %vm1602_vm10, %v10458_v3, %v1604_v62 }
  0x82   : > { %8423 = vmatpush3.bf16.msra.mxu0 %v9546_v23  ;;  %3203 = vmatprep.mubr.bf16.mxu0 %v1357_v7  ;;  %v600_v15 = vshrl.u32 %v543_v6, 16  ;;  %v603_v16 = vshll.u32 %v543_v6, 16  ;;  %v392_v17 = vsel %vm10439_vm6, 0, %v391_v11  ;;  %v590_v19 = vrot.slane %v10443_v56, 4  ;;  %899 = vst [vmem:[#allocation2 + $0x10] sm:$0xf] %v589_v13 }
  0x83   : > { %8535 = vmatpush3.bf16.msra.mxu1 %v9547_v24  ;;  %8424 = vmatprep.subr.bf16.mxu0 %v9548_v26  ;;  %v896_v14 = vld [vmem:[#allocation2 + $0xc] sm:$0xf]  ;;  %v594_v21 = vrot.slane %v592_v9, 7  ;;  %393 = vst [vmem:[#allocation2 + $0x20] sm:$0x1] %v392_v17  ;;  %s12914_s9 = scalar_lea.vmem [#allocation10], %s7904_s30 }
  0x84   : > { %8536 = vmatprep.subr.bf16.mxu1 %v9549_v27  ;;  %v897_v20 = vsel %vm10454_vm9, %v580_v60, %v896_v14  ;;  %v344_v22 = vld [vmem:[#allocation2 + $0x24] sm:$0x1]  ;;  %v544_v23 = vld [vmem:[%s10414_s19 + $0x10] sm:$0xf]  ;;  %v602_v24 = vrot.slane %v600_v15, 7  ;;  %v9597_v53 = vld [vmem:[#allocation7 + $0x158] sm:$0xff]  }
  0x85   : > { %898 = vst [vmem:[#allocation2 + $0xc] sm:$0xf] %v897_v20  ;;  %v345_v26 = vsel %vm10426_vm2, 0, %v344_v22  ;;  %v545_v27 = vld [vmem:[%s10414_s19 + $0x14] sm:$0xf]  ;;  %v597_v34 = vor.u32 %v595_v10, %v594_v21  ;;  %v9598_v8 = vld [vmem:[#allocation7 + $0x118] sm:$0xff]  }
  0x86   : > { %8425 = vmatpush3.bf16.msra.mxu0 %v9550_v28  ;;  %v609_v28 = vshrl.u32 %v544_v23, 16  ;;  %346 = vst [vmem:[#allocation2 + $0x24] sm:$0x1] %v345_v26  ;;  %v605_v35 = vor.u32 %v603_v16, %v602_v24  ;;  %v394_v41 = vld [vmem:[#allocation2 + $0x2c] sm:$0x1]  ;;  %s8411_s29 = sshll.u32 %s10250_s28, 12 }
  0x87   : > { %8537 = vmatpush3.bf16.msra.mxu1 %v9551_v29  ;;  %8426 = vmatprep.subr.bf16.mxu0 %v9552_v30  ;;  %v9585_v29 = vld [vmem:[#allocation7 + $0x150] sm:$0xff]   ;;  %v598_v30 = vrot.slane %v594_v21, 4  ;;  %v900_v42 = vld [vmem:[#allocation2 + $0x14] sm:$0x1]  ;;  %v395_v45 = vsel %vm10439_vm6, 0, %v394_v41  ;;  %s7800_s11 = sshll.u32 %s12914_s9, 4  ;;  %s13060_s13 = scalar_lea.hbm %s13116_s7, %s8411_s29  ;;  %s13062_s11 = int_to_ptr.vmem [resolvable:$true] %s7800_s11 }
  0x88   : > { %8538 = vmatprep.subr.bf16.mxu1 %v9553_v31  ;;  %v612_v31 = vshll.u32 %v544_v23, 16  ;;  %v347_v46 = vld [vmem:[#allocation2 + $0x30] sm:$0x1]  ;;  %v901_v47 = vsel %vm10426_vm2, %v590_v19, %v900_v42  ;;  %v903_v48 = vld [vmem:[#allocation2 + $0x18] sm:$0xf]  ;;  %s7787_s28 = scalar_lea.sflag [#allocation6], %s10410_s20 }
  0x89   : > { %v606_v43 = vsel %vm10447_vm8, %v598_v30, %v605_v35  ;;  %396 = vst [vmem:[#allocation2 + $0x2c] sm:$0x1] %v395_v45  ;;  %v348_v51 = vsel %vm10426_vm2, 0, %v347_v46  ;;  %v546_v52 = vld [vmem:[%s10414_s19 + $0x18] sm:$0xf]  ;;  %s10108_s15 = scalar_lea.vmem %s13062_s11, 4096 }
  0x8a   : > { %8427 = vmatpush3.bf16.msra.mxu0 %v9554_v32  ;;  %v617_v32 = vshrl.u32 %v545_v27, 16  ;;  %906 = vst [vmem:[#allocation2 + $0x1c] sm:$0xf] %v606_v43  ;;  %v1073_v55 = vld [vmem:[#allocation2 + $0x10] sm:$0xf]  ;;  %v626_v11 = vshrl.u32 %v546_v52, 16  ;;  %p10109_p11 = scmp.ne.s32.totalorder %s13062_s11, %s10108_s15 }
  0x8b   : > { %8539 = vmatpush3.bf16.msra.mxu1 %v9555_v33  ;;  %8636 = vmatprep.subr.bf16.mxu0 %v9561_v39  ;;  %v620_v33 = vshll.u32 %v545_v27, 16  ;;  %v607_v39 = vrot.slane %v602_v24, 4  ;;  %902 = vst [vmem:[#allocation2 + $0x14] sm:$0x1] %v901_v47  ;;  %v1011_v56 = vld [vmem:[#allocation2 + $0x10] sm:$0xf] }
  0x8c   : > { %v10478_v40 = vrot.slane %v617_v32, 7  ;;  %v907_v58 = vld [vmem:[#allocation2 + $0x20] sm:$0x1]  ;;  %349 = vst [vmem:[#allocation2 + $0x30] sm:$0x1] %v348_v51  ;;  %v629_v14 = vshll.u32 %v546_v52, 16 }
  0x8d   : > { %3204 = vmatmul.mubr.bf16.vlgmr.msra.gmra.mrb[0].mxu0 %v7905_v36  ;;  %v611_v36 = vrot.slane %v609_v28, 7  ;;  %v1072_v60 = vld [vmem:[#allocation2 + $0xc] sm:$0xf]  ;;  %v908_v63 = vsel %vm10426_vm2, %v607_v39, %v907_v58  ;;  %v910_v7 = vld [vmem:[#allocation2 + $0x24] sm:$0xf]  ;;  %p13295_p0 = scmp.ne.s32.totalorder %s13163_s16, 0 }
  0x8e   : > { %8637 = vmatpush3.bf16.msra.mxu0 %v9562_v57  ;;  %v622_v50 = vor.u32 %v620_v33, %v10478_v40  ;;  %v904_v57 = vsel %vm10454_vm9, %v597_v34, %v903_v48  ;;  %v1010_v61 = vld [vmem:[#allocation2 + $0xc] sm:$0xf]  ;;  %v10496_v1 = vcombine.low %v1072_v60, %v1073_v55  ;;  %909 = vst [vmem:[#allocation2 + $0x20] sm:$0x1] %v908_v63  ;;  %v624_v23 = vrot.slane %v10478_v40, 4  ;;  %v9621_v63 = vld [vmem:[#allocation7 + $0x168] sm:$0xff]  }
  0x8f   : > { %8638 = vmatprep.subr.bf16.mxu0 %v9573_v12  ;;  %v615_v44 = vrot.slane %v611_v36, 4  ;;  %v614_v49 = vor.u32 %v612_v31, %v611_v36  ;;  %905 = vst [vmem:[#allocation2 + $0x18] sm:$0xf] %v904_v57  ;;  %v10502_v5 = vcombine.low %v1010_v61, %v1011_v56  ;;  %v1057_v6 = vld [vmem:[#allocation2 + $0xc] sm:$0xe]  ;;  %v9609_v12 = vld [vmem:[#allocation7 + $0x160] sm:$0xff]   ;;  %p10110_p2 = pnand %p10109_p11, %p13295_p0 }
  0x90   : > { %v7938_v9 = vcombine.low %v1057_v6, %v1011_v56  ;;  %3364 = vmatprep.mubr.bf16.mxu1 %v10496_v1  ;;  %v547_v62 = vld [vmem:[%s10414_s19 + $0x1c] sm:$0xf]  ;;  %v397_v42 = vld [vmem:[#allocation2 + $0x38] sm:$0x1]  ;;  %v350_v48 = vld [vmem:[#allocation2 + $0x3c] sm:$0x1] }
  0x91   : > { %v623_v0 = vsel %vm10447_vm8, %v615_v44, %v622_v50  ;;  %v911_v10 = vsel %vm10454_vm9, %v614_v49, %v910_v7  ;;  %v1361_v37 = vshll.u32 %v10502_v5, 16  ;;  %3365 = vmatmul.mubr.bf16.vlgmr.msra.gmra.mrb[0].mxu1 %v1605_v4  ;;  %v1359_v3 = vshrl.u32 %v10502_v5, 16  ;;  %v1075_v16 = vld [vmem:[#allocation2 + $0x1c] sm:$0xf]  ;;  %v914_v47 = vld [vmem:[#allocation2 + $0x2c] sm:$0x1]  ;;  %p10111_p3 = pneg %p10110_p2 }
  0x92   : > { %8639 = vmatpush3.bf16.msra.mxu0 %v9574_v18  ;;  %913 = vst [vmem:[#allocation2 + $0x28] sm:$0xf] %v623_v0  ;;  %912 = vst [vmem:[#allocation2 + $0x24] sm:$0xf] %v911_v10  ;;  %v1606_v13 = vrot.slane %v7938_v9, 1  ;;  %v10510_v18 = vrot.slane %v626_v11, 7  ;;  %v915_v60 = vsel %vm10426_vm2, %v624_v23, %v914_v47 }
  0x93   : > { %8640 = vmatprep.subr.bf16.mxu0 %v9585_v29  ;;  %v1363_v15 = vrot.slane %v1361_v37, 1  ;;  %v1013_v17 = vld [vmem:[#allocation2 + $0x1c] sm:$0xf]  ;;  %v9564_v19 = vld [vmem:[#allocation2 + $0x14] ss:$0 sps:$4 sm:$0x11]  }
  0x94   : > { %v634_v20 = vshrl.u32 %v547_v62, 16  ;;  %v637_v24 = vshll.u32 %v547_v62, 16  ;;  %v1366_v27 = vshll.u32 %v9564_v19, 16  ;;  %v1607_v29 = vrot.slane %v9564_v19, 1  ;;  %v9610_v49 = vld [vmem:[#allocation7 + $0x120] sm:$0xff]   ;;  %v9622_v37 = vld [vmem:[#allocation7 + $0x128] sm:$0xff]  }
  0x95   : > { %v1364_v26 = vor.u32 %v1363_v15, %v1359_v3  ;;  %v9569_v32 = vld [vmem:[#allocation2 + $0x20] ss:$0 sps:$4 sm:$0x11]   ;;  %v631_v34 = vor.u32 %v629_v14, %v10510_v18  ;;  %v632_v35 = vrot.slane %v10510_v18, 4  ;;  %v10529_v56 = vld [vmem:[%s10414_s19 + $0x20] sm:$0xf] }
  0x96   : > { %8641 = vmatpush3.bf16.msra.mxu0 %v9586_v38  ;;  %v1074_v21 = vld [vmem:[#allocation2 + $0x18] sm:$0xf]  ;;  %v1368_v36 = vrot.slane %v1366_v27, 1  ;;  %v1608_v38 = vsel %vm1602_vm10, %v1606_v13, %v1607_v29  ;;  %v10521_v41 = vrot.slane %v634_v20, 7  ;;  %v1378_v45 = vshll.u32 %v9569_v32, 16  ;;  %v9633_v14 = vld [vmem:[#allocation7 + $0x170] sm:$0xff]  }
  0x97   : > { %8642 = vmatprep.subr.bf16.mxu0 %v9597_v53  ;;  %v1012_v22 = vld [vmem:[#allocation2 + $0x18] sm:$0xf]  ;;  %v10513_v28 = vcombine.low %v1074_v21, %v1075_v16  ;;  %v1610_v52 = vrot.slane %v9569_v32, 1  ;;  %v917_v61 = vld [vmem:[#allocation2 + $0x30] sm:$0xf]  ;;  %v351_v13 = vsel %vm10426_vm2, 0, %v350_v48 }
  0x98   : > { %v10515_v31 = vcombine.low %v1012_v22, %v1013_v17  ;;  %v1058_v33 = vld [vmem:[#allocation2 + $0x18] sm:$0xe]  ;;  %v1369_v50 = vsel %vm1345_vm5, %v1364_v26, %v1368_v36  ;;  %v1380_v58 = vrot.slane %v1378_v45, 1  ;;  %916 = vst [vmem:[#allocation2 + $0x2c] sm:$0x1] %v915_v60  ;;  %v639_v6 = vor.u32 %v637_v24, %v10521_v41  ;;  %v9635_v20 = vld [vmem:[#allocation7 + $0x1c0] sm:$0xff]  }
  0x99   : > { %v1077_v30 = vld [vmem:[#allocation2 + $0x28] sm:$0xf]  ;;  %3372 = vmatprep.mubr.bf16.mxu1 %v10513_v28  ;;  %v1076_v39 = vld [vmem:[#allocation2 + $0x24] sm:$0xf]  ;;  %v7939_v40 = vcombine.low %v1058_v33, %v1013_v17  ;;  %3211 = vmatprep.mubr.bf16.mxu0 %v1369_v50  ;;  %v918_v10 = vsel %vm10454_vm9, %v631_v34, %v917_v61  ;;  %v641_v3 = vrot.slane %v10521_v41, 4  ;;  %v643_v17 = vshrl.u32 %v10529_v56, 16 }
  0x9a   : > { %8643 = vmatpush3.bf16.msra.mxu0 %v9598_v8  ;;  %v1371_v43 = vshrl.u32 %v10515_v31, 16  ;;  %v1373_v44 = vshll.u32 %v10515_v31, 16  ;;  %v10525_v46 = vcombine.low %v1076_v39, %v1077_v30  ;;  %3373 = vmatmul.mubr.bf16.gmra.mrb[4].mxu1 %v1608_v38  ;;  %v1014_v53 = vld [vmem:[#allocation2 + $0x24] sm:$0xf]  ;;  %v1015_v55 = vld [vmem:[#allocation2 + $0x28] sm:$0xf]  ;;  %v640_v62 = vsel %vm10447_vm8, %v632_v35, %v639_v6 }
  0x9b   : > { %8644 = vmatprep.subr.bf16.mxu0 %v9609_v12  ;;  %v1609_v51 = vrot.slane %v7939_v40, 1  ;;  %3212 = vmatmul.mubr.bf16.gmra.mrb[4].mxu0 %v10502_v5  ;;  %v10536_v4 = vcombine.low %v1014_v53, %v1015_v55  ;;  %v1059_v7 = vld [vmem:[#allocation2 + $0x24] sm:$0xe]  ;;  %v549_v8 = vld [vmem:[%s10414_s19 + $0x24] sm:$0xf]  ;;  %v398_v12 = vsel %vm10439_vm6, 0, %v397_v42 }
  0x9c   : > { %v1375_v57 = vrot.slane %v1373_v44, 1  ;;  %3380 = vmatprep.mubr.bf16.mxu1 %v10525_v46  ;;  %v7940_v11 = vcombine.low %v1059_v7, %v1015_v55  ;;  %919 = vst [vmem:[#allocation2 + $0x30] sm:$0xf] %v918_v10  ;;  %399 = vst [vmem:[#allocation2 + $0x38] sm:$0x1] %v398_v12  ;;  %v646_v18 = vshll.u32 %v10529_v56, 16  ;;  %8748 = vmatprep.subr.bf16.mxu1 %v9635_v20 }
  0x9d   : > { %v1611_v0 = vsel %vm1602_vm10, %v1609_v51, %v1610_v52  ;;  %v1385_v5 = vshll.u32 %v10536_v4, 16  ;;  %v1383_v16 = vshrl.u32 %v10536_v4, 16  ;;  %920 = vst [vmem:[#allocation2 + $0x34] sm:$0xf] %v640_v62  ;;  %352 = vst [vmem:[#allocation2 + $0x3c] sm:$0x1] %v351_v13 }
  0x9e   : > { %v1376_v9 = vor.u32 %v1375_v57, %v1371_v43  ;;  %8645 = vmatpush3.bf16.msra.mxu0 %v9610_v49  ;;  %v400_v19 = vld [vmem:[#allocation2 + $0x44] sm:$0x1]  ;;  %v651_v22 = vshrl.u32 %v549_v8, 16  ;;  %v654_v23 = vshll.u32 %v549_v8, 16  ;;  %v353_v26 = vld [vmem:[#allocation2 + $0x48] sm:$0x1] }
  0x9f   : > { %8646 = vmatprep.subr.bf16.mxu0 %v9621_v63  ;;  %v1387_v21 = vrot.slane %v1385_v5, 1  ;;  %v401_v24 = vsel %vm10439_vm6, 0, %v400_v19  ;;  %v1612_v27 = vrot.slane %v7940_v11, 1  ;;  %v645_v29 = vrot.slane %v643_v17, 7  ;;  %v550_v32 = vld [vmem:[%s10414_s19 + $0x28] sm:$0xf] }
  0xa0   : > { %v1381_v15 = vsel %vm1345_vm5, %v1376_v9, %v1380_v58  ;;  %402 = vst [vmem:[#allocation2 + $0x44] sm:$0x1] %v401_v24  ;;  %v354_v30 = vsel %vm10426_vm2, 0, %v353_v26  ;;  %v9634_v33 = vld [vmem:[#allocation7 + $0x130] sm:$0xff]   ;;  %v653_v34 = vrot.slane %v651_v22, 7  ;;  %v660_v36 = vshrl.u32 %v550_v32, 16 }
  0xa1   : > { %3219 = vmatprep.mubr.bf16.mxu0 %v1381_v15  ;;  %355 = vst [vmem:[#allocation2 + $0x48] sm:$0x1] %v354_v30  ;;  %v10560_v35 = vld [vmem:[%s10414_s19 + $0x2c] sm:$0xf]  ;;  %v663_v38 = vshll.u32 %v550_v32, 16  ;;  %v9636_v39 = vld [vmem:[#allocation7 + $0x180] sm:$0xff]   ;;  %v1388_v43 = vor.u32 %v1387_v21, %v1383_v16  ;;  %v648_v44 = vor.u32 %v646_v18, %v645_v29 }
  0xa2   : > { %8647 = vmatpush3.bf16.msra.mxu0 %v9622_v37  ;;  %3381 = vmatmul.mubr.bf16.gmra.mrb[8].mxu1 %v1611_v0  ;;  %v9576_v40 = vld [vmem:[#allocation2 + $0x2c] ss:$0 sps:$4 sm:$0x11]   ;;  %v649_v42 = vrot.slane %v645_v29, 4  ;;  %v656_v45 = vor.u32 %v654_v23, %v653_v34  ;;  %v10563_v47 = vrot.slane %v660_v36, 7  ;;  %v9637_v48 = vld [vmem:[#allocation7 + $0x1c8] sm:$0xff]  }
  0xa3   : > { %8648 = vmatprep.subr.bf16.mxu0 %v9633_v14  ;;  %3220 = vmatmul.mubr.bf16.gmra.mrb[8].mxu0 %v10515_v31  ;;  %v1390_v49 = vshll.u32 %v9576_v40, 16  ;;  %v1078_v50 = vld [vmem:[#allocation2 + $0x30] sm:$0xf]  ;;  %v1613_v51 = vrot.slane %v9576_v40, 1  ;;  %v658_v52 = vrot.slane %v653_v34, 4  ;;  %v668_v53 = vshrl.u32 %v10560_v35, 16 }
  0xa4   : > { %8749 = vmatpush3.bf16.msra.mxu1 %v9636_v39  ;;  %v1079_v55 = vld [vmem:[#allocation2 + $0x34] sm:$0xf]  ;;  %v921_v56 = vld [vmem:[#allocation2 + $0x38] sm:$0x1]  ;;  %v1016_v57 = vld [vmem:[#allocation2 + $0x30] sm:$0xf]  ;;  %v657_v31 = vsel %vm10447_vm8, %v649_v42, %v656_v45  ;;  %v665_v8 = vor.u32 %v663_v38, %v10563_v47 }
  0xa5   : > { %v403_v58 = vld [vmem:[#allocation2 + $0x50] sm:$0x1]  ;;  %v356_v60 = vld [vmem:[#allocation2 + $0x54] sm:$0x1]  ;;  %8750 = vmatprep.subr.bf16.mxu1 %v9637_v48  ;;  %v1392_v61 = vrot.slane %v1390_v49, 1  ;;  %v10568_v63 = vcombine.low %v1078_v50, %v1079_v55  ;;  %v1614_v0 = vsel %vm1602_vm10, %v1612_v27, %v1613_v51  ;;  %v9642_v9 = vld [vmem:[#allocation7 + $0x188] sm:$0xff]   ;;  %v922_v10 = vsel %vm10426_vm2, %v641_v3, %v921_v56 }
  0xa6   : > { %8649 = vmatpush3.bf16.msra.mxu0 %v9634_v33  ;;  %v1017_v6 = vld [vmem:[#allocation2 + $0x34] sm:$0xf]  ;;  %v924_v7 = vld [vmem:[#allocation2 + $0x3c] sm:$0xf]  ;;  %927 = vst [vmem:[#allocation2 + $0x40] sm:$0xf] %v657_v31 }
  0xa7   : > { %v10576_v11 = vcombine.low %v1016_v57, %v1017_v6  ;;  %v925_v12 = vsel %vm10454_vm9, %v648_v44, %v924_v7  ;;  %v1060_v37 = vld [vmem:[#allocation2 + $0x30] sm:$0xe]  ;;  %v928_v5 = vld [vmem:[#allocation2 + $0x44] sm:$0x1]  ;;  %v1393_v13 = vsel %vm1345_vm5, %v1388_v43, %v1392_v61  ;;  %3388 = vmatprep.mubr.bf16.mxu1 %v10568_v63  ;;  %923 = vst [vmem:[#allocation2 + $0x38] sm:$0x1] %v922_v10 }
  0xa8   : > { %v9644_v62 = vld [vmem:[#allocation7 + $0x1d0] sm:$0xff]   ;;  %926 = vst [vmem:[#allocation2 + $0x3c] sm:$0xf] %v925_v12  ;;  %v7941_v14 = vcombine.low %v1060_v37, %v1017_v6  ;;  %v929_v41 = vsel %vm10426_vm2, %v658_v52, %v928_v5  ;;  %v931_v3 = vld [vmem:[#allocation2 + $0x48] sm:$0xf]  ;;  %8751 = vmatpush3.bf16.msra.mxu1 %v9642_v9  ;;  %3227 = vmatprep.mubr.bf16.mxu0 %v1393_v13  ;;  %v666_v18 = vrot.slane %v10563_v47, 4 }
  0xa9   : > { %v10585_v15 = vld [vmem:[%s10414_s19 + $0x30] sm:$0xf]  ;;  %v1397_v17 = vshll.u32 %v10576_v11, 16  ;;  %930 = vst [vmem:[#allocation2 + $0x44] sm:$0x1] %v929_v41  ;;  %v10589_v19 = vrot.slane %v668_v53, 7  ;;  %v932_v22 = vsel %vm10454_vm9, %v665_v8, %v931_v3  ;;  %8752 = vmatprep.subr.bf16.mxu1 %v9644_v62 }
  0xaa   : > { %v9645_v16 = vld [vmem:[#allocation7 + $0x190] sm:$0xff]   ;;  %3389 = vmatmul.mubr.bf16.gmra.mrb[12].mxu1 %v1614_v0  ;;  %v671_v20 = vshll.u32 %v10560_v35, 16  ;;  %v404_v23 = vsel %vm10439_vm6, 0, %v403_v58  ;;  %v357_v24 = vsel %vm10426_vm2, 0, %v356_v60  ;;  %v9646_v26 = vld [vmem:[#allocation7 + $0x1d8] sm:$0xff]   ;;  %v1395_v27 = vshrl.u32 %v10576_v11, 16 }
  0xab   : > { %v553_v21 = vld [vmem:[%s10414_s19 + $0x34] sm:$0xf]  ;;  %3228 = vmatmul.mubr.bf16.gmra.mrb[12].mxu0 %v10536_v4  ;;  %v1615_v29 = vrot.slane %v7941_v14, 1  ;;  %933 = vst [vmem:[#allocation2 + $0x48] sm:$0xf] %v932_v22  ;;  %v677_v32 = vshrl.u32 %v10585_v15, 16 }
  0xac   : > { %v673_v30 = vor.u32 %v671_v20, %v10589_v19  ;;  %405 = vst [vmem:[#allocation2 + $0x50] sm:$0x1] %v404_v23  ;;  %358 = vst [vmem:[#allocation2 + $0x54] sm:$0x1] %v357_v24  ;;  %v685_v33 = vshrl.u32 %v553_v21, 16  ;;  %v688_v34 = vshll.u32 %v553_v21, 16  ;;  %8753 = vmatpush3.bf16.msra.mxu1 %v9645_v16 }
  0xad   : > { %v9651_v35 = vld [vmem:[#allocation7 + $0x198] sm:$0xff]   ;;  %v1399_v38 = vrot.slane %v1397_v17, 1  ;;  %v1081_v39 = vld [vmem:[#allocation2 + $0x40] sm:$0xf]  ;;  %v679_v40 = vrot.slane %v677_v32, 7  ;;  %v680_v42 = vshll.u32 %v10585_v15, 16  ;;  %8754 = vmatprep.subr.bf16.mxu1 %v9646_v26 }
  0xae   : > { %v9653_v36 = vld [vmem:[#allocation7 + $0x178] sm:$0xff]   ;;  %v674_v4 = vsel %vm10447_vm8, %v666_v18, %v673_v30  ;;  %v1019_v44 = vld [vmem:[#allocation2 + $0x40] sm:$0xf]  ;;  %v10606_v45 = vrot.slane %v685_v33, 7  ;;  %v9655_v47 = vld [vmem:[#allocation7 + $0x1e0] sm:$0xff]   ;;  %v675_v52 = vrot.slane %v10589_v19, 4 }
  0xaf   : > { %v9654_v43 = vld [vmem:[#allocation7 + $0x138] sm:$0xff]   ;;  %934 = vst [vmem:[#allocation2 + $0x4c] sm:$0xf] %v674_v4  ;;  %8650 = vmatprep.subr.bf16.mxu0 %v9653_v36  ;;  %v9581_v48 = vld [vmem:[#allocation2 + $0x38] ss:$0 sps:$4 sm:$0x11]   ;;  %v1400_v55 = vor.u32 %v1399_v38, %v1395_v27  ;;  %v682_v37 = vor.u32 %v680_v42, %v679_v40 }
  0xb0   : > { %v683_v49 = vrot.slane %v679_v40, 4  ;;  %8651 = vmatpush3.bf16.msra.mxu0 %v9654_v43  ;;  %v1080_v50 = vld [vmem:[#allocation2 + $0x3c] sm:$0xf]  ;;  %v690_v53 = vor.u32 %v688_v34, %v10606_v45  ;;  %8755 = vmatpush3.bf16.msra.mxu1 %v9651_v35  ;;  %v1402_v56 = vshll.u32 %v9581_v48, 16  ;;  %v1616_v31 = vrot.slane %v9581_v48, 1  ;;  %s10186_s14 = smov [#allocation10]  }
  0xb1   : > { %v1018_v51 = vld [vmem:[#allocation2 + $0x3c] sm:$0xf]  ;;  %v10610_v57 = vcombine.low %v1080_v50, %v1081_v39  ;;  %8756 = vmatprep.subr.bf16.mxu1 %v9655_v47  ;;  %v9588_v61 = vld [vmem:[#allocation2 + $0x44] ss:$0 sps:$4 sm:$0x11]   ;;  %v692_v35 = vrot.slane %v10606_v45, 4 }
  0xb2   : > { %v1061_v58 = vld [vmem:[#allocation2 + $0x3c] sm:$0xe]  ;;  %v10612_v60 = vcombine.low %v1018_v51, %v1019_v44  ;;  %v691_v6 = vsel %vm10447_vm8, %v683_v49, %v690_v53  ;;  %v406_v7 = vld [vmem:[#allocation2 + $0x5c] sm:$0x1]  ;;  %v1404_v8 = vrot.slane %v1402_v56, 1  ;;  %v1617_v9 = vsel %vm1602_vm10, %v1615_v29, %v1616_v31  ;;  %v9656_v39 = vld [vmem:[#allocation7 + $0x1a0] sm:$0xff]  }
  0xb3   : > { %v7942_v0 = vcombine.low %v1061_v58, %v1019_v44  ;;  %3396 = vmatprep.mubr.bf16.mxu1 %v10610_v57  ;;  %v1082_v10 = vld [vmem:[#allocation2 + $0x48] sm:$0xf]  ;;  %v935_v12 = vld [vmem:[#allocation2 + $0x50] sm:$0x1]  ;;  %941 = vst [vmem:[#allocation2 + $0x58] sm:$0xf] %v691_v6 }
  0xb4   : > { %3397 = vmatmul.mubr.bf16.gmra.mrb[16].mxu1 %v1617_v9  ;;  %v1407_v5 = vshrl.u32 %v10612_v60, 16  ;;  %v1409_v62 = vshll.u32 %v10612_v60, 16  ;;  %v1414_v13 = vshll.u32 %v9588_v61, 16  ;;  %v1020_v41 = vld [vmem:[#allocation2 + $0x48] sm:$0xf]  ;;  %v1405_v3 = vsel %vm1345_vm5, %v1400_v55, %v1404_v8  ;;  %s10112_s21 = sshll.u32 %s10186_s14, 4  ;;  %s10113_s21 = int_to_ptr.vmem [resolvable:$false] %s10112_s21 }
  0xb5   : > { %v1618_v14 = vrot.slane %v7942_v0, 1  ;;  %v1619_v16 = vrot.slane %v9588_v61, 1  ;;  %v936_v17 = vsel %vm10426_vm2, %v675_v52, %v935_v12  ;;  %v407_v19 = vsel %vm10439_vm6, 0, %v406_v7  ;;  %3235 = vmatprep.mubr.bf16.mxu0 %v1405_v3  ;;  %v938_v23 = vld [vmem:[#allocation2 + $0x54] sm:$0xf]  ;;  %8757 = vmatpush3.bf16.msra.mxu1 %v9656_v39  ;;  %v9657_v7 = vld [vmem:[#allocation7 + $0x1e8] sm:$0xff]   ;;  %p10115_p7 = scmp.lt.s32.totalorder %s13062_s11, %s10113_s21 }
  0xb6   : > { %v1083_v15 = vld [vmem:[#allocation2 + $0x4c] sm:$0xf]  ;;  %v1411_v20 = vrot.slane %v1409_v62, 1  ;;  %v1416_v21 = vrot.slane %v1414_v13, 1  ;;  %937 = vst [vmem:[#allocation2 + $0x50] sm:$0x1] %v936_v17  ;;  %3236 = vmatmul.mubr.bf16.gmra.mrb[16].mxu0 %v10576_v11  ;;  %v939_v27 = vsel %vm10454_vm9, %v682_v37, %v938_v23  ;;  %8758 = vmatprep.subr.bf16.mxu1 %v9657_v7 }
  0xb7   : > { %v1021_v18 = vld [vmem:[#allocation2 + $0x4c] sm:$0xf]  ;;  %v10625_v22 = vcombine.low %v1082_v10, %v1083_v15  ;;  %v1062_v24 = vld [vmem:[#allocation2 + $0x48] sm:$0xe]  ;;  %408 = vst [vmem:[#allocation2 + $0x5c] sm:$0x1] %v407_v19  ;;  %v1620_v4 = vsel %vm1602_vm10, %v1618_v14, %v1619_v16 }
  0xb8   : > { %v10628_v26 = vcombine.low %v1020_v41, %v1021_v18  ;;  %v7943_v29 = vcombine.low %v1062_v24, %v1021_v18  ;;  %v359_v30 = vld [vmem:[#allocation2 + $0x60] sm:$0x1]  ;;  %v554_v32 = vld [vmem:[%s10414_s19 + $0x38] sm:$0xf]  ;;  %v555_v33 = vld [vmem:[%s10414_s19 + $0x3c] sm:$0xf]  ;;  %v1412_v34 = vor.u32 %v1411_v20, %v1407_v5 }
  0xb9   : > { %3404 = vmatprep.mubr.bf16.mxu1 %v10625_v22  ;;  %940 = vst [vmem:[#allocation2 + $0x54] sm:$0xf] %v939_v27  ;;  %v360_v36 = vsel %vm10426_vm2, 0, %v359_v30  ;;  %v694_v38 = vshrl.u32 %v554_v32, 16  ;;  %v409_v11 = vld [vmem:[#allocation2 + $0x68] sm:$0x1] }
  0xba   : > { %v1419_v40 = vshrl.u32 %v10628_v26, 16  ;;  %v1421_v42 = vshll.u32 %v10628_v26, 16  ;;  %361 = vst [vmem:[#allocation2 + $0x60] sm:$0x1] %v360_v36  ;;  %v697_v43 = vshll.u32 %v554_v32, 16  ;;  %v1417_v47 = vsel %vm1345_vm5, %v1412_v34, %v1416_v21  ;;  %v9662_v14 = vld [vmem:[#allocation7 + $0x1a8] sm:$0xff]  }
  0xbb   : > { %v362_v44 = vld [vmem:[#allocation2 + $0x6c] sm:$0x1]  ;;  %v1621_v45 = vrot.slane %v7943_v29, 1  ;;  %v696_v48 = vrot.slane %v694_v38, 7  ;;  %v702_v49 = vshrl.u32 %v555_v33, 16  ;;  %3243 = vmatprep.mubr.bf16.mxu0 %v1417_v47  ;;  %v705_v52 = vshll.u32 %v555_v33, 16  ;;  %8759 = vmatpush3.bf16.msra.mxu1 %v9662_v14 }
  0xbc   : > { %v1423_v50 = vrot.slane %v1421_v42, 1  ;;  %v1085_v51 = vld [vmem:[#allocation2 + $0x58] sm:$0xf]  ;;  %v410_v53 = vsel %vm10439_vm6, 0, %v409_v11  ;;  %v363_v55 = vsel %vm10426_vm2, 0, %v362_v44  ;;  %3405 = vmatmul.mubr.bf16.gmra.mrb[20].mxu1 %v1620_v4  ;;  %v9664_v32 = vld [vmem:[#allocation7 + $0x1f0] sm:$0xff]  }
  0xbd   : > { %v556_v56 = vld [vmem:[%s10414_s19 + $0x40] sm:$0xf]  ;;  %v1023_v31 = vld [vmem:[#allocation2 + $0x58] sm:$0xf]  ;;  %v700_v58 = vrot.slane %v696_v48, 4  ;;  %v704_v61 = vrot.slane %v702_v49, 7  ;;  %v699_v9 = vor.u32 %v697_v43, %v696_v48  ;;  %8760 = vmatprep.subr.bf16.mxu1 %v9664_v32 }
  0xbe   : > { %411 = vst [vmem:[#allocation2 + $0x68] sm:$0x1] %v410_v53  ;;  %364 = vst [vmem:[#allocation2 + $0x6c] sm:$0x1] %v363_v55  ;;  %v557_v0 = vld [vmem:[%s10414_s19 + $0x44] sm:$0xf]  ;;  %v1424_v12 = vor.u32 %v1423_v50, %v1419_v40  ;;  %3244 = vmatmul.mubr.bf16.gmra.mrb[20].mxu0 %v10612_v60 }
  0xbf   : > { %v711_v6 = vshrl.u32 %v556_v56, 16  ;;  %v9593_v8 = vld [vmem:[#allocation2 + $0x50] ss:$0 sps:$4 sm:$0x11]   ;;  %v714_v10 = vshll.u32 %v556_v56, 16  ;;  %v707_v5 = vor.u32 %v705_v52, %v704_v61  ;;  %v719_v13 = vshrl.u32 %v557_v0, 16 }
  0xc0   : > { %v942_v37 = vld [vmem:[#allocation2 + $0x5c] sm:$0x1]  ;;  %v1426_v41 = vshll.u32 %v9593_v8, 16  ;;  %v1084_v3 = vld [vmem:[#allocation2 + $0x54] sm:$0xf]  ;;  %v1622_v15 = vrot.slane %v9593_v8, 1 }
  0xc1   : > { %v713_v62 = vrot.slane %v711_v6, 7  ;;  %v943_v16 = vsel %vm10426_vm2, %v692_v35, %v942_v37  ;;  %v709_v17 = vrot.slane %v704_v61, 4  ;;  %v10651_v18 = vcombine.low %v1084_v3, %v1085_v51  ;;  %v1022_v19 = vld [vmem:[#allocation2 + $0x54] sm:$0xf]  ;;  %v945_v21 = vld [vmem:[#allocation2 + $0x60] sm:$0xf] }
  0xc2   : > { %944 = vst [vmem:[#allocation2 + $0x5c] sm:$0x1] %v943_v16  ;;  %v708_v20 = vsel %vm10447_vm8, %v700_v58, %v707_v5  ;;  %v1063_v23 = vld [vmem:[#allocation2 + $0x54] sm:$0xe]  ;;  %v1428_v27 = vrot.slane %v1426_v41, 1  ;;  %v1623_v60 = vsel %vm1602_vm10, %v1621_v45, %v1622_v15  ;;  %v10656_v29 = vcombine.low %v1022_v19, %v1023_v31  ;;  %v9665_v35 = vld [vmem:[#allocation7 + $0x1b0] sm:$0xff]  }
  0xc3   : > { %v716_v24 = vor.u32 %v714_v10, %v713_v62  ;;  %v946_v30 = vsel %vm10454_vm9, %v699_v9, %v945_v21  ;;  %948 = vst [vmem:[#allocation2 + $0x64] sm:$0xf] %v708_v20  ;;  %3412 = vmatprep.mubr.bf16.mxu1 %v10651_v18  ;;  %v7944_v33 = vcombine.low %v1063_v23, %v1023_v31  ;;  %v10661_v34 = vrot.slane %v719_v13, 7  ;;  %v9666_v40 = vld [vmem:[#allocation7 + $0x1f8] sm:$0xff]   ;;  %v412_v50 = vld [vmem:[#allocation2 + $0x74] sm:$0x1] }
  0xc4   : > { %947 = vst [vmem:[#allocation2 + $0x60] sm:$0xf] %v946_v30  ;;  %v1429_v36 = vsel %vm1345_vm5, %v1424_v12, %v1428_v27  ;;  %v1433_v38 = vshll.u32 %v10656_v29, 16  ;;  %v717_v39 = vrot.slane %v713_v62, 4  ;;  %v722_v4 = vshll.u32 %v557_v0, 16  ;;  %3413 = vmatmul.mubr.bf16.gmra.mrb[24].mxu1 %v1623_v60  ;;  %s10114_s23 = scalar_lea.vmem %s10113_s21, 8192 }
  0xc5   : > { %v949_v11 = vld [vmem:[#allocation2 + $0x68] sm:$0x1]  ;;  %3251 = vmatprep.mubr.bf16.mxu0 %v1429_v36  ;;  %v1431_v42 = vshrl.u32 %v10656_v29, 16  ;;  %v952_v44 = vld [vmem:[#allocation2 + $0x6c] sm:$0xf]  ;;  %v1624_v45 = vrot.slane %v7944_v33, 1  ;;  %8761 = vmatpush3.bf16.msra.mxu1 %v9665_v35  ;;  %p10116_p9 = scmp.lt.s32.totalorder %s10114_s23, %s10108_s15 }
  0xc6   : > { %v950_v43 = vsel %vm10426_vm2, %v709_v17, %v949_v11  ;;  %v1435_v47 = vrot.slane %v1433_v38, 1  ;;  %v724_v48 = vor.u32 %v722_v4, %v10661_v34  ;;  %v953_v49 = vsel %vm10454_vm9, %v716_v24, %v952_v44  ;;  %v365_v51 = vld [vmem:[#allocation2 + $0x78] sm:$0x1]  ;;  %v559_v56 = vld [vmem:[%s10414_s19 + $0x4c] sm:$0xf]  ;;  %8762 = vmatprep.subr.bf16.mxu1 %v9666_v40  ;;  %3252 = vmatmul.mubr.bf16.gmra.mrb[24].mxu0 %v10628_v26  ;;  %v9668_v17 = vld [vmem:[#allocation7 + $0x1b8] sm:$0xff]  }
  0xc7   : > { %951 = vst [vmem:[#allocation2 + $0x68] sm:$0x1] %v950_v43  ;;  %954 = vst [vmem:[#allocation2 + $0x6c] sm:$0xf] %v953_v49  ;;  %v413_v52 = vsel %vm10439_vm6, 0, %v412_v50  ;;  %v366_v53 = vsel %vm10426_vm2, 0, %v365_v51  ;;  %p10117_p12 = por %p10116_p9, %p10115_p7 }
  0xc8   : > { %v558_v55 = vld [vmem:[%s10414_s19 + $0x48] sm:$0xf]  ;;  %v725_v58 = vsel %vm10447_vm8, %v717_v39, %v724_v48  ;;  %414 = vst [vmem:[#allocation2 + $0x74] sm:$0x1] %v413_v52  ;;  %367 = vst [vmem:[#allocation2 + $0x78] sm:$0x1] %v366_v53  ;;  %v1436_v8 = vor.u32 %v1435_v47, %v1431_v42 }
  0xc9   : > { %v9600_v31 = vld [vmem:[#allocation2 + $0x5c] ss:$0 sps:$4 sm:$0x11]   ;;  %v728_v61 = vshrl.u32 %v558_v55, 16  ;;  %955 = vst [vmem:[#allocation2 + $0x70] sm:$0xf] %v725_v58  ;;  %8763 = vmatpush3.bf16.msra.mxu1 %v9668_v17  ;;  %p10118_p1 = pnand %p10117_p12, %p10111_p3 }
  0xca   : > { %v1087_v0 = vld [vmem:[#allocation2 + $0x64] sm:$0xf]  ;;  %v736_v7 = vshrl.u32 %v559_v56, 16  ;;  %v1438_v9 = vshll.u32 %v9600_v31, 16  ;;  %v1625_v12 = vrot.slane %v9600_v31, 1  ;;  %v731_v37 = vshll.u32 %v558_v55, 16 }
  0xcb   : > { %v1025_v6 = vld [vmem:[#allocation2 + $0x64] sm:$0xf]  ;;  %v1086_v10 = vld [vmem:[#allocation2 + $0x60] sm:$0xf]  ;;  %v726_v26 = vrot.slane %v10661_v34, 4  ;;  %v730_v14 = vrot.slane %v728_v61, 7 }
  0xcc   : > { %v10680_v5 = vcombine.low %v1086_v10, %v1087_v0  ;;  %v1024_v62 = vld [vmem:[#allocation2 + $0x60] sm:$0xf]  ;;  %v1440_v41 = vrot.slane %v1438_v9, 1  ;;  %v1626_v3 = vsel %vm1602_vm10, %v1624_v45, %v1625_v12  ;;  %v10687_v20 = vrot.slane %v736_v7, 7  ;;  %v10697_v45 = vld [vmem:[#allocation7 + $0x200] sm:$0xff]  }
  0xcd   : > { %v1064_v13 = vld [vmem:[#allocation2 + $0x60] sm:$0xe]  ;;  %v10684_v15 = vcombine.low %v1024_v62, %v1025_v6  ;;  %v733_v60 = vor.u32 %v731_v37, %v730_v14  ;;  %v415_v30 = vld [vmem:[#allocation2 + $0x80] sm:$0x1]  ;;  %v734_v36 = vrot.slane %v730_v14, 4  ;;  %v739_v40 = vshll.u32 %v559_v56, 16  ;;  %9356 = vmatprep.subr.bf16.mxu0 %v10697_v45 }
  0xce   : > { %v7945_v16 = vcombine.low %v1064_v13, %v1025_v6  ;;  %3420 = vmatprep.mubr.bf16.mxu1 %v10680_v5  ;;  %v9605_v19 = vld [vmem:[#allocation2 + $0x68] ss:$0 sps:$4 sm:$0x11]   ;;  %v1441_v21 = vsel %vm1345_vm5, %v1436_v8, %v1440_v41  ;;  %v1088_v27 = vld [vmem:[#allocation2 + $0x6c] sm:$0xf]  ;;  %v416_v56 = vsel %vm10439_vm6, 0, %v415_v30 }
  0xcf   : > { %3421 = vmatmul.mubr.bf16.gmra.mrb[28].mxu1 %v1626_v3  ;;  %v1443_v23 = vshrl.u32 %v10684_v15, 16  ;;  %v1445_v24 = vshll.u32 %v10684_v15, 16  ;;  %3259 = vmatprep.mubr.bf16.mxu0 %v1441_v21  ;;  %v1450_v32 = vshll.u32 %v9605_v19, 16  ;;  %v1628_v34 = vrot.slane %v9605_v19, 1  ;;  %v956_v35 = vld [vmem:[#allocation2 + $0x74] sm:$0x1] }
  0xd0   : > { %v1627_v33 = vrot.slane %v7945_v16, 1  ;;  %3260 = vmatmul.mubr.bf16.gmra.mrb[28].mxu0 %v10656_v29  ;;  %v1089_v11 = vld [vmem:[#allocation2 + $0x70] sm:$0xf]  ;;  %v957_v39 = vsel %vm10426_vm2, %v726_v26, %v956_v35  ;;  %v1026_v4 = vld [vmem:[#allocation2 + $0x6c] sm:$0xf]  ;;  %v741_v29 = vor.u32 %v739_v40, %v10687_v20  ;;  %v743_v6 = vrot.slane %v10687_v20, 4 }
  0xd1   : > { %v1447_v38 = vrot.slane %v1445_v24, 1  ;;  %v1452_v42 = vrot.slane %v1450_v32, 1  ;;  %v10695_v43 = vcombine.low %v1088_v27, %v1089_v11  ;;  %958 = vst [vmem:[#allocation2 + $0x74] sm:$0x1] %v957_v39  ;;  %v1027_v44 = vld [vmem:[#allocation2 + $0x70] sm:$0xf] }
  0xd2   : > { %v959_v47 = vld [vmem:[#allocation2 + $0x78] sm:$0xf]  ;;  %v10699_v49 = vcombine.low %v1026_v4, %v1027_v44  ;;  %v1065_v50 = vld [vmem:[#allocation2 + $0x6c] sm:$0xe]  ;;  %v368_v51 = vld [vmem:[#allocation2 + $0x84] sm:$0x1]  ;;  %v1629_v53 = vsel %vm1602_vm10, %v1627_v33, %v1628_v34  ;;  %v742_v0 = vsel %vm10447_vm8, %v734_v36, %v741_v29 }
  0xd3   : > { %v1448_v48 = vor.u32 %v1447_v38, %v1443_v23  ;;  %v560_v52 = vld [vmem:[%s10414_s19 + $0x50] sm:$0xf]  ;;  %3428 = vmatprep.mubr.bf16.mxu1 %v10695_v43  ;;  %v960_v55 = vsel %vm10454_vm9, %v733_v60, %v959_v47  ;;  %v561_v31 = vld [vmem:[%s10414_s19 + $0x54] sm:$0xf]  ;;  %417 = vst [vmem:[#allocation2 + $0x80] sm:$0x1] %v416_v56  ;;  %v7946_v8 = vcombine.low %v1065_v50, %v1027_v44 }
  0xd4   : > { %v1457_v61 = vshll.u32 %v10699_v49, 16  ;;  %961 = vst [vmem:[#allocation2 + $0x78] sm:$0xf] %v960_v55  ;;  %v1455_v7 = vshrl.u32 %v10699_v49, 16  ;;  %962 = vst [vmem:[#allocation2 + $0x7c] sm:$0xf] %v742_v0 }
  0xd5   : > { %v1453_v58 = vsel %vm1345_vm5, %v1448_v48, %v1452_v42  ;;  %v369_v9 = vsel %vm10426_vm2, 0, %v368_v51  ;;  %v745_v10 = vshrl.u32 %v560_v52, 16  ;;  %v748_v37 = vshll.u32 %v560_v52, 16  ;;  %v418_v13 = vld [vmem:[#allocation2 + $0x8c] sm:$0x1] }
  0xd6   : > { %3267 = vmatprep.mubr.bf16.mxu0 %v1453_v58  ;;  %v1459_v12 = vrot.slane %v1457_v61, 1  ;;  %370 = vst [vmem:[#allocation2 + $0x84] sm:$0x1] %v369_v9  ;;  %v753_v62 = vshrl.u32 %v561_v31, 16  ;;  %v756_v26 = vshll.u32 %v561_v31, 16  ;;  %v419_v41 = vsel %vm10439_vm6, 0, %v418_v13 }
  0xd7   : > { %3429 = vmatmul.mubr.bf16.gmra.mrb[32].mxu1 %v1629_v53  ;;  %v747_v14 = vrot.slane %v745_v10, 7  ;;  %v371_v3 = vld [vmem:[#allocation2 + $0x90] sm:$0x1]  ;;  %v562_v16 = vld [vmem:[%s10414_s19 + $0x58] sm:$0xf]  ;;  %v1630_v21 = vrot.slane %v7946_v8, 1 }
  0xd8   : > { %3268 = vmatmul.mubr.bf16.gmra.mrb[32].mxu0 %v10684_v15  ;;  %v9612_v17 = vld [vmem:[#allocation2 + $0x74] ss:$0 sps:$4 sm:$0x11]   ;;  %v755_v19 = vrot.slane %v753_v62, 7  ;;  %420 = vst [vmem:[#allocation2 + $0x8c] sm:$0x1] %v419_v41  ;;  %v1460_v20 = vor.u32 %v1459_v12, %v1455_v7 }
  0xd9   : > { %v751_v23 = vrot.slane %v747_v14, 4  ;;  %v372_v24 = vsel %vm10426_vm2, 0, %v371_v3  ;;  %v1462_v27 = vshll.u32 %v9612_v17, 16  ;;  %v1631_v60 = vrot.slane %v9612_v17, 1  ;;  %v563_v33 = vld [vmem:[%s10414_s19 + $0x5c] sm:$0xf] }
  0xda   : > { %v750_v30 = vor.u32 %v748_v37, %v747_v14  ;;  %v758_v32 = vor.u32 %v756_v26, %v755_v19  ;;  %373 = vst [vmem:[#allocation2 + $0x90] sm:$0x1] %v372_v24  ;;  %v963_v35 = vld [vmem:[#allocation2 + $0x80] sm:$0x1]  ;;  %v762_v36 = vshrl.u32 %v562_v16, 16  ;;  %v760_v40 = vrot.slane %v755_v19, 4 }
  0xdb   : > { %v1090_v34 = vld [vmem:[#allocation2 + $0x78] sm:$0xf]  ;;  %v1464_v38 = vrot.slane %v1462_v27, 1  ;;  %v1091_v15 = vld [vmem:[#allocation2 + $0x7c] sm:$0xf]  ;;  %v964_v11 = vsel %vm10426_vm2, %v743_v6, %v963_v35  ;;  %v1632_v44 = vsel %vm1602_vm10, %v1630_v21, %v1631_v60  ;;  %v765_v0 = vshll.u32 %v562_v16, 16 }
  0xdc   : > { %v1028_v39 = vld [vmem:[#allocation2 + $0x78] sm:$0xf]  ;;  %v759_v4 = vsel %vm10447_vm8, %v751_v23, %v758_v32  ;;  %v10730_v42 = vcombine.low %v1090_v34, %v1091_v15  ;;  %965 = vst [vmem:[#allocation2 + $0x80] sm:$0x1] %v964_v11  ;;  %v1029_v47 = vld [vmem:[#allocation2 + $0x7c] sm:$0xf] }
  0xdd   : > { %v966_v48 = vld [vmem:[#allocation2 + $0x84] sm:$0xf]  ;;  %969 = vst [vmem:[#allocation2 + $0x88] sm:$0xf] %v759_v4  ;;  %v1066_v29 = vld [vmem:[#allocation2 + $0x78] sm:$0xe]  ;;  %v1465_v50 = vsel %vm1345_vm5, %v1460_v20, %v1464_v38  ;;  %v10734_v51 = vcombine.low %v1028_v39, %v1029_v47 }
  0xde   : > { %v967_v52 = vsel %vm10454_vm9, %v750_v30, %v966_v48  ;;  %v421_v53 = vld [vmem:[#allocation2 + $0x98] sm:$0x1]  ;;  %v374_v55 = vld [vmem:[#allocation2 + $0x9c] sm:$0x1]  ;;  %v564_v56 = vld [vmem:[%s10414_s19 + $0x60] sm:$0xf]  ;;  %3275 = vmatprep.mubr.bf16.mxu0 %v1465_v50  ;;  %3436 = vmatprep.mubr.bf16.mxu1 %v10730_v42  ;;  %v7947_v31 = vcombine.low %v1066_v29, %v1029_v47 }
  0xdf   : > { %968 = vst [vmem:[#allocation2 + $0x84] sm:$0xf] %v967_v52  ;;  %v970_v58 = vld [vmem:[#allocation2 + $0x8c] sm:$0x1]  ;;  %v764_v61 = vrot.slane %v762_v36, 7  ;;  %v770_v6 = vshrl.u32 %v563_v33, 16  ;;  %3437 = vmatmul.mubr.bf16.gmra.mrb[36].mxu1 %v1632_v44 }
  0xe0   : > { %3276 = vmatmul.mubr.bf16.gmra.mrb[36].mxu0 %v10699_v49  ;;  %v1467_v7 = vshrl.u32 %v10734_v51, 16  ;;  %v1469_v8 = vshll.u32 %v10734_v51, 16  ;;  %v971_v9 = vsel %vm10426_vm2, %v760_v40, %v970_v58  ;;  %v565_v10 = vld [vmem:[%s10414_s19 + $0x64] sm:$0xf]  ;;  %v773_v26 = vshll.u32 %v563_v33, 16 }
  0xe1   : > { %972 = vst [vmem:[#allocation2 + $0x8c] sm:$0x1] %v971_v9  ;;  %v767_v12 = vor.u32 %v765_v0, %v764_v61  ;;  %v768_v37 = vrot.slane %v764_v61, 4  ;;  %v772_v62 = vrot.slane %v770_v6, 7  ;;  %v973_v13 = vld [vmem:[#allocation2 + $0x90] sm:$0xf] }
  0xe2   : > { %v1471_v14 = vrot.slane %v1469_v8, 1  ;;  %v422_v41 = vsel %vm10439_vm6, 0, %v421_v53  ;;  %v375_v49 = vsel %vm10426_vm2, 0, %v374_v55  ;;  %v779_v3 = vshrl.u32 %v564_v56, 16  ;;  %v10993_v59 = vld [vmem:[#allocation2 + $0x64] sm:$0xf] }
  0xe3   : > { %v1633_v16 = vrot.slane %v7947_v31, 1  ;;  %v775_v17 = vor.u32 %v773_v26, %v772_v62  ;;  %v974_v19 = vsel %vm10454_vm9, %v767_v12, %v973_v13  ;;  %423 = vst [vmem:[#allocation2 + $0x98] sm:$0x1] %v422_v41  ;;  %376 = vst [vmem:[#allocation2 + $0x9c] sm:$0x1] %v375_v49  ;;  %v782_v20 = vshll.u32 %v564_v56, 16 }
  0xe4   : > { %v9617_v21 = vld [vmem:[#allocation2 + $0x80] ss:$0 sps:$4 sm:$0x11]   ;;  %975 = vst [vmem:[#allocation2 + $0x90] sm:$0xf] %v974_v19  ;;  %v781_v23 = vrot.slane %v779_v3, 7  ;;  %v1472_v33 = vor.u32 %v1471_v14, %v1467_v7 }
  0xe5   : > { %v1093_v24 = vld [vmem:[#allocation2 + $0x88] sm:$0xf]  ;;  %v776_v60 = vsel %vm10447_vm8, %v768_v37, %v775_v17  ;;  %v787_v30 = vshrl.u32 %v565_v10, 16  ;;  %v790_v32 = vshll.u32 %v565_v10, 16  ;;  %v1474_v34 = vshll.u32 %v9617_v21, 16  ;;  %13188 = vst [vmem:[#allocation25_spill] sm:$0xff] %v10993_v59 }
  0xe6   : > { %v1031_v27 = vld [vmem:[#allocation2 + $0x88] sm:$0xf]  ;;  %v1092_v35 = vld [vmem:[#allocation2 + $0x84] sm:$0xf]  ;;  %v1634_v36 = vrot.slane %v9617_v21, 1  ;;  %v777_v38 = vrot.slane %v772_v62, 4  ;;  %v784_v52 = vor.u32 %v782_v20, %v781_v23 }
  0xe7   : > { %976 = vst [vmem:[#allocation2 + $0x94] sm:$0xf] %v776_v60  ;;  %v10754_v15 = vcombine.low %v1092_v35, %v1093_v24  ;;  %v1030_v11 = vld [vmem:[#allocation2 + $0x84] sm:$0xf]  ;;  %v785_v4 = vrot.slane %v781_v23, 4  ;;  %v10756_v40 = vrot.slane %v787_v30, 7 }
  0xe8   : > { %v1067_v39 = vld [vmem:[#allocation2 + $0x84] sm:$0xe]  ;;  %v1476_v44 = vrot.slane %v1474_v34, 1  ;;  %v1635_v47 = vsel %vm1602_vm10, %v1633_v16, %v1634_v36  ;;  %v7916_v48 = vcombine.low %v1030_v11, %v1031_v27  ;;  %v9624_v29 = vld [vmem:[#allocation2 + $0x8c] ss:$0 sps:$4 sm:$0x11]  }
  0xe9   : > { %v7948_v50 = vcombine.low %v1067_v39, %v1031_v27  ;;  %3444 = vmatprep.mubr.bf16.mxu1 %v10754_v15  ;;  %v792_v53 = vor.u32 %v790_v32, %v10756_v40  ;;  %v1486_v58 = vshll.u32 %v9624_v29, 16  ;;  %v1637_v7 = vrot.slane %v9624_v29, 1  ;;  %v424_v19 = vld [vmem:[#allocation2 + $0xa4] sm:$0x1]  ;;  %v377_v20 = vld [vmem:[#allocation2 + $0xa8] sm:$0x1] }
  0xea   : > { %v1477_v55 = vsel %vm1345_vm5, %v1472_v33, %v1476_v44  ;;  %3445 = vmatmul.mubr.bf16.gmra.mrb[40].mxu1 %v1635_v47  ;;  %v1479_v56 = vshrl.u32 %v7916_v48, 16  ;;  %v1481_v31 = vshll.u32 %v7916_v48, 16  ;;  %v977_v61 = vld [vmem:[#allocation2 + $0x98] sm:$0x1]  ;;  %v980_v62 = vld [vmem:[#allocation2 + $0x9c] sm:$0xf] }
  0xeb   : > { %3283 = vmatprep.mubr.bf16.mxu0 %v1477_v55  ;;  %v1094_v0 = vld [vmem:[#allocation2 + $0x90] sm:$0xf]  ;;  %v1636_v6 = vrot.slane %v7948_v50, 1  ;;  %v978_v8 = vsel %vm10426_vm2, %v777_v38, %v977_v61  ;;  %v793_v9 = vsel %vm10447_vm8, %v785_v4, %v792_v53  ;;  %v1488_v12 = vrot.slane %v1486_v58, 1  ;;  %v566_v27 = vld [vmem:[%s10414_s19 + $0x68] sm:$0xf] }
  0xec   : > { %3284 = vmatmul.mubr.bf16.gmra.mrb[40].mxu0 %v10734_v51  ;;  %v1483_v10 = vrot.slane %v1481_v31, 1  ;;  %979 = vst [vmem:[#allocation2 + $0x98] sm:$0x1] %v978_v8  ;;  %v1032_v37 = vld [vmem:[#allocation2 + $0x90] sm:$0xf]  ;;  %v981_v14 = vsel %vm10454_vm9, %v784_v52, %v980_v62  ;;  %v425_v30 = vsel %vm10439_vm6, 0, %v424_v19 }
  0xed   : > { %983 = vst [vmem:[#allocation2 + $0xa0] sm:$0xf] %v793_v9  ;;  %v1068_v41 = vld [vmem:[#allocation2 + $0x90] sm:$0xe]  ;;  %982 = vst [vmem:[#allocation2 + $0x9c] sm:$0xf] %v981_v14  ;;  %v1638_v51 = vsel %vm1602_vm10, %v1636_v6, %v1637_v7 }
  0xee   : > { %v1095_v26 = vld [vmem:[#allocation2 + $0x94] sm:$0xf]  ;;  %v1484_v49 = vor.u32 %v1483_v10, %v1479_v56  ;;  %v378_v32 = vsel %vm10426_vm2, 0, %v377_v20  ;;  %v567_v33 = vld [vmem:[%s10414_s19 + $0x6c] sm:$0xf]  ;;  %v796_v34 = vshrl.u32 %v566_v27, 16 }
  0xef   : > { %v1033_v13 = vld [vmem:[#allocation2 + $0x94] sm:$0xf]  ;;  %v10769_v3 = vcombine.low %v1094_v0, %v1095_v26  ;;  %426 = vst [vmem:[#allocation2 + $0xa4] sm:$0x1] %v425_v30  ;;  %379 = vst [vmem:[#allocation2 + $0xa8] sm:$0x1] %v378_v32 }
  0xf0   : > { %v7917_v16 = vcombine.low %v1032_v37, %v1033_v13  ;;  %v7949_v17 = vcombine.low %v1068_v41, %v1033_v13  ;;  %v1489_v21 = vsel %vm1345_vm5, %v1484_v49, %v1488_v12  ;;  %v799_v36 = vshll.u32 %v566_v27, 16  ;;  %v427_v13 = vld [vmem:[#allocation2 + $0xb0] sm:$0x1]  ;;  %v380_v49 = vld [vmem:[#allocation2 + $0xb4] sm:$0x1] }
  0xf1   : > { %13181 = vst [vmem:[#allocation18_spill] sm:$0xff] %v10769_v3  ;;  %3452 = vmatprep.mubr.bf16.mxu1 %v10769_v3  ;;  %3291 = vmatprep.mubr.bf16.mxu0 %v1489_v21  ;;  %v804_v38 = vshrl.u32 %v567_v33, 16  ;;  %v807_v11 = vshll.u32 %v567_v33, 16  ;;  %v798_v4 = vrot.slane %v796_v34, 7  ;;  %v794_v44 = vrot.slane %v10756_v40, 4 }
  0xf2   : > { %v1491_v23 = vshrl.u32 %v7917_v16, 16  ;;  %v1493_v24 = vshll.u32 %v7917_v16, 16  ;;  %v1639_v60 = vrot.slane %v7949_v17, 1  ;;  %3453 = vmatmul.mubr.bf16.gmra.mrb[44].mxu1 %v1638_v51  ;;  %v428_v41 = vsel %vm10439_vm6, 0, %v427_v13  ;;  %v568_v51 = vld [vmem:[%s10414_s19 + $0x70] sm:$0xf] }
  0xf3   : > { %v9629_v39 = vld [vmem:[#allocation2 + $0x98] ss:$0 sps:$4 sm:$0x11]   ;;  %v10781_v29 = vrot.slane %v804_v38, 7  ;;  %v801_v61 = vor.u32 %v799_v36, %v798_v4  ;;  %v802_v0 = vrot.slane %v798_v4, 4  ;;  %v381_v17 = vsel %vm10426_vm2, 0, %v380_v49 }
  0xf4   : > { %v1495_v35 = vrot.slane %v1493_v24, 1  ;;  %3292 = vmatmul.mubr.bf16.gmra.mrb[44].mxu0 %v7916_v48  ;;  %v1097_v47 = vld [vmem:[#allocation2 + $0xa0] sm:$0xf]  ;;  %v1498_v52 = vshll.u32 %v9629_v39, 16  ;;  %v1096_v53 = vld [vmem:[#allocation2 + $0x9c] sm:$0xf] }
  0xf5   : > { %v1640_v55 = vrot.slane %v9629_v39, 1  ;;  %v1035_v56 = vld [vmem:[#allocation2 + $0xa0] sm:$0xf]  ;;  %v10783_v31 = vcombine.low %v1096_v53, %v1097_v47  ;;  %v1034_v58 = vld [vmem:[#allocation2 + $0x9c] sm:$0xf]  ;;  %v809_v6 = vor.u32 %v807_v11, %v10781_v29  ;;  %v813_v20 = vshrl.u32 %v568_v51, 16 }
  0xf6   : > { %v1496_v50 = vor.u32 %v1495_v35, %v1491_v23  ;;  %v1500_v7 = vrot.slane %v1498_v52, 1  ;;  %v10788_v40 = vcombine.low %v1034_v58, %v1035_v56  ;;  %v984_v10 = vld [vmem:[#allocation2 + $0xa4] sm:$0x1]  ;;  %v987_v12 = vld [vmem:[#allocation2 + $0xa8] sm:$0xf]  ;;  %v816_v21 = vshll.u32 %v568_v51, 16 }
  0xf7   : > { %v1641_v48 = vsel %vm1602_vm10, %v1639_v60, %v1640_v55  ;;  %3460 = vmatprep.mubr.bf16.mxu1 %v10783_v31  ;;  %v810_v8 = vsel %vm10447_vm8, %v802_v0, %v809_v6  ;;  %v985_v37 = vsel %vm10426_vm2, %v794_v44, %v984_v10  ;;  %v988_v62 = vsel %vm10454_vm9, %v801_v61, %v987_v12  ;;  %v1069_v26 = vld [vmem:[#allocation2 + $0x9c] sm:$0xe]  ;;  %v569_v19 = vld [vmem:[%s10414_s19 + $0x74] sm:$0xf]  ;;  %v570_v49 = vld [vmem:[%s10414_s19 + $0x78] sm:$0xf] }
  0xf8   : > { %v1501_v9 = vsel %vm1345_vm5, %v1496_v50, %v1500_v7  ;;  %990 = vst [vmem:[#allocation2 + $0xac] sm:$0xf] %v810_v8  ;;  %986 = vst [vmem:[#allocation2 + $0xa4] sm:$0x1] %v985_v37  ;;  %v1505_v14 = vshll.u32 %v10788_v40, 16  ;;  %v7950_v23 = vcombine.low %v1069_v26, %v1035_v56  ;;  %v821_v24 = vshrl.u32 %v569_v19, 16 }
  0xf9   : > { %3299 = vmatprep.mubr.bf16.mxu0 %v1501_v9  ;;  %989 = vst [vmem:[#allocation2 + $0xa8] sm:$0xf] %v988_v62  ;;  %429 = vst [vmem:[#allocation2 + $0xb0] sm:$0x1] %v428_v41  ;;  %v824_v27 = vshll.u32 %v569_v19, 16  ;;  %v815_v60 = vrot.slane %v813_v20, 7 }
  0xfa   : > { %3461 = vmatmul.mubr.bf16.gmra.mrb[48].mxu1 %v1641_v48  ;;  %382 = vst [vmem:[#allocation2 + $0xb4] sm:$0x1] %v381_v17  ;;  %v1507_v30 = vrot.slane %v1505_v14, 1  ;;  %v10807_v34 = vrot.slane %v821_v24, 7  ;;  %v811_v35 = vrot.slane %v10781_v29, 4  ;;  %v1642_v11 = vrot.slane %v7950_v23, 1 }
  0xfb   : > { %v819_v36 = vrot.slane %v815_v60, 4  ;;  %v818_v39 = vor.u32 %v816_v21, %v815_v60  ;;  %v430_v37 = vld [vmem:[#allocation2 + $0xbc] sm:$0x1]  ;;  %v383_v62 = vld [vmem:[#allocation2 + $0xc0] sm:$0x1]  ;;  %v830_v19 = vshrl.u32 %v570_v49, 16 }
  0xfc   : > { %3300 = vmatmul.mubr.bf16.gmra.mrb[48].mxu0 %v7917_v16  ;;  %v1503_v16 = vshrl.u32 %v10788_v40, 16  ;;  %v826_v4 = vor.u32 %v824_v27, %v10807_v34  ;;  %v431_v14 = vsel %vm10439_vm6, 0, %v430_v37  ;;  %v384_v41 = vsel %vm10426_vm2, 0, %v383_v62  ;;  %v571_v17 = vld [vmem:[%s10414_s19 + $0x7c] sm:$0xf] }
  0xfd   : > { %432 = vst [vmem:[#allocation2 + $0xbc] sm:$0x1] %v431_v14  ;;  %385 = vst [vmem:[#allocation2 + $0xc0] sm:$0x1] %v384_v41  ;;  %v833_v20 = vshll.u32 %v570_v49, 16  ;;  %v838_v21 = vshrl.u32 %v571_v17, 16 }
  0xfe   : > { %v1508_v50 = vor.u32 %v1507_v30, %v1503_v16  ;;  %v827_v0 = vsel %vm10447_vm8, %v819_v36, %v826_v4  ;;  %v832_v23 = vrot.slane %v830_v19, 7  ;;  %v841_v24 = vshll.u32 %v571_v17, 16  ;;  %v10857_v37 = vld [vmem:[#allocation2 + $0x14] ss:$0 sps:$4 sm:$0x11]  }
  0xff   : > { %v10805_v32 = vld [vmem:[#allocation2 + $0xac] sm:$0xf]  ;;  %v9639_v38 = vld [vmem:[#allocation2 + $0xa4] ss:$0 sps:$4 sm:$0x11]   ;;  %v10834_v16 = vrot.slane %v838_v21, 7 }
 0x100   : > { %v1037_v33 = vld [vmem:[#allocation2 + $0xac] sm:$0xf]  ;;  %v1098_v44 = vld [vmem:[#allocation2 + $0xa8] sm:$0xf]  ;;  %v1510_v52 = vshll.u32 %v9639_v38, 16  ;;  %v1643_v55 = vrot.slane %v9639_v38, 1  ;;  %v835_v4 = vor.u32 %v833_v20, %v832_v23 }
 0x101   : > { %v1036_v47 = vld [vmem:[#allocation2 + $0xa8] sm:$0xf]  ;;  %v10812_v53 = vcombine.low %v1098_v44, %v10805_v32  ;;  %v991_v56 = vld [vmem:[#allocation2 + $0xb0] sm:$0x1]  ;;  %v994_v6 = vld [vmem:[#allocation2 + $0xb4] sm:$0xf] }
 0x102   : > { %v1070_v58 = vld [vmem:[#allocation2 + $0xa8] sm:$0xe]  ;;  %v992_v61 = vsel %vm10426_vm2, %v811_v35, %v991_v56  ;;  %v10816_v29 = vcombine.low %v1036_v47, %v1037_v33  ;;  %v1512_v48 = vrot.slane %v1510_v52, 1  ;;  %v1644_v8 = vsel %vm1602_vm10, %v1642_v11, %v1643_v55  ;;  %997 = vst [vmem:[#allocation2 + $0xb8] sm:$0xf] %v827_v0 }
 0x103   : > { %13182 = vst [vmem:[#allocation19_spill] sm:$0xff] %v10812_v53  ;;  %v7951_v7 = vcombine.low %v1070_v58, %v1037_v33  ;;  %3468 = vmatprep.mubr.bf16.mxu1 %v10812_v53  ;;  %993 = vst [vmem:[#allocation2 + $0xb0] sm:$0x1] %v992_v61  ;;  %v995_v9 = vsel %vm10454_vm9, %v818_v39, %v994_v6  ;;  %v828_v30 = vrot.slane %v10807_v34, 4  ;;  %v836_v47 = vrot.slane %v832_v23, 4 }
 0x104   : > { %3469 = vmatmul.mubr.bf16.gmra.mrb[52].mxu1 %v1644_v8  ;;  %v1517_v10 = vshll.u32 %v10816_v29, 16  ;;  %996 = vst [vmem:[#allocation2 + $0xb4] sm:$0xf] %v995_v9  ;;  %v1513_v12 = vsel %vm1345_vm5, %v1508_v50, %v1512_v48  ;;  %v1515_v26 = vshrl.u32 %v10816_v29, 16  ;;  %v843_v50 = vor.u32 %v841_v24, %v10834_v16  ;;  %v998_v55 = vld [vmem:[#allocation2 + $0xbc] sm:$0x1] }
 0x105   : > { %3307 = vmatprep.mubr.bf16.mxu0 %v1513_v12  ;;  %v1645_v13 = vrot.slane %v7951_v7, 1  ;;  %v1001_v56 = vld [vmem:[#allocation2 + $0xc0] sm:$0xf]  ;;  %v1120_v58 = vld [vmem:[#allocation2 + $0xc] sm:$0xe]  ;;  %v999_v61 = vsel %vm10426_vm2, %v828_v30, %v998_v55  ;;  %v1814_v9 = vshll.u32 %v10496_v1, 16 }
 0x106   : > { %3308 = vmatmul.mubr.bf16.gmra.mrb[52].mxu0 %v10788_v40  ;;  %v1519_v51 = vrot.slane %v1517_v10, 1  ;;  %v844_v0 = vsel %vm10447_vm8, %v836_v47, %v843_v50  ;;  %1000 = vst [vmem:[#allocation2 + $0xbc] sm:$0x1] %v999_v61  ;;  %v1002_v7 = vsel %vm10454_vm9, %v835_v4, %v1001_v56  ;;  %v9956_v10 = vld [vmem:[#allocation2 + $0x10] sm:$0xf]  ;;  %v1812_v14 = vshrl.u32 %v10496_v1, 16 }
 0x107   : > { %1004 = vst [vmem:[#allocation2 + $0xc4] sm:$0xf] %v844_v0  ;;  %1003 = vst [vmem:[#allocation2 + $0xc0] sm:$0xf] %v1002_v7  ;;  %v7985_v12 = vcombine.low %v1120_v58, %v9956_v10  ;;  %v1139_v20 = vld [vmem:[#allocation2 + $0x24] sm:$0xf] }
 0x108   : > { %v1520_v60 = vor.u32 %v1519_v51, %v1515_v26  ;;  %v1137_v26 = vld [vmem:[#allocation2 + $0x18] sm:$0xf]  ;;  %v9671_v49 = vld [vmem:[#allocation2 + $0x20] ss:$0 sps:$4 sm:$0x11]   ;;  %v1816_v21 = vrot.slane %v1814_v9, 1 }
 0x109   : > { %v10837_v35 = vld [vmem:[#allocation2 + $0xb8] sm:$0xf]  ;;  %v2067_v23 = vrot.slane %v7985_v12, 1  ;;  %v2283_v24 = vshll.u32 %v9671_v49, 16  ;;  %v2068_v1 = vrot.slane %v10857_v37, 1  ;;  %v1838_v7 = vshll.u32 %v10525_v46, 16 }
 0x10a   : > { %v9648_v27 = vld [vmem:[#allocation2 + $0xb0] ss:$0 sps:$4 sm:$0x11]   ;;  %v1039_v39 = vld [vmem:[#allocation2 + $0xb8] sm:$0xf]  ;;  %v1819_v9 = vshll.u32 %v10857_v37, 16 }
 0x10b   : > { %v1100_v33 = vld [vmem:[#allocation2 + $0xb4] sm:$0xf]  ;;  %v1522_v36 = vshll.u32 %v9648_v27, 16  ;;  %v1646_v38 = vrot.slane %v9648_v27, 1  ;;  %v10862_v51 = vld [vmem:[#allocation2 + $0x18] sm:$0xe] }
 0x10c   : > { %v10840_v40 = vcombine.low %v1100_v33, %v10837_v35  ;;  %v1038_v11 = vld [vmem:[#allocation2 + $0xb4] sm:$0xf]  ;;  %v1140_v27 = vld [vmem:[#allocation2 + $0x28] sm:$0xf]  ;;  %v9957_v55 = vld [vmem:[#allocation2 + $0x1c] sm:$0xf] }
 0x10d   : > { %v10842_v44 = vcombine.low %v1038_v11, %v1039_v39  ;;  %v1524_v52 = vrot.slane %v1522_v36, 1  ;;  %v1647_v34 = vsel %vm1602_vm10, %v1645_v13, %v1646_v38  ;;  %v1071_v48 = vld [vmem:[#allocation2 + $0xb4] sm:$0xe]  ;;  %v1138_v13 = vld [vmem:[#allocation2 + $0x1c] sm:$0xf]  ;;  %v10870_v11 = vcombine.low %v1139_v20, %v1140_v27 }
 0x10e   : > { %13183 = vst [vmem:[#allocation20_spill] sm:$0xff] %v10840_v40  ;;  %3476 = vmatprep.mubr.bf16.mxu1 %v10840_v40  ;;  %v7952_v62 = vcombine.low %v1071_v48, %v1039_v39  ;;  %v10860_v41 = vcombine.low %v1137_v26, %v1138_v13  ;;  %v1102_v33 = vld [vmem:[#allocation2 + $0xc0] sm:$0xf]  ;;  %v10866_v36 = vld [vmem:[#allocation2 + $0xc4] sm:$0xf]  ;;  %v7986_v56 = vcombine.low %v10862_v51, %v9957_v55  ;;  %v2285_v0 = vrot.slane %v2283_v24, 1 }
 0x10f   : > { %3477 = vmatmul.mubr.bf16.gmra.mrb[56].mxu1 %v1647_v34  ;;  %v1525_v6 = vsel %vm1345_vm5, %v1520_v60, %v1524_v52  ;;  %v1529_v8 = vshll.u32 %v10842_v44, 16  ;;  %v1527_v17 = vshrl.u32 %v10842_v44, 16  ;;  %v9659_v60 = vld [vmem:[#allocation2 + $0xbc] ss:$0 sps:$4 sm:$0x11]   ;;  %13184 = vst [vmem:[#allocation21_spill] sm:$0xff] %v10866_v36  ;;  %v10875_v50 = vcombine.low %v1102_v33, %v10866_v36 }
 0x110   : > { %3315 = vmatprep.mubr.bf16.mxu0 %v1525_v6  ;;  %v1648_v30 = vrot.slane %v7952_v62, 1  ;;  %v2276_v38 = vshrl.u32 %v10860_v41, 16  ;;  %v10872_v39 = vld [vmem:[#allocation2 + $0x24] sm:$0xe]  ;;  %v1534_v47 = vshll.u32 %v9659_v60, 16  ;;  %v1649_v52 = vrot.slane %v9659_v60, 1 }
 0x111   : > { %3316 = vmatmul.mubr.bf16.gmra.mrb[56].mxu0 %v10816_v29  ;;  %v1531_v19 = vrot.slane %v1529_v8, 1  ;;  %v2278_v29 = vshll.u32 %v10860_v41, 16  ;;  %13185 = vst [vmem:[#allocation22_spill] sm:$0xff] %v10875_v50  ;;  %v1826_v34 = vshll.u32 %v10513_v28, 16  ;;  %v10879_v58 = vld [vmem:[#allocation2 + $0x30] sm:$0xe]  ;;  %3484 = vmatprep.mubr.bf16.mxu1 %v10875_v50 }
 0x112   : > { %v9674_v6 = vld [vmem:[#allocation2 + $0x2c] ss:$0 sps:$4 sm:$0x11]   ;;  %v1536_v48 = vrot.slane %v1534_v47, 1  ;;  %v1650_v8 = vsel %vm1602_vm10, %v1648_v30, %v1649_v52  ;;  %v2288_v62 = vshrl.u32 %v10870_v11, 16  ;;  %v2290_v26 = vshll.u32 %v10870_v11, 16 }
 0x113   : > { %v1532_v4 = vor.u32 %v1531_v19, %v1527_v17  ;;  %v2280_v61 = vrot.slane %v2278_v29, 1  ;;  %v10885_v10 = vld [vmem:[#allocation2 + $0x20] ss:$0 sps:$4 sm:$0x11]   ;;  %v2295_v13 = vshll.u32 %v9674_v6, 16  ;;  %v1850_v49 = vshll.u32 %v10568_v63, 16 }
 0x114   : > { %v1862_v51 = vshll.u32 %v10610_v57, 16  ;;  %v2069_v19 = vsel %vm1602_vm10, %v2067_v23, %v2068_v1  ;;  %v1141_v20 = vld [vmem:[#allocation2 + $0x30] sm:$0xf]  ;;  %v9958_v29 = vld [vmem:[#allocation2 + $0x28] sm:$0xf]  ;;  %v2292_v27 = vrot.slane %v2290_v26, 1 }
 0x115   : > { %v2281_v12 = vor.u32 %v2280_v61, %v2276_v38  ;;  %v1537_v17 = vsel %vm1345_vm5, %v1532_v4, %v1536_v48  ;;  %v7987_v37 = vcombine.low %v10872_v39, %v9958_v29  ;;  %v2297_v60 = vrot.slane %v2295_v13, 1  ;;  %v10895_v30 = vld [vmem:[#allocation2 + $0x34] sm:$0xf]  ;;  %v10903_v1 = vld [vmem:[#allocation2 + $0x38] ss:$0 sps:$4 sm:$0x11]  }
 0x116   : > { %3323 = vmatprep.mubr.bf16.mxu0 %v1537_v17  ;;  %v9959_v33 = vld [vmem:[#allocation2 + $0x34] sm:$0xf]  ;;  %v1817_v4 = vor.u32 %v1816_v21, %v1812_v14  ;;  %v10901_v23 = vcombine.low %v1141_v20, %v10895_v30  ;;  %v1821_v55 = vrot.slane %v1819_v9, 1  ;;  %v2293_v61 = vor.u32 %v2292_v27, %v2288_v62  ;;  %v10910_v21 = vld [vmem:[#allocation2 + $0x40] sm:$0xf]  ;;  %v9676_v17 = vld [vmem:[#allocation7 + $0x208] sm:$0xff]  }
 0x117   : > { %3485 = vmatmul.mubr.bf16.gmra.mrb[60].mxu1 %v1650_v8  ;;  %v2286_v24 = vsel %vm1345_vm5, %v2281_v12, %v2285_v0  ;;  %v7988_v38 = vcombine.low %v10879_v58, %v9959_v33  ;;  %v1143_v0 = vld [vmem:[#allocation2 + $0x3c] sm:$0xf]  ;;  %v2070_v6 = vrot.slane %v7986_v56, 1  ;;  %v2307_v26 = vshll.u32 %v10903_v1, 16  ;;  %v1145_v62 = vld [vmem:[#allocation2 + $0x48] sm:$0xf] }
 0x118   : > { %3686 = vmatprep.mubr.bf16.mxu1 %v2286_v24  ;;  %v2302_v14 = vshll.u32 %v10901_v23, 16  ;;  %v1124_v48 = vld [vmem:[#allocation2 + $0x3c] sm:$0xe]  ;;  %v2298_v8 = vsel %vm1345_vm5, %v2293_v61, %v2297_v60  ;;  %v2300_v12 = vshrl.u32 %v10901_v23, 16  ;;  %v10916_v9 = vcombine.low %v1143_v0, %v10910_v21  ;;  %v10931_v58 = vld [vmem:[#allocation2 + $0x4c] sm:$0xf] }
 0x119   : > { %3324 = vmatmul.mubr.bf16.gmra.mrb[60].mxu0 %v10842_v44  ;;  %v2071_v44 = vrot.slane %v10885_v10, 1  ;;  %v1824_v56 = vshrl.u32 %v10513_v28, 16  ;;  %v1828_v13 = vrot.slane %v1826_v34, 1  ;;  %v1822_v24 = vsel %vm1345_vm5, %v1817_v4, %v1821_v55  ;;  %v9675_v60 = vld [vmem:[#allocation2 + $0x2c] ss:$0 sps:$4 sm:$0x11]  }
 0x11a   : > { %3525 = vmatprep.mubr.bf16.mxu0 %v2069_v19  ;;  %v2304_v19 = vrot.slane %v2302_v14, 1  ;;  %v1831_v27 = vshll.u32 %v10885_v10, 16  ;;  %v2073_v28 = vrot.slane %v7987_v37, 1  ;;  %v1836_v34 = vshrl.u32 %v10525_v46, 16  ;;  %v9960_v4 = vld [vmem:[#allocation2 + $0x40] sm:$0xf] }
 0x11b   : > { %v2072_v61 = vsel %vm1602_vm10, %v2070_v6, %v2071_v44  ;;  %v2309_v14 = vrot.slane %v2307_v26, 1  ;;  %v10928_v20 = vld [vmem:[#allocation2 + $0x44] ss:$0 sps:$4 sm:$0x11]   ;;  %v2314_v29 = vshll.u32 %v10916_v9, 16  ;;  %v7989_v55 = vcombine.low %v1124_v48, %v9960_v4 }
 0x11c   : > { %v2305_v0 = vor.u32 %v2304_v19, %v2300_v12  ;;  %v1829_v10 = vor.u32 %v1828_v13, %v1824_v56  ;;  %v1833_v37 = vrot.slane %v1831_v27, 1  ;;  %v1840_v6 = vrot.slane %v1838_v7, 1  ;;  %v9683_v13 = vld [vmem:[#allocation7 + $0x210] sm:$0xff]   ;;  %v9690_v27 = vld [vmem:[#allocation7 + $0x218] sm:$0xff]   ;;  %v11014_v2 = vld [vmem:[#allocation2 + $0x70] sm:$0xf] }
 0x11d   : > { %v10936_v44 = vrot.slane %v7988_v38, 1  ;;  %v2074_v48 = vrot.slane %v9675_v60, 1  ;;  %v1852_v26 = vrot.slane %v1850_v49, 1  ;;  %v2312_v56 = vshrl.u32 %v10916_v9, 16  ;;  %v1149_v47 = vld [vmem:[#allocation2 + $0x60] sm:$0xf] }
 0x11e   : > { %v2316_v19 = vrot.slane %v2314_v29, 1  ;;  %v2319_v46 = vshll.u32 %v10928_v20, 16  ;;  %v10946_v7 = vcombine.low %v1145_v62, %v10931_v58  ;;  %v9679_v38 = vld [vmem:[#allocation2 + $0x38] ss:$0 sps:$4 sm:$0x11]   ;;  %v1834_v12 = vsel %vm1345_vm5, %v1829_v10, %v1833_v37  ;;  %13191 = vst [vmem:[#allocation27_spill] sm:$0xff] %v11014_v2 }
 0x11f   : > { %3687 = vmatmul.mubr.bf16.vlgmr.msra.gmra.mrb[64].mxu1 %v10860_v41  ;;  %v1125_v41 = vld [vmem:[#allocation2 + $0x48] sm:$0xe]  ;;  %v1843_v49 = vshll.u32 %v9675_v60, 16  ;;  %v10952_v33 = vld [vmem:[#allocation2 + $0x50] ss:$0 sps:$4 sm:$0x11]  }
 0x120   : > { %3694 = vmatprep.mubr.bf16.mxu1 %v2298_v8  ;;  %v1848_v8 = vshrl.u32 %v10568_v63, 16  ;;  %v10956_v62 = vrot.slane %v7989_v55, 1  ;;  %v2317_v52 = vor.u32 %v2316_v19, %v2312_v56  ;;  %v2321_v39 = vrot.slane %v2319_v46, 1  ;;  %v10959_v10 = vld [vmem:[#allocation2 + $0x58] sm:$0xf] }
 0x121   : > { %3526 = vmatmul.mubr.bf16.vlgmr.msra.gmra.mrb[64].mxu0 %v1822_v24  ;;  %v10948_v24 = vld [vmem:[#allocation2 + $0x44] ss:$0 sps:$4 sm:$0x11]   ;;  %13186 = vst [vmem:[#allocation23_spill] sm:$0xff] %v10959_v10  ;;  %v1841_v55 = vor.u32 %v1840_v6, %v1836_v34  ;;  %v1855_v19 = vshll.u32 %v9679_v38, 16  ;;  %v2331_v34 = vshll.u32 %v10952_v33, 16 }
 0x122   : > { %9357 = vmatpush3.bf16.msra.mxu0 %v10697_v45  ;;  %3533 = vmatprep.mubr.bf16.mxu0 %v2072_v61  ;;  %v2310_v45 = vsel %vm1345_vm5, %v2305_v0, %v2309_v14  ;;  %v9961_v61 = vld [vmem:[#allocation2 + $0x4c] sm:$0xf]  ;;  %v2075_v0 = vsel %vm1602_vm10, %v2073_v28, %v2074_v48  ;;  %v1147_v14 = vld [vmem:[#allocation2 + $0x54] sm:$0xf]  ;;  %v10966_v28 = vrot.slane %v1862_v51, 1  ;;  %v1845_v48 = vrot.slane %v1843_v49, 1 }
 0x123   : > { %9358 = vmatprep.subr.bf16.mxu0 %v9676_v17  ;;  %v7990_v4 = vcombine.low %v1125_v41, %v9961_v61  ;;  %v2326_v41 = vshll.u32 %v10946_v7, 16  ;;  %v1867_v46 = vshll.u32 %v10948_v24, 16  ;;  %v10972_v61 = vcombine.low %v1147_v14, %v10959_v10  ;;  %v9962_v6 = vld [vmem:[#allocation2 + $0x58] sm:$0xf]  ;;  %v10981_v29 = vld [vmem:[#allocation2 + $0x6c] sm:$0xe] }
 0x124   : > { %v2322_v60 = vsel %vm1345_vm5, %v2317_v52, %v2321_v39  ;;  %v2324_v51 = vshrl.u32 %v10946_v7, 16  ;;  %v10979_v49 = vld [vmem:[#allocation2 + $0x5c] ss:$0 sps:$4 sm:$0x11]   ;;  %v1846_v14 = vsel %vm1345_vm5, %v1841_v55, %v1845_v48  ;;  %v2333_v48 = vrot.slane %v2331_v34, 1 }
 0x125   : > { %v10968_v56 = vrot.slane %v7990_v4, 1  ;;  %v10977_v4 = vld [vmem:[#allocation2 + $0x50] ss:$0 sps:$4 sm:$0x11]   ;;  %13187 = vst [vmem:[#allocation24_spill] sm:$0xff] %v10979_v49  ;;  %v2338_v37 = vshll.u32 %v10972_v61, 16 }
 0x126   : > { %9359 = vmatpush3.bf16.msra.mxu0 %v9676_v17  ;;  %v2328_v17 = vrot.slane %v2326_v41, 1  ;;  %v10986_v52 = vld [vmem:[#allocation2 + $0x5c] ss:$0 sps:$4 sm:$0x11]   ;;  %v1879_v63 = vshll.u32 %v10977_v4, 16  ;;  %v13221_v54 = vshll.u32 %v10812_v53, 16 }
 0x127   : > { %3695 = vmatmul.mubr.bf16.gmra.mrb[68].mxu1 %v10870_v11  ;;  %9360 = vmatprep.subr.bf16.mxu0 %v9683_v13  ;;  %v1126_v11 = vld [vmem:[#allocation2 + $0x54] sm:$0xe] }
 0x128   : > { %3702 = vmatprep.mubr.bf16.mxu1 %v2310_v45  ;;  %v2077_v45 = vrot.slane %v9679_v38, 1  ;;  %v9704_v38 = vld [vmem:[#allocation7 + $0x228] sm:$0xff]   ;;  %v2329_v55 = vor.u32 %v2328_v17, %v2324_v51  ;;  %v11010_v17 = vld [vmem:[#allocation2 + $0x68] ss:$0 sps:$4 sm:$0x11]  }
 0x129   : > { %3534 = vmatmul.mubr.bf16.gmra.mrb[68].mxu0 %v1834_v12  ;;  %v9697_v12 = vld [vmem:[#allocation7 + $0x220] sm:$0xff]   ;;  %13190 = vst [vmem:[#allocation26_spill] sm:$0xff] %v11010_v17 }
 0x12a   : > { %3541 = vmatprep.mubr.bf16.mxu0 %v2075_v0  ;;  %9361 = vmatpush3.bf16.msra.mxu0 %v9683_v13  ;;  %v7991_v13 = vcombine.low %v1126_v11, %v9962_v6  ;;  %v1127_v0 = vld [vmem:[#allocation2 + $0x60] sm:$0xe]  ;;  %v2078_v41 = vsel %vm1602_vm10, %v10936_v44, %v2077_v45  ;;  %v1853_v11 = vor.u32 %v1852_v26, %v1848_v8  ;;  %v1857_v6 = vrot.slane %v1855_v19, 1  ;;  %v9963_v19 = vld [vmem:[#allocation2 + $0x64] sm:$0xf] }
 0x12b   : > { %9362 = vmatprep.subr.bf16.mxu0 %v9690_v27  ;;  %v11000_v44 = vrot.slane %v1867_v46, 1  ;;  %v2336_v8 = vshrl.u32 %v10972_v61, 16  ;;  %v2343_v45 = vshll.u32 %v10979_v49, 16  ;;  %v7992_v51 = vcombine.low %v1127_v0, %v9963_v19  ;;  %v9964_v46 = vld [vmem:[#allocation2 + $0x70] sm:$0xf] }
 0x12c   : > { %v11004_v26 = vrot.slane %v7991_v13, 1  ;;  %v7993_v34 = vcombine.low %v10981_v29, %v9964_v46  ;;  %v1151_v13 = vld [vmem:[#allocation2 + $0x6c] sm:$0xf]  ;;  %v2334_v50 = vsel %vm1345_vm5, %v2329_v55, %v2333_v48  ;;  %v11021_v0 = vld [vmem:[#allocation2 + $0x68] ss:$0 sps:$4 sm:$0x11]  }
 0x12d   : > { %v2083_v29 = vrot.slane %v10977_v4, 1  ;;  %v13192_v46 = vshll.u32 %v10651_v18, 16  ;;  %v11037_v55 = vld [vmem:[#allocation2 + $0x74] ss:$0 sps:$4 sm:$0x11]  }
 0x12e   : > { %9363 = vmatpush3.bf16.msra.mxu0 %v9690_v27  ;;  %v13189_v27 = vshll.u32 %v10625_v22, 16  ;;  %13193 = vst [vmem:[#allocation28_spill] sm:$0xff] %v11037_v55  ;;  %v11050_v36 = vrot.slane %v7993_v34, 1  ;;  %v1153_v34 = vld [vmem:[#allocation2 + $0x78] sm:$0xf] }
 0x12f   : > { %3703 = vmatmul.mubr.bf16.gmra.mrb[72].mxu1 %v10901_v23  ;;  %9364 = vmatprep.subr.bf16.mxu0 %v9697_v12  ;;  %v2080_v23 = vrot.slane %v10948_v24, 1  ;;  %v11008_v24 = vcombine.low %v1149_v47, %v10993_v59  ;;  %v11029_v40 = vrot.slane %v13192_v46, 1  ;;  %v1132_v49 = vld [vmem:[#allocation2 + $0x9c] sm:$0xe] }
 0x130   : > { %3710 = vmatprep.mubr.bf16.mxu1 %v2322_v60  ;;  %v10998_v39 = vrot.slane %v13189_v27, 1  ;;  %v9711_v60 = vld [vmem:[#allocation7 + $0x230] sm:$0xff]   ;;  %v1891_v27 = vshll.u32 %v10986_v52, 16 }
 0x131   : > { %3542 = vmatmul.mubr.bf16.gmra.mrb[72].mxu0 %v1846_v14  ;;  %v2340_v14 = vrot.slane %v2338_v37, 1  ;;  %v2081_v47 = vsel %vm1602_vm10, %v10956_v62, %v2080_v23  ;;  %v11024_v37 = vrot.slane %v1879_v63, 1  ;;  %v2350_v62 = vshll.u32 %v11008_v24, 16 }
 0x132   : > { %3549 = vmatprep.mubr.bf16.mxu0 %v2078_v41  ;;  %9365 = vmatpush3.bf16.msra.mxu0 %v9697_v12  ;;  %v1858_v41 = vsel %vm1345_vm5, %v1853_v11, %v1857_v6  ;;  %v2345_v11 = vrot.slane %v2343_v45, 1  ;;  %v2355_v6 = vshll.u32 %v11010_v17, 16  ;;  %v11035_v23 = vcombine.low %v1151_v13, %v11014_v2  ;;  %v11060_v2 = vld [vmem:[#allocation2 + $0x7c] sm:$0xf] }
 0x133   : > { %9366 = vmatprep.subr.bf16.mxu0 %v9704_v38  ;;  %v2341_v4 = vor.u32 %v2340_v14, %v2336_v8  ;;  %v11039_v48 = vrot.slane %v1891_v27, 1  ;;  %v11041_v63 = vrot.slane %v7992_v51, 1  ;;  %v2348_v45 = vshrl.u32 %v11008_v24, 16  ;;  %v11056_v51 = vld [vmem:[#allocation2 + $0x74] ss:$0 sps:$4 sm:$0x11]  }
 0x134   : > { %v13194_v13 = vshll.u32 %v10680_v5, 16  ;;  %v1903_v8 = vshll.u32 %v11021_v0, 16  ;;  %v1129_v14 = vld [vmem:[#allocation2 + $0x78] sm:$0xe]  ;;  %v2352_v27 = vrot.slane %v2350_v62, 1  ;;  %v2357_v46 = vrot.slane %v2355_v6, 1 }
 0x135   : > { %v2362_v12 = vshll.u32 %v11035_v23, 16  ;;  %13196 = vst [vmem:[#allocation29_spill] sm:$0xff] %v11060_v2  ;;  %v9965_v17 = vld [vmem:[#allocation2 + $0x7c] sm:$0xf]  ;;  %v1915_v6 = vshll.u32 %v11056_v51, 16 }
 0x136   : > { %9367 = vmatpush3.bf16.msra.mxu0 %v9704_v38  ;;  %v11048_v19 = vrot.slane %v13194_v13, 1  ;;  %v2367_v13 = vshll.u32 %v11037_v55, 16  ;;  %v7994_v59 = vcombine.low %v1129_v14, %v9965_v17  ;;  %v11069_v55 = vld [vmem:[#allocation2 + $0x80] ss:$0 sps:$4 sm:$0x11]   ;;  %v11078_v17 = vcombine.low %v1153_v34, %v11060_v2 }
 0x137   : > { %3711 = vmatmul.mubr.bf16.gmra.mrb[76].mxu1 %v10916_v9  ;;  %9368 = vmatprep.subr.bf16.mxu0 %v9711_v60  ;;  %v9718_v9 = vld [vmem:[#allocation7 + $0x238] sm:$0xff]   ;;  %13199 = vst [vmem:[#allocation31_spill] sm:$0xff] %v11069_v55  ;;  %v11082_v14 = vrot.slane %v1903_v8, 1  ;;  %v13201_v34 = vshll.u32 %v10695_v43, 16 }
 0x138   : > { %3718 = vmatprep.mubr.bf16.mxu1 %v2334_v50  ;;  %v13195_v50 = vshrl.u32 %v10610_v57, 16  ;;  %v1130_v57 = vld [vmem:[#allocation2 + $0x84] sm:$0xe]  ;;  %v9966_v2 = vld [vmem:[#allocation2 + $0x88] sm:$0xf] }
 0x139   : > { %3550 = vmatmul.mubr.bf16.gmra.mrb[76].mxu0 %v1858_v41  ;;  %v1155_v41 = vld [vmem:[#allocation2 + $0x84] sm:$0xf]  ;;  %v11095_v8 = vld [vmem:[#allocation2 + $0x8c] ss:$0 sps:$4 sm:$0x11]  }
 0x13a   : > { %v1865_v38 = vor.u32 %v10966_v28, %v13195_v50  ;;  %3557 = vmatprep.mubr.bf16.mxu0 %v2081_v47  ;;  %9369 = vmatpush3.bf16.msra.mxu0 %v9711_v60  ;;  %v2346_v28 = vsel %vm1345_vm5, %v2341_v4, %v2345_v11  ;;  %v11063_v50 = vld [vmem:[#allocation2 + $0x88] sm:$0xf]  ;;  %v13198_v47 = vshrl.u32 %v10625_v22, 16  ;;  %v2084_v11 = vsel %vm1602_vm10, %v10968_v56, %v2083_v29  ;;  %v11080_v22 = vld [vmem:[#allocation2 + $0x80] ss:$0 sps:$4 sm:$0x11]  }
 0x13b   : > { %9370 = vmatprep.subr.bf16.mxu0 %v9718_v9  ;;  %13197 = vst [vmem:[#allocation30_spill] sm:$0xff] %v11063_v50  ;;  %v11088_v56 = vrot.slane %v2367_v13, 1  ;;  %v1912_v4 = vrot.slane %v13201_v34, 1  ;;  %13202 = vst [vmem:[#allocation33_spill] sm:$0xff] %v11095_v8  ;;  %v1927_v13 = vshll.u32 %v11080_v22, 16 }
 0x13c   : > { %v1877_v62 = vor.u32 %v10998_v39, %v13198_v47  ;;  %v1870_v60 = vsel %vm1345_vm5, %v1865_v38, %v11000_v44  ;;  %v2353_v39 = vor.u32 %v2352_v27, %v2348_v45  ;;  %v2360_v47 = vshrl.u32 %v11035_v23, 16 }
 0x13d   : > { %v11086_v44 = vcombine.low %v1155_v41, %v11063_v50  ;;  %v2364_v38 = vrot.slane %v2362_v12, 1  ;;  %v11093_v45 = vrot.slane %v1915_v6, 1  ;;  %v2374_v27 = vshll.u32 %v11078_v17, 16  ;;  %v9967_v41 = vld [vmem:[#allocation2 + $0x94] sm:$0xf] }
 0x13e   : > { %9371 = vmatpush3.bf16.msra.mxu0 %v9718_v9  ;;  %v7995_v9 = vcombine.low %v1130_v57, %v9966_v2  ;;  %v11099_v12 = vrot.slane %v7994_v59, 1  ;;  %v11103_v50 = vld [vmem:[#allocation2 + $0x8c] ss:$0 sps:$4 sm:$0x11]   ;;  %v1882_v2 = vsel %vm1345_vm5, %v1877_v62, %v11024_v37  ;;  %v13203_v57 = vrot.slane %v10986_v52, 1 }
 0x13f   : > { %3719 = vmatmul.mubr.bf16.gmra.mrb[80].mxu1 %v10946_v7  ;;  %13200 = vst [vmem:[#allocation32_spill] sm:$0xff] %v11086_v44  ;;  %v1131_v7 = vld [vmem:[#allocation2 + $0x90] sm:$0xe]  ;;  %v2386_v34 = vshll.u32 %v11086_v44, 16  ;;  %v2365_v59 = vor.u32 %v2364_v38, %v2360_v47  ;;  %v2391_v37 = vshll.u32 %v11095_v8, 16  ;;  %v2376_v52 = vrot.slane %v2374_v27, 1 }
 0x140   : > { %3726 = vmatprep.mubr.bf16.mxu1 %v2346_v28  ;;  %v2379_v28 = vshll.u32 %v11069_v55, 16  ;;  %v7996_v29 = vcombine.low %v1131_v7, %v9967_v41  ;;  %v2087_v6 = vsel %vm1602_vm10, %v11004_v26, %v13203_v57  ;;  %v11112_v55 = vld [vmem:[#allocation2 + $0x94] sm:$0xf]  ;;  %v2372_v7 = vshrl.u32 %v11078_v17, 16  ;;  %v11118_v62 = vld [vmem:[#allocation2 + $0xa8] sm:$0xe] }
 0x141   : > { %3558 = vmatmul.mubr.bf16.gmra.mrb[80].mxu0 %v1870_v60  ;;  %v2358_v60 = vsel %vm1345_vm5, %v2353_v39, %v2357_v46  ;;  %v13204_v46 = vshll.u32 %v10730_v42, 16  ;;  %v11125_v47 = vrot.slane %v7995_v9, 1  ;;  %v11127_v38 = vld [vmem:[#allocation2 + $0xb4] sm:$0xe]  ;;  %v11129_v57 = vrot.slane %v1927_v13, 1 }
 0x142   : > { %3565 = vmatprep.mubr.bf16.mxu0 %v2084_v11  ;;  %v1157_v11 = vld [vmem:[#allocation2 + $0x90] sm:$0xf]  ;;  %v11121_v26 = vrot.slane %v2379_v28, 1  ;;  %v2384_v10 = vshrl.u32 %v11086_v44, 16  ;;  %v1939_v41 = vshll.u32 %v11103_v50, 16  ;;  %v13207_v28 = vshll.u32 %v10754_v15, 16 }
 0x143   : > { %v1924_v39 = vrot.slane %v13204_v46, 1  ;;  %13205 = vst [vmem:[#allocation34_spill] sm:$0xff] %v11125_v47  ;;  %13206 = vst [vmem:[#allocation35_spill] sm:$0xff] %v11129_v57  ;;  %v11134_v8 = vcombine.low %v1157_v11, %v11112_v55  ;;  %v11141_v9 = vrot.slane %v7996_v29, 1  ;;  %v13209_v13 = vshrl.u32 %v10651_v18, 16 }
 0x144   : > { %v11139_v46 = vrot.slane %v13207_v28, 1  ;;  %v13210_v47 = vshrl.u32 %v10680_v5, 16  ;;  %v11149_v11 = vrot.slane %v2391_v37, 1  ;;  %v1159_v27 = vld [vmem:[#allocation2 + $0x9c] sm:$0xf]  ;;  %v11160_v5 = vrot.slane %v1939_v41, 1 }
 0x145   : > { %v11152_v57 = vld [vmem:[#allocation2 + $0xa0] sm:$0xf]  ;;  %v11156_v18 = vld [vmem:[#allocation2 + $0x98] ss:$0 sps:$4 sm:$0x11]   ;;  %v13211_v37 = vshll.u32 %v10769_v3, 16 }
 0x146   : > { %13208 = vst [vmem:[#allocation36_spill] sm:$0xff] %v11139_v46  ;;  %v1901_v44 = vor.u32 %v11048_v19, %v13210_v47  ;;  %v9968_v28 = vld [vmem:[#allocation2 + $0xa0] sm:$0xf]  ;;  %v2398_v19 = vshll.u32 %v11134_v8, 16  ;;  %v11175_v41 = vcombine.low %v1159_v27, %v11152_v57  ;;  %v11177_v29 = vld [vmem:[#allocation2 + $0xac] sm:$0xf] }
 0x147   : > { %3727 = vmatmul.mubr.bf16.gmra.mrb[84].mxu1 %v10972_v61  ;;  %v2388_v61 = vrot.slane %v2386_v34, 1  ;;  %v7997_v46 = vcombine.low %v1132_v49, %v9968_v28  ;;  %v11166_v47 = vrot.slane %v13211_v37, 1  ;;  %v1161_v34 = vld [vmem:[#allocation2 + $0xa8] sm:$0xf]  ;;  %v13214_v37 = vrot.slane %v11021_v0, 1 }
 0x148   : > { %3734 = vmatprep.mubr.bf16.mxu1 %v2358_v60  ;;  %v1889_v60 = vor.u32 %v11029_v40, %v13209_v13  ;;  %v11158_v40 = vld [vmem:[#allocation2 + $0x98] ss:$0 sps:$4 sm:$0x11]   ;;  %v13213_v13 = vshrl.u32 %v10695_v43, 16  ;;  %v13215_v43 = vrot.slane %v11056_v51, 1  ;;  %v2396_v0 = vshrl.u32 %v11134_v8, 16 }
 0x149   : > { %3566 = vmatmul.mubr.bf16.gmra.mrb[84].mxu0 %v1882_v2  ;;  %13212 = vst [vmem:[#allocation37_spill] sm:$0xff] %v11166_v47  ;;  %v2090_v49 = vsel %vm1602_vm10, %v11041_v63, %v13214_v37  ;;  %v11197_v27 = vld [vmem:[#allocation2 + $0xa4] ss:$0 sps:$4 sm:$0x11]   ;;  %v1951_v63 = vshll.u32 %v11158_v40, 16  ;;  %v2377_v51 = vor.u32 %v2376_v52, %v2372_v7  ;;  %v2389_v37 = vor.u32 %v2388_v61, %v2384_v10 }
 0x14a   : > { %3573 = vmatprep.mubr.bf16.mxu0 %v2087_v6  ;;  %v2370_v6 = vsel %vm1345_vm5, %v2365_v59, %v11088_v56  ;;  %v1913_v28 = vor.u32 %v1912_v4, %v13213_v13  ;;  %v1894_v2 = vsel %vm1345_vm5, %v1889_v60, %v11039_v48  ;;  %v11187_v56 = vsel %vm1345_vm5, %v1901_v44, %v11082_v14  ;;  %v11195_v59 = vld [vmem:[#allocation2 + $0xa4] ss:$0 sps:$4 sm:$0x11]   ;;  %v433_v13 = vld [vmem:[#allocation2 + $0xc8] sm:$0x1] }
 0x14b   : > { %v11193_v4 = vsel %vm1602_vm10, %v11050_v36, %v13215_v43  ;;  %v2403_v48 = vshll.u32 %v11156_v18, 16  ;;  %v11203_v14 = vrot.slane %v7997_v46, 1  ;;  %v2400_v44 = vrot.slane %v2398_v19, 1  ;;  %v11214_v3 = vld [vmem:[#allocation2 + $0xb0] ss:$0 sps:$4 sm:$0x11]  }
 0x14c   : > { %v11207_v60 = vcombine.low %v1161_v34, %v11177_v29  ;;  %v2410_v47 = vshll.u32 %v11175_v41, 16  ;;  %v434_v7 = vsel %vm10439_vm6, 0, %v433_v13  ;;  %v13216_v52 = vrot.slane %v11080_v22, 1 }
 0x14d   : > { %v13217_v34 = vshrl.u32 %v10730_v42, 16  ;;  %v2415_v61 = vshll.u32 %v11195_v59, 16  ;;  %v1963_v19 = vshll.u32 %v11197_v27, 16  ;;  %435 = vst [vmem:[#allocation2 + $0xc8] sm:$0x1] %v434_v7 }
 0x14e   : > { %v11222_v46 = vsel %vm1602_vm10, %v11099_v12, %v13216_v52  ;;  %v11236_v12 = vrot.slane %v1951_v63, 1  ;;  %v2422_v7 = vshll.u32 %v11207_v60, 16  ;;  %v13218_v63 = vshll.u32 %v10783_v31, 16 }
 0x14f   : > { %3735 = vmatmul.mubr.bf16.gmra.mrb[88].mxu1 %v11008_v24  ;;  %v11211_v24 = vsel %vm1345_vm5, %v1913_v28, %v11093_v45  ;;  %v11226_v45 = vor.u32 %v1924_v39, %v13217_v34  ;;  %v2382_v39 = vsel %vm1345_vm5, %v2377_v51, %v11121_v26  ;;  %v1163_v26 = vld [vmem:[#allocation2 + $0xb4] sm:$0xf]  ;;  %v11255_v51 = vld [vmem:[#allocation2 + $0xb8] sm:$0xf]  ;;  %v11257_v42 = vrot.slane %v2410_v47, 1 }
 0x150   : > { %3742 = vmatprep.mubr.bf16.mxu1 %v2370_v6  ;;  %v11230_v6 = vld [vmem:[#allocation2 + $0xb0] ss:$0 sps:$4 sm:$0x11]   ;;  %v11259_v34 = vrot.slane %v2415_v61, 1  ;;  %v11261_v36 = vrot.slane %v1963_v19, 1  ;;  %v11273_v19 = vrot.slane %v2422_v7, 1 }
 0x151   : > { %3574 = vmatmul.mubr.bf16.gmra.mrb[88].mxu0 %v1894_v2  ;;  %v11232_v2 = vrot.slane %v2403_v48, 1  ;;  %v1188_v61 = vld [vmem:[#allocation2 + $0x3c] sm:$0xe]  ;;  %v2538_v47 = vrot.slane %v10903_v1, 1  ;;  %v1190_v7 = vld [vmem:[#allocation2 + $0x54] sm:$0xe] }
 0x152   : > { %3581 = vmatprep.mubr.bf16.mxu0 %v2090_v49  ;;  %v11246_v49 = vsel %vm1345_vm5, %v2389_v37, %v11149_v11  ;;  %13219 = vst [vmem:[#allocation38_spill] sm:$0xff] %v11261_v36  ;;  %v1975_v11 = vshll.u32 %v11230_v6, 16  ;;  %v1187_v37 = vld [vmem:[#allocation2 + $0x30] sm:$0xe]  ;;  %v11277_v36 = vrot.slane %v13221_v54, 1 }
 0x153   : > { %v1195_v1 = vld [vmem:[#allocation2 + $0x90] sm:$0xe] }
 0x154   : > { %13222 = vst [vmem:[#allocation39_spill] sm:$0xff] %v11277_v36  ;;  %v1005_v52 = vld [vmem:[#allocation2 + $0xc8] sm:$0x1]  ;;  %v11290_v54 = vrot.slane %v1975_v11, 1 }
 0x156   : > { %13223 = vst [vmem:[#allocation40_spill] sm:$0xff] %v11290_v54  ;;  %v11319_v54 = vld [vmem:[#allocation2 + $0xc0] sm:$0xe] }
 0x157   : > { %3743 = vmatmul.mubr.bf16.gmra.mrb[92].mxu1 %v11035_v23  ;;  %v11280_v23 = vcombine.low %v1163_v26, %v11255_v51  ;;  %v13224_v26 = vcombine.low %v11127_v38, %v10837_v35  ;;  %v1192_v35 = vld [vmem:[#allocation2 + $0x6c] sm:$0xe] }
 0x158   : > { %3750 = vmatprep.mubr.bf16.mxu1 %v2382_v39  ;;  %v8036_v39 = vcombine.low %v1188_v61, %v10910_v21  ;;  %v1193_v61 = vld [vmem:[#allocation2 + $0x78] sm:$0xe] }
 0x159   : > { %3582 = vmatmul.mubr.bf16.gmra.mrb[92].mxu0 %v11187_v56  ;;  %v11295_v36 = vrot.slane %v13224_v26, 1  ;;  %v2541_v56 = vrot.slane %v10928_v20, 1  ;;  %v13230_v20 = vld [vmem:[#allocation24_spill] sm:$0xff] }
 0x15a   : > { %3589 = vmatprep.mubr.bf16.mxu0 %v11193_v4  ;;  %v2540_v21 = vrot.slane %v8036_v39, 1  ;;  %v1194_v4 = vld [vmem:[#allocation2 + $0x84] sm:$0xe] }
 0x15b   : > { %13225 = vst [vmem:[#allocation41_spill] sm:$0xff] %v11295_v36  ;;  %v13234_v36 = vld [vmem:[#allocation28_spill] sm:$0xff] }
 0x15f   : > { %3751 = vmatmul.mubr.bf16.gmra.mrb[96].mxu1 %v11078_v17 }
 0x160   : > { %v8428_v43 = vpop.f32.mrb[0].mxu0  ;;  %3758 = vmatprep.mubr.bf16.mxu1 %v11246_v49  ;;  %v11341_v49 = vld [vmem:[#allocation2 + $0xbc] ss:$0 sps:$4 sm:$0x11]  }
 0x161   : > { %v8429_v10 = vpop.f32.mrb[1].mxu0  ;;  %3590 = vmatmul.mubr.bf16.gmra.mrb[96].mxu0 %v11211_v24 }
 0x162   : > { %v11234_v22 = vadd.f32 %v8429_v10, %v8428_v43  ;;  %v8431_v28 = vpop.f32.mrb[2].mxu0  ;;  %v11252_v43 = vrot.slane %v13218_v63, 1  ;;  %v2427_v10 = vshll.u32 %v11214_v3, 16  ;;  %3597 = vmatprep.mubr.bf16.mxu0 %v11222_v46 }
 0x163   : > { %v8432_v13 = vpop.f32.mrb[3].mxu0 }
 0x164   : > { %v11248_v48 = vadd.f32 %v8432_v13, %v8431_v28  ;;  %v13220_v13 = vcombine.low %v11118_v62, %v10805_v32  ;;  %v8035_v28 = vcombine.low %v1187_v37, %v10895_v30  ;;  %v1189_v32 = vld [vmem:[#allocation2 + $0x48] sm:$0xe]  ;;  %v11283_v62 = vor.u32 %v2400_v44, %v2396_v0  ;;  %v13228_v37 = vld [vmem:[#allocation23_spill] sm:$0xff]  ;;  %v8540_v26 = vpop.f32.mrb[0].mxu1 }
 0x165   : > { %v13226_v30 = vrot.slane %v10834_v16, 4  ;;  %v8037_v11 = vcombine.low %v1189_v32, %v10931_v58  ;;  %v13231_v58 = vld [vmem:[#allocation25_spill] sm:$0xff]  ;;  %v8541_v38 = vpop.f32.mrb[1].mxu1 }
 0x166   : > { %v11269_v63 = vrot.slane %v13220_v13, 1  ;;  %v11285_v13 = vrot.slane %v2427_v10, 1  ;;  %v2537_v44 = vrot.slane %v8035_v28, 1  ;;  %v1191_v10 = vld [vmem:[#allocation2 + $0x60] sm:$0xe]  ;;  %v8038_v28 = vcombine.low %v1190_v7, %v13228_v37 }
 0x167   : > { %v1006_v0 = vsel %vm10426_vm2, %v13226_v30, %v1005_v52  ;;  %v2544_v52 = vrot.slane %v10952_v33, 1  ;;  %v11312_v30 = vsel %vm1602_vm10, %v2540_v21, %v2541_v56  ;;  %v2543_v39 = vrot.slane %v8037_v11, 1  ;;  %v1196_v37 = vld [vmem:[#allocation2 + $0x9c] sm:$0xe]  ;;  %v8543_v56 = vpop.f32.mrb[2].mxu1 }
 0x168   : > { %1007 = vst [vmem:[#allocation2 + $0xc8] sm:$0x1] %v1006_v0  ;;  %v11307_v16 = vsel %vm1602_vm10, %v2537_v44, %v2538_v47  ;;  %13229 = vst [vmem:[#allocation23_spill] sm:$0xff] %v11312_v30  ;;  %v2547_v0 = vrot.slane %v13230_v20, 1  ;;  %v8039_v32 = vcombine.low %v1191_v10, %v13231_v58  ;;  %v2546_v25 = vrot.slane %v8038_v28, 1  ;;  %v13232_v47 = vld [vmem:[#allocation26_spill] sm:$0xff] }
 0x169   : > { %13227 = vst [vmem:[#allocation42_spill] sm:$0xff] %v11307_v16  ;;  %v2550_v44 = vrot.slane %v13232_v47, 1  ;;  %v13233_v16 = vld [vmem:[#allocation27_spill] sm:$0xff]  ;;  %v2553_v7 = vrot.slane %v13234_v36, 1  ;;  %v11322_v21 = vadd.f32 %v8541_v38, %v8540_v26  ;;  %v11325_v11 = vsel %vm1602_vm10, %v2543_v39, %v2544_v52  ;;  %v13235_v20 = vld [vmem:[#allocation29_spill] sm:$0xff]  ;;  %v13237_v38 = vld [vmem:[#allocation30_spill] sm:$0xff] }
 0x16a   : > { %v8040_v33 = vcombine.low %v1192_v35, %v13233_v16  ;;  %v2549_v10 = vrot.slane %v8039_v32, 1  ;;  %v8041_v28 = vcombine.low %v1193_v61, %v13235_v20  ;;  %v1197_v58 = vld [vmem:[#allocation2 + $0xa8] sm:$0xe]  ;;  %v1198_v47 = vld [vmem:[#allocation2 + $0xb4] sm:$0xe]  ;;  %v8544_v35 = vpop.f32.mrb[3].mxu1  ;;  %v11330_v36 = vsel %vm1602_vm10, %v2546_v25, %v2547_v0 }
 0x16b   : > { %v13236_v30 = vld [vmem:[#allocation31_spill] sm:$0xff]  ;;  %v8042_v26 = vcombine.low %v1194_v4, %v13237_v38  ;;  %v11334_v53 = vadd.f32 %v8544_v35, %v8543_v56  ;;  %v13238_v61 = vld [vmem:[#allocation33_spill] sm:$0xff]  ;;  %v8044_v4 = vcombine.low %v1196_v37, %v11152_v57  ;;  %v8045_v56 = vcombine.low %v1197_v58, %v11177_v29  ;;  %v1199_v57 = vld [vmem:[#allocation2 + $0xc0] sm:$0xe] }
 0x16c   : > { %v2552_v16 = vrot.slane %v8040_v33, 1  ;;  %v2556_v17 = vrot.slane %v13236_v30, 1  ;;  %v11337_v52 = vsel %vm1602_vm10, %v2549_v10, %v2550_v44  ;;  %v2555_v39 = vrot.slane %v8041_v28, 1  ;;  %v13239_v10 = vld [vmem:[#allocation21_spill] sm:$0xff]  ;;  %v13240_v37 = vld [vmem:[#allocation35_spill] sm:$0xff] }
 0x16d   : > { %v2559_v32 = vrot.slane %v13238_v61, 1  ;;  %v2558_v0 = vrot.slane %v8042_v26, 1  ;;  %v8043_v30 = vcombine.low %v1195_v1, %v11112_v55  ;;  %v2562_v33 = vrot.slane %v11156_v18, 1  ;;  %v8546_v29 = vpop.f32.mrb[4].mxu1  ;;  %v11366_v28 = vld [vmem:[#allocation2 + $0xc4] sm:$0xf] }
 0x16e   : > { %v11344_v25 = vsel %vm1602_vm10, %v2552_v16, %v2553_v7  ;;  %v11350_v44 = vsel %vm1602_vm10, %v2555_v39, %v2556_v17  ;;  %v8046_v24 = vcombine.low %v1198_v47, %v11255_v51  ;;  %v8000_v7 = vcombine.low %v11319_v54, %v13239_v10  ;;  %v8547_v47 = vpop.f32.mrb[5].mxu1  ;;  %v11372_v16 = vld [vmem:[#allocation2 + $0xd4] ss:$0 sps:$4 sm:$0x11]   ;;  %v13245_v61 = vld [vmem:[#allocation36_spill] sm:$0xff] }
 0x16f   : > { %v11358_v20 = vsel %vm1602_vm10, %v2558_v0, %v2559_v32  ;;  %v2561_v55 = vrot.slane %v8043_v30, 1  ;;  %v2564_v1 = vrot.slane %v8044_v4, 1  ;;  %v1930_v46 = vsel %vm1345_vm5, %v11226_v45, %v13240_v37  ;;  %v11368_v51 = vld [vmem:[#allocation2 + $0xc8] ss:$0 sps:$4 sm:$0x11]   ;;  %v13243_v26 = vld [vmem:[#allocation34_spill] sm:$0xff] }
 0x170   : > { %v2406_v18 = vsel %vm1345_vm5, %v11283_v62, %v11232_v2  ;;  %v2565_v54 = vrot.slane %v11195_v59, 1  ;;  %v2567_v58 = vrot.slane %v8045_v56, 1  ;;  %v2439_v35 = vshll.u32 %v11341_v49, 16  ;;  %v13241_v2 = vld [vmem:[#allocation32_spill] sm:$0xff]  ;;  %v8434_v0 = vpop.f32.mrb[4].mxu0  ;;  %v8549_v4 = vpop.f32.mrb[6].mxu1  ;;  %3598 = vmatmul.mubr.bf16.gmra.mrb[100].mxu0 %v1930_v46 }
 0x171   : > { %v11375_v17 = vsel %vm1602_vm10, %v2561_v55, %v2562_v33  ;;  %v2568_v45 = vrot.slane %v11214_v3, 1  ;;  %v2570_v38 = vrot.slane %v8046_v24, 1  ;;  %3759 = vmatmul.mubr.bf16.gmra.mrb[100].mxu1 %v13241_v2  ;;  %v13242_v62 = vrot.slane %v11103_v50, 1  ;;  %v11386_v56 = vld [vmem:[#allocation2 + $0xd0] sm:$0xf]  ;;  %v8435_v24 = vpop.f32.mrb[5].mxu0 }
 0x172   : > { %v13244_v59 = vshrl.u32 %v10754_v15, 16  ;;  %v8548_v30 = vadd.f32 %v8547_v47, %v8546_v29  ;;  %v11389_v33 = vsel %vm1602_vm10, %v2564_v1, %v2565_v54  ;;  %v1200_v3 = vld [vmem:[#allocation2 + $0xcc] sm:$0xe]  ;;  %3766 = vmatprep.mubr.bf16.mxu1 %v2406_v18  ;;  %v8550_v10 = vpop.f32.mrb[7].mxu1  ;;  %v13246_v50 = vld [vmem:[#allocation20_spill] sm:$0xff]  ;;  %v2571_v15 = vrot.slane %v11341_v49, 1 }
 0x173   : > { %v2099_v39 = vsel %vm1602_vm10, %v13243_v26, %v13242_v62  ;;  %v11393_v37 = vsel %vm1602_vm10, %v2567_v58, %v2568_v45  ;;  %v8047_v2 = vcombine.low %v1199_v57, %v11366_v28  ;;  %v13247_v29 = vshrl.u32 %v11175_v41, 16  ;;  %v8437_v1 = vpop.f32.mrb[6].mxu0  ;;  %v11406_v55 = vld [vmem:[#allocation2 + $0xbc] ss:$0 sps:$4 sm:$0x11]  }
 0x174   : > { %v1937_v32 = vor.u32 %v13245_v61, %v13244_v59  ;;  %v8436_v62 = vadd.f32 %v8435_v24, %v8434_v0  ;;  %v8551_v54 = vadd.f32 %v8550_v10, %v8549_v4  ;;  %v2574_v18 = vrot.slane %v11368_v51, 1  ;;  %v8438_v26 = vpop.f32.mrb[7].mxu0  ;;  %3605 = vmatprep.mubr.bf16.mxu0 %v2099_v39 }
 0x175   : > { %v2413_v47 = vor.u32 %v11257_v42, %v13247_v29  ;;  %v11402_v59 = vsel %vm1602_vm10, %v2570_v38, %v2571_v15  ;;  %v2573_v58 = vrot.slane %v8047_v2, 1  ;;  %v8048_v45 = vcombine.low %v1200_v3, %v11386_v56  ;;  %v1165_v3 = vld [vmem:[#allocation2 + $0xc0] sm:$0xf] }
 0x176   : > { %v2577_v61 = vrot.slane %v11372_v16, 1  ;;  %v8439_v57 = vadd.f32 %v8438_v26, %v8437_v1  ;;  %v11410_v42 = vadd.f32 %v11322_v21, %v11234_v22  ;;  %v11414_v46 = vadd.f32 %v11334_v53, %v11248_v48  ;;  %v8552_v22 = vpop.f32.mrb[8].mxu1 }
 0x177   : > { %v11416_v0 = vadd.f32 %v8548_v30, %v8436_v62  ;;  %v13248_v38 = vshll.u32 %v13246_v50, 16  ;;  %v11423_v39 = vsel %vm1602_vm10, %v2573_v58, %v2574_v18  ;;  %v2576_v24 = vrot.slane %v8048_v45, 1  ;;  %v8553_v53 = vpop.f32.mrb[9].mxu1  ;;  %v8440_v62 = vpop.f32.mrb[8].mxu0 }
 0x178   : > { %v2418_v10 = vsel %vm1345_vm5, %v2413_v47, %v11259_v34  ;;  %v11427_v21 = vrot.slane %v8000_v7, 1  ;;  %v11429_v15 = vadd.f32 %v8551_v54, %v8439_v57  ;;  %v13249_v48 = vshll.u32 %v11280_v23, 16  ;;  %v8555_v34 = vpop.f32.mrb[10].mxu1  ;;  %v8441_v26 = vpop.f32.mrb[9].mxu0  ;;  %v13252_v57 = vld [vmem:[#allocation18_spill] sm:$0xff] }
 0x179   : > { %v11420_v4 = vrot.slane %v13248_v38, 1  ;;  %v11434_v2 = vsel %vm1602_vm10, %v2576_v24, %v2577_v61  ;;  %v1942_v29 = vsel %vm1345_vm5, %v1937_v32, %v11160_v5  ;;  %3767 = vmatmul.mubr.bf16.gmra.mrb[104].mxu1 %v11134_v8  ;;  %v8554_v1 = vadd.f32 %v8553_v53, %v8552_v22  ;;  %v8556_v58 = vpop.f32.mrb[11].mxu1  ;;  %v8443_v61 = vpop.f32.mrb[10].mxu0  ;;  %v13254_v24 = vld [vmem:[#allocation37_spill] sm:$0xff] }
 0x17a   : > { %v2436_v30 = vrot.slane %v13249_v48, 1  ;;  %v13250_v7 = vrot.slane %v11158_v40, 1  ;;  %3774 = vmatprep.mubr.bf16.mxu1 %v2418_v10  ;;  %v13251_v54 = vshrl.u32 %v11207_v60, 16  ;;  %v8442_v45 = vadd.f32 %v8441_v26, %v8440_v62  ;;  %3606 = vmatmul.mubr.bf16.gmra.mrb[104].mxu0 %v1942_v29  ;;  %v8444_v40 = vpop.f32.mrb[11].mxu0 }
 0x17b   : > { %v8557_v5 = vadd.f32 %v8556_v58, %v8555_v34  ;;  %v2110_v8 = vrot.slane %v11406_v55, 1  ;;  %v11448_v32 = vcombine.low %v1165_v3, %v11366_v28  ;;  %v13253_v38 = vshrl.u32 %v13252_v57, 16 }
 0x17c   : > { %v2102_v47 = vsel %vm1602_vm10, %v11141_v9, %v13250_v7  ;;  %v2425_v18 = vor.u32 %v11273_v19, %v13251_v54  ;;  %v2441_v9 = vrot.slane %v2439_v35, 1  ;;  %v8445_v10 = vadd.f32 %v8444_v40, %v8443_v61  ;;  %v1167_v7 = vld [vmem:[#allocation2 + $0xcc] sm:$0xf] }
 0x17d   : > { %3613 = vmatprep.mubr.bf16.mxu0 %v2102_v47  ;;  %v1949_v19 = vor.u32 %v13254_v24, %v13253_v38  ;;  %v11455_v22 = vadd.f32 %v8554_v1, %v8442_v45  ;;  %v8558_v48 = vpop.f32.mrb[12].mxu1  ;;  %v2446_v28 = vshll.u32 %v11448_v32, 16  ;;  %v2444_v49 = vshrl.u32 %v11448_v32, 16 }
 0x17e   : > { %v2430_v53 = vsel %vm1345_vm5, %v2425_v18, %v11285_v13  ;;  %v11460_v3 = vadd.f32 %v8557_v5, %v8445_v10  ;;  %v8559_v29 = vpop.f32.mrb[13].mxu1  ;;  %v8446_v62 = vpop.f32.mrb[12].mxu0  ;;  %v13255_v47 = vrot.slane %v11197_v27, 1  ;;  %v13256_v26 = vshrl.u32 %v11280_v23, 16  ;;  %v13258_v10 = vld [vmem:[#allocation38_spill] sm:$0xff] }
 0x17f   : > { %v1954_v35 = vsel %vm1345_vm5, %v1949_v19, %v11236_v12  ;;  %v8560_v34 = vadd.f32 %v8559_v29, %v8558_v48  ;;  %v8561_v1 = vpop.f32.mrb[14].mxu1  ;;  %v8447_v54 = vpop.f32.mrb[13].mxu0  ;;  %v2448_v5 = vrot.slane %v2446_v28, 1  ;;  %v2451_v40 = vshll.u32 %v11368_v51, 16 }
 0x180   : > { %v2105_v13 = vsel %vm1602_vm10, %v11203_v14, %v13255_v47  ;;  %v8562_v18 = vpop.f32.mrb[15].mxu1  ;;  %v2437_v58 = vor.u32 %v2436_v30, %v13256_v26  ;;  %v8448_v45 = vadd.f32 %v8447_v54, %v8446_v62  ;;  %v8449_v61 = vpop.f32.mrb[14].mxu0  ;;  %v13257_v27 = vshrl.u32 %v10783_v31, 16 }
 0x181   : > { %3775 = vmatmul.mubr.bf16.gmra.mrb[108].mxu1 %v11175_v41  ;;  %v8563_v12 = vadd.f32 %v8562_v18, %v8561_v1  ;;  %v8450_v41 = vpop.f32.mrb[15].mxu0  ;;  %v11479_v24 = vcombine.low %v1167_v7, %v11386_v56  ;;  %v13259_v51 = vrot.slane %v11230_v6, 1  ;;  %v2449_v56 = vor.u32 %v2448_v5, %v2444_v49  ;;  %v13262_v1 = vld [vmem:[#allocation39_spill] sm:$0xff]  ;;  %v13263_v5 = vld [vmem:[#allocation40_spill] sm:$0xff] }
 0x182   : > { %3782 = vmatprep.mubr.bf16.mxu1 %v2430_v53  ;;  %3614 = vmatmul.mubr.bf16.gmra.mrb[108].mxu0 %v1954_v35  ;;  %v1961_v57 = vor.u32 %v11252_v43, %v13257_v27  ;;  %v8451_v14 = vadd.f32 %v8450_v41, %v8449_v61  ;;  %v11476_v38 = vadd.f32 %v8560_v34, %v8448_v45  ;;  %v2453_v28 = vrot.slane %v2451_v40, 1  ;;  %v13260_v34 = vld [vmem:[#allocation19_spill] sm:$0xff] }
 0x183   : > { %3621 = vmatprep.mubr.bf16.mxu0 %v2105_v13  ;;  %v2442_v30 = vsel %vm1345_vm5, %v2437_v58, %v2441_v9  ;;  %v2108_v31 = vsel %vm1602_vm10, %v11269_v63, %v13259_v51  ;;  %v2458_v48 = vshll.u32 %v11479_v24, 16  ;;  %v2456_v62 = vshrl.u32 %v11479_v24, 16 }
 0x184   : > { %v11482_v19 = vadd.f32 %v8563_v12, %v8451_v14  ;;  %v1966_v53 = vsel %vm1345_vm5, %v1961_v57, %v13258_v10  ;;  %v2463_v54 = vshll.u32 %v11372_v16, 16  ;;  %v2454_v49 = vsel %vm1345_vm5, %v2449_v56, %v2453_v28  ;;  %v9721_v12 = vld [vmem:[#allocation2 + $0xc8] ss:$0 sps:$4 sm:$0x11]   ;;  %v13265_v14 = vld [vmem:[#allocation22_spill] sm:$0xff] }
 0x185   : > { %v2460_v58 = vrot.slane %v2458_v48, 1  ;;  %v1987_v45 = vshll.u32 %v11406_v55, 16  ;;  %v13264_v16 = vld [vmem:[#allocation41_spill] sm:$0xff]  ;;  %v13266_v28 = vshrl.u32 %v13246_v50, 16 }
 0x186   : > { %v2111_v57 = vsel %vm1602_vm10, %v13264_v16, %v2110_v8  ;;  %v2465_v51 = vrot.slane %v2463_v54, 1 }
 0x187   : > { %v8564_v43 = vpop.f32.mrb[16].mxu1  ;;  %v1989_v48 = vrot.slane %v1987_v45, 1  ;;  %v1985_v55 = vor.u32 %v11420_v4, %v13266_v28  ;;  %v1186_v45 = vld [vmem:[#allocation2 + $0x24] sm:$0xe]  ;;  %v9971_v28 = vld [vmem:[#allocation2 + $0x28] sm:$0xf] }
 0x188   : > { %v8565_v29 = vpop.f32.mrb[17].mxu1 }
 0x189   : > { %3783 = vmatmul.mubr.bf16.gmra.mrb[112].mxu1 %v11207_v60  ;;  %v8566_v9 = vadd.f32 %v8565_v29, %v8564_v43  ;;  %v8567_v35 = vpop.f32.mrb[18].mxu1  ;;  %v13261_v60 = vshrl.u32 %v13260_v34, 16  ;;  %v8452_v7 = vpop.f32.mrb[16].mxu0  ;;  %v1990_v54 = vsel %vm1345_vm5, %v1985_v55, %v1989_v48  ;;  %v8034_v55 = vcombine.low %v1186_v45, %v9971_v28 }
 0x18a   : > { %3790 = vmatprep.mubr.bf16.mxu1 %v2442_v30  ;;  %3622 = vmatmul.mubr.bf16.gmra.mrb[112].mxu0 %v1966_v53  ;;  %v8568_v47 = vpop.f32.mrb[19].mxu1  ;;  %v8453_v63 = vpop.f32.mrb[17].mxu0  ;;  %v1992_v30 = vshrl.u32 %v13265_v14, 16  ;;  %v2461_v53 = vor.u32 %v2460_v58, %v2456_v62  ;;  %v13267_v62 = vshll.u32 %v13265_v14, 16 }
 0x18b   : > { %3629 = vmatprep.mubr.bf16.mxu0 %v2108_v31  ;;  %v1973_v6 = vor.u32 %v13262_v1, %v13261_v60  ;;  %v8569_v13 = vadd.f32 %v8568_v47, %v8567_v35  ;;  %v8454_v18 = vadd.f32 %v8453_v63, %v8452_v7  ;;  %v8455_v26 = vpop.f32.mrb[18].mxu0  ;;  %v2113_v35 = vrot.slane %v9721_v12, 1 }
 0x18c   : > { %v8456_v61 = vpop.f32.mrb[19].mxu0  ;;  %v1996_v1 = vrot.slane %v13267_v62, 1  ;;  %v1999_v63 = vshll.u32 %v9721_v12, 16  ;;  %v9970_v12 = vld [vmem:[#allocation2 + $0x20] ss:$0 sps:$4 sm:$0x11]  }
 0x18d   : > { %v1978_v41 = vsel %vm1345_vm5, %v1973_v6, %v13263_v5  ;;  %v8457_v40 = vadd.f32 %v8456_v61, %v8455_v26  ;;  %v11502_v27 = vadd.f32 %v8566_v9, %v8454_v18  ;;  %v1185_v9 = vld [vmem:[#allocation2 + $0x18] sm:$0xe]  ;;  %v2466_v6 = vsel %vm1345_vm5, %v2461_v53, %v2465_v51  ;;  %v9969_v18 = vld [vmem:[#allocation2 + $0x1c] sm:$0xf]  ;;  %v9740_v53 = vld [vmem:[#allocation9 + $0x40] sm:$0xff]  }
 0x18e   : > { %v8033_v26 = vcombine.low %v1185_v9, %v9969_v18  ;;  %8884 = vmatprep.subr.bf16.mxu1 %v9740_v53 }
 0x18f   : > { %v8570_v10 = vpop.f32.mrb[20].mxu1  ;;  %v11509_v43 = vadd.f32 %v8569_v13, %v8457_v40 }
 0x190   : > { %v8571_v31 = vpop.f32.mrb[21].mxu1 }
 0x191   : > { %3791 = vmatmul.mubr.bf16.gmra.mrb[116].mxu1 %v11280_v23  ;;  %v8572_v23 = vadd.f32 %v8571_v31, %v8570_v10  ;;  %v8573_v56 = vpop.f32.mrb[22].mxu1  ;;  %v8458_v29 = vpop.f32.mrb[20].mxu0 }
 0x192   : > { %3798 = vmatprep.mubr.bf16.mxu1 %v2454_v49  ;;  %3630 = vmatmul.mubr.bf16.gmra.mrb[116].mxu0 %v1978_v41  ;;  %v8574_v8 = vpop.f32.mrb[23].mxu1  ;;  %v8459_v34 = vpop.f32.mrb[21].mxu0  ;;  %v2114_v49 = vsel %vm1602_vm10, %v11427_v21, %v2113_v35  ;;  %v2532_v41 = vrot.slane %v9970_v12, 1  ;;  %v2531_v21 = vrot.slane %v8033_v26, 1 }
 0x193   : > { %3637 = vmatprep.mubr.bf16.mxu0 %v2111_v57  ;;  %v8575_v60 = vadd.f32 %v8574_v8, %v8573_v56  ;;  %v8460_v7 = vadd.f32 %v8459_v34, %v8458_v29  ;;  %v8461_v47 = vpop.f32.mrb[22].mxu0  ;;  %v2001_v57 = vrot.slane %v1999_v63, 1  ;;  %v9741_v56 = vld [vmem:[#allocation9] sm:$0xff]   ;;  %v9972_v34 = vld [vmem:[#allocation2 + $0x2c] ss:$0 sps:$4 sm:$0x11]  }
 0x194   : > { %v8462_v13 = vpop.f32.mrb[23].mxu0  ;;  %v2533_v35 = vsel %vm1602_vm10, %v2531_v21, %v2532_v41  ;;  %8885 = vmatpush3.bf16.msra.mxu1 %v9741_v56 }
 0x195   : > { %v8463_v50 = vadd.f32 %v8462_v13, %v8461_v47  ;;  %v11519_v4 = vadd.f32 %v8572_v23, %v8460_v7 }
 0x197   : > { %v8576_v58 = vpop.f32.mrb[24].mxu1  ;;  %v11523_v5 = vadd.f32 %v8575_v60, %v8463_v50  ;;  %v2535_v60 = vrot.slane %v9972_v34, 1 }
 0x198   : > { %v8577_v61 = vpop.f32.mrb[25].mxu1 }
 0x199   : > { %3799 = vmatmul.mubr.bf16.gmra.mrb[120].mxu1 %v11448_v32  ;;  %v8578_v40 = vadd.f32 %v8577_v61, %v8576_v58  ;;  %v8579_v16 = vpop.f32.mrb[26].mxu1  ;;  %v1997_v32 = vor.u32 %v1996_v1, %v1992_v30  ;;  %v8464_v14 = vpop.f32.mrb[24].mxu0 }
 0x19a   : > { %3806 = vmatprep.mubr.bf16.mxu1 %v2466_v6  ;;  %3638 = vmatmul.mubr.bf16.gmra.mrb[120].mxu0 %v1990_v54  ;;  %v8580_v10 = vpop.f32.mrb[27].mxu1  ;;  %v8465_v51 = vpop.f32.mrb[25].mxu0  ;;  %v2534_v6 = vrot.slane %v8034_v55, 1 }
 0x19b   : > { %3645 = vmatprep.mubr.bf16.mxu0 %v2114_v49  ;;  %v8581_v31 = vadd.f32 %v8580_v10, %v8579_v16  ;;  %v8466_v48 = vadd.f32 %v8465_v51, %v8464_v14  ;;  %v8467_v23 = vpop.f32.mrb[26].mxu0  ;;  %v2002_v8 = vsel %vm1345_vm5, %v1997_v32, %v2001_v57  ;;  %v13268_v16 = vld [vmem:[#allocation42_spill] sm:$0xff]  ;;  %v9742_v10 = vld [vmem:[#allocation9 + $0x48] sm:$0xff]  }
 0x19c   : > { %v8468_v29 = vpop.f32.mrb[27].mxu0  ;;  %v2536_v58 = vsel %vm1602_vm10, %v2534_v6, %v2535_v60  ;;  %8886 = vmatprep.subr.bf16.mxu1 %v9742_v10 }
 0x19d   : > { %v8469_v9 = vadd.f32 %v8468_v29, %v8467_v23  ;;  %v11527_v30 = vadd.f32 %v8578_v40, %v8466_v48  ;;  %v9743_v23 = vld [vmem:[#allocation9 + $0x8] sm:$0xff]  }
 0x19e   : > { %8887 = vmatpush3.bf16.msra.mxu1 %v9743_v23 }
 0x19f   : > { %v11530_v1 = vadd.f32 %v8581_v31, %v8469_v9 }
 0x1a1   : > { %3807 = vmatmul.mubr.bf16.gmra.mrb[124].mxu1 %v11479_v24 }
 0x1a2   : > { %v8582_v62 = vpop.f32.mrb[28].mxu1  ;;  %3646 = vmatmul.mubr.bf16.gmra.mrb[124].mxu0 %v2002_v8  ;;  %v13269_v8 = vld [vmem:[#allocation23_spill] sm:$0xff] }
 0x1a3   : > { %v8583_v7 = vpop.f32.mrb[29].mxu1  ;;  %9372 = vmatprep.mubr.bf16.mxu0 %v2533_v35  ;;  %v8470_v47 = vpop.f32.mrb[28].mxu0 }
 0x1a4   : > { %v8584_v63 = vadd.f32 %v8583_v7, %v8582_v62  ;;  %v8585_v13 = vpop.f32.mrb[30].mxu1  ;;  %v8471_v54 = vpop.f32.mrb[29].mxu0 }
 0x1a5   : > { %v8586_v24 = vpop.f32.mrb[31].mxu1  ;;  %v8472_v50 = vadd.f32 %v8471_v54, %v8470_v47  ;;  %v8473_v49 = vpop.f32.mrb[30].mxu0 }
 0x1a6   : > { %v8587_v18 = vadd.f32 %v8586_v24, %v8585_v13  ;;  %v8474_v26 = vpop.f32.mrb[31].mxu0 }
 0x1a7   : > { %v8475_v45 = vadd.f32 %v8474_v26, %v8473_v49  ;;  %v11533_v61 = vadd.f32 %v8584_v63, %v8472_v50  ;;  %v9745_v26 = vld [vmem:[#allocation9 + $0x10] sm:$0xff]  }
 0x1a9   : > { %v11535_v41 = vadd.f32 %v8587_v18, %v8475_v45 }
 0x1aa   : > { %v8588_v12 = vpop.f32.mrb[32].mxu1  ;;  %9373 = vmatmul.mubr.bf16.vlgmr.msra.gmra.mrb[128].mxu0 %v2536_v58 }
 0x1ab   : > { %v8589_v40 = vpop.f32.mrb[33].mxu1  ;;  %9376 = vmatprep.mubr.bf16.mxu0 %v13268_v16  ;;  %v8476_v32 = vpop.f32.mrb[32].mxu0 }
 0x1ac   : > { %v8590_v57 = vadd.f32 %v8589_v40, %v8588_v12  ;;  %v8591_v14 = vpop.f32.mrb[34].mxu1  ;;  %v8477_v53 = vpop.f32.mrb[33].mxu0 }
 0x1ad   : > { %v8592_v21 = vpop.f32.mrb[35].mxu1  ;;  %v8478_v51 = vadd.f32 %v8477_v53, %v8476_v32  ;;  %v8479_v31 = vpop.f32.mrb[34].mxu0 }
 0x1ae   : > { %v8593_v48 = vadd.f32 %v8592_v21, %v8591_v14  ;;  %v8480_v56 = vpop.f32.mrb[35].mxu0 }
 0x1af   : > { %v11538_v28 = vadd.f32 %v8590_v57, %v8478_v51  ;;  %v8481_v55 = vadd.f32 %v8480_v56, %v8479_v31 }
 0x1b1   : > { %v11540_v29 = vadd.f32 %v8593_v48, %v8481_v55 }
 0x1b2   : > { %9377 = vmatmul.mubr.bf16.gmra.mrb[132].mxu0 %v13269_v8  ;;  %v8594_v35 = vpop.f32.mrb[36].mxu1 }
 0x1b3   : > { %9380 = vmatprep.mubr.bf16.mxu0 %v11325_v11  ;;  %v8482_v9 = vpop.f32.mrb[36].mxu0  ;;  %v8595_v60 = vpop.f32.mrb[37].mxu1  ;;  %v9744_v11 = vld [vmem:[#allocation9 + $0x50] sm:$0xff]  }
 0x1b4   : > { %v8483_v34 = vpop.f32.mrb[37].mxu0  ;;  %v8596_v6 = vadd.f32 %v8595_v60, %v8594_v35  ;;  %v8597_v47 = vpop.f32.mrb[38].mxu1  ;;  %8888 = vmatprep.subr.bf16.mxu1 %v9744_v11 }
 0x1b5   : > { %v8484_v62 = vadd.f32 %v8483_v34, %v8482_v9  ;;  %v8485_v7 = vpop.f32.mrb[38].mxu0  ;;  %v8598_v13 = vpop.f32.mrb[39].mxu1  ;;  %8889 = vmatpush3.bf16.msra.mxu1 %v9745_v26 }
 0x1b6   : > { %v8486_v63 = vpop.f32.mrb[39].mxu0  ;;  %v8599_v50 = vadd.f32 %v8598_v13, %v8597_v47  ;;  %v9747_v47 = vld [vmem:[#allocation9 + $0x18] sm:$0xff]  }
 0x1b7   : > { %v11544_v54 = vadd.f32 %v8596_v6, %v8484_v62  ;;  %v8487_v24 = vadd.f32 %v8486_v63, %v8485_v7  ;;  %v9746_v62 = vld [vmem:[#allocation9 + $0x58] sm:$0xff]  }
 0x1b8   : > { %8890 = vmatprep.subr.bf16.mxu1 %v9746_v62 }
 0x1b9   : > { %v11546_v49 = vadd.f32 %v8599_v50, %v8487_v24  ;;  %8891 = vmatpush3.bf16.msra.mxu1 %v9747_v47 }
 0x1ba   : > { %9381 = vmatmul.mubr.bf16.gmra.mrb[136].mxu0 %v11330_v36 }
 0x1bb   : > { %9384 = vmatprep.mubr.bf16.mxu0 %v11337_v52 }
 0x1bd   : > { %v8600_v18 = vpop.f32.mrb[40].mxu1 }
 0x1be   : > { %v8601_v58 = vpop.f32.mrb[41].mxu1 }
 0x1bf   : > { %v8488_v45 = vpop.f32.mrb[40].mxu0  ;;  %v8602_v12 = vadd.f32 %v8601_v58, %v8600_v18  ;;  %v8603_v40 = vpop.f32.mrb[42].mxu1 }
 0x1c0   : > { %v8489_v16 = vpop.f32.mrb[41].mxu0  ;;  %v8604_v32 = vpop.f32.mrb[43].mxu1 }
 0x1c1   : > { %v8490_v57 = vadd.f32 %v8489_v16, %v8488_v45  ;;  %v8491_v14 = vpop.f32.mrb[42].mxu0  ;;  %v8605_v10 = vadd.f32 %v8604_v32, %v8603_v40 }
 0x1c2   : > { %9385 = vmatmul.mubr.bf16.gmra.mrb[140].mxu0 %v11344_v25  ;;  %v8492_v53 = vpop.f32.mrb[43].mxu0 }
 0x1c3   : > { %9388 = vmatprep.mubr.bf16.mxu0 %v11350_v44  ;;  %v11552_v36 = vadd.f32 %v8602_v12, %v8490_v57  ;;  %v8493_v52 = vadd.f32 %v8492_v53, %v8491_v14  ;;  %v9748_v57 = vld [vmem:[#allocation9 + $0x60] sm:$0xff]  }
 0x1c4   : > { %8892 = vmatprep.subr.bf16.mxu1 %v9748_v57 }
 0x1c5   : > { %v11554_v21 = vadd.f32 %v8605_v10, %v8493_v52  ;;  %v8606_v51 = vpop.f32.mrb[44].mxu1 }
 0x1c6   : > { %v8607_v31 = vpop.f32.mrb[45].mxu1 }
 0x1c7   : > { %v8494_v48 = vpop.f32.mrb[44].mxu0  ;;  %v8608_v23 = vadd.f32 %v8607_v31, %v8606_v51  ;;  %v8609_v56 = vpop.f32.mrb[46].mxu1 }
 0x1c8   : > { %v8495_v55 = vpop.f32.mrb[45].mxu0  ;;  %v8610_v8 = vpop.f32.mrb[47].mxu1 }
 0x1c9   : > { %v8496_v9 = vadd.f32 %v8495_v55, %v8494_v48  ;;  %v8497_v35 = vpop.f32.mrb[46].mxu0  ;;  %v8611_v34 = vadd.f32 %v8610_v8, %v8609_v56 }
 0x1ca   : > { %9389 = vmatmul.mubr.bf16.gmra.mrb[144].mxu0 %v11358_v20  ;;  %v8498_v25 = vpop.f32.mrb[47].mxu0 }
 0x1cb   : > { %9392 = vmatprep.mubr.bf16.mxu0 %v11375_v17  ;;  %v11558_v44 = vadd.f32 %v8608_v23, %v8496_v9  ;;  %v8499_v60 = vadd.f32 %v8498_v25, %v8497_v35 }
 0x1cd   : > { %v11560_v6 = vadd.f32 %v8611_v34, %v8499_v60  ;;  %v8612_v7 = vpop.f32.mrb[48].mxu1 }
 0x1ce   : > { %v8613_v63 = vpop.f32.mrb[49].mxu1 }
 0x1cf   : > { %v8500_v13 = vpop.f32.mrb[48].mxu0  ;;  %v8614_v24 = vadd.f32 %v8613_v63, %v8612_v7  ;;  %v8615_v50 = vpop.f32.mrb[50].mxu1 }
 0x1d0   : > { %v8501_v11 = vpop.f32.mrb[49].mxu0  ;;  %v8616_v18 = vpop.f32.mrb[51].mxu1 }
 0x1d1   : > { %v8502_v20 = vadd.f32 %v8501_v11, %v8500_v13  ;;  %v8503_v26 = vpop.f32.mrb[50].mxu0  ;;  %v8617_v58 = vadd.f32 %v8616_v18, %v8615_v50  ;;  %v9750_v13 = vld [vmem:[#allocation9 + $0x68] sm:$0xff]  }
 0x1d2   : > { %9393 = vmatmul.mubr.bf16.gmra.mrb[148].mxu0 %v11389_v33  ;;  %v8504_v17 = vpop.f32.mrb[51].mxu0  ;;  %v9749_v33 = vld [vmem:[#allocation9 + $0x20] sm:$0xff]   ;;  %v9751_v11 = vld [vmem:[#allocation9 + $0x28] sm:$0xff]  }
 0x1d3   : > { %9396 = vmatprep.mubr.bf16.mxu0 %v11393_v37  ;;  %v11564_v45 = vadd.f32 %v8614_v24, %v8502_v20  ;;  %v8505_v12 = vadd.f32 %v8504_v17, %v8503_v26  ;;  %8893 = vmatpush3.bf16.msra.mxu1 %v9749_v33 }
 0x1d4   : > { %8894 = vmatprep.subr.bf16.mxu1 %v9750_v13 }
 0x1d5   : > { %v11566_v40 = vadd.f32 %v8617_v58, %v8505_v12 }
 0x1d7   : > { %v8618_v16 = vpop.f32.mrb[52].mxu1  ;;  %8895 = vmatpush3.bf16.msra.mxu1 %v9751_v11 }
 0x1d8   : > { %v8619_v32 = vpop.f32.mrb[53].mxu1 }
 0x1d9   : > { %v8620_v14 = vadd.f32 %v8619_v32, %v8618_v16  ;;  %v8621_v10 = vpop.f32.mrb[54].mxu1  ;;  %v8506_v53 = vpop.f32.mrb[52].mxu0 }
 0x1da   : > { %9397 = vmatmul.mubr.bf16.gmra.mrb[152].mxu0 %v11402_v59  ;;  %v8622_v52 = vpop.f32.mrb[55].mxu1  ;;  %v8507_v51 = vpop.f32.mrb[53].mxu0 }
 0x1db   : > { %9400 = vmatprep.mubr.bf16.mxu0 %v11423_v39  ;;  %v8623_v37 = vadd.f32 %v8622_v52, %v8621_v10  ;;  %v8508_v31 = vadd.f32 %v8507_v51, %v8506_v53  ;;  %v8509_v48 = vpop.f32.mrb[54].mxu0 }
 0x1dc   : > { %v8510_v23 = vpop.f32.mrb[55].mxu0 }
 0x1dd   : > { %v11570_v56 = vadd.f32 %v8620_v14, %v8508_v31  ;;  %v8511_v59 = vadd.f32 %v8510_v23, %v8509_v48  ;;  %v9752_v31 = vld [vmem:[#allocation9 + $0x70] sm:$0xff]   ;;  %v447_v48 = vld [vmem:[#allocation3 + $0x18] sm:$0x1] }
 0x1de   : > { %v9754_v23 = vld [vmem:[#allocation9 + $0xc0] sm:$0xff]   ;;  %8896 = vmatprep.subr.bf16.mxu1 %v9752_v31 }
 0x1df   : > { %v11573_v39 = vadd.f32 %v8623_v37, %v8511_v59  ;;  %8996 = vmatprep.subr.bf16.mxu0 %v9754_v23 }
 0x1e2   : > { %9401 = vmatmul.mubr.bf16.gmra.mrb[156].mxu0 %v11434_v2  ;;  %v8624_v55 = vpop.f32.mrb[56].mxu1 }
 0x1e3   : > { %v8625_v8 = vpop.f32.mrb[57].mxu1 }
 0x1e4   : > { %v8626_v9 = vadd.f32 %v8625_v8, %v8624_v55  ;;  %v8627_v35 = vpop.f32.mrb[58].mxu1  ;;  %v8512_v34 = vpop.f32.mrb[56].mxu0 }
 0x1e5   : > { %v8628_v25 = vpop.f32.mrb[59].mxu1  ;;  %v8513_v60 = vpop.f32.mrb[57].mxu0 }
 0x1e6   : > { %v8629_v62 = vadd.f32 %v8628_v25, %v8627_v35  ;;  %v8514_v7 = vadd.f32 %v8513_v60, %v8512_v34  ;;  %v8515_v47 = vpop.f32.mrb[58].mxu0  ;;  %v9755_v35 = vld [vmem:[#allocation9 + $0x80] sm:$0xff]  }
 0x1e7   : > { %v8516_v63 = vpop.f32.mrb[59].mxu0  ;;  %8997 = vmatpush3.bf16.msra.mxu0 %v9755_v35 }
 0x1e8   : > { %v11575_v24 = vadd.f32 %v8626_v9, %v8514_v7  ;;  %v8517_v50 = vadd.f32 %v8516_v63, %v8515_v47  ;;  %v448_v9 = vsel %vm10426_vm2, 0, %v447_v48  ;;  %v9756_v63 = vld [vmem:[#allocation9 + $0xc8] sm:$0xff]  }
 0x1e9   : > { %449 = vst [vmem:[#allocation3 + $0x18] sm:$0x1] %v448_v9  ;;  %8998 = vmatprep.subr.bf16.mxu0 %v9756_v63  ;;  %v495_v48 = vld [vmem:[#allocation3 + $0x20] sm:$0x1]  ;;  %v492_v9 = vld [vmem:[#allocation3 + $0x14] sm:$0x1] }
 0x1ea   : > { %v11577_v2 = vadd.f32 %v8629_v62, %v8517_v50  ;;  %v8630_v18 = vpop.f32.mrb[60].mxu1  ;;  %v9757_v50 = vld [vmem:[#allocation9 + $0x88] sm:$0xff]  }
 0x1eb   : > { %v8631_v20 = vpop.f32.mrb[61].mxu1  ;;  %8999 = vmatpush3.bf16.msra.mxu0 %v9757_v50 }
 0x1ec   : > { %v8632_v26 = vadd.f32 %v8631_v20, %v8630_v18  ;;  %v8633_v58 = vpop.f32.mrb[62].mxu1  ;;  %v8518_v17 = vpop.f32.mrb[60].mxu0 }
 0x1ed   : > { %v8634_v12 = vpop.f32.mrb[63].mxu1  ;;  %v8519_v16 = vpop.f32.mrb[61].mxu0 }
 0x1ee   : > { %v8635_v32 = vadd.f32 %v8634_v12, %v8633_v58  ;;  %v8520_v57 = vadd.f32 %v8519_v16, %v8518_v17  ;;  %v8521_v14 = vpop.f32.mrb[62].mxu0  ;;  %v9758_v12 = vld [vmem:[#allocation9 + $0xd0] sm:$0xff]  }
 0x1ef   : > { %v8522_v10 = vpop.f32.mrb[63].mxu0  ;;  %9000 = vmatprep.subr.bf16.mxu0 %v9758_v12  ;;  %v450_v12 = vld [vmem:[#allocation3 + $0x24] sm:$0x1] }
 0x1f0   : > { %v11579_v53 = vadd.f32 %v8632_v26, %v8520_v57  ;;  %v8523_v52 = vadd.f32 %v8522_v10, %v8521_v14  ;;  %v9759_v57 = vld [vmem:[#allocation9 + $0x90] sm:$0xff]  }
 0x1f1   : > { %9001 = vmatpush3.bf16.msra.mxu0 %v9759_v57  ;;  %v501_v57 = vld [vmem:[#allocation3 + $0x38] sm:$0x1] }
 0x1f2   : > { %v8764_v33 = vpop.f32.mrb[64].mxu1  ;;  %v11581_v51 = vadd.f32 %v8635_v32, %v8523_v52  ;;  %v444_v52 = vld [vmem:[#allocation3 + $0xc] sm:$0x1] }
 0x1f3   : > { %v8765_v37 = vpop.f32.mrb[65].mxu1  ;;  %v445_v31 = vsel %vm10426_vm2, 0, %v444_v52  ;;  %v502_v52 = vsel %vm10439_vm6, 0, %v501_v57 }
 0x1f4   : > { %v8766_v59 = vadd.f32 %v8765_v37, %v8764_v33  ;;  %v8767_v55 = vpop.f32.mrb[66].mxu1  ;;  %v8652_v34 = vpop.f32.mrb[64].mxu0  ;;  %446 = vst [vmem:[#allocation3 + $0xc] sm:$0x1] %v445_v31  ;;  %503 = vst [vmem:[#allocation3 + $0x38] sm:$0x1] %v502_v52 }
 0x1f5   : > { %v8768_v25 = vpop.f32.mrb[67].mxu1  ;;  %v8653_v60 = vpop.f32.mrb[65].mxu0 }
 0x1f6   : > { %v8769_v62 = vadd.f32 %v8768_v25, %v8767_v55  ;;  %v8654_v7 = vadd.f32 %v8653_v60, %v8652_v34  ;;  %v8655_v47 = vpop.f32.mrb[66].mxu0  ;;  %v496_v55 = vsel %vm10439_vm6, 0, %v495_v48  ;;  %v493_v34 = vsel %vm10439_vm6, 0, %v492_v9  ;;  %v9760_v48 = vld [vmem:[#allocation9 + $0xd8] sm:$0xff]  }
 0x1f7   : > { %v8656_v13 = vpop.f32.mrb[67].mxu0  ;;  %497 = vst [vmem:[#allocation3 + $0x20] sm:$0x1] %v496_v55  ;;  %494 = vst [vmem:[#allocation3 + $0x14] sm:$0x1] %v493_v34  ;;  %9002 = vmatprep.subr.bf16.mxu0 %v9760_v48 }
 0x1f8   : > { %v3528_v11 = vadd.f32 %v8654_v7, %v11410_v42  ;;  %v8657_v18 = vadd.f32 %v8656_v13, %v8655_v47 }
 0x1fa   : > { %v8770_v20 = vpop.f32.mrb[68].mxu1  ;;  %v3531_v26 = vadd.f32 %v8657_v18, %v11414_v46  ;;  %v11587_v17 = vadd.f32 %v8766_v59, %v3528_v11  ;;  %v453_v11 = vld [vmem:[#allocation3 + $0x30] sm:$0x1] }
 0x1fb   : > { %v8771_v58 = vpop.f32.mrb[69].mxu1 }
 0x1fc   : > { %v8772_v16 = vadd.f32 %v8771_v58, %v8770_v20  ;;  %v8773_v32 = vpop.f32.mrb[70].mxu1  ;;  %v8658_v14 = vpop.f32.mrb[68].mxu0  ;;  %v11589_v33 = vadd.f32 %v8769_v62, %v3531_v26  ;;  %v454_v58 = vsel %vm10426_vm2, 0, %v453_v11  ;;  %v9765_v11 = vld [vmem:[#allocation9 + $0xa0] sm:$0xff]  }
 0x1fd   : > { %v8774_v10 = vpop.f32.mrb[71].mxu1  ;;  %v8659_v42 = vpop.f32.mrb[69].mxu0  ;;  %455 = vst [vmem:[#allocation3 + $0x30] sm:$0x1] %v454_v58 }
 0x1fe   : > { %v8775_v37 = vadd.f32 %v8774_v10, %v8773_v32  ;;  %v8660_v46 = vadd.f32 %v8659_v42, %v8658_v14  ;;  %v8661_v23 = vpop.f32.mrb[70].mxu0  ;;  %v9753_v10 = vld [vmem:[#allocation9 + $0x30] sm:$0xff]  }
 0x1ff   : > { %v8662_v35 = vpop.f32.mrb[71].mxu0  ;;  %8897 = vmatpush3.bf16.msra.mxu1 %v9753_v10 }
 0x200   : > { %v3536_v25 = vadd.f32 %v8660_v46, %v11416_v0  ;;  %v8663_v60 = vadd.f32 %v8662_v35, %v8661_v23  ;;  %v9761_v23 = vld [vmem:[#allocation9 + $0x98] sm:$0xff]  }
 0x201   : > { %9003 = vmatpush3.bf16.msra.mxu0 %v9761_v23  ;;  %v9762_v23 = vld [vmem:[#allocation9 + $0x78] sm:$0xff]  }
 0x202   : > { %v8776_v62 = vpop.f32.mrb[72].mxu1  ;;  %v3539_v7 = vadd.f32 %v8663_v60, %v11429_v15  ;;  %v11599_v63 = vadd.f32 %v8772_v16, %v3536_v25  ;;  %v451_v15 = vsel %vm10426_vm2, 0, %v450_v12  ;;  %v498_v12 = vld [vmem:[#allocation3 + $0x2c] sm:$0x1]  ;;  %8898 = vmatprep.subr.bf16.mxu1 %v9762_v23 }
 0x203   : > { %v8777_v47 = vpop.f32.mrb[73].mxu1  ;;  %452 = vst [vmem:[#allocation3 + $0x24] sm:$0x1] %v451_v15  ;;  %v499_v57 = vsel %vm10439_vm6, 0, %v498_v12 }
 0x204   : > { %v8778_v13 = vadd.f32 %v8777_v47, %v8776_v62  ;;  %v8779_v50 = vpop.f32.mrb[74].mxu1  ;;  %v8664_v18 = vpop.f32.mrb[72].mxu0  ;;  %v11601_v26 = vadd.f32 %v8775_v37, %v3539_v7  ;;  %v9764_v47 = vld [vmem:[#allocation9 + $0xe0] sm:$0xff]   ;;  %500 = vst [vmem:[#allocation3 + $0x2c] sm:$0x1] %v499_v57 }
 0x205   : > { %v8780_v20 = vpop.f32.mrb[75].mxu1  ;;  %v8665_v0 = vpop.f32.mrb[73].mxu0  ;;  %9004 = vmatprep.subr.bf16.mxu0 %v9764_v47 }
 0x206   : > { %v8781_v32 = vadd.f32 %v8780_v20, %v8779_v50  ;;  %v8666_v16 = vadd.f32 %v8665_v0, %v8664_v18  ;;  %v8667_v14 = vpop.f32.mrb[74].mxu0  ;;  %9005 = vmatpush3.bf16.msra.mxu0 %v9765_v11  ;;  %v9766_v0 = vld [vmem:[#allocation9 + $0xe8] sm:$0xff]  }
 0x207   : > { %v8668_v42 = vpop.f32.mrb[75].mxu0  ;;  %9006 = vmatprep.subr.bf16.mxu0 %v9766_v0 }
 0x208   : > { %v3544_v37 = vadd.f32 %v8666_v16, %v11455_v22  ;;  %v8669_v31 = vadd.f32 %v8668_v42, %v8667_v14 }
 0x20a   : > { %v8782_v46 = vpop.f32.mrb[76].mxu1  ;;  %v3547_v55 = vadd.f32 %v8669_v31, %v11460_v3  ;;  %v11611_v35 = vadd.f32 %v8778_v13, %v3544_v37  ;;  %v4614_v37 = vld [vmem:[#allocation3] sm:$0xf] }
 0x20b   : > { %v8783_v9 = vpop.f32.mrb[77].mxu1 }
 0x20c   : > { %v8784_v34 = vadd.f32 %v8783_v9, %v8782_v46  ;;  %v8785_v25 = vpop.f32.mrb[78].mxu1  ;;  %v8670_v60 = vpop.f32.mrb[76].mxu0  ;;  %v11613_v7 = vadd.f32 %v8781_v32, %v3547_v55  ;;  %v9767_v32 = vld [vmem:[#allocation9 + $0xa8] sm:$0xff]   ;;  %v9768_v55 = vld [vmem:[#allocation9 + $0xf0] sm:$0xff]  }
 0x20d   : > { %v8786_v62 = vpop.f32.mrb[79].mxu1  ;;  %v8671_v22 = vpop.f32.mrb[77].mxu0  ;;  %9007 = vmatpush3.bf16.msra.mxu0 %v9767_v32 }
 0x20e   : > { %v8787_v50 = vadd.f32 %v8786_v62, %v8785_v25  ;;  %v8672_v18 = vadd.f32 %v8671_v22, %v8670_v60  ;;  %v8673_v20 = vpop.f32.mrb[78].mxu0  ;;  %v459_v25 = vld [vmem:[#allocation3 + $0x48] sm:$0x1]  ;;  %v9763_v60 = vld [vmem:[#allocation9 + $0x38] sm:$0xff]   ;;  %9008 = vmatprep.subr.bf16.mxu0 %v9768_v55 }
 0x20f   : > { %v8674_v58 = vpop.f32.mrb[79].mxu0  ;;  %v9769_v62 = vld [vmem:[#allocation9 + $0xb0] sm:$0xff]   ;;  %v460_v11 = vsel %vm10426_vm2, 0, %v459_v25  ;;  %8899 = vmatpush3.bf16.msra.mxu1 %v9763_v60 }
 0x210   : > { %v3552_v3 = vadd.f32 %v8672_v18, %v11476_v38  ;;  %v8675_v13 = vadd.f32 %v8674_v58, %v8673_v20  ;;  %v11621_v38 = vld [vmem:[#allocation3 + $0x4] sm:$0xf]  ;;  %v456_v18 = vld [vmem:[#allocation3 + $0x3c] sm:$0x1]  ;;  %461 = vst [vmem:[#allocation3 + $0x48] sm:$0x1] %v460_v11 }
 0x211   : > { %v11626_v9 = vcombine.low %v4614_v37, %v11621_v38  ;;  %v457_v58 = vsel %vm10426_vm2, 0, %v456_v18  ;;  %9009 = vmatpush3.bf16.msra.mxu0 %v9769_v62  ;;  %v9771_v37 = vld [vmem:[#allocation3 + $0x8] ss:$0 sps:$4 sm:$0x11]   ;;  %v9772_v62 = vld [vmem:[#allocation9 + $0xf8] sm:$0xff]  }
 0x212   : > { %v8788_v15 = vpop.f32.mrb[80].mxu1  ;;  %v3555_v16 = vadd.f32 %v8675_v13, %v11482_v19  ;;  %v11619_v10 = vadd.f32 %v8784_v34, %v3552_v3  ;;  %v507_v3 = vld [vmem:[#allocation3 + $0x50] sm:$0x1]  ;;  %458 = vst [vmem:[#allocation3 + $0x3c] sm:$0x1] %v457_v58  ;;  %v4959_v60 = vshll.u32 %v9771_v37, 16  ;;  %9010 = vmatprep.subr.bf16.mxu0 %v9772_v62 }
 0x213   : > { %v8789_v14 = vpop.f32.mrb[81].mxu1  ;;  %v508_v0 = vsel %vm10439_vm6, 0, %v507_v3  ;;  %v465_v11 = vld [vmem:[#allocation3 + $0x60] sm:$0x1]  ;;  %v4662_v18 = vld [vmem:[#allocation3] sm:$0xe] }
 0x214   : > { %v8790_v52 = vadd.f32 %v8789_v14, %v8788_v15  ;;  %v8791_v42 = vpop.f32.mrb[82].mxu1  ;;  %v8676_v31 = vpop.f32.mrb[80].mxu0  ;;  %v11623_v46 = vadd.f32 %v8787_v50, %v3555_v16  ;;  %v4954_v50 = vshll.u32 %v11626_v9, 16  ;;  %v504_v15 = vld [vmem:[#allocation3 + $0x44] sm:$0x1]  ;;  %v466_v58 = vsel %vm10426_vm2, 0, %v465_v11 }
 0x215   : > { %v8792_v48 = vpop.f32.mrb[83].mxu1  ;;  %v8677_v19 = vpop.f32.mrb[81].mxu0  ;;  %509 = vst [vmem:[#allocation3 + $0x50] sm:$0x1] %v508_v0  ;;  %v505_v32 = vsel %vm10439_vm6, 0, %v504_v15 }
 0x216   : > { %v8793_v34 = vadd.f32 %v8792_v48, %v8791_v42  ;;  %v8678_v47 = vadd.f32 %v8677_v19, %v8676_v31  ;;  %v8679_v22 = vpop.f32.mrb[82].mxu0  ;;  %506 = vst [vmem:[#allocation3 + $0x44] sm:$0x1] %v505_v32  ;;  %v4956_v31 = vrot.slane %v4954_v50, 1  ;;  %v462_v3 = vld [vmem:[#allocation3 + $0x54] sm:$0x1] }
 0x217   : > { %v8680_v20 = vpop.f32.mrb[83].mxu0  ;;  %467 = vst [vmem:[#allocation3 + $0x60] sm:$0x1] %v466_v58  ;;  %v513_v0 = vld [vmem:[#allocation3 + $0x68] sm:$0x1] }
 0x218   : > { %v3560_v13 = vadd.f32 %v8678_v47, %v11502_v27  ;;  %v8681_v12 = vadd.f32 %v8680_v20, %v8679_v22  ;;  %v4952_v27 = vshrl.u32 %v11626_v9, 16  ;;  %v514_v32 = vsel %vm10439_vm6, 0, %v513_v0  ;;  %v471_v0 = vld [vmem:[#allocation3 + $0x78] sm:$0x1] }
 0x219   : > { %515 = vst [vmem:[#allocation3 + $0x68] sm:$0x1] %v514_v32  ;;  %v468_v32 = vld [vmem:[#allocation3 + $0x6c] sm:$0x1] }
 0x21a   : > { %v8794_v57 = vpop.f32.mrb[84].mxu1  ;;  %v3563_v16 = vadd.f32 %v8681_v12, %v11509_v43  ;;  %v11639_v42 = vadd.f32 %v8790_v52, %v3560_v13  ;;  %v9773_v43 = vld [vmem:[#allocation9 + $0xb8] sm:$0xff]   ;;  %v4957_v50 = vor.u32 %v4956_v31, %v4952_v27  ;;  %v8187_v13 = vcombine.low %v4662_v18, %v11621_v38  ;;  %v510_v18 = vld [vmem:[#allocation3 + $0x5c] sm:$0x1] }
 0x21b   : > { %v8795_v14 = vpop.f32.mrb[85].mxu1  ;;  %9011 = vmatpush3.bf16.msra.mxu0 %v9773_v43  ;;  %v5208_v31 = vrot.slane %v9771_v37, 1 }
 0x21c   : > { %v8796_v48 = vadd.f32 %v8795_v14, %v8794_v57  ;;  %v8797_v23 = vpop.f32.mrb[86].mxu1  ;;  %v8682_v55 = vpop.f32.mrb[84].mxu0  ;;  %v11642_v25 = vadd.f32 %v8793_v34, %v3563_v16  ;;  %v463_v34 = vsel %vm10426_vm2, 0, %v462_v3  ;;  %v4961_v16 = vrot.slane %v4959_v60, 1 }
 0x21d   : > { %v8798_v19 = vpop.f32.mrb[87].mxu1  ;;  %v8683_v47 = vpop.f32.mrb[85].mxu0  ;;  %464 = vst [vmem:[#allocation3 + $0x54] sm:$0x1] %v463_v34  ;;  %v5207_v27 = vrot.slane %v8187_v13, 1 }
 0x21e   : > { %v8799_v22 = vadd.f32 %v8798_v19, %v8797_v23  ;;  %v8684_v52 = vadd.f32 %v8683_v47, %v8682_v55  ;;  %v8685_v20 = vpop.f32.mrb[86].mxu0  ;;  %v4962_v19 = vsel %vm1345_vm5, %v4957_v50, %v4961_v16 }
 0x21f   : > { %v8686_v12 = vpop.f32.mrb[87].mxu0  ;;  %6807 = vmatprep.mubr.bf16.mxu1 %v4962_v19 }
 0x220   : > { %v3568_v15 = vadd.f32 %v8684_v52, %v11519_v4  ;;  %v8687_v57 = vadd.f32 %v8686_v12, %v8685_v20  ;;  %v11657_v4 = vsel %vm1602_vm10, %v5207_v27, %v5208_v31  ;;  %6808 = vmatmul.mubr.bf16.vlgmr.msra.gmra.mrb[128].mxu1 %v11626_v9 }
 0x222   : > { %v8800_v14 = vpop.f32.mrb[88].mxu1  ;;  %v3571_v38 = vadd.f32 %v8687_v57, %v11523_v5  ;;  %v11653_v55 = vadd.f32 %v8796_v48, %v3568_v15  ;;  %v511_v48 = vsel %vm10439_vm6, 0, %v510_v18  ;;  %v472_v57 = vsel %vm10426_vm2, 0, %v471_v0  ;;  %v516_v0 = vld [vmem:[#allocation3 + $0x74] sm:$0x1] }
 0x223   : > { %v8801_v23 = vpop.f32.mrb[89].mxu1  ;;  %512 = vst [vmem:[#allocation3 + $0x5c] sm:$0x1] %v511_v48  ;;  %473 = vst [vmem:[#allocation3 + $0x78] sm:$0x1] %v472_v57 }
 0x224   : > { %v8802_v62 = vadd.f32 %v8801_v23, %v8800_v14  ;;  %v8803_v47 = vpop.f32.mrb[90].mxu1  ;;  %v8688_v11 = vpop.f32.mrb[88].mxu0  ;;  %v11659_v60 = vadd.f32 %v8799_v22, %v3571_v38 }
 0x225   : > { %v8804_v43 = vpop.f32.mrb[91].mxu1  ;;  %v8689_v37 = vpop.f32.mrb[89].mxu0 }
 0x226   : > { %v8805_v5 = vadd.f32 %v8804_v43, %v8803_v47  ;;  %v8690_v52 = vadd.f32 %v8689_v37, %v8688_v11  ;;  %v8691_v20 = vpop.f32.mrb[90].mxu0 }
 0x227   : > { %v8692_v58 = vpop.f32.mrb[91].mxu0 }
 0x228   : > { %v3576_v3 = vadd.f32 %v8690_v52, %v11527_v30  ;;  %v8693_v50 = vadd.f32 %v8692_v58, %v8691_v20  ;;  %v469_v30 = vsel %vm10426_vm2, 0, %v468_v32  ;;  %v519_v20 = vld [vmem:[#allocation3 + $0x80] sm:$0x1] }
 0x229   : > { %470 = vst [vmem:[#allocation3 + $0x6c] sm:$0x1] %v469_v30 }
 0x22a   : > { %v8806_v13 = vpop.f32.mrb[92].mxu1  ;;  %v3579_v12 = vadd.f32 %v8693_v50, %v11530_v1  ;;  %v11666_v34 = vadd.f32 %v8802_v62, %v3576_v3  ;;  %v9776_v62 = vld [vmem:[#allocation9 + $0x140] sm:$0xff]  }
 0x22b   : > { %v8807_v22 = vpop.f32.mrb[93].mxu1  ;;  %9108 = vmatprep.subr.bf16.mxu1 %v9776_v62 }
 0x22c   : > { %v8808_v9 = vadd.f32 %v8807_v22, %v8806_v13  ;;  %v8809_v15 = vpop.f32.mrb[94].mxu1  ;;  %v8694_v16 = vpop.f32.mrb[92].mxu0  ;;  %v11670_v27 = vadd.f32 %v8805_v5, %v3579_v12  ;;  %v9778_v13 = vld [vmem:[#allocation9 + $0x100] sm:$0xff]   ;;  %v520_v12 = vsel %vm10439_vm6, 0, %v519_v20 }
 0x22d   : > { %v8810_v14 = vpop.f32.mrb[95].mxu1  ;;  %v8695_v31 = vpop.f32.mrb[93].mxu0  ;;  %521 = vst [vmem:[#allocation3 + $0x80] sm:$0x1] %v520_v12  ;;  %9109 = vmatpush3.bf16.msra.mxu1 %v9778_v13 }
 0x22e   : > { %v8811_v1 = vadd.f32 %v8810_v14, %v8809_v15  ;;  %v8696_v38 = vadd.f32 %v8695_v31, %v8694_v16  ;;  %v8697_v23 = vpop.f32.mrb[94].mxu0 }
 0x22f   : > { %v8698_v19 = vpop.f32.mrb[95].mxu0 }
 0x230   : > { %v3584_v47 = vadd.f32 %v8696_v38, %v11533_v61  ;;  %v8699_v11 = vadd.f32 %v8698_v19, %v8697_v23 }
 0x232   : > { %v8812_v43 = vpop.f32.mrb[96].mxu1  ;;  %v3587_v18 = vadd.f32 %v8699_v11, %v11535_v41  ;;  %v11676_v5 = vadd.f32 %v8808_v9, %v3584_v47  ;;  %v517_v9 = vsel %vm10439_vm6, 0, %v516_v0  ;;  %v477_v11 = vld [vmem:[#allocation3 + $0x90] sm:$0x1]  ;;  %v474_v0 = vld [vmem:[#allocation3 + $0x84] sm:$0x1] }
 0x233   : > { %v8813_v37 = vpop.f32.mrb[97].mxu1  ;;  %518 = vst [vmem:[#allocation3 + $0x74] sm:$0x1] %v517_v9 }
 0x234   : > { %v8814_v48 = vadd.f32 %v8813_v37, %v8812_v43  ;;  %v8815_v52 = vpop.f32.mrb[98].mxu1  ;;  %v8700_v58 = vpop.f32.mrb[96].mxu0  ;;  %v11678_v50 = vadd.f32 %v8811_v1, %v3587_v18  ;;  %v478_v37 = vsel %vm10426_vm2, 0, %v477_v11 }
 0x235   : > { %v8816_v3 = vpop.f32.mrb[99].mxu1  ;;  %v8701_v61 = vpop.f32.mrb[97].mxu0  ;;  %479 = vst [vmem:[#allocation3 + $0x90] sm:$0x1] %v478_v37 }
 0x236   : > { %v8817_v22 = vadd.f32 %v8816_v3, %v8815_v52  ;;  %v8702_v15 = vadd.f32 %v8701_v61, %v8700_v58  ;;  %v8703_v41 = vpop.f32.mrb[98].mxu0 }
 0x237   : > { %v8704_v57 = vpop.f32.mrb[99].mxu0 }
 0x238   : > { %v3592_v32 = vadd.f32 %v8702_v15, %v11538_v28  ;;  %v8705_v16 = vadd.f32 %v8704_v57, %v8703_v41  ;;  %v475_v57 = vsel %vm10426_vm2, 0, %v474_v0 }
 0x239   : > { %476 = vst [vmem:[#allocation3 + $0x84] sm:$0x1] %v475_v57 }
 0x23a   : > { %v3595_v30 = vadd.f32 %v8705_v16, %v11540_v29  ;;  %v11686_v1 = vadd.f32 %v8814_v48, %v3592_v32 }
 0x23c   : > { %v11688_v47 = vadd.f32 %v8817_v22, %v3595_v30 }
 0x243   : > { %v8706_v19 = vpop.f32.mrb[100].mxu0 }
 0x244   : > { %v8818_v14 = vpop.f32.mrb[100].mxu1  ;;  %v8707_v43 = vpop.f32.mrb[101].mxu0 }
 0x245   : > { %v8819_v31 = vpop.f32.mrb[101].mxu1  ;;  %v8708_v28 = vadd.f32 %v8707_v43, %v8706_v19  ;;  %v8709_v52 = vpop.f32.mrb[102].mxu0 }
 0x246   : > { %v8820_v38 = vadd.f32 %v8819_v31, %v8818_v14  ;;  %v8821_v23 = vpop.f32.mrb[102].mxu1  ;;  %v8710_v20 = vpop.f32.mrb[103].mxu0 }
 0x247   : > { %v8822_v62 = vpop.f32.mrb[103].mxu1  ;;  %v3600_v29 = vadd.f32 %v8708_v28, %v11544_v54  ;;  %v8711_v48 = vadd.f32 %v8710_v20, %v8709_v52 }
 0x248   : > { %v8823_v18 = vadd.f32 %v8822_v62, %v8821_v23 }
 0x249   : > { %v3603_v3 = vadd.f32 %v8711_v48, %v11546_v49  ;;  %v11694_v12 = vadd.f32 %v8820_v38, %v3600_v29 }
 0x24b   : > { %v11696_v9 = vadd.f32 %v8823_v18, %v3603_v3  ;;  %v525_v18 = vld [vmem:[#allocation3 + $0x98] sm:$0x1] }
 0x24c   : > { %v8824_v58 = vpop.f32.mrb[104].mxu1  ;;  %v526_v52 = vsel %vm10439_vm6, 0, %v525_v18 }
 0x24d   : > { %v8825_v13 = vpop.f32.mrb[105].mxu1  ;;  %v8712_v15 = vpop.f32.mrb[104].mxu0  ;;  %527 = vst [vmem:[#allocation3 + $0x98] sm:$0x1] %v526_v52 }
 0x24e   : > { %v8826_v61 = vadd.f32 %v8825_v13, %v8824_v58  ;;  %v8827_v22 = vpop.f32.mrb[106].mxu1  ;;  %v8713_v32 = vpop.f32.mrb[105].mxu0  ;;  %v9788_v13 = vld [vmem:[#allocation9 + $0x148] sm:$0xff]  }
 0x24f   : > { %v8828_v41 = vpop.f32.mrb[107].mxu1  ;;  %v8714_v54 = vadd.f32 %v8713_v32, %v8712_v15  ;;  %v8715_v14 = vpop.f32.mrb[106].mxu0  ;;  %v9792_v15 = vld [vmem:[#allocation9 + $0x108] sm:$0xff]   ;;  %9110 = vmatprep.subr.bf16.mxu1 %v9788_v13 }
 0x250   : > { %v8829_v16 = vadd.f32 %v8828_v41, %v8827_v22  ;;  %v8716_v30 = vpop.f32.mrb[107].mxu0  ;;  %v480_v41 = vld [vmem:[#allocation3 + $0x9c] sm:$0x1]  ;;  %9111 = vmatpush3.bf16.msra.mxu1 %v9792_v15 }
 0x251   : > { %v3608_v49 = vadd.f32 %v8714_v54, %v11552_v36  ;;  %v8717_v31 = vadd.f32 %v8716_v30, %v8715_v14  ;;  %v522_v36 = vld [vmem:[#allocation3 + $0x8c] sm:$0x1] }
 0x253   : > { %v3611_v23 = vadd.f32 %v8717_v31, %v11554_v21  ;;  %v11702_v62 = vadd.f32 %v8826_v61, %v3608_v49  ;;  %v523_v21 = vsel %vm10439_vm6, 0, %v522_v36  ;;  %v483_v61 = vld [vmem:[#allocation3 + $0xa8] sm:$0x1] }
 0x254   : > { %v8830_v38 = vpop.f32.mrb[108].mxu1  ;;  %524 = vst [vmem:[#allocation3 + $0x8c] sm:$0x1] %v523_v21  ;;  %v484_v0 = vsel %vm10426_vm2, 0, %v483_v61 }
 0x255   : > { %v8831_v19 = vpop.f32.mrb[109].mxu1  ;;  %v8718_v37 = vpop.f32.mrb[108].mxu0  ;;  %v11706_v20 = vadd.f32 %v8829_v16, %v3611_v23  ;;  %485 = vst [vmem:[#allocation3 + $0xa8] sm:$0x1] %v484_v0  ;;  %v481_v16 = vsel %vm10426_vm2, 0, %v480_v41 }
 0x256   : > { %v8832_v11 = vadd.f32 %v8831_v19, %v8830_v38  ;;  %v8833_v43 = vpop.f32.mrb[110].mxu1  ;;  %v8719_v29 = vpop.f32.mrb[109].mxu0  ;;  %482 = vst [vmem:[#allocation3 + $0x9c] sm:$0x1] %v481_v16 }
 0x257   : > { %v8834_v28 = vpop.f32.mrb[111].mxu1  ;;  %v8720_v58 = vadd.f32 %v8719_v29, %v8718_v37  ;;  %v8721_v3 = vpop.f32.mrb[110].mxu0 }
 0x258   : > { %v8835_v48 = vadd.f32 %v8834_v28, %v8833_v43  ;;  %v8722_v22 = vpop.f32.mrb[111].mxu0 }
 0x259   : > { %v3616_v57 = vadd.f32 %v8720_v58, %v11558_v44  ;;  %v8723_v32 = vadd.f32 %v8722_v22, %v8721_v3  ;;  %v531_v3 = vld [vmem:[#allocation3 + $0xb0] sm:$0x1] }
 0x25a   : > { %v532_v13 = vsel %vm10439_vm6, 0, %v531_v3 }
 0x25b   : > { %v3619_v14 = vadd.f32 %v8723_v32, %v11560_v6  ;;  %v11716_v49 = vadd.f32 %v8832_v11, %v3616_v57  ;;  %533 = vst [vmem:[#allocation3 + $0xb0] sm:$0x1] %v532_v13  ;;  %v528_v57 = vld [vmem:[#allocation3 + $0xa4] sm:$0x1] }
 0x25c   : > { %v8836_v54 = vpop.f32.mrb[112].mxu1 }
 0x25d   : > { %v8837_v30 = vpop.f32.mrb[113].mxu1  ;;  %v8724_v23 = vpop.f32.mrb[112].mxu0  ;;  %v11718_v43 = vadd.f32 %v8835_v48, %v3619_v14 }
 0x25e   : > { %v8838_v31 = vadd.f32 %v8837_v30, %v8836_v54  ;;  %v8839_v38 = vpop.f32.mrb[114].mxu1  ;;  %v8725_v44 = vpop.f32.mrb[113].mxu0 }
 0x25f   : > { %v8840_v19 = vpop.f32.mrb[115].mxu1  ;;  %v8726_v37 = vadd.f32 %v8725_v44, %v8724_v23  ;;  %v8727_v28 = vpop.f32.mrb[114].mxu0 }
 0x260   : > { %v8841_v18 = vadd.f32 %v8840_v19, %v8839_v38  ;;  %v8728_v52 = vpop.f32.mrb[115].mxu0  ;;  %v486_v38 = vld [vmem:[#allocation3 + $0xb4] sm:$0x1] }
 0x261   : > { %v3624_v29 = vadd.f32 %v8726_v37, %v11564_v45  ;;  %v8729_v36 = vadd.f32 %v8728_v52, %v8727_v28  ;;  %v487_v44 = vsel %vm10426_vm2, 0, %v486_v38 }
 0x262   : > { %488 = vst [vmem:[#allocation3 + $0xb4] sm:$0x1] %v487_v44  ;;  %v9804_v44 = vld [vmem:[#allocation9 + $0x110] sm:$0xff]  }
 0x263   : > { %v3627_v6 = vadd.f32 %v8729_v36, %v11566_v40  ;;  %v11722_v21 = vadd.f32 %v8838_v31, %v3624_v29  ;;  %v529_v40 = vsel %vm10439_vm6, 0, %v528_v57  ;;  %v489_v31 = vld [vmem:[#allocation3 + $0xc0] sm:$0x1] }
 0x264   : > { %v8842_v58 = vpop.f32.mrb[116].mxu1  ;;  %530 = vst [vmem:[#allocation3 + $0xa4] sm:$0x1] %v529_v40  ;;  %v490_v19 = vsel %vm10426_vm2, 0, %v489_v31 }
 0x265   : > { %v8843_v11 = vpop.f32.mrb[117].mxu1  ;;  %v8730_v22 = vpop.f32.mrb[116].mxu0  ;;  %v11726_v15 = vadd.f32 %v8841_v18, %v3627_v6  ;;  %491 = vst [vmem:[#allocation3 + $0xc0] sm:$0x1] %v490_v19 }
 0x266   : > { %v8844_v48 = vadd.f32 %v8843_v11, %v8842_v58  ;;  %v8845_v61 = vpop.f32.mrb[118].mxu1  ;;  %v8731_v41 = vpop.f32.mrb[117].mxu0  ;;  %v537_v11 = vld [vmem:[#allocation3 + $0xc8] sm:$0x1] }
 0x267   : > { %v8846_v0 = vpop.f32.mrb[119].mxu1  ;;  %v8732_v32 = vadd.f32 %v8731_v41, %v8730_v22  ;;  %v8733_v16 = vpop.f32.mrb[118].mxu0  ;;  %v538_v22 = vsel %vm10439_vm6, 0, %v537_v11 }
 0x268   : > { %v8847_v45 = vadd.f32 %v8846_v0, %v8845_v61  ;;  %v8734_v54 = vpop.f32.mrb[119].mxu0  ;;  %539 = vst [vmem:[#allocation3 + $0xc8] sm:$0x1] %v538_v22 }
 0x269   : > { %v3632_v14 = vadd.f32 %v8732_v32, %v11570_v56  ;;  %v8735_v30 = vadd.f32 %v8734_v54, %v8733_v16  ;;  %v534_v54 = vld [vmem:[#allocation3 + $0xbc] sm:$0x1] }
 0x26a   : > { %v535_v31 = vsel %vm10439_vm6, 0, %v534_v54 }
 0x26b   : > { %v3635_v18 = vadd.f32 %v8735_v30, %v11573_v39  ;;  %v11736_v28 = vadd.f32 %v8844_v48, %v3632_v14  ;;  %536 = vst [vmem:[#allocation3 + $0xbc] sm:$0x1] %v535_v31 }
 0x26c   : > { %v8848_v23 = vpop.f32.mrb[120].mxu1 }
 0x26d   : > { %v8849_v37 = vpop.f32.mrb[121].mxu1  ;;  %v8736_v56 = vpop.f32.mrb[120].mxu0  ;;  %v11738_v58 = vadd.f32 %v8847_v45, %v3635_v18 }
 0x26e   : > { %v8850_v52 = vadd.f32 %v8849_v37, %v8848_v23  ;;  %v8851_v29 = vpop.f32.mrb[122].mxu1  ;;  %v8737_v3 = vpop.f32.mrb[121].mxu0 }
 0x26f   : > { %v8852_v36 = vpop.f32.mrb[123].mxu1  ;;  %v8738_v13 = vadd.f32 %v8737_v3, %v8736_v56  ;;  %v8739_v61 = vpop.f32.mrb[122].mxu0  ;;  %v9812_v56 = vld [vmem:[#allocation9 + $0x158] sm:$0xff]  }
 0x270   : > { %v8853_v6 = vadd.f32 %v8852_v36, %v8851_v29  ;;  %v8740_v39 = vpop.f32.mrb[123].mxu0 }
 0x271   : > { %v3640_v48 = vadd.f32 %v8738_v13, %v11575_v24  ;;  %v8741_v0 = vadd.f32 %v8740_v39, %v8739_v61  ;;  %v9800_v24 = vld [vmem:[#allocation9 + $0x150] sm:$0xff]   ;;  %v9816_v39 = vld [vmem:[#allocation9 + $0x118] sm:$0xff]  }
 0x272   : > { %9112 = vmatprep.subr.bf16.mxu1 %v9800_v24 }
 0x273   : > { %v3643_v57 = vadd.f32 %v8741_v0, %v11577_v2  ;;  %v11744_v16 = vadd.f32 %v8850_v52, %v3640_v48  ;;  %9113 = vmatpush3.bf16.msra.mxu1 %v9804_v44 }
 0x274   : > { %v8854_v41 = vpop.f32.mrb[124].mxu1  ;;  %9114 = vmatprep.subr.bf16.mxu1 %v9812_v56 }
 0x275   : > { %v8855_v32 = vpop.f32.mrb[125].mxu1  ;;  %v8742_v14 = vpop.f32.mrb[124].mxu0  ;;  %v11748_v38 = vadd.f32 %v8853_v6, %v3643_v57  ;;  %v11757_v6 = vld [vmem:[%s13111_s2] ss:$0 sm:$0xff] }
 0x276   : > { %v8856_v45 = vadd.f32 %v8855_v32, %v8854_v41  ;;  %v8857_v40 = vpop.f32.mrb[126].mxu1  ;;  %v8743_v23 = vpop.f32.mrb[125].mxu0 }
 0x277   : > { %v8858_v30 = vpop.f32.mrb[127].mxu1  ;;  %v8744_v18 = vadd.f32 %v8743_v23, %v8742_v14  ;;  %v8745_v2 = vpop.f32.mrb[126].mxu0  ;;  %9115 = vmatpush3.bf16.msra.mxu1 %v9816_v39 }
 0x278   : > { %v8859_v19 = vadd.f32 %v8858_v30, %v8857_v40  ;;  %v8746_v37 = vpop.f32.mrb[127].mxu0 }
 0x279   : > { %v3648_v52 = vadd.f32 %v8744_v18, %v11579_v53  ;;  %v8747_v29 = vadd.f32 %v8746_v37, %v8745_v2  ;;  %v11765_v53 = vld [vmem:[%s13112_s3] ss:$0 sm:$0xff] }
 0x27b   : > { %v3651_v36 = vadd.f32 %v8747_v29, %v11581_v51  ;;  %v11752_v59 = vadd.f32 %v8856_v45, %v3648_v52 }
 0x27d   : > { %v9374_v3 = vpop.f32.mrb[128].mxu0  ;;  %v11759_v11 = vadd.f32 %v8859_v19, %v3651_v36 }
 0x27e   : > { %v3858_v13 = vadd.f32 %v9374_v3, %v11599_v63  ;;  %v3849_v61 = vpop.f32.mrb[129].mxu0 }
 0x27f   : > { %v3850_v51 = vadd.f32 %v3849_v61, %v11587_v17  ;;  %v9375_v22 = vpop.f32.mrb[130].mxu0 }
 0x280   : > { %v3985_v48 = vmul.f32 %v11757_v6, %v3858_v13  ;;  %v3861_v0 = vadd.f32 %v9375_v22, %v11601_v26  ;;  %v3852_v41 = vpop.f32.mrb[131].mxu0  ;;  %v9824_v13 = vld [vmem:[#allocation9 + $0x1c0] sm:$0xff]  }
 0x281   : > { %v3983_v57 = vmul.f32 %v11757_v6, %v3850_v51  ;;  %v3853_v32 = vadd.f32 %v3852_v41, %v11589_v33  ;;  %9220 = vmatprep.subr.bf16.mxu0 %v9824_v13 }
 0x282   : > { %v4024_v63 = vadd.f32 %v11765_v53, %v3985_v48  ;;  %v3986_v45 = vmul.f32 %v11757_v6, %v3861_v0 }
 0x283   : > { %v4022_v40 = vadd.f32 %v11765_v53, %v3983_v57  ;;  %v3984_v17 = vmul.f32 %v11757_v6, %v3853_v32  ;;  %v4509_v57 = vld [vmem:[#allocation3 + $0x18] sm:$0xf] }
 0x284   : > { %v4056_v54 = vmax.f32 %v4024_v63, 0.0  ;;  %v4025_v14 = vadd.f32 %v11765_v53, %v3986_v45 }
 0x285   : > { %v4054_v30 = vmax.f32 %v4022_v40, 0.0  ;;  %v4023_v26 = vadd.f32 %v11765_v53, %v3984_v17  ;;  %v9378_v31 = vpop.f32.mrb[132].mxu0 }
 0x286   : > { %v8381_v23 = vpack.c.bf16 %v4056_v54, %v4056_v54  ;;  %v4057_v19 = vmax.f32 %v4025_v14, 0.0  ;;  %v3874_v33 = vadd.f32 %v9378_v31, %v11619_v10  ;;  %v3865_v24 = vpop.f32.mrb[133].mxu0  ;;  %v4502_v14 = vld [vmem:[#allocation3 + $0xc] sm:$0xf] }
 0x287   : > { %v8379_v44 = vpack.c.bf16 %v4054_v30, %v4054_v30  ;;  %v4055_v18 = vmax.f32 %v4023_v26, 0.0  ;;  %v3866_v2 = vadd.f32 %v3865_v24, %v11611_v35  ;;  %v11780_v37 = vpop.f32.mrb[134].mxu0  ;;  %v9826_v35 = vld [vmem:[#allocation9 + $0x160] sm:$0xff]  }
 0x288   : > { %v4200_v52 = vshrl.u32 %v8381_v23, 16  ;;  %v4203_v29 = vshll.u32 %v8381_v23, 16  ;;  %v8382_v56 = vpack.c.bf16 %v4057_v19, %v4057_v19  ;;  %v3989_v36 = vmul.f32 %v11757_v6, %v3874_v33  ;;  %v3868_v3 = vpop.f32.mrb[135].mxu0  ;;  %9116 = vmatprep.subr.bf16.mxu1 %v9826_v35  ;;  %v4513_v19 = vld [vmem:[#allocation3 + $0x20] sm:$0x1] }
 0x289   : > { %v4183_v61 = vshrl.u32 %v8379_v44, 16  ;;  %v4186_v51 = vshll.u32 %v8379_v44, 16  ;;  %v8380_v22 = vpack.c.bf16 %v4055_v18, %v4055_v18  ;;  %v3987_v39 = vmul.f32 %v11757_v6, %v3866_v2 }
 0x28a   : > { %v4202_v10 = vrot.slane %v4200_v52, 7  ;;  %v4208_v48 = vshrl.u32 %v8382_v56, 16  ;;  %v4211_v0 = vshll.u32 %v8382_v56, 16  ;;  %v4028_v41 = vadd.f32 %v11765_v53, %v3989_v36  ;;  %v4506_v36 = vld [vmem:[#allocation3 + $0x14] sm:$0x1] }
 0x28b   : > { %v4185_v32 = vrot.slane %v4183_v61, 7  ;;  %v4191_v63 = vshrl.u32 %v8380_v22, 16  ;;  %v4194_v45 = vshll.u32 %v8380_v22, 16  ;;  %v4026_v40 = vadd.f32 %v11765_v53, %v3987_v39 }
 0x28c   : > { %v4205_v17 = vor.u32 %v4203_v29, %v4202_v10  ;;  %v4206_v54 = vrot.slane %v4202_v10, 4  ;;  %v4210_v30 = vrot.slane %v4208_v48, 7  ;;  %v4060_v26 = vmax.f32 %v4028_v41, 0.0  ;;  %v9830_v48 = vld [vmem:[#allocation9 + $0x120] sm:$0xff]  }
 0x28d   : > { %v4188_v31 = vor.u32 %v4186_v51, %v4185_v32  ;;  %v4189_v23 = vrot.slane %v4185_v32, 4  ;;  %v4193_v33 = vrot.slane %v4191_v63, 7  ;;  %v4058_v24 = vmax.f32 %v4026_v40, 0.0  ;;  %v9382_v44 = vpop.f32.mrb[136].mxu0  ;;  %9117 = vmatpush3.bf16.msra.mxu1 %v9830_v48 }
 0x28e   : > { %v4510_v2 = vsel %vm10454_vm9, %v4205_v17, %v4509_v57  ;;  %v4213_v52 = vor.u32 %v4211_v0, %v4210_v30  ;;  %v4215_v56 = vrot.slane %v4210_v30, 4  ;;  %v8385_v13 = vpack.c.bf16 %v4060_v26, %v4060_v26  ;;  %v3881_v61 = vpop.f32.mrb[137].mxu0 }
 0x28f   : > { %4511 = vst [vmem:[#allocation3 + $0x18] sm:$0xf] %v4510_v2  ;;  %v4503_v29 = vsel %vm10454_vm9, %v4188_v31, %v4502_v14  ;;  %v4196_v22 = vor.u32 %v4194_v45, %v4193_v33  ;;  %v4198_v39 = vrot.slane %v4193_v33, 4  ;;  %v8383_v51 = vpack.c.bf16 %v4058_v24, %v4058_v24  ;;  %v9383_v10 = vpop.f32.mrb[138].mxu0 }
 0x290   : > { %4504 = vst [vmem:[#allocation3 + $0xc] sm:$0xf] %v4503_v29  ;;  %v4214_v35 = vsel %vm10447_vm8, %v4206_v54, %v4213_v52  ;;  %v4514_v0 = vsel %vm10426_vm2, %v4215_v56, %v4513_v19  ;;  %v4234_v57 = vshrl.u32 %v8385_v13, 16  ;;  %v4237_v32 = vshll.u32 %v8385_v13, 16  ;;  %v3884_v63 = vpop.f32.mrb[139].mxu0 }
 0x291   : > { %4512 = vst [vmem:[#allocation3 + $0x1c] sm:$0xf] %v4214_v35  ;;  %4515 = vst [vmem:[#allocation3 + $0x20] sm:$0x1] %v4514_v0  ;;  %v4197_v40 = vsel %vm10447_vm8, %v4189_v23, %v4196_v22  ;;  %v4507_v45 = vsel %vm10426_vm2, %v4198_v39, %v4506_v36  ;;  %v4217_v17 = vshrl.u32 %v8383_v51, 16  ;;  %v4220_v14 = vshll.u32 %v8383_v51, 16 }
 0x292   : > { %4505 = vst [vmem:[#allocation3 + $0x10] sm:$0xf] %v4197_v40  ;;  %4508 = vst [vmem:[#allocation3 + $0x14] sm:$0x1] %v4507_v45  ;;  %v11798_v54 = vrot.slane %v4234_v57, 7  ;;  %v3877_v30 = vadd.f32 %v11780_v37, %v11623_v46  ;;  %v3869_v26 = vadd.f32 %v3868_v3, %v11613_v7  ;;  %v3890_v31 = vadd.f32 %v9382_v44, %v11653_v55 }
 0x293   : > { %v4523_v19 = vld [vmem:[#allocation3 + $0x30] sm:$0xf]  ;;  %v11804_v33 = vrot.slane %v4217_v17, 7  ;;  %v3882_v23 = vadd.f32 %v3881_v61, %v11639_v42  ;;  %v3893_v24 = vadd.f32 %v9383_v10, %v11659_v60  ;;  %v3885_v2 = vadd.f32 %v3884_v63, %v11642_v25  ;;  %v4516_v36 = vld [vmem:[#allocation3 + $0x24] sm:$0xf] }
 0x294   : > { %v4239_v52 = vor.u32 %v4237_v32, %v11798_v54  ;;  %v4240_v56 = vrot.slane %v11798_v54, 4  ;;  %v3990_v46 = vmul.f32 %v11757_v6, %v3877_v30  ;;  %v3988_v7 = vmul.f32 %v11757_v6, %v3869_v26 }
 0x295   : > { %v4222_v55 = vor.u32 %v4220_v14, %v11804_v33  ;;  %v4223_v37 = vrot.slane %v11804_v33, 4  ;;  %v3993_v3 = vmul.f32 %v11757_v6, %v3890_v31  ;;  %v3991_v42 = vmul.f32 %v11757_v6, %v3882_v23  ;;  %v9386_v60 = vpop.f32.mrb[140].mxu0 }
 0x296   : > { %v4524_v25 = vsel %vm10454_vm9, %v4239_v52, %v4523_v19  ;;  %v4029_v44 = vadd.f32 %v11765_v53, %v3990_v46  ;;  %v4027_v13 = vadd.f32 %v11765_v53, %v3988_v7  ;;  %v3994_v61 = vmul.f32 %v11757_v6, %v3893_v24  ;;  %v3897_v29 = vpop.f32.mrb[141].mxu0 }
 0x297   : > { %4525 = vst [vmem:[#allocation3 + $0x30] sm:$0xf] %v4524_v25  ;;  %v4517_v22 = vsel %vm10454_vm9, %v4222_v55, %v4516_v36  ;;  %v4032_v39 = vadd.f32 %v11765_v53, %v3993_v3  ;;  %v4030_v51 = vadd.f32 %v11765_v53, %v3991_v42  ;;  %v3992_v10 = vmul.f32 %v11757_v6, %v3885_v2  ;;  %v11827_v48 = vpop.f32.mrb[142].mxu0  ;;  %v4527_v55 = vld [vmem:[#allocation3 + $0x38] sm:$0x1] }
 0x298   : > { %4518 = vst [vmem:[#allocation3 + $0x24] sm:$0xf] %v4517_v22  ;;  %v4061_v35 = vmax.f32 %v4029_v44, 0.0  ;;  %v4059_v0 = vmax.f32 %v4027_v13, 0.0  ;;  %v4033_v57 = vadd.f32 %v11765_v53, %v3994_v61  ;;  %v3906_v32 = vadd.f32 %v9386_v60, %v11676_v5  ;;  %v11831_v63 = vpop.f32.mrb[143].mxu0  ;;  %v9840_v13 = vld [vmem:[#allocation9 + $0x168] sm:$0xff]  }
 0x299   : > { %v4064_v40 = vmax.f32 %v4032_v39, 0.0  ;;  %v4062_v45 = vmax.f32 %v4030_v51, 0.0  ;;  %v4031_v17 = vadd.f32 %v11765_v53, %v3992_v10  ;;  %v3898_v14 = vadd.f32 %v3897_v29, %v11666_v34  ;;  %v4520_v3 = vld [vmem:[#allocation3 + $0x2c] sm:$0x1]  ;;  %9118 = vmatprep.subr.bf16.mxu1 %v9840_v13 }
 0x29a   : > { %v8386_v30 = vpack.c.bf16 %v4061_v35, %v4061_v35  ;;  %v8384_v26 = vpack.c.bf16 %v4059_v0, %v4059_v0  ;;  %v4065_v31 = vmax.f32 %v4033_v57, 0.0  ;;  %v3997_v19 = vmul.f32 %v11757_v6, %v3906_v32  ;;  %v4537_v35 = vld [vmem:[#allocation3 + $0x48] sm:$0xf] }
 0x29b   : > { %v8389_v23 = vpack.c.bf16 %v4064_v40, %v4064_v40  ;;  %v8387_v24 = vpack.c.bf16 %v4062_v45, %v4062_v45  ;;  %v4063_v2 = vmax.f32 %v4031_v17, 0.0  ;;  %v3995_v52 = vmul.f32 %v11757_v6, %v3898_v14 }
 0x29c   : > { %v4242_v36 = vshrl.u32 %v8386_v30, 16  ;;  %v4245_v5 = vshll.u32 %v8386_v30, 16  ;;  %v4225_v46 = vshrl.u32 %v8384_v26, 16  ;;  %v4228_v7 = vshll.u32 %v8384_v26, 16  ;;  %v4530_v26 = vld [vmem:[#allocation3 + $0x3c] sm:$0xf] }
 0x29d   : > { %v4268_v42 = vshrl.u32 %v8389_v23, 16  ;;  %v4271_v60 = vshll.u32 %v8389_v23, 16  ;;  %v4251_v25 = vshrl.u32 %v8387_v24, 16  ;;  %v4254_v34 = vshll.u32 %v8387_v24, 16  ;;  %v11837_v44 = vpop.f32.mrb[144].mxu0  ;;  %v9844_v23 = vld [vmem:[#allocation9 + $0x128] sm:$0xff]  }
 0x29e   : > { %v4244_v61 = vrot.slane %v4242_v36, 7  ;;  %v4227_v29 = vrot.slane %v4225_v46, 7  ;;  %v8390_v22 = vpack.c.bf16 %v4065_v31, %v4065_v31  ;;  %v8388_v39 = vpack.c.bf16 %v4063_v2, %v4063_v2  ;;  %v11839_v51 = vpop.f32.mrb[145].mxu0  ;;  %v4679_v46 = vld [vmem:[#allocation3 + $0x10] sm:$0xf]  ;;  %9119 = vmatpush3.bf16.msra.mxu1 %v9844_v23 }
 0x29f   : > { %v11841_v10 = vrot.slane %v4268_v42, 7  ;;  %v11843_v0 = vrot.slane %v4251_v25, 7  ;;  %v4036_v57 = vadd.f32 %v11765_v53, %v3997_v19  ;;  %v4034_v32 = vadd.f32 %v11765_v53, %v3995_v52  ;;  %v11847_v40 = vpop.f32.mrb[146].mxu0  ;;  %v4534_v23 = vld [vmem:[#allocation3 + $0x44] sm:$0x1] }
 0x2a0   : > { %v4247_v45 = vor.u32 %v4245_v5, %v4244_v61  ;;  %v4249_v17 = vrot.slane %v4244_v61, 4  ;;  %v4230_v14 = vor.u32 %v4228_v7, %v4227_v29  ;;  %v4232_v30 = vrot.slane %v4227_v29, 4  ;;  %v11849_v31 = vpop.f32.mrb[147].mxu0 }
 0x2a1   : > { %v4273_v24 = vor.u32 %v4271_v60, %v11841_v10  ;;  %v4256_v2 = vor.u32 %v4254_v34, %v11843_v0  ;;  %v4274_v54 = vrot.slane %v11841_v10, 4  ;;  %v4276_v7 = vshrl.u32 %v8390_v22, 16  ;;  %v4678_v60 = vld [vmem:[#allocation3 + $0xc] sm:$0xf]  ;;  %v9825_v10 = vld [vmem:[#allocation9 + $0x180] sm:$0xff]  }
 0x2a2   : > { %v4248_v19 = vsel %vm10447_vm8, %v4240_v56, %v4247_v45  ;;  %v4528_v52 = vsel %vm10426_vm2, %v4249_v17, %v4527_v55  ;;  %v4231_v36 = vsel %vm10447_vm8, %v4223_v37, %v4230_v14  ;;  %v4521_v5 = vsel %vm10426_vm2, %v4232_v30, %v4520_v3 }
 0x2a3   : > { %4526 = vst [vmem:[#allocation3 + $0x34] sm:$0xf] %v4248_v19  ;;  %4529 = vst [vmem:[#allocation3 + $0x38] sm:$0x1] %v4528_v52  ;;  %v4538_v56 = vsel %vm10454_vm9, %v4273_v24, %v4537_v35  ;;  %v4531_v33 = vsel %vm10454_vm9, %v4256_v2, %v4530_v26  ;;  %v4279_v37 = vshll.u32 %v8390_v22, 16  ;;  %v4259_v55 = vshrl.u32 %v8388_v39, 16 }
 0x2a4   : > { %4519 = vst [vmem:[#allocation3 + $0x28] sm:$0xf] %v4231_v36  ;;  %4522 = vst [vmem:[#allocation3 + $0x2c] sm:$0x1] %v4521_v5  ;;  %v4068_v3 = vmax.f32 %v4036_v57, 0.0  ;;  %v4066_v42 = vmax.f32 %v4034_v32, 0.0  ;;  %v3909_v34 = vadd.f32 %v11827_v48, %v11678_v50  ;;  %v3901_v13 = vadd.f32 %v11831_v63, %v11670_v27 }
 0x2a5   : > { %4539 = vst [vmem:[#allocation3 + $0x48] sm:$0xf] %v4538_v56  ;;  %4532 = vst [vmem:[#allocation3 + $0x3c] sm:$0xf] %v4531_v33  ;;  %v4278_v25 = vrot.slane %v4276_v7, 7  ;;  %v11874_v61 = vcombine.low %v4678_v60, %v4679_v46  ;;  %v11876_v29 = vpop.f32.mrb[148].mxu0 }
 0x2a6   : > { %v4541_v35 = vld [vmem:[#allocation3 + $0x50] sm:$0x1]  ;;  %v4261_v45 = vrot.slane %v4259_v55, 7  ;;  %v4262_v17 = vshll.u32 %v8388_v39, 16  ;;  %v8393_v22 = vpack.c.bf16 %v4068_v3, %v4068_v3  ;;  %v8391_v14 = vpack.c.bf16 %v4066_v42, %v4066_v42  ;;  %v11878_v57 = vpop.f32.mrb[149].mxu0  ;;  %v9838_v32 = vld [vmem:[#allocation9 + $0x1c8] sm:$0xff]  }
 0x2a7   : > { %v4281_v30 = vor.u32 %v4279_v37, %v4278_v25  ;;  %v4283_v26 = vrot.slane %v4278_v25, 4  ;;  %v3998_v50 = vmul.f32 %v11757_v6, %v3909_v34  ;;  %v3996_v27 = vmul.f32 %v11757_v6, %v3901_v13  ;;  %6968 = vmatprep.mubr.bf16.mxu0 %v11874_v61  ;;  %v11883_v48 = vpop.f32.mrb[150].mxu0  ;;  %v9839_v52 = vld [vmem:[#allocation9 + $0x188] sm:$0xff]   ;;  %v9854_v37 = vld [vmem:[#allocation9 + $0x170] sm:$0xff]   ;;  %v4544_v34 = vld [vmem:[#allocation3 + $0x54] sm:$0xf] }
 0x2a8   : > { %v4257_v63 = vrot.slane %v11843_v0, 4  ;;  %v4264_v24 = vor.u32 %v4262_v17, %v4261_v45  ;;  %v4266_v39 = vrot.slane %v4261_v45, 4  ;;  %v4302_v2 = vshrl.u32 %v8393_v22, 16  ;;  %6969 = vmatmul.mubr.bf16.vlgmr.msra.gmra.mrb[160].mxu0 %v11657_v4  ;;  %v11887_v19 = vpop.f32.mrb[151].mxu0  ;;  %v4551_v55 = vld [vmem:[#allocation3 + $0x60] sm:$0xf]  ;;  %9120 = vmatprep.subr.bf16.mxu1 %v9854_v37 }
 0x2a9   : > { %v4282_v36 = vsel %vm10447_vm8, %v4274_v54, %v4281_v30  ;;  %v4542_v5 = vsel %vm10426_vm2, %v4283_v26, %v4541_v35  ;;  %v4305_v46 = vshll.u32 %v8393_v22, 16  ;;  %v4285_v56 = vshrl.u32 %v8391_v14, 16  ;;  %9221 = vmatpush3.bf16.msra.mxu0 %v9825_v10  ;;  %v9852_v54 = vld [vmem:[#allocation9 + $0x1d0] sm:$0xff]   ;;  %v4681_v35 = vld [vmem:[#allocation3 + $0x1c] sm:$0xf] }
 0x2aa   : > { %4540 = vst [vmem:[#allocation3 + $0x4c] sm:$0xf] %v4282_v36  ;;  %4543 = vst [vmem:[#allocation3 + $0x50] sm:$0x1] %v4542_v5  ;;  %v4265_v0 = vsel %vm10447_vm8, %v4257_v63, %v4264_v24  ;;  %v4535_v4 = vsel %vm10426_vm2, %v4266_v39, %v4534_v23  ;;  %v11897_v33 = vrot.slane %v4302_v2, 7  ;;  %v4037_v7 = vadd.f32 %v11765_v53, %v3998_v50  ;;  %v9858_v5 = vld [vmem:[#allocation9 + $0x130] sm:$0xff]  }
 0x2ab   : > { %9222 = vmatprep.subr.bf16.mxu0 %v9838_v32  ;;  %4533 = vst [vmem:[#allocation3 + $0x40] sm:$0xf] %v4265_v0  ;;  %4536 = vst [vmem:[#allocation3 + $0x44] sm:$0x1] %v4535_v4  ;;  %v11900_v3 = vrot.slane %v4285_v56, 7  ;;  %v4288_v42 = vshll.u32 %v8391_v14, 16  ;;  %v4035_v60 = vadd.f32 %v11765_v53, %v3996_v27  ;;  %v3922_v10 = vadd.f32 %v11837_v44, %v11694_v12 }
 0x2ac   : > { %v4307_v25 = vor.u32 %v4305_v46, %v11897_v33  ;;  %v4069_v13 = vmax.f32 %v4037_v7, 0.0  ;;  %v9853_v32 = vld [vmem:[#allocation9 + $0x190] sm:$0xff]   ;;  %v3914_v23 = vadd.f32 %v11839_v51, %v11686_v1  ;;  %v4680_v50 = vld [vmem:[#allocation3 + $0x18] sm:$0xf]  ;;  %v4308_v39 = vrot.slane %v11897_v33, 4  ;;  %9121 = vmatpush3.bf16.msra.mxu1 %v9858_v5 }
 0x2ad   : > { %v4290_v45 = vor.u32 %v4288_v42, %v11900_v3  ;;  %v4067_v17 = vmax.f32 %v4035_v60, 0.0  ;;  %v11907_v22 = vpop.f32.mrb[152].mxu0  ;;  %9223 = vmatpush3.bf16.msra.mxu0 %v9839_v52  ;;  %v4001_v26 = vmul.f32 %v11757_v6, %v3922_v10  ;;  %v11918_v63 = vcombine.low %v4680_v50, %v4681_v35  ;;  %v11925_v51 = vld [vmem:[#allocation3 + $0x10] sm:$0xf]  ;;  %v4616_v33 = vld [vmem:[#allocation3 + $0xc] sm:$0xf] }
 0x2ae   : > { %v4552_v14 = vsel %vm10454_vm9, %v4307_v25, %v4551_v55  ;;  %v8394_v30 = vpack.c.bf16 %v4069_v13, %v4069_v13  ;;  %v11914_v12 = vpop.f32.mrb[153].mxu0  ;;  %9224 = vmatprep.subr.bf16.mxu0 %v9852_v54  ;;  %v3999_v1 = vmul.f32 %v11757_v6, %v3914_v23  ;;  %v4291_v46 = vrot.slane %v11900_v3, 4  ;;  %v11936_v42 = vld [vmem:[#allocation3 + $0x14] ss:$0 sps:$4 sm:$0x11]  }
 0x2af   : > { %4553 = vst [vmem:[#allocation3 + $0x60] sm:$0xf] %v4552_v14  ;;  %v4545_v44 = vsel %vm10454_vm9, %v4290_v45, %v4544_v34  ;;  %v8392_v27 = vpack.c.bf16 %v4067_v17, %v4067_v17  ;;  %v11920_v24 = vpop.f32.mrb[154].mxu0  ;;  %v4040_v52 = vadd.f32 %v11765_v53, %v4001_v26  ;;  %6976 = vmatprep.mubr.bf16.mxu0 %v11918_v63  ;;  %v4555_v3 = vld [vmem:[#allocation3 + $0x68] sm:$0x1]  ;;  %v4971_v50 = vshll.u32 %v11936_v42, 16 }
 0x2b0   : > { %4546 = vst [vmem:[#allocation3 + $0x54] sm:$0xf] %v4545_v44  ;;  %v4310_v2 = vshrl.u32 %v8394_v30, 16  ;;  %v11927_v36 = vpop.f32.mrb[155].mxu0  ;;  %v4313_v56 = vshll.u32 %v8394_v30, 16  ;;  %v3925_v4 = vadd.f32 %v11847_v40, %v11696_v9  ;;  %v4038_v37 = vadd.f32 %v11765_v53, %v3999_v1 }
 0x2b1   : > { %v4293_v0 = vshrl.u32 %v8392_v27, 16  ;;  %9225 = vmatpush3.bf16.msra.mxu0 %v9853_v32  ;;  %v4072_v54 = vmax.f32 %v4040_v52, 0.0  ;;  %v3917_v55 = vadd.f32 %v11849_v31, %v11688_v47  ;;  %v4296_v25 = vshll.u32 %v8392_v27, 16  ;;  %v4548_v10 = vld [vmem:[#allocation3 + $0x5c] sm:$0x1] }
 0x2b2   : > { %v4312_v7 = vrot.slane %v4310_v2, 7  ;;  %v4002_v34 = vmul.f32 %v11757_v6, %v3925_v4  ;;  %v11940_v13 = vcombine.low %v4616_v33, %v11925_v51  ;;  %v4070_v45 = vmax.f32 %v4038_v37, 0.0  ;;  %v4667_v18 = vld [vmem:[#allocation3 + $0x3c] sm:$0xe] }
 0x2b3   : > { %v4295_v60 = vrot.slane %v4293_v0, 7  ;;  %v8397_v35 = vpack.c.bf16 %v4072_v54, %v4072_v54  ;;  %v4000_v31 = vmul.f32 %v11757_v6, %v3917_v55  ;;  %v4565_v0 = vld [vmem:[#allocation3 + $0x78] sm:$0xf] }
 0x2b4   : > { %v4315_v9 = vor.u32 %v4313_v56, %v4312_v7  ;;  %v4317_v40 = vrot.slane %v4312_v7, 4  ;;  %v4041_v47 = vadd.f32 %v11765_v53, %v4002_v34  ;;  %v8395_v52 = vpack.c.bf16 %v4070_v45, %v4070_v45 }
 0x2b5   : > { %v4298_v17 = vor.u32 %v4296_v25, %v4295_v60  ;;  %v4300_v32 = vrot.slane %v4295_v60, 4  ;;  %v11944_v14 = vpop.f32.mrb[156].mxu0  ;;  %v4336_v23 = vshrl.u32 %v8397_v35, 16  ;;  %v4339_v56 = vshll.u32 %v8397_v35, 16 }
 0x2b6   : > { %v4316_v30 = vsel %vm10447_vm8, %v4308_v39, %v4315_v9  ;;  %v4556_v26 = vsel %vm10426_vm2, %v4317_v40, %v4555_v3  ;;  %v11951_v44 = vpop.f32.mrb[157].mxu0  ;;  %v4073_v1 = vmax.f32 %v4041_v47, 0.0  ;;  %v4039_v4 = vadd.f32 %v11765_v53, %v4000_v31  ;;  %v11964_v3 = vld [vmem:[#allocation3 + $0x1c] sm:$0xf]  ;;  %v9866_v40 = vld [vmem:[#allocation9 + $0x1d8] sm:$0xff]  }
 0x2b7   : > { %4554 = vst [vmem:[#allocation3 + $0x64] sm:$0xf] %v4316_v30  ;;  %4557 = vst [vmem:[#allocation3 + $0x68] sm:$0x1] %v4556_v26  ;;  %v4299_v27 = vsel %vm10447_vm8, %v4291_v46, %v4298_v17  ;;  %v4549_v2 = vsel %vm10426_vm2, %v4300_v32, %v4548_v10  ;;  %v11957_v5 = vpop.f32.mrb[158].mxu0  ;;  %v4338_v39 = vrot.slane %v4336_v23, 7  ;;  %v3938_v17 = vadd.f32 %v11876_v29, %v11716_v49 }
 0x2b8   : > { %4547 = vst [vmem:[#allocation3 + $0x58] sm:$0xf] %v4299_v27  ;;  %4550 = vst [vmem:[#allocation3 + $0x5c] sm:$0x1] %v4549_v2  ;;  %v4966_v33 = vshll.u32 %v11940_v13, 16  ;;  %v11961_v7 = vpop.f32.mrb[159].mxu0  ;;  %v8398_v37 = vpack.c.bf16 %v4073_v1, %v4073_v1  ;;  %9226 = vmatprep.subr.bf16.mxu0 %v9866_v40 }
 0x2b9   : > { %v4319_v54 = vshrl.u32 %v8395_v52, 16  ;;  %v4322_v46 = vshll.u32 %v8395_v52, 16  ;;  %v4964_v55 = vshrl.u32 %v11940_v13, 16  ;;  %v4341_v60 = vor.u32 %v4339_v56, %v4338_v39  ;;  %v4618_v32 = vld [vmem:[#allocation3 + $0x18] sm:$0xf]  ;;  %v9867_v47 = vld [vmem:[#allocation9 + $0x198] sm:$0xff]  }
 0x2ba   : > { %v4071_v25 = vmax.f32 %v4039_v4, 0.0  ;;  %v4968_v34 = vrot.slane %v4966_v33, 1  ;;  %v4973_v9 = vrot.slane %v4971_v50, 1  ;;  %v4342_v10 = vrot.slane %v4338_v39, 4  ;;  %v4558_v30 = vld [vmem:[#allocation3 + $0x6c] sm:$0xf]  ;;  %9227 = vmatpush3.bf16.msra.mxu0 %v9867_v47 }
 0x2bb   : > { %v4321_v35 = vrot.slane %v4319_v54, 7  ;;  %v4344_v45 = vshrl.u32 %v8398_v37, 16  ;;  %v4566_v31 = vsel %vm10454_vm9, %v4341_v60, %v4565_v0  ;;  %v11971_v27 = vcombine.low %v4618_v32, %v11964_v3  ;;  %v11973_v2 = vld [vmem:[#allocation3 + $0x20] ss:$0 sps:$4 sm:$0x11]   ;;  %v9868_v33 = vld [vmem:[#allocation9 + $0x178] sm:$0xff]  }
 0x2bc   : > { %v8396_v26 = vpack.c.bf16 %v4071_v25, %v4071_v25  ;;  %v4969_v23 = vor.u32 %v4968_v34, %v4964_v55  ;;  %4567 = vst [vmem:[#allocation3 + $0x78] sm:$0xf] %v4566_v31  ;;  %v4347_v1 = vshll.u32 %v8398_v37, 16  ;;  %v4005_v49 = vmul.f32 %v11757_v6, %v3938_v17  ;;  %v4569_v39 = vld [vmem:[#allocation3 + $0x80] sm:$0x1]  ;;  %v9872_v37 = vld [vmem:[#allocation9 + $0x138] sm:$0xff]   ;;  %9122 = vmatprep.subr.bf16.mxu1 %v9868_v33 }
 0x2bd   : > { %v4324_v50 = vor.u32 %v4322_v46, %v4321_v35  ;;  %v4346_v52 = vrot.slane %v4344_v45, 7  ;;  %v4325_v29 = vrot.slane %v4321_v35, 4  ;;  %v4663_v25 = vld [vmem:[#allocation3 + $0xc] sm:$0xe]  ;;  %v4978_v40 = vshll.u32 %v11971_v27, 16  ;;  %v9873_v45 = vld [vmem:[#allocation9 + $0x1e0] sm:$0xff]   ;;  %9123 = vmatpush3.bf16.msra.mxu1 %v9872_v37 }
 0x2be   : > { %v4327_v56 = vshrl.u32 %v8396_v26, 16  ;;  %v4330_v0 = vshll.u32 %v8396_v26, 16  ;;  %v4974_v4 = vsel %vm1345_vm5, %v4969_v23, %v4973_v9  ;;  %v4044_v46 = vadd.f32 %v11765_v53, %v4005_v49  ;;  %v4562_v47 = vld [vmem:[#allocation3 + $0x74] sm:$0x1]  ;;  %9228 = vmatprep.subr.bf16.mxu0 %v9873_v45  ;;  %v4682_v33 = vld [vmem:[#allocation3 + $0x24] sm:$0xf] }
 0x2bf   : > { %v4559_v54 = vsel %vm10454_vm9, %v4324_v50, %v4558_v30  ;;  %v4349_v55 = vor.u32 %v4347_v1, %v4346_v52  ;;  %v4351_v60 = vrot.slane %v4346_v52, 4  ;;  %6815 = vmatprep.mubr.bf16.mxu1 %v4974_v4  ;;  %v4983_v35 = vshll.u32 %v11973_v2, 16  ;;  %v4683_v52 = vld [vmem:[#allocation3 + $0x28] sm:$0xf]  ;;  %v9877_v1 = vld [vmem:[#allocation9 + $0x1e8] sm:$0xff]  }
 0x2c0   : > { %4560 = vst [vmem:[#allocation3 + $0x6c] sm:$0xf] %v4559_v54  ;;  %v4329_v34 = vrot.slane %v4327_v56, 7  ;;  %6816 = vmatmul.mubr.bf16.gmra.mrb[132].mxu1 %v11940_v13  ;;  %v8188_v9 = vcombine.low %v4663_v25, %v11925_v51  ;;  %v4076_v31 = vmax.f32 %v4044_v46, 0.0  ;;  %v5211_v30 = vrot.slane %v11936_v42, 1  ;;  %v9876_v13 = vld [vmem:[#allocation9 + $0x1a0] sm:$0xff]  }
 0x2c1   : > { %v4350_v17 = vsel %vm10447_vm8, %v4342_v10, %v4349_v55  ;;  %v4570_v32 = vsel %vm10426_vm2, %v4351_v60, %v4569_v39  ;;  %v4976_v51 = vshrl.u32 %v11971_v27, 16  ;;  %v4980_v50 = vrot.slane %v4978_v40, 1  ;;  %9229 = vmatpush3.bf16.msra.mxu0 %v9876_v13  ;;  %v11996_v54 = vld [vmem:[#allocation3 + $0x28] sm:$0xf]  ;;  %v4620_v46 = vld [vmem:[#allocation3 + $0x24] sm:$0xf] }
 0x2c2   : > { %4568 = vst [vmem:[#allocation3 + $0x7c] sm:$0xf] %v4350_v17  ;;  %4571 = vst [vmem:[#allocation3 + $0x80] sm:$0x1] %v4570_v32  ;;  %v4332_v26 = vor.u32 %v4330_v0, %v4329_v34  ;;  %v4334_v23 = vrot.slane %v4329_v34, 4  ;;  %v8401_v10 = vpack.c.bf16 %v4076_v31, %v4076_v31  ;;  %v5210_v49 = vrot.slane %v8188_v9, 1  ;;  %9230 = vmatprep.subr.bf16.mxu0 %v9877_v1 }
 0x2c3   : > { %v3930_v39 = vadd.f32 %v11878_v57, %v11702_v62  ;;  %v4981_v0 = vor.u32 %v4980_v50, %v4976_v51  ;;  %v4985_v4 = vrot.slane %v4983_v35, 1  ;;  %v12000_v57 = vcombine.low %v4682_v33, %v4683_v52  ;;  %v12007_v40 = vld [vmem:[#allocation3 + $0x2c] ss:$0 sps:$4 sm:$0x11]   ;;  %v9878_v35 = vld [vmem:[#allocation9 + $0x1a8] sm:$0xff]   ;;  %v9885_v52 = vld [vmem:[#allocation9 + $0x1f8] sm:$0xff]  }
 0x2c4   : > { %v4333_v42 = vsel %vm10447_vm8, %v4325_v29, %v4332_v26  ;;  %v4563_v56 = vsel %vm10426_vm2, %v4334_v23, %v4562_v47  ;;  %v4370_v55 = vshrl.u32 %v8401_v10, 16  ;;  %v5212_v60 = vsel %vm1602_vm10, %v5210_v49, %v5211_v30  ;;  %v4579_v47 = vld [vmem:[#allocation3 + $0x90] sm:$0xf]  ;;  %v9882_v30 = vld [vmem:[#allocation9 + $0x1b0] sm:$0xff]   ;;  %v9887_v49 = vld [vmem:[#allocation9 + $0x200] sm:$0xff]  }
 0x2c5   : > { %4561 = vst [vmem:[#allocation3 + $0x70] sm:$0xf] %v4333_v42  ;;  %4564 = vst [vmem:[#allocation3 + $0x74] sm:$0x1] %v4563_v56  ;;  %v4003_v62 = vmul.f32 %v11757_v6, %v3930_v39  ;;  %v4373_v29 = vshll.u32 %v8401_v10, 16  ;;  %v4986_v25 = vsel %vm1345_vm5, %v4981_v0, %v4985_v4  ;;  %6977 = vmatmul.mubr.bf16.gmra.mrb[164].mxu0 %v5212_v60  ;;  %v4995_v50 = vshll.u32 %v12007_v40, 16 }
 0x2c6   : > { %v3941_v37 = vadd.f32 %v11883_v48, %v11718_v43  ;;  %v3933_v34 = vadd.f32 %v11887_v19, %v11706_v20  ;;  %v12009_v9 = vrot.slane %v4370_v55, 7  ;;  %6823 = vmatprep.mubr.bf16.mxu1 %v4986_v25  ;;  %6984 = vmatprep.mubr.bf16.mxu0 %v12000_v57  ;;  %v3954_v17 = vadd.f32 %v11907_v22, %v11736_v28  ;;  %v4664_v43 = vld [vmem:[#allocation3 + $0x18] sm:$0xe]  ;;  %v9881_v48 = vld [vmem:[#allocation9 + $0x1f0] sm:$0xff]   ;;  %v4685_v4 = vld [vmem:[#allocation3 + $0x34] sm:$0xf] }
 0x2c7   : > { %v4042_v45 = vadd.f32 %v11765_v53, %v4003_v62  ;;  %v12016_v32 = vcombine.low %v4620_v46, %v11996_v54  ;;  %v8189_v31 = vcombine.low %v4664_v43, %v11964_v3  ;;  %9231 = vmatpush3.bf16.msra.mxu0 %v9878_v35  ;;  %v5214_v62 = vrot.slane %v11973_v2, 1  ;;  %v9886_v46 = vld [vmem:[#allocation9 + $0x1b8] sm:$0xff]   ;;  %9404 = vmatprep.subr.bf16.mxu1 %v9887_v49 }
 0x2c8   : > { %v4006_v20 = vmul.f32 %v11757_v6, %v3941_v37  ;;  %v4004_v19 = vmul.f32 %v11757_v6, %v3933_v34  ;;  %6824 = vmatmul.mubr.bf16.gmra.mrb[136].mxu1 %v11971_v27  ;;  %v4375_v13 = vor.u32 %v4373_v29, %v12009_v9  ;;  %v4009_v28 = vmul.f32 %v11757_v6, %v3954_v17  ;;  %v4684_v35 = vld [vmem:[#allocation3 + $0x30] sm:$0xf]  ;;  %v4572_v17 = vld [vmem:[#allocation3 + $0x84] sm:$0xf] }
 0x2c9   : > { %v4074_v26 = vmax.f32 %v4042_v45, 0.0  ;;  %9232 = vmatprep.subr.bf16.mxu0 %v9881_v48  ;;  %v4990_v51 = vshll.u32 %v12016_v32, 16  ;;  %v4988_v10 = vshrl.u32 %v12016_v32, 16  ;;  %v5213_v0 = vrot.slane %v8189_v31, 1 }
 0x2ca   : > { %v4045_v22 = vadd.f32 %v11765_v53, %v4006_v20  ;;  %v4043_v23 = vadd.f32 %v11765_v53, %v4004_v19  ;;  %v4580_v3 = vsel %vm10454_vm9, %v4375_v13, %v4579_v47  ;;  %v4048_v1 = vadd.f32 %v11765_v53, %v4009_v28 }
 0x2cb   : > { %v8399_v27 = vpack.c.bf16 %v4074_v26, %v4074_v26  ;;  %4581 = vst [vmem:[#allocation3 + $0x90] sm:$0xf] %v4580_v3  ;;  %v4992_v56 = vrot.slane %v4990_v51, 1  ;;  %9233 = vmatpush3.bf16.msra.mxu0 %v9882_v30  ;;  %v3946_v34 = vadd.f32 %v11914_v12, %v11722_v21  ;;  %v5215_v48 = vsel %vm1602_vm10, %v5213_v0, %v5214_v62  ;;  %v4583_v26 = vld [vmem:[#allocation3 + $0x98] sm:$0x1] }
 0x2cc   : > { %v4077_v39 = vmax.f32 %v4045_v22, 0.0  ;;  %v4075_v42 = vmax.f32 %v4043_v23, 0.0  ;;  %v4080_v60 = vmax.f32 %v4048_v1, 0.0  ;;  %9234 = vmatprep.subr.bf16.mxu0 %v9885_v52  ;;  %v12036_v47 = vcombine.low %v4684_v35, %v4685_v4  ;;  %v4576_v23 = vld [vmem:[#allocation3 + $0x8c] sm:$0x1] }
 0x2cd   : > { %v4353_v33 = vshrl.u32 %v8399_v27, 16  ;;  %v4356_v55 = vshll.u32 %v8399_v27, 16  ;;  %v4993_v37 = vor.u32 %v4992_v56, %v4988_v10  ;;  %v4376_v20 = vrot.slane %v12009_v9, 4  ;;  %6985 = vmatmul.mubr.bf16.gmra.mrb[168].mxu0 %v5215_v48  ;;  %v4593_v1 = vld [vmem:[#allocation3 + $0xa8] sm:$0xf] }
 0x2ce   : > { %v8402_v29 = vpack.c.bf16 %v4077_v39, %v4077_v39  ;;  %v8400_v25 = vpack.c.bf16 %v4075_v42, %v4075_v42  ;;  %v8405_v43 = vpack.c.bf16 %v4080_v60, %v4080_v60  ;;  %v4997_v31 = vrot.slane %v4995_v50, 1  ;;  %6992 = vmatprep.mubr.bf16.mxu0 %v12036_v47  ;;  %v12047_v56 = vld [vmem:[#allocation3 + $0x38] ss:$0 sps:$4 sm:$0x11]   ;;  %v12081_v48 = vld [vmem:[%s13112_s3] ss:$0 sm:$0xff] }
 0x2cf   : > { %v4355_v45 = vrot.slane %v4353_v33, 7  ;;  %9235 = vmatpush3.bf16.msra.mxu0 %v9886_v46  ;;  %v4007_v52 = vmul.f32 %v11757_v6, %v3946_v34  ;;  %v3957_v4 = vadd.f32 %v11920_v24, %v11738_v58  ;;  %v12053_v33 = vld [vmem:[#allocation3 + $0x34] sm:$0xf]  ;;  %v4622_v46 = vld [vmem:[#allocation3 + $0x30] sm:$0xf]  ;;  %v3970_v34 = vadd.f32 %v11944_v14, %v11752_v59 }
 0x2d0   : > { %v4378_v2 = vshrl.u32 %v8402_v29, 16  ;;  %v4361_v19 = vshrl.u32 %v8400_v25, 16  ;;  %v4381_v13 = vshll.u32 %v8402_v29, 16  ;;  %v4364_v28 = vshll.u32 %v8400_v25, 16  ;;  %v12068_v24 = vld [vmem:[%s13111_s2] ss:$0 sm:$0xff] }
 0x2d1   : > { %v4358_v30 = vor.u32 %v4356_v55, %v4355_v45  ;;  %v4404_v22 = vshrl.u32 %v8405_v43, 16  ;;  %v4998_v51 = vsel %vm1345_vm5, %v4993_v37, %v4997_v31  ;;  %v4359_v9 = vrot.slane %v4355_v45, 4  ;;  %v4665_v37 = vld [vmem:[#allocation3 + $0x24] sm:$0xe] }
 0x2d2   : > { %v4380_v21 = vrot.slane %v4378_v2, 7  ;;  %v4363_v12 = vrot.slane %v4361_v19, 7  ;;  %v4407_v27 = vshll.u32 %v8405_v43, 16  ;;  %6831 = vmatprep.mubr.bf16.mxu1 %v4998_v51  ;;  %v4046_v0 = vadd.f32 %v11765_v53, %v4007_v52  ;;  %v12086_v2 = vld [vmem:[#allocation3 + $0x40] sm:$0xf] }
 0x2d3   : > { %v4573_v50 = vsel %vm10454_vm9, %v4358_v30, %v4572_v17  ;;  %v12044_v3 = vrot.slane %v4404_v22, 7  ;;  %6832 = vmatmul.mubr.bf16.gmra.mrb[140].mxu1 %v12016_v32  ;;  %v4010_v29 = vmul.f32 %v12068_v24, %v3957_v4  ;;  %v3949_v25 = vadd.f32 %v11927_v36, %v11726_v15  ;;  %v12101_v4 = vld [vmem:[#allocation3 + $0x40] sm:$0xf] }
 0x2d4   : > { %4574 = vst [vmem:[#allocation3 + $0x84] sm:$0xf] %v4573_v50  ;;  %v4383_v10 = vor.u32 %v4381_v13, %v4380_v21  ;;  %v4385_v49 = vrot.slane %v4380_v21, 4  ;;  %v4366_v39 = vor.u32 %v4364_v28, %v4363_v12  ;;  %v4368_v42 = vrot.slane %v4363_v12, 4  ;;  %v4586_v50 = vld [vmem:[#allocation3 + $0x9c] sm:$0xf] }
 0x2d5   : > { %v4409_v6 = vor.u32 %v4407_v27, %v12044_v3  ;;  %v4078_v53 = vmax.f32 %v4046_v0, 0.0  ;;  %v8159_v35 = vcombine.low %v4622_v46, %v12053_v33  ;;  %v5007_v45 = vshll.u32 %v12047_v56, 16  ;;  %v4597_v46 = vld [vmem:[#allocation3 + $0xb0] sm:$0x1] }
 0x2d6   : > { %v4384_v55 = vsel %vm10447_vm8, %v4376_v20, %v4383_v10  ;;  %v4584_v60 = vsel %vm10426_vm2, %v4385_v49, %v4583_v26  ;;  %v4367_v32 = vsel %vm10447_vm8, %v4359_v9, %v4366_v39  ;;  %v4577_v62 = vsel %vm10426_vm2, %v4368_v42, %v4576_v23 }
 0x2d7   : > { %4582 = vst [vmem:[#allocation3 + $0x94] sm:$0xf] %v4384_v55  ;;  %4585 = vst [vmem:[#allocation3 + $0x98] sm:$0x1] %v4584_v60  ;;  %v4594_v58 = vsel %vm10454_vm9, %v4409_v6, %v4593_v1  ;;  %v8190_v17 = vcombine.low %v4665_v37, %v11996_v54  ;;  %v8403_v43 = vpack.c.bf16 %v4078_v53, %v4078_v53  ;;  %v5217_v36 = vrot.slane %v12007_v40, 1 }
 0x2d8   : > { %4575 = vst [vmem:[#allocation3 + $0x88] sm:$0xf] %v4367_v32  ;;  %4578 = vst [vmem:[#allocation3 + $0x8c] sm:$0x1] %v4577_v62  ;;  %v4049_v20 = vadd.f32 %v12081_v48, %v4010_v29  ;;  %v4008_v15 = vmul.f32 %v12068_v24, %v3949_v25  ;;  %v4013_v59 = vmul.f32 %v12068_v24, %v3970_v34  ;;  %v5000_v14 = vshrl.u32 %v8159_v35, 16 }
 0x2d9   : > { %4595 = vst [vmem:[#allocation3 + $0xa8] sm:$0xf] %v4594_v58  ;;  %v5002_v19 = vshll.u32 %v8159_v35, 16  ;;  %v5009_v31 = vrot.slane %v5007_v45, 1  ;;  %v4387_v54 = vshrl.u32 %v8403_v43, 16  ;;  %v4390_v30 = vshll.u32 %v8403_v43, 16 }
 0x2da   : > { %v4081_v13 = vmax.f32 %v4049_v20, 0.0  ;;  %v4047_v26 = vadd.f32 %v12081_v48, %v4008_v15  ;;  %v4052_v28 = vadd.f32 %v12081_v48, %v4013_v59  ;;  %v5216_v21 = vrot.slane %v8190_v17, 1  ;;  %v4686_v40 = vld [vmem:[#allocation3 + $0x3c] sm:$0xf]  ;;  %v4590_v20 = vld [vmem:[#allocation3 + $0xa4] sm:$0x1] }
 0x2db   : > { %v5004_v22 = vrot.slane %v5002_v19, 1  ;;  %v3962_v12 = vadd.f32 %v11951_v44, %v11744_v16  ;;  %v4389_v23 = vrot.slane %v4387_v54, 7  ;;  %v12094_v9 = vcombine.low %v4686_v40, %v12086_v2  ;;  %v4607_v19 = vld [vmem:[#allocation3 + $0xc0] sm:$0xf] }
 0x2dc   : > { %v8406_v51 = vpack.c.bf16 %v4081_v13, %v4081_v13  ;;  %v4079_v52 = vmax.f32 %v4047_v26, 0.0  ;;  %v4084_v27 = vmax.f32 %v4052_v28, 0.0  ;;  %v5218_v10 = vsel %vm1602_vm10, %v5216_v21, %v5217_v36 }
 0x2dd   : > { %v5005_v1 = vor.u32 %v5004_v22, %v5000_v14  ;;  %v4011_v49 = vmul.f32 %v12068_v24, %v3962_v12  ;;  %v4392_v39 = vor.u32 %v4390_v30, %v4389_v23  ;;  %6993 = vmatmul.mubr.bf16.gmra.mrb[172].mxu0 %v5218_v10  ;;  %v4410_v55 = vrot.slane %v12044_v3, 4  ;;  %v4624_v3 = vld [vmem:[#allocation3 + $0x3c] sm:$0xf] }
 0x2de   : > { %v4412_v42 = vshrl.u32 %v8406_v51, 16  ;;  %v8404_v6 = vpack.c.bf16 %v4079_v52, %v4079_v52  ;;  %v8409_v0 = vpack.c.bf16 %v4084_v27, %v4084_v27  ;;  %7000 = vmatprep.mubr.bf16.mxu0 %v12094_v9  ;;  %v4415_v62 = vshll.u32 %v8406_v51, 16  ;;  %v4666_v27 = vld [vmem:[#allocation3 + $0x30] sm:$0xe] }
 0x2df   : > { %v5010_v16 = vsel %vm1345_vm5, %v5005_v1, %v5009_v31  ;;  %v4050_v44 = vadd.f32 %v12081_v48, %v4011_v49  ;;  %v4587_v60 = vsel %vm10454_vm9, %v4392_v39, %v4586_v50  ;;  %v3973_v17 = vadd.f32 %v11957_v5, %v11759_v11  ;;  %v12120_v5 = vld [vmem:[#allocation3 + $0x44] ss:$0 sps:$4 sm:$0x11]   ;;  %v4688_v39 = vld [vmem:[#allocation3 + $0x48] sm:$0xf] }
 0x2e0   : > { %v4414_v32 = vrot.slane %v4412_v42, 7  ;;  %6839 = vmatprep.mubr.bf16.mxu1 %v5010_v16  ;;  %4588 = vst [vmem:[#allocation3 + $0x9c] sm:$0xf] %v4587_v60  ;;  %v4395_v58 = vshrl.u32 %v8404_v6, 16  ;;  %v4398_v53 = vshll.u32 %v8404_v6, 16  ;;  %v4438_v29 = vshrl.u32 %v8409_v0, 16 }
 0x2e1   : > { %v4441_v25 = vshll.u32 %v8409_v0, 16  ;;  %6840 = vmatmul.mubr.bf16.gmra.mrb[144].mxu1 %v8159_v35  ;;  %v4082_v45 = vmax.f32 %v4050_v44, 0.0  ;;  %v3965_v36 = vadd.f32 %v11961_v7, %v11748_v38  ;;  %v12113_v59 = vcombine.low %v4624_v3, %v12101_v4  ;;  %v12138_v42 = vld [vmem:[#allocation3 + $0x4c] sm:$0xf] }
 0x2e2   : > { %v4417_v37 = vor.u32 %v4415_v62, %v4414_v32  ;;  %v4419_v34 = vrot.slane %v4414_v32, 4  ;;  %v4397_v43 = vrot.slane %v4395_v58, 7  ;;  %v12108_v15 = vrot.slane %v4438_v29, 7  ;;  %v12141_v44 = vld [vmem:[#allocation3 + $0x4c] sm:$0xf] }
 0x2e3   : > { %v8407_v31 = vpack.c.bf16 %v4082_v45, %v4082_v45  ;;  %v4014_v11 = vmul.f32 %v12068_v24, %v3973_v17  ;;  %v4393_v54 = vrot.slane %v4389_v23, 4  ;;  %v4012_v28 = vmul.f32 %v12068_v24, %v3965_v36  ;;  %v4600_v23 = vld [vmem:[#allocation3 + $0xb4] sm:$0xf] }
 0x2e4   : > { %v4418_v35 = vsel %vm10447_vm8, %v4410_v55, %v4417_v37  ;;  %v4598_v14 = vsel %vm10426_vm2, %v4419_v34, %v4597_v46  ;;  %v4400_v30 = vor.u32 %v4398_v53, %v4397_v43  ;;  %v4402_v38 = vrot.slane %v4397_v43, 4  ;;  %v12143_v55 = vld [vmem:[#allocation3 + $0x50] ss:$0 sps:$4 sm:$0x11]   ;;  %v4626_v53 = vld [vmem:[#allocation3 + $0x48] sm:$0xf] }
 0x2e5   : > { %4596 = vst [vmem:[#allocation3 + $0xac] sm:$0xf] %v4418_v35  ;;  %4599 = vst [vmem:[#allocation3 + $0xb0] sm:$0x1] %v4598_v14  ;;  %v4443_v7 = vor.u32 %v4441_v25, %v12108_v15  ;;  %v4421_v13 = vshrl.u32 %v8407_v31, 16  ;;  %v4053_v26 = vadd.f32 %v12081_v48, %v4014_v11  ;;  %v4424_v40 = vshll.u32 %v8407_v31, 16 }
 0x2e6   : > { %v4401_v22 = vsel %vm10447_vm8, %v4393_v54, %v4400_v30  ;;  %v4591_v21 = vsel %vm10426_vm2, %v4402_v38, %v4590_v20  ;;  %v4051_v50 = vadd.f32 %v12081_v48, %v4012_v28  ;;  %v5014_v24 = vshll.u32 %v12113_v59, 16  ;;  %v4611_v20 = vld [vmem:[#allocation3 + $0xc8] sm:$0x1]  ;;  %v12161_v28 = vld [vmem:[#allocation3 + $0x58] sm:$0xf] }
 0x2e7   : > { %v4608_v12 = vsel %vm10454_vm9, %v4443_v7, %v4607_v19  ;;  %4589 = vst [vmem:[#allocation3 + $0xa0] sm:$0xf] %v4401_v22  ;;  %4592 = vst [vmem:[#allocation3 + $0xa4] sm:$0x1] %v4591_v21  ;;  %v12131_v51 = vrot.slane %v4421_v13, 7  ;;  %v4085_v52 = vmax.f32 %v4053_v26, 0.0  ;;  %v8191_v10 = vcombine.low %v4666_v27, %v12053_v33 }
 0x2e8   : > { %4609 = vst [vmem:[#allocation3 + $0xc0] sm:$0xf] %v4608_v12  ;;  %v5019_v1 = vshll.u32 %v12120_v5, 16  ;;  %v5220_v49 = vrot.slane %v12047_v56, 1  ;;  %v4083_v16 = vmax.f32 %v4051_v50, 0.0  ;;  %v4444_v48 = vrot.slane %v12108_v15, 4 }
 0x2e9   : > { %v4426_v6 = vor.u32 %v4424_v40, %v12131_v51  ;;  %v8410_v0 = vpack.c.bf16 %v4085_v52, %v4085_v52  ;;  %v5012_v60 = vshrl.u32 %v12113_v59, 16  ;;  %v5016_v32 = vrot.slane %v5014_v24, 1  ;;  %v4604_v15 = vld [vmem:[#allocation3 + $0xbc] sm:$0x1]  ;;  %v12167_v40 = vld [vmem:[#allocation3 + $0x58] sm:$0xf] }
 0x2ea   : > { %v5219_v62 = vrot.slane %v8191_v10, 1  ;;  %v8408_v46 = vpack.c.bf16 %v4083_v16, %v4083_v16  ;;  %v12150_v58 = vcombine.low %v4688_v39, %v12138_v42  ;;  %v5021_v25 = vrot.slane %v5019_v1, 1  ;;  %v4628_v52 = vld [vmem:[#allocation3 + $0x54] sm:$0xf]  ;;  %v4668_v1 = vld [vmem:[#allocation3 + $0x48] sm:$0xe] }
 0x2eb   : > { %v4601_v56 = vsel %vm10454_vm9, %v4426_v6, %v4600_v23  ;;  %v4446_v33 = vshrl.u32 %v8410_v0, 16  ;;  %v5017_v29 = vor.u32 %v5016_v32, %v5012_v60  ;;  %v8161_v34 = vcombine.low %v4626_v53, %v12141_v44  ;;  %v12169_v23 = vld [vmem:[#allocation3 + $0x5c] ss:$0 sps:$4 sm:$0x11]   ;;  %v4690_v24 = vld [vmem:[#allocation3 + $0x54] sm:$0xf] }
 0x2ec   : > { %4602 = vst [vmem:[#allocation3 + $0xb4] sm:$0xf] %v4601_v56  ;;  %v5221_v37 = vsel %vm1602_vm10, %v5219_v62, %v5220_v49  ;;  %v4427_v45 = vrot.slane %v12131_v51, 4  ;;  %v4449_v3 = vshll.u32 %v8410_v0, 16  ;;  %v4429_v43 = vshrl.u32 %v8408_v46, 16 }
 0x2ed   : > { %v4448_v17 = vrot.slane %v4446_v33, 7  ;;  %7001 = vmatmul.mubr.bf16.gmra.mrb[176].mxu0 %v5221_v37  ;;  %v5022_v36 = vsel %vm1345_vm5, %v5017_v29, %v5021_v25  ;;  %v5026_v35 = vshll.u32 %v8161_v34, 16  ;;  %v5031_v14 = vshll.u32 %v12143_v55, 16  ;;  %v12176_v10 = vld [vmem:[#allocation3 + $0x64] sm:$0xf] }
 0x2ee   : > { %7008 = vmatprep.mubr.bf16.mxu0 %v12150_v58  ;;  %v8192_v19 = vcombine.low %v4667_v18, %v12101_v4  ;;  %v4431_v54 = vrot.slane %v4429_v43, 7  ;;  %v4432_v30 = vshll.u32 %v8408_v46, 16  ;;  %6847 = vmatprep.mubr.bf16.mxu1 %v5022_v36  ;;  %v5024_v38 = vshrl.u32 %v8161_v34, 16  ;;  %v4630_v16 = vld [vmem:[#allocation3 + $0x60] sm:$0xf] }
 0x2ef   : > { %v4451_v31 = vor.u32 %v4449_v3, %v4448_v17  ;;  %v4453_v11 = vrot.slane %v4448_v17, 4  ;;  %6848 = vmatmul.mubr.bf16.gmra.mrb[148].mxu1 %v12113_v59  ;;  %v5028_v7 = vrot.slane %v5026_v35, 1  ;;  %v5223_v26 = vrot.slane %v12120_v5, 1  ;;  %v12187_v60 = vld [vmem:[#allocation3 + $0x68] ss:$0 sps:$4 sm:$0x11]  }
 0x2f0   : > { %v5222_v13 = vrot.slane %v8192_v19, 1  ;;  %v4434_v21 = vor.u32 %v4432_v30, %v4431_v54  ;;  %v4436_v12 = vrot.slane %v4431_v54, 4  ;;  %v5033_v51 = vrot.slane %v5031_v14, 1  ;;  %v12189_v56 = vld [vmem:[#allocation3 + $0x70] sm:$0xf] }
 0x2f1   : > { %v4452_v22 = vsel %vm10447_vm8, %v4444_v48, %v4451_v31  ;;  %v4612_v4 = vsel %vm10426_vm2, %v4453_v11, %v4611_v20  ;;  %v5029_v59 = vor.u32 %v5028_v7, %v5024_v38  ;;  %v8162_v27 = vcombine.low %v4628_v52, %v12161_v28  ;;  %v12192_v46 = vld [vmem:[#allocation3 + $0x64] sm:$0xf]  ;;  %v4632_v37 = vld [vmem:[#allocation3 + $0x6c] sm:$0xf]  ;;  %v12202_v19 = vld [vmem:[#allocation3 + $0x7c] sm:$0xf] }
 0x2f2   : > { %4610 = vst [vmem:[#allocation3 + $0xc4] sm:$0xf] %v4452_v22  ;;  %4613 = vst [vmem:[#allocation3 + $0xc8] sm:$0x1] %v4612_v4  ;;  %v4435_v5 = vsel %vm10447_vm8, %v4427_v45, %v4434_v21  ;;  %v4605_v50 = vsel %vm10426_vm2, %v4436_v12, %v4604_v15  ;;  %v5224_v39 = vsel %vm1602_vm10, %v5222_v13, %v5223_v26  ;;  %v5043_v0 = vshll.u32 %v12169_v23, 16 }
 0x2f3   : > { %4603 = vst [vmem:[#allocation3 + $0xb8] sm:$0xf] %v4435_v5  ;;  %4606 = vst [vmem:[#allocation3 + $0xbc] sm:$0x1] %v4605_v50  ;;  %v5034_v49 = vsel %vm1345_vm5, %v5029_v59, %v5033_v51  ;;  %v12181_v6 = vcombine.low %v4690_v24, %v12167_v40  ;;  %v8193_v41 = vcombine.low %v4668_v1, %v12141_v44  ;;  %v5038_v8 = vshll.u32 %v8162_v27, 16 }
 0x2f4   : > { %6855 = vmatprep.mubr.bf16.mxu1 %v5034_v49  ;;  %v8163_v48 = vcombine.low %v4630_v16, %v12176_v10  ;;  %v5036_v32 = vshrl.u32 %v8162_v27, 16  ;;  %v5226_v44 = vrot.slane %v12143_v55, 1  ;;  %v5045_v25 = vrot.slane %v5043_v0, 1  ;;  %v4692_v45 = vld [vmem:[#allocation3 + $0x60] sm:$0xf] }
 0x2f5   : > { %7009 = vmatmul.mubr.bf16.gmra.mrb[180].mxu0 %v5224_v39  ;;  %v5040_v62 = vrot.slane %v5038_v8, 1  ;;  %v5225_v33 = vrot.slane %v8193_v41, 1  ;;  %v5055_v43 = vshll.u32 %v12187_v60, 16  ;;  %v8164_v18 = vcombine.low %v4632_v37, %v12189_v56  ;;  %v4669_v15 = vld [vmem:[#allocation3 + $0x54] sm:$0xe] }
 0x2f6   : > { %7016 = vmatprep.mubr.bf16.mxu0 %v12181_v6  ;;  %v5050_v53 = vshll.u32 %v8163_v48, 16  ;;  %v5048_v17 = vshrl.u32 %v8163_v48, 16  ;;  %v8194_v35 = vcombine.low %v4669_v15, %v12161_v28  ;;  %v12205_v11 = vld [vmem:[#allocation3 + $0x74] ss:$0 sps:$4 sm:$0x11]   ;;  %v5229_v54 = vrot.slane %v12169_v23, 1 }
 0x2f7   : > { %6856 = vmatmul.mubr.bf16.gmra.mrb[152].mxu1 %v8161_v34  ;;  %v5041_v29 = vor.u32 %v5040_v62, %v5036_v32  ;;  %v12198_v34 = vcombine.low %v4692_v45, %v12192_v46  ;;  %v5227_v55 = vsel %vm1602_vm10, %v5225_v33, %v5226_v44  ;;  %v5062_v14 = vshll.u32 %v8164_v18, 16  ;;  %v4634_v30 = vld [vmem:[#allocation3 + $0x78] sm:$0xf]  ;;  %v12209_v13 = vld [vmem:[#allocation3 + $0x70] sm:$0xf] }
 0x2f8   : > { %v5052_v3 = vrot.slane %v5050_v53, 1  ;;  %v5057_v31 = vrot.slane %v5055_v43, 1  ;;  %v5228_v7 = vrot.slane %v8194_v35, 1  ;;  %v12212_v28 = vcombine.low %v4634_v30, %v12202_v19  ;;  %v4694_v22 = vld [vmem:[#allocation3 + $0x6c] sm:$0xf] }
 0x2f9   : > { %v5046_v20 = vsel %vm1345_vm5, %v5041_v29, %v5045_v25  ;;  %v5064_v26 = vrot.slane %v5062_v14, 1  ;;  %v5060_v4 = vshrl.u32 %v8164_v18, 16  ;;  %v5067_v21 = vshll.u32 %v12205_v11, 16  ;;  %v4670_v23 = vld [vmem:[#allocation3 + $0x60] sm:$0xe] }
 0x2fa   : > { %6863 = vmatprep.mubr.bf16.mxu1 %v5046_v20  ;;  %v5053_v36 = vor.u32 %v5052_v3, %v5048_v17  ;;  %v12216_v12 = vcombine.low %v4694_v22, %v12209_v13  ;;  %v5230_v59 = vsel %vm1602_vm10, %v5228_v7, %v5229_v54  ;;  %v8195_v52 = vcombine.low %v4670_v23, %v12176_v10  ;;  %v12221_v50 = vld [vmem:[#allocation3 + $0x88] sm:$0xf]  ;;  %v4636_v49 = vld [vmem:[#allocation3 + $0x84] sm:$0xf]  ;;  %v4697_v8 = vld [vmem:[#allocation3 + $0x7c] sm:$0xf] }
 0x2fb   : > { %v5065_v51 = vor.u32 %v5064_v26, %v5060_v4  ;;  %v5074_v5 = vshll.u32 %v12212_v28, 16  ;;  %v5069_v24 = vrot.slane %v5067_v21, 1  ;;  %v5232_v1 = vrot.slane %v12187_v60, 1  ;;  %v4696_v16 = vld [vmem:[#allocation3 + $0x78] sm:$0xf] }
 0x2fc   : > { %v5058_v38 = vsel %vm1345_vm5, %v5053_v36, %v5057_v31  ;;  %v5231_v41 = vrot.slane %v8195_v52, 1  ;;  %v12229_v10 = vcombine.low %v4636_v49, %v12221_v50  ;;  %v5072_v32 = vshrl.u32 %v12212_v28, 16  ;;  %v4671_v44 = vld [vmem:[#allocation3 + $0x6c] sm:$0xe]  ;;  %v12238_v25 = vld [vmem:[#allocation3 + $0x94] sm:$0xf] }
 0x2fd   : > { %7017 = vmatmul.mubr.bf16.gmra.mrb[184].mxu0 %v5227_v55  ;;  %v5070_v39 = vsel %vm1345_vm5, %v5065_v51, %v5069_v24  ;;  %v5076_v0 = vrot.slane %v5074_v5, 1  ;;  %v12233_v33 = vcombine.low %v4696_v16, %v4697_v8  ;;  %v8196_v53 = vcombine.low %v4671_v44, %v12189_v56  ;;  %v12241_v45 = vld [vmem:[#allocation3 + $0x8c] ss:$0 sps:$4 sm:$0x11]   ;;  %v4638_v3 = vld [vmem:[#allocation3 + $0x90] sm:$0xf] }
 0x2fe   : > { %7024 = vmatprep.mubr.bf16.mxu0 %v12198_v34  ;;  %v5233_v60 = vsel %vm1602_vm10, %v5231_v41, %v5232_v1  ;;  %v5086_v29 = vshll.u32 %v12229_v10, 16  ;;  %v5235_v17 = vrot.slane %v12205_v11, 1  ;;  %v12246_v56 = vcombine.low %v4638_v3, %v12238_v25  ;;  %v4699_v55 = vld [vmem:[#allocation3 + $0x88] sm:$0xf]  ;;  %v4672_v14 = vld [vmem:[#allocation3 + $0x78] sm:$0xe] }
 0x2ff   : > { %6864 = vmatmul.mubr.bf16.gmra.mrb[156].mxu1 %v8162_v27  ;;  %v12224_v27 = vld [vmem:[#allocation3 + $0x80] ss:$0 sps:$4 sm:$0x11]   ;;  %v5234_v20 = vrot.slane %v8196_v53, 1  ;;  %v5084_v36 = vshrl.u32 %v12229_v10, 16  ;;  %v5091_v35 = vshll.u32 %v12241_v45, 16  ;;  %v8197_v54 = vcombine.low %v4672_v14, %v12202_v19 }
 0x300   : > { %6871 = vmatprep.mubr.bf16.mxu1 %v5058_v38  ;;  %v5079_v62 = vshll.u32 %v12224_v27, 16  ;;  %v5088_v15 = vrot.slane %v5086_v29, 1  ;;  %v4698_v31 = vld [vmem:[#allocation3 + $0x84] sm:$0xf]  ;;  %v5098_v38 = vshll.u32 %v12246_v56, 16  ;;  %v5238_v19 = vrot.slane %v12224_v27, 1 }
 0x301   : > { %v5236_v11 = vsel %vm1602_vm10, %v5234_v20, %v5235_v17  ;;  %v12255_v7 = vld [vmem:[#allocation3 + $0x2c] ss:$0 sps:$4 sm:$0x11]   ;;  %v12257_v26 = vld [vmem:[#allocation3 + $0xa0] sm:$0xf]  ;;  %v5093_v22 = vrot.slane %v5091_v35, 1 }
 0x302   : > { %v5081_v37 = vrot.slane %v5079_v62, 1  ;;  %v5089_v30 = vor.u32 %v5088_v15, %v5084_v36  ;;  %v12260_v4 = vld [vmem:[#allocation3 + $0x98] ss:$0 sps:$4 sm:$0x11]   ;;  %v5237_v21 = vrot.slane %v8197_v54, 1  ;;  %v5100_v5 = vrot.slane %v5098_v38, 1 }
 0x303   : > { %v4640_v23 = vld [vmem:[#allocation3 + $0x9c] sm:$0xf]  ;;  %v4701_v52 = vld [vmem:[#allocation3 + $0x94] sm:$0xf]  ;;  %v12270_v1 = vpop.f32.mrb[128].mxu1  ;;  %v5096_v41 = vshrl.u32 %v12246_v56, 16 }
 0x304   : > { %v5094_v51 = vsel %vm1345_vm5, %v5089_v30, %v5093_v22  ;;  %v12268_v24 = vcombine.low %v4640_v23, %v12257_v26  ;;  %v4700_v49 = vld [vmem:[#allocation3 + $0x90] sm:$0xf]  ;;  %v5103_v27 = vshll.u32 %v12260_v4, 16  ;;  %v12281_v53 = vld [vmem:[#allocation3 + $0xac] sm:$0xf]  ;;  %v12283_v29 = vpop.f32.mrb[129].mxu1 }
 0x305   : > { %7025 = vmatmul.mubr.bf16.gmra.mrb[188].mxu0 %v5230_v59  ;;  %v12263_v59 = vld [vmem:[#allocation3 + $0x28] sm:$0xf]  ;;  %v12277_v16 = vcombine.low %v4700_v49, %v4701_v52  ;;  %v5101_v62 = vor.u32 %v5100_v5, %v5096_v41  ;;  %v12286_v17 = vld [vmem:[#allocation3 + $0xa4] ss:$0 sps:$4 sm:$0x11]  }
 0x306   : > { %7032 = vmatprep.mubr.bf16.mxu0 %v12216_v12  ;;  %v4642_v20 = vld [vmem:[#allocation3 + $0xa8] sm:$0xf]  ;;  %v5108_v54 = vshrl.u32 %v12268_v24, 16  ;;  %v4702_v30 = vld [vmem:[#allocation3 + $0x9c] sm:$0xf] }
 0x307   : > { %6872 = vmatmul.mubr.bf16.gmra.mrb[160].mxu1 %v8163_v48  ;;  %v5077_v48 = vor.u32 %v5076_v0, %v5072_v32  ;;  %v5239_v0 = vsel %vm1602_vm10, %v5237_v21, %v5238_v19  ;;  %v4673_v32 = vld [vmem:[#allocation3 + $0x84] sm:$0xe]  ;;  %v12299_v14 = vcombine.low %v4642_v20, %v12281_v53  ;;  %v12311_v23 = vld [vmem:[#allocation3 + $0xb8] sm:$0xf]  ;;  %v4644_v49 = vld [vmem:[#allocation3 + $0xb4] sm:$0xf] }
 0x308   : > { %6879 = vmatprep.mubr.bf16.mxu1 %v5070_v39  ;;  %v4792_v39 = vld [vmem:[#allocation3 + $0x24] sm:$0xe]  ;;  %v8198_v44 = vcombine.low %v4673_v32, %v12221_v50  ;;  %v5241_v50 = vrot.slane %v12241_v45, 1  ;;  %v4674_v45 = vld [vmem:[#allocation3 + $0x90] sm:$0xe] }
 0x309   : > { %v5082_v43 = vsel %vm1345_vm5, %v5077_v48, %v5081_v37  ;;  %v8284_v8 = vcombine.low %v4792_v39, %v12263_v59  ;;  %v5105_v37 = vrot.slane %v5103_v27, 1  ;;  %v8199_v38 = vcombine.low %v4674_v45, %v12238_v25  ;;  %v9862_v52 = vld [vmem:[#allocation3 + $0xb0] ss:$0 sps:$4 sm:$0x11]   ;;  %v4705_v41 = vld [vmem:[#allocation3 + $0xac] sm:$0xf] }
 0x30a   : > { %v5240_v36 = vrot.slane %v8198_v44, 1  ;;  %v5122_v19 = vshll.u32 %v12299_v14, 16  ;;  %v5244_v39 = vrot.slane %v12260_v4, 1  ;;  %v5127_v32 = vshll.u32 %v9862_v52, 16  ;;  %v4675_v44 = vld [vmem:[#allocation3 + $0x9c] sm:$0xe] }
 0x30b   : > { %v6138_v48 = vrot.slane %v8284_v8, 1  ;;  %v5243_v5 = vrot.slane %v8199_v38, 1  ;;  %v12318_v8 = vcombine.low %v4644_v49, %v12311_v23  ;;  %v4744_v45 = vld [vmem:[#allocation3 + $0x1c] sm:$0xf]  ;;  %v4676_v38 = vld [vmem:[#allocation3 + $0xa8] sm:$0xe] }
 0x30c   : > { %v5124_v27 = vrot.slane %v5122_v19, 1  ;;  %v8201_v19 = vcombine.low %v4676_v38, %v12281_v53  ;;  %v4726_v49 = vld [vmem:[#allocation3 + $0xc] sm:$0xe] }
 0x30d   : > { %7033 = vmatmul.mubr.bf16.gmra.mrb[192].mxu0 %v5233_v60  ;;  %v5110_v60 = vshll.u32 %v12268_v24, 16  ;;  %v5134_v4 = vshll.u32 %v12318_v8, 16 }
 0x30e   : > { %7040 = vmatprep.mubr.bf16.mxu0 %v12233_v33 }
 0x30f   : > { %6880 = vmatmul.mubr.bf16.gmra.mrb[164].mxu1 %v8164_v18  ;;  %v12252_v18 = vcombine.low %v4698_v31, %v4699_v55  ;;  %v5106_v55 = vsel %vm1345_vm5, %v5101_v62, %v5105_v37  ;;  %v5112_v35 = vrot.slane %v5110_v60, 1  ;;  %v12301_v31 = vld [vmem:[#allocation3 + $0xa0] sm:$0xf]  ;;  %v5245_v60 = vsel %vm1602_vm10, %v5243_v5, %v5244_v39  ;;  %v9975_v39 = vld [vmem:[#allocation3 + $0x10] sm:$0xf] }
 0x310   : > { %6887 = vmatprep.mubr.bf16.mxu1 %v5082_v43  ;;  %v12291_v43 = vpop.f32.mrb[130].mxu1  ;;  %13275 = vst [vmem:[#allocation25_spill] sm:$0xff] %v12301_v31  ;;  %v12308_v22 = vcombine.low %v4702_v30, %v12301_v31  ;;  %v5129_v37 = vrot.slane %v5127_v32, 1  ;;  %v4706_v30 = vld [vmem:[#allocation3 + $0xb4] sm:$0xf] }
 0x311   : > { %v12294_v15 = vpop.f32.mrb[131].mxu1  ;;  %v5113_v21 = vor.u32 %v5112_v35, %v5108_v54  ;;  %v5136_v35 = vrot.slane %v5134_v4, 1  ;;  %v4707_v54 = vld [vmem:[#allocation3 + $0xb8] sm:$0xf]  ;;  %v4709_v32 = vld [vmem:[#allocation3 + $0xc4] sm:$0xf] }
 0x312   : > { %13276 = vst [vmem:[#allocation26_spill] sm:$0xff] %v12308_v22  ;;  %v9884_v4 = vld [vmem:[#allocation3 + $0x20] ss:$0 sps:$4 sm:$0x11]  }
 0x315   : > { %7041 = vmatmul.mubr.bf16.gmra.mrb[196].mxu0 %v5236_v11  ;;  %v5115_v11 = vshll.u32 %v12286_v17, 16 }
 0x316   : > { %7048 = vmatprep.mubr.bf16.mxu0 %v12252_v18 }
 0x317   : > { %6888 = vmatmul.mubr.bf16.gmra.mrb[168].mxu1 %v12212_v28  ;;  %v6139_v28 = vrot.slane %v12255_v7, 1 }
 0x318   : > { %6895 = vmatprep.mubr.bf16.mxu1 %v5094_v51  ;;  %v5117_v51 = vrot.slane %v5115_v11, 1 }
 0x319   : > { %v12289_v3 = vsel %vm1602_vm10, %v6138_v48, %v6139_v28  ;;  %v4704_v28 = vld [vmem:[#allocation3 + $0xa8] sm:$0xf]  ;;  %v8200_v48 = vcombine.low %v4675_v44, %v12257_v26  ;;  %v5132_v26 = vshrl.u32 %v12318_v8, 16  ;;  %v4708_v44 = vld [vmem:[#allocation3 + $0xc0] sm:$0xf] }
 0x31a   : > { %13274 = vst [vmem:[#allocation24_spill] sm:$0xff] %v12289_v3  ;;  %v5118_v25 = vsel %vm1345_vm5, %v5113_v21, %v5117_v51  ;;  %v12321_v62 = vcombine.low %v4704_v28, %v4705_v41  ;;  %v12335_v21 = vcombine.low %v4706_v30, %v4707_v54  ;;  %v4743_v51 = vld [vmem:[#allocation3 + $0x18] sm:$0xf]  ;;  %v8235_v41 = vcombine.low %v4726_v49, %v9975_v39  ;;  %v9976_v30 = vld [vmem:[#allocation3 + $0x1c] sm:$0xf] }
 0x31b   : > { %v5249_v28 = vrot.slane %v8201_v19, 1  ;;  %v9888_v19 = vld [vmem:[#allocation3 + $0x20] ss:$0 sps:$4 sm:$0x11]   ;;  %v4748_v39 = vld [vmem:[#allocation3 + $0x34] sm:$0xf] }
 0x31c   : > { %13277 = vst [vmem:[#allocation27_spill] sm:$0xff] %v12321_v62  ;;  %13278 = vst [vmem:[#allocation28_spill] sm:$0xff] %v12335_v21  ;;  %v12496_v3 = vld [vmem:[#allocation3 + $0x94] sm:$0xf] }
 0x31d   : > { %7049 = vmatmul.mubr.bf16.gmra.mrb[200].mxu0 %v5239_v0  ;;  %v5120_v0 = vshrl.u32 %v12299_v14, 16 }
 0x31e   : > { %7056 = vmatprep.mubr.bf16.mxu0 %v12277_v16 }
 0x31f   : > { %6896 = vmatmul.mubr.bf16.gmra.mrb[172].mxu1 %v12229_v10  ;;  %v5242_v10 = vsel %vm1602_vm10, %v5240_v36, %v5241_v50  ;;  %v12327_v50 = vld [vmem:[#allocation3 + $0xbc] ss:$0 sps:$4 sm:$0x11]   ;;  %v5247_v36 = vrot.slane %v12286_v17, 1  ;;  %v12338_v17 = vcombine.low %v4743_v51, %v4744_v45  ;;  %v5887_v45 = vshll.u32 %v9884_v4, 16 }
 0x320   : > { %6903 = vmatprep.mubr.bf16.mxu1 %v5106_v55  ;;  %v5246_v55 = vrot.slane %v8200_v48, 1  ;;  %v5139_v11 = vshll.u32 %v12327_v50, 16  ;;  %v4677_v48 = vld [vmem:[#allocation3 + $0xb4] sm:$0xe] }
 0x321   : > { %v5882_v53 = vshll.u32 %v12338_v17, 16 }
 0x322   : > { %v5141_v5 = vrot.slane %v5139_v11, 1  ;;  %v5880_v11 = vshrl.u32 %v12338_v17, 16 }
 0x325   : > { %7057 = vmatmul.mubr.bf16.gmra.mrb[204].mxu0 %v5242_v10  ;;  %v5248_v10 = vsel %vm1602_vm10, %v5246_v55, %v5247_v36  ;;  %v4745_v36 = vld [vmem:[#allocation3 + $0x24] sm:$0xf] }
 0x326   : > { %7064 = vmatprep.mubr.bf16.mxu0 %v12308_v22 }
 0x327   : > { %6904 = vmatmul.mubr.bf16.gmra.mrb[176].mxu1 %v12246_v56  ;;  %v5125_v56 = vor.u32 %v5124_v27, %v5120_v0  ;;  %v5250_v0 = vrot.slane %v9862_v52, 1  ;;  %v5884_v52 = vrot.slane %v5882_v53, 1 }
 0x328   : > { %6911 = vmatprep.mubr.bf16.mxu1 %v5118_v25  ;;  %v9880_v25 = vld [vmem:[#allocation3 + $0x14] ss:$0 sps:$4 sm:$0x11]  }
 0x329   : > { %v5130_v20 = vsel %vm1345_vm5, %v5125_v56, %v5129_v37  ;;  %v12345_v56 = vcombine.low %v4708_v44, %v4709_v32  ;;  %v5251_v37 = vsel %vm1602_vm10, %v5249_v28, %v5250_v0  ;;  %v5672_v55 = vrot.slane %v9880_v25, 1  ;;  %v4747_v0 = vld [vmem:[#allocation3 + $0x30] sm:$0xf] }
 0x32a   : > { %v5423_v51 = vshll.u32 %v9880_v25, 16  ;;  %v12361_v53 = vcombine.low %v4747_v0, %v4748_v39  ;;  %v12389_v0 = vld [vmem:[#allocation3 + $0x38] ss:$0 sps:$4 sm:$0x11]  }
 0x32b   : > { %13279 = vst [vmem:[#allocation29_spill] sm:$0xff] %v12345_v56 }
 0x32c   : > { %v5425_v25 = vrot.slane %v5423_v51, 1  ;;  %v9903_v51 = vld [vmem:[#allocation9 + $0x210] sm:$0xff]  }
 0x32d   : > { %7065 = vmatmul.mubr.bf16.gmra.mrb[208].mxu0 %v5245_v60  ;;  %v5418_v60 = vshll.u32 %v11874_v61, 16 }
 0x32e   : > { %7072 = vmatprep.mubr.bf16.mxu0 %v12321_v62 }
 0x32f   : > { %6912 = vmatmul.mubr.bf16.gmra.mrb[180].mxu1 %v12268_v24  ;;  %v5137_v24 = vor.u32 %v5136_v35, %v5132_v26  ;;  %v12350_v35 = vcombine.low %v4745_v36, %v12263_v59  ;;  %v5420_v54 = vrot.slane %v5418_v60, 1  ;;  %v4727_v26 = vld [vmem:[#allocation3 + $0x18] sm:$0xe]  ;;  %v5416_v59 = vshrl.u32 %v11874_v61, 16  ;;  %v9895_v60 = vld [vmem:[#allocation9 + $0x208] sm:$0xff]  }
 0x330   : > { %6919 = vmatprep.mubr.bf16.mxu1 %v5130_v20  ;;  %v8202_v20 = vcombine.low %v4677_v48, %v12311_v23  ;;  %v8236_v38 = vcombine.low %v4727_v26, %v9976_v30  ;;  %v4728_v48 = vld [vmem:[#allocation3 + $0x24] sm:$0xe]  ;;  %v5906_v26 = vshll.u32 %v12361_v53, 16  ;;  %v5442_v30 = vshll.u32 %v12000_v57, 16 }
 0x331   : > { %v5142_v27 = vsel %vm1345_vm5, %v5137_v24, %v5141_v5  ;;  %v5885_v5 = vor.u32 %v5884_v52, %v5880_v11  ;;  %v5894_v49 = vshll.u32 %v12350_v35, 16  ;;  %v5421_v28 = vor.u32 %v5420_v54, %v5416_v59  ;;  %v12368_v54 = vld [vmem:[#allocation3 + $0x2c] ss:$0 sps:$4 sm:$0x11]   ;;  %v12371_v11 = vld [vmem:[#allocation3 + $0x40] sm:$0xf] }
 0x332   : > { %v5252_v23 = vrot.slane %v8202_v20, 1  ;;  %v5674_v32 = vrot.slane %v8236_v38, 1  ;;  %v5899_v20 = vshll.u32 %v12255_v7, 16  ;;  %v9978_v7 = vld [vmem:[#allocation9 + $0x200] sm:$0xff]  }
 0x333   : > { %v5896_v44 = vrot.slane %v5894_v49, 1  ;;  %v5426_v4 = vsel %vm1345_vm5, %v5421_v28, %v5425_v25  ;;  %v4749_v59 = vld [vmem:[#allocation3 + $0x3c] sm:$0xf]  ;;  %v5908_v28 = vrot.slane %v5906_v26, 1 }
 0x334   : > { %v12380_v39 = vcombine.low %v4749_v59, %v12371_v11  ;;  %v12394_v25 = vld [vmem:[#allocation3 + $0x44] ss:$0 sps:$4 sm:$0x11]  }
 0x335   : > { %7073 = vmatmul.mubr.bf16.gmra.mrb[212].mxu0 %v5248_v10  ;;  %v5253_v10 = vrot.slane %v12327_v50, 1  ;;  %v5675_v50 = vrot.slane %v9888_v19, 1 }
 0x336   : > { %7080 = vmatprep.mubr.bf16.mxu0 %v12335_v21  ;;  %v12499_v21 = vld [vmem:[#allocation3 + $0xb0] ss:$0 sps:$4 sm:$0x11]  }
 0x337   : > { %6920 = vmatmul.mubr.bf16.gmra.mrb[184].mxu1 %v12299_v14  ;;  %v5671_v14 = vrot.slane %v8235_v41, 1  ;;  %v5430_v41 = vshll.u32 %v11918_v63, 16  ;;  %v5676_v52 = vsel %vm1602_vm10, %v5674_v32, %v5675_v50  ;;  %v9979_v32 = vld [vmem:[#allocation3 + $0x34] sm:$0xf] }
 0x338   : > { %6927 = vmatprep.mubr.bf16.mxu1 %v5142_v27  ;;  %v5889_v27 = vrot.slane %v5887_v45, 1  ;;  %v12375_v45 = vadd.f32 %v12283_v29, %v12270_v1  ;;  %v12384_v1 = vadd.f32 %v12294_v15, %v12291_v43  ;;  %v4729_v29 = vld [vmem:[#allocation3 + $0x30] sm:$0xe]  ;;  %v5904_v43 = vshrl.u32 %v12361_v53, 16 }
 0x339   : > { %v5673_v24 = vsel %vm1602_vm10, %v5671_v14, %v5672_v55  ;;  %v5432_v14 = vrot.slane %v5430_v41, 1  ;;  %v9977_v55 = vld [vmem:[#allocation3 + $0x28] sm:$0xf]  ;;  %v8238_v50 = vcombine.low %v4729_v29, %v9979_v32 }
 0x33a   : > { %v5890_v61 = vsel %vm1345_vm5, %v5885_v5, %v5889_v27  ;;  %v8237_v36 = vcombine.low %v4728_v48, %v9977_v55  ;;  %v5901_v5 = vrot.slane %v5899_v20, 1  ;;  %v5678_v27 = vrot.slane %v12368_v54, 1 }
 0x33b   : > { %v5444_v48 = vrot.slane %v5442_v30, 1  ;;  %v5454_v20 = vshll.u32 %v12036_v47, 16  ;;  %v5466_v30 = vshll.u32 %v12094_v9, 16  ;;  %v5680_v59 = vrot.slane %v8238_v50, 1 }
 0x33c   : > { %v5677_v41 = vrot.slane %v8237_v36, 1  ;;  %v5909_v36 = vor.u32 %v5908_v28, %v5904_v43  ;;  %v5923_v28 = vshll.u32 %v12394_v25, 16  ;;  %v5459_v50 = vshll.u32 %v12389_v0, 16 }
 0x33d   : > { %7081 = vmatmul.mubr.bf16.gmra.mrb[216].mxu0 %v5251_v37  ;;  %v5892_v37 = vshrl.u32 %v12350_v35, 16  ;;  %v5456_v32 = vrot.slane %v5454_v20, 1  ;;  %v4755_v20 = vld [vmem:[#allocation3 + $0x60] sm:$0xf] }
 0x33e   : > { %7088 = vmatprep.mubr.bf16.mxu0 %v12345_v56  ;;  %v5679_v55 = vsel %vm1602_vm10, %v5677_v41, %v5678_v27 }
 0x33f   : > { %6928 = vmatmul.mubr.bf16.gmra.mrb[188].mxu1 %v12318_v8  ;;  %v5254_v8 = vsel %vm1602_vm10, %v5252_v23, %v5253_v10  ;;  %v5897_v38 = vor.u32 %v5896_v44, %v5892_v37  ;;  %v5428_v23 = vshrl.u32 %v11918_v63, 16  ;;  %v5435_v10 = vshll.u32 %v9888_v19, 16  ;;  %v9911_v44 = vld [vmem:[#allocation9 + $0x218] sm:$0xff]   ;;  %v4751_v37 = vld [vmem:[#allocation3 + $0x48] sm:$0xf] }
 0x340   : > { %7129 = vmatprep.mubr.bf16.mxu1 %v5673_v24  ;;  %v9894_v24 = vld [vmem:[#allocation3 + $0x38] ss:$0 sps:$4 sm:$0x11]  }
 0x341   : > { %v5433_v49 = vor.u32 %v5432_v14, %v5428_v23  ;;  %v5902_v63 = vsel %vm1345_vm5, %v5897_v38, %v5901_v5  ;;  %v5437_v19 = vrot.slane %v5435_v10, 1  ;;  %v5911_v15 = vshll.u32 %v9894_v24, 16  ;;  %v12400_v14 = vld [vmem:[#allocation3 + $0x48] sm:$0xe] }
 0x342   : > { %v5440_v38 = vshrl.u32 %v12000_v57, 16  ;;  %v12412_v23 = vld [vmem:[#allocation3 + $0x50] ss:$0 sps:$4 sm:$0x11]   ;;  %v8240_v10 = vcombine.low %v12400_v14, %v12138_v42  ;;  %v5681_v5 = vrot.slane %v12389_v0, 1 }
 0x343   : > { %v5913_v24 = vrot.slane %v5911_v15, 1  ;;  %v4754_v15 = vld [vmem:[#allocation3 + $0x58] sm:$0xf]  ;;  %v4796_v14 = vld [vmem:[#allocation3 + $0x54] sm:$0xe] }
 0x344   : > { %v5445_v29 = vor.u32 %v5444_v48, %v5440_v38  ;;  %v5682_v48 = vsel %vm1602_vm10, %v5680_v59, %v5681_v5  ;;  %v5464_v38 = vshrl.u32 %v12094_v9, 16  ;;  %v12440_v59 = vld [vmem:[#allocation3 + $0x70] sm:$0xf] }
 0x345   : > { %7089 = vmatmul.mubr.bf16.gmra.mrb[220].mxu0 %v5254_v8  ;;  %v12391_v8 = vld [vmem:[#allocation3 + $0x4c] sm:$0xf]  ;;  %v5914_v57 = vsel %vm1345_vm5, %v5909_v36, %v5913_v24  ;;  %v5925_v36 = vrot.slane %v5923_v28, 1  ;;  %v4753_v24 = vld [vmem:[#allocation3 + $0x54] sm:$0xf] }
 0x346   : > { %7290 = vmatprep.mubr.bf16.mxu0 %v5890_v61  ;;  %v4730_v61 = vld [vmem:[#allocation3 + $0x3c] sm:$0xe]  ;;  %v12406_v26 = vcombine.low %v4751_v37, %v12391_v8 }
 0x347   : > { %7130 = vmatmul.mubr.bf16.vlgmr.msra.gmra.mrb[192].mxu1 %v5426_v4  ;;  %v5447_v4 = vshll.u32 %v12368_v54, 16  ;;  %v8239_v54 = vcombine.low %v4730_v61, %v12086_v2  ;;  %v4794_v2 = vld [vmem:[#allocation3 + $0x3c] sm:$0xe] }
 0x348   : > { %7137 = vmatprep.mubr.bf16.mxu1 %v5676_v52  ;;  %9405 = vmatpush3.bf16.msra.mxu1 %v9978_v7  ;;  %v12403_v52 = vld [vmem:[#allocation3 + $0x44] ss:$0 sps:$4 sm:$0x11]   ;;  %v5478_v7 = vshll.u32 %v12150_v58, 16  ;;  %v8286_v42 = vcombine.low %v4794_v2, %v12371_v11  ;;  %v5935_v11 = vshll.u32 %v12412_v23, 16  ;;  %v5928_v28 = vshrl.u32 %v12406_v26, 16 }
 0x349   : > { %9406 = vmatprep.subr.bf16.mxu1 %v9895_v60  ;;  %v5449_v41 = vrot.slane %v5447_v4, 1  ;;  %v5683_v61 = vrot.slane %v8239_v54, 1  ;;  %v5684_v43 = vrot.slane %v12403_v52, 1  ;;  %v5468_v4 = vrot.slane %v5466_v30, 1  ;;  %v4798_v2 = vld [vmem:[#allocation3 + $0x6c] sm:$0xe] }
 0x34a   : > { %v5471_v30 = vshll.u32 %v12403_v52, 16  ;;  %v12442_v5 = vrot.slane %v8286_v42, 1  ;;  %v12448_v52 = vld [vmem:[#allocation3 + $0x74] ss:$0 sps:$4 sm:$0x11]  }
 0x34b   : > { %v5450_v0 = vsel %vm1345_vm5, %v5445_v29, %v5449_v41  ;;  %v5461_v41 = vrot.slane %v5459_v50, 1  ;;  %v5469_v9 = vor.u32 %v5468_v4, %v5464_v38  ;;  %v4802_v38 = vld [vmem:[#allocation3 + $0x9c] sm:$0xe] }
 0x34c   : > { %9407 = vmatpush3.bf16.msra.mxu1 %v9895_v60  ;;  %v5918_v60 = vshll.u32 %v12380_v39, 16  ;;  %v5473_v4 = vrot.slane %v5471_v30, 1 }
 0x34d   : > { %7291 = vmatmul.mubr.bf16.vlgmr.msra.gmra.mrb[224].mxu0 %v12338_v17  ;;  %9408 = vmatprep.subr.bf16.mxu1 %v9903_v51  ;;  %v5438_v17 = vsel %vm1345_vm5, %v5433_v49, %v5437_v19  ;;  %v9919_v49 = vld [vmem:[#allocation9 + $0x220] sm:$0xff]   ;;  %v5930_v19 = vshll.u32 %v12406_v26, 16 }
 0x34e   : > { %7298 = vmatprep.mubr.bf16.mxu0 %v5902_v63  ;;  %v5920_v27 = vrot.slane %v5918_v60, 1  ;;  %v12418_v63 = vld [vmem:[#allocation3 + $0x54] sm:$0xe]  ;;  %v12431_v60 = vld [vmem:[#allocation3 + $0x50] ss:$0 sps:$4 sm:$0x11]   ;;  %v12470_v30 = vsel %vm1345_vm5, %v5469_v9, %v5473_v4 }
 0x34f   : > { %7138 = vmatmul.mubr.bf16.gmra.mrb[196].mxu1 %v5438_v17  ;;  %v5932_v54 = vrot.slane %v5930_v19, 1  ;;  %v4800_v19 = vld [vmem:[#allocation3 + $0x84] sm:$0xe]  ;;  %v5687_v50 = vrot.slane %v12431_v60, 1  ;;  %v12483_v9 = vrot.slane %v5478_v7, 1 }
 0x350   : > { %7145 = vmatprep.mubr.bf16.mxu1 %v5679_v55  ;;  %9409 = vmatpush3.bf16.msra.mxu1 %v9903_v51  ;;  %v5916_v51 = vshrl.u32 %v12380_v39, 16  ;;  %v12436_v55 = vld [vmem:[#allocation3 + $0x5c] ss:$0 sps:$4 sm:$0x11]  }
 0x351   : > { %9410 = vmatprep.subr.bf16.mxu1 %v9911_v44  ;;  %v12462_v17 = vld [vmem:[#allocation3 + $0xa4] ss:$0 sps:$4 sm:$0x11]   ;;  %v12487_v4 = vld [vmem:[#allocation3 + $0x80] ss:$0 sps:$4 sm:$0x11]  }
 0x352   : > { %v5921_v37 = vor.u32 %v5920_v27, %v5916_v51  ;;  %v12445_v27 = vld [vmem:[#allocation3 + $0x88] sm:$0xf]  ;;  %v8288_v51 = vcombine.low %v4796_v14, %v4754_v15  ;;  %13281 = vst [vmem:[#allocation30_spill] sm:$0xff] %v12462_v17  ;;  %v6169_v56 = vrot.slane %v12462_v17, 1  ;;  %v4799_v17 = vld [vmem:[#allocation3 + $0x78] sm:$0xe] }
 0x353   : > { %v8292_v14 = vcombine.low %v4800_v19, %v12445_v27 }
 0x354   : > { %9411 = vmatpush3.bf16.msra.mxu1 %v9911_v44  ;;  %v5452_v44 = vshrl.u32 %v12036_v47, 16  ;;  %v5685_v47 = vsel %vm1602_vm10, %v5683_v61, %v5684_v43  ;;  %v5926_v42 = vsel %vm1345_vm5, %v5921_v37, %v5925_v36  ;;  %v12452_v61 = vcombine.low %v4753_v24, %v4754_v15  ;;  %v12456_v43 = vld [vmem:[#allocation3 + $0xa0] sm:$0xf]  ;;  %v12493_v15 = vld [vmem:[#allocation3 + $0x98] ss:$0 sps:$4 sm:$0x11]  }
 0x355   : > { %7299 = vmatmul.mubr.bf16.gmra.mrb[228].mxu0 %v12350_v35  ;;  %9412 = vmatprep.subr.bf16.mxu1 %v9919_v49  ;;  %v9927_v35 = vld [vmem:[#allocation9 + $0x228] sm:$0xff]   ;;  %v6151_v37 = vrot.slane %v12436_v55, 1  ;;  %v6150_v24 = vrot.slane %v8288_v51, 1  ;;  %v12485_v51 = vld [vmem:[#allocation3 + $0x7c] sm:$0xf] }
 0x356   : > { %7306 = vmatprep.mubr.bf16.mxu0 %v5914_v57  ;;  %v5457_v29 = vor.u32 %v5456_v32, %v5452_v44  ;;  %v5937_v57 = vrot.slane %v5935_v11, 1  ;;  %v5686_v32 = vrot.slane %v8240_v10, 1  ;;  %v5933_v11 = vor.u32 %v5932_v54, %v5928_v28  ;;  %v4804_v54 = vld [vmem:[#allocation3 + $0xb4] sm:$0xe] }
 0x357   : > { %7146 = vmatmul.mubr.bf16.gmra.mrb[200].mxu1 %v5450_v0  ;;  %v12458_v0 = vld [vmem:[#allocation3 + $0xb8] sm:$0xf]  ;;  %v8290_v44 = vcombine.low %v4798_v2, %v12440_v59  ;;  %v4756_v2 = vld [vmem:[#allocation3 + $0x64] sm:$0xf]  ;;  %v12510_v62 = vsel %vm1602_vm10, %v6150_v24, %v6151_v37  ;;  %v8291_v37 = vcombine.low %v4799_v17, %v12485_v51  ;;  %v6166_v17 = vrot.slane %v12493_v15, 1 }
 0x358   : > { %7153 = vmatprep.mubr.bf16.mxu1 %v5682_v48  ;;  %9413 = vmatpush3.bf16.msra.mxu1 %v9919_v49  ;;  %v9935_v48 = vld [vmem:[#allocation9 + $0x230] sm:$0xff]   ;;  %13280 = vst [vmem:[#allocation31_spill] sm:$0xff] %v12458_v0  ;;  %v5462_v10 = vsel %vm1345_vm5, %v5457_v29, %v5461_v41  ;;  %v8296_v29 = vcombine.low %v4804_v54, %v12458_v0  ;;  %v9943_v41 = vld [vmem:[#allocation9 + $0x238] sm:$0xff]   ;;  %v4797_v0 = vld [vmem:[#allocation3 + $0x60] sm:$0xe] }
 0x359   : > { %9414 = vmatprep.subr.bf16.mxu1 %v9927_v35  ;;  %v12454_v49 = vld [vmem:[#allocation3 + $0x8c] ss:$0 sps:$4 sm:$0x11]   ;;  %v12472_v28 = vld [vmem:[#allocation3 + $0x68] ss:$0 sps:$4 sm:$0x11]   ;;  %v12477_v19 = vsel %vm1602_vm10, %v5686_v32, %v5687_v50  ;;  %v5938_v54 = vsel %vm1345_vm5, %v5933_v11, %v5937_v57  ;;  %v8289_v31 = vcombine.low %v4797_v0, %v4756_v2 }
 0x35a   : > { %v6156_v36 = vrot.slane %v8290_v44, 1  ;;  %v6157_v32 = vrot.slane %v12448_v52, 1  ;;  %v6162_v50 = vrot.slane %v8292_v14, 1  ;;  %v6163_v7 = vrot.slane %v12454_v49, 1  ;;  %v12525_v24 = vld [vmem:[#allocation3 + $0xc4] sm:$0xf] }
 0x35b   : > { %v13282_v57 = vrot.slane %v12394_v25, 1  ;;  %v6154_v25 = vrot.slane %v12472_v28, 1 }
 0x35c   : > { %9415 = vmatpush3.bf16.msra.mxu1 %v9927_v35  ;;  %v4795_v35 = vld [vmem:[#allocation3 + $0x48] sm:$0xe] }
 0x35d   : > { %7307 = vmatmul.mubr.bf16.gmra.mrb[232].mxu0 %v12361_v53  ;;  %v8294_v53 = vcombine.low %v4802_v38, %v12456_v43  ;;  %9416 = vmatprep.subr.bf16.mxu1 %v9935_v48  ;;  %v12489_v38 = vld [vmem:[#allocation3 + $0xbc] ss:$0 sps:$4 sm:$0x11]   ;;  %v12505_v11 = vsel %vm1602_vm10, %v12442_v5, %v13282_v57  ;;  %v8287_v44 = vcombine.low %v4795_v35, %v12391_v8  ;;  %v12516_v8 = vld [vmem:[#allocation3 + $0xac] sm:$0xf] }
 0x35e   : > { %7314 = vmatprep.mubr.bf16.mxu0 %v5926_v42  ;;  %v5942_v42 = vshll.u32 %v12452_v61, 16  ;;  %v6175_v22 = vrot.slane %v12489_v38, 1  ;;  %v12514_v57 = vcombine.low %v4755_v20, %v4756_v2  ;;  %v6160_v20 = vrot.slane %v12487_v4, 1  ;;  %v4801_v35 = vld [vmem:[#allocation3 + $0x90] sm:$0xe] }
 0x35f   : > { %7154 = vmatmul.mubr.bf16.gmra.mrb[204].mxu1 %v5462_v10  ;;  %v6168_v14 = vrot.slane %v8294_v53, 1  ;;  %v6148_v10 = vrot.slane %v12412_v23, 1  ;;  %v12518_v53 = vld [vmem:[#allocation3 + $0xc8] ss:$0 sps:$4 sm:$0x11]   ;;  %v12521_v23 = vsel %vm1602_vm10, %v6156_v36, %v6157_v32  ;;  %v12532_v2 = vsel %vm1602_vm10, %v6162_v50, %v6163_v7 }
 0x360   : > { %7161 = vmatprep.mubr.bf16.mxu1 %v5685_v47  ;;  %9417 = vmatpush3.bf16.msra.mxu1 %v9935_v48  ;;  %v6174_v47 = vrot.slane %v8296_v29, 1  ;;  %v6147_v48 = vrot.slane %v8287_v44, 1  ;;  %v5944_v5 = vrot.slane %v5942_v42, 1  ;;  %v6153_v29 = vrot.slane %v8289_v31, 1 }
 0x361   : > { %9418 = vmatprep.subr.bf16.mxu1 %v9943_v41  ;;  %v6159_v36 = vrot.slane %v8291_v37, 1  ;;  %v8293_v42 = vcombine.low %v4801_v35, %v12496_v3  ;;  %v6172_v44 = vrot.slane %v12499_v21, 1  ;;  %v9908_v7 = vld [vmem:[#allocation3 + $0x5c] ss:$0 sps:$4 sm:$0x11]   ;;  %v5490_v35 = vshll.u32 %v12181_v6, 16 }
 0x362   : > { %v12528_v0 = vsel %vm1602_vm10, %v6147_v48, %v6148_v10  ;;  %v12540_v32 = vsel %vm1602_vm10, %v6153_v29, %v6154_v25  ;;  %v12545_v50 = vsel %vm1602_vm10, %v6174_v47, %v6175_v22  ;;  %v6178_v48 = vrot.slane %v12518_v53, 1 }
 0x363   : > { %v12549_v10 = vsel %vm1602_vm10, %v6159_v36, %v6160_v20  ;;  %v13283_v25 = vshrl.u32 %v12452_v61, 16  ;;  %v5483_v22 = vshll.u32 %v12431_v60, 16  ;;  %v5954_v47 = vshll.u32 %v12514_v57, 16 }
 0x364   : > { %9419 = vmatpush3.bf16.msra.mxu1 %v9943_v41  ;;  %v4803_v41 = vld [vmem:[#allocation3 + $0xa8] sm:$0xe]  ;;  %v13284_v36 = vshll.u32 %v12436_v55, 16  ;;  %v13286_v60 = vcombine.low %v12418_v63, %v12167_v40  ;;  %v5952_v40 = vshrl.u32 %v12514_v57, 16  ;;  %v5959_v63 = vshll.u32 %v12472_v28, 16 }
 0x365   : > { %7315 = vmatmul.mubr.bf16.gmra.mrb[236].mxu0 %v12380_v39  ;;  %v12537_v39 = vsel %vm1602_vm10, %v6168_v14, %v6169_v56  ;;  %v8295_v31 = vcombine.low %v4803_v41, %v12516_v8  ;;  %v6165_v56 = vrot.slane %v8293_v42, 1  ;;  %v5945_v37 = vor.u32 %v5944_v5, %v13283_v25 }
 0x366   : > { %7322 = vmatprep.mubr.bf16.mxu0 %v5938_v54  ;;  %v4805_v54 = vld [vmem:[#allocation3 + $0xc0] sm:$0xe]  ;;  %v5949_v42 = vrot.slane %v13284_v36, 1  ;;  %v13285_v41 = vshrl.u32 %v12150_v58, 16  ;;  %v5485_v55 = vrot.slane %v5483_v22, 1  ;;  %v5488_v22 = vshrl.u32 %v12181_v6, 16 }
 0x367   : > { %7162 = vmatmul.mubr.bf16.gmra.mrb[208].mxu1 %v12470_v30  ;;  %v8297_v14 = vcombine.low %v4805_v54, %v12525_v24  ;;  %v6171_v29 = vrot.slane %v8295_v31, 1  ;;  %v12559_v30 = vsel %vm1602_vm10, %v6165_v56, %v6166_v17  ;;  %v4757_v54 = vld [vmem:[#allocation3 + $0x6c] sm:$0xf]  ;;  %v5689_v31 = vrot.slane %v13286_v60, 1 }
 0x368   : > { %7169 = vmatprep.mubr.bf16.mxu1 %v12477_v19  ;;  %v5481_v19 = vor.u32 %v12483_v9, %v13285_v41  ;;  %v5690_v17 = vrot.slane %v9908_v7, 1  ;;  %v12574_v56 = vcombine.low %v4757_v54, %v12440_v59  ;;  %v5950_v58 = vsel %vm1345_vm5, %v5945_v37, %v5949_v42  ;;  %v4759_v54 = vld [vmem:[#allocation3 + $0x78] sm:$0xf] }
 0x369   : > { %v6177_v20 = vrot.slane %v8297_v14, 1  ;;  %v12568_v5 = vsel %vm1602_vm10, %v6171_v29, %v6172_v44  ;;  %v5956_v9 = vrot.slane %v5954_v47, 1  ;;  %v4733_v44 = vld [vmem:[#allocation3 + $0x60] sm:$0xe]  ;;  %v5492_v29 = vrot.slane %v5490_v35, 1 }
 0x36a   : > { %v5486_v25 = vsel %vm1345_vm5, %v5481_v19, %v5485_v55  ;;  %v8242_v59 = vcombine.low %v4733_v44, %v12192_v46  ;;  %v5495_v47 = vshll.u32 %v9908_v7, 16  ;;  %v5502_v36 = vshll.u32 %v12198_v34, 16 }
 0x36b   : > { %v12577_v14 = vsel %vm1602_vm10, %v6177_v20, %v6178_v48  ;;  %v5691_v48 = vsel %vm1602_vm10, %v5689_v31, %v5690_v17  ;;  %v9912_v20 = vld [vmem:[#allocation3 + $0x68] ss:$0 sps:$4 sm:$0x11]   ;;  %v5957_v37 = vor.u32 %v5956_v9, %v5952_v40  ;;  %v5961_v42 = vrot.slane %v5959_v63, 1  ;;  %v4734_v17 = vld [vmem:[#allocation3 + $0x6c] sm:$0xe] }
 0x36c   : > { %v5493_v41 = vor.u32 %v5492_v29, %v5488_v22  ;;  %v5692_v19 = vrot.slane %v8242_v59, 1  ;;  %v5693_v28 = vrot.slane %v9912_v20, 1  ;;  %v5497_v60 = vrot.slane %v5495_v47, 1  ;;  %v9916_v40 = vld [vmem:[#allocation3 + $0x74] ss:$0 sps:$4 sm:$0x11]  }
 0x36d   : > { %7323 = vmatmul.mubr.bf16.gmra.mrb[240].mxu0 %v12406_v26  ;;  %v5966_v26 = vshll.u32 %v12574_v56, 16  ;;  %v5962_v46 = vsel %vm1345_vm5, %v5957_v37, %v5961_v42  ;;  %v12592_v31 = vcombine.low %v4759_v54, %v12485_v51  ;;  %v5964_v6 = vshrl.u32 %v12574_v56, 16 }
 0x36e   : > { %7330 = vmatprep.mubr.bf16.mxu0 %v5950_v58  ;;  %v5971_v7 = vshll.u32 %v12448_v52, 16  ;;  %v5498_v58 = vsel %vm1345_vm5, %v5493_v41, %v5497_v60  ;;  %v5504_v55 = vrot.slane %v5502_v36, 1  ;;  %v8243_v9 = vcombine.low %v4734_v17, %v12209_v13  ;;  %v4806_v13 = vld [vmem:[#allocation3 + $0xcc] sm:$0xe]  ;;  %v4761_v41 = vld [vmem:[#allocation3 + $0x84] sm:$0xf] }
 0x36f   : > { %7170 = vmatmul.mubr.bf16.gmra.mrb[212].mxu1 %v5486_v25  ;;  %v5968_v35 = vrot.slane %v5966_v26, 1  ;;  %v5507_v25 = vshll.u32 %v9912_v20, 16  ;;  %v5500_v51 = vshrl.u32 %v12198_v34, 16  ;;  %v5978_v63 = vshll.u32 %v12592_v31, 16 }
 0x370   : > { %7177 = vmatprep.mubr.bf16.mxu1 %v5691_v48  ;;  %v5973_v59 = vrot.slane %v5971_v7, 1  ;;  %v5514_v48 = vshll.u32 %v12216_v12, 16  ;;  %v5695_v42 = vrot.slane %v8243_v9, 1  ;;  %v5696_v20 = vrot.slane %v9916_v40, 1  ;;  %v4735_v7 = vld [vmem:[#allocation3 + $0x78] sm:$0xe] }
 0x371   : > { %v5969_v44 = vor.u32 %v5968_v35, %v5964_v6  ;;  %v5505_v26 = vor.u32 %v5504_v55, %v5500_v51  ;;  %v5509_v36 = vrot.slane %v5507_v25, 1  ;;  %v5980_v34 = vrot.slane %v5978_v63, 1  ;;  %v9980_v55 = vld [vmem:[#allocation3 + $0x7c] sm:$0xf] }
 0x372   : > { %v5983_v60 = vshll.u32 %v12487_v4, 16  ;;  %v5697_v9 = vsel %vm1602_vm10, %v5695_v42, %v5696_v20  ;;  %v5512_v25 = vshrl.u32 %v12216_v12, 16  ;;  %v5519_v51 = vshll.u32 %v9916_v40, 16  ;;  %v4736_v42 = vld [vmem:[#allocation3 + $0x84] sm:$0xe] }
 0x373   : > { %v5974_v47 = vsel %vm1345_vm5, %v5969_v44, %v5973_v59  ;;  %v5510_v17 = vsel %vm1345_vm5, %v5505_v26, %v5509_v36  ;;  %v12620_v44 = vld [vmem:[#allocation3 + $0xd4] ss:$0 sps:$4 sm:$0x11]  }
 0x374   : > { %v6181_v59 = vrot.slane %v12620_v44, 1 }
 0x375   : > { %7331 = vmatmul.mubr.bf16.gmra.mrb[244].mxu0 %v12452_v61  ;;  %v5694_v61 = vsel %vm1602_vm10, %v5692_v19, %v5693_v28  ;;  %v12605_v28 = vcombine.low %v4761_v41, %v12445_v27 }
 0x376   : > { %7338 = vmatprep.mubr.bf16.mxu0 %v5962_v46  ;;  %v12610_v46 = vld [vmem:[#allocation3 + $0xd0] sm:$0xf] }
 0x377   : > { %7178 = vmatmul.mubr.bf16.gmra.mrb[216].mxu1 %v5498_v58  ;;  %v8298_v6 = vcombine.low %v4806_v13, %v12610_v46  ;;  %v5516_v58 = vrot.slane %v5514_v48, 1  ;;  %v5990_v63 = vshll.u32 %v12605_v28, 16  ;;  %v5988_v41 = vshrl.u32 %v12605_v28, 16 }
 0x378   : > { %7185 = vmatprep.mubr.bf16.mxu1 %v5694_v61  ;;  %v9920_v61 = vld [vmem:[#allocation3 + $0x80] ss:$0 sps:$4 sm:$0x11]  }
 0x379   : > { %v5517_v48 = vor.u32 %v5516_v58, %v5512_v25  ;;  %v5992_v36 = vrot.slane %v5990_v63, 1  ;;  %v5538_v58 = vshll.u32 %v12252_v18, 16 }
 0x37b   : > { %v9012_v29 = vpop.f32.mrb[160].mxu0 }
 0x37c   : > { %v9013_v52 = vpop.f32.mrb[161].mxu0 }
 0x37d   : > { %v9014_v37 = vadd.f32 %v9013_v52, %v9012_v29  ;;  %v9015_v22 = vpop.f32.mrb[162].mxu0  ;;  %7339 = vmatmul.mubr.bf16.gmra.mrb[248].mxu0 %v12514_v57  ;;  %v5976_v57 = vshrl.u32 %v12592_v31, 16  ;;  %v6180_v29 = vrot.slane %v8298_v6, 1  ;;  %v5985_v52 = vrot.slane %v5983_v60, 1 }
 0x37e   : > { %v9016_v19 = vpop.f32.mrb[163].mxu0  ;;  %7346 = vmatprep.mubr.bf16.mxu0 %v5974_v47  ;;  %v5521_v47 = vrot.slane %v5519_v51, 1  ;;  %v9924_v6 = vld [vmem:[#allocation3 + $0x8c] ss:$0 sps:$4 sm:$0x11]  }
 0x37f   : > { %v12608_v35 = vadd.f32 %v9014_v37, %v12375_v45  ;;  %v9017_v54 = vadd.f32 %v9016_v19, %v9015_v22  ;;  %v8244_v45 = vcombine.low %v4735_v7, %v9980_v55  ;;  %7186 = vmatmul.mubr.bf16.gmra.mrb[220].mxu1 %v5510_v17  ;;  %v5981_v4 = vor.u32 %v5980_v34, %v5976_v57  ;;  %v4763_v22 = vld [vmem:[#allocation3 + $0x90] sm:$0xf] }
 0x380   : > { %7193 = vmatprep.mubr.bf16.mxu1 %v5697_v9  ;;  %v5699_v37 = vrot.slane %v9920_v61, 1  ;;  %v12629_v12 = vcombine.low %v4763_v22, %v12496_v3  ;;  %v12632_v40 = vsel %vm1602_vm10, %v6180_v29, %v6181_v59  ;;  %v5522_v20 = vsel %vm1345_vm5, %v5517_v48, %v5521_v47  ;;  %v9982_v48 = vld [vmem:[#allocation3 + $0x94] sm:$0xf] }
 0x381   : > { %v12617_v27 = vadd.f32 %v9017_v54, %v12384_v1  ;;  %v5526_v1 = vshll.u32 %v12233_v33, 16  ;;  %v5698_v26 = vrot.slane %v8244_v45, 1  ;;  %v5986_v13 = vsel %vm1345_vm5, %v5981_v4, %v5985_v52  ;;  %v4765_v4 = vld [vmem:[#allocation3 + $0x9c] sm:$0xf] }
 0x382   : > { %v5995_v19 = vshll.u32 %v12454_v49, 16  ;;  %v5993_v3 = vor.u32 %v5992_v36, %v5988_v41  ;;  %v5524_v7 = vshrl.u32 %v12233_v33, 16  ;;  %v5531_v17 = vshll.u32 %v9920_v61, 16  ;;  %v4737_v33 = vld [vmem:[#allocation3 + $0x90] sm:$0xe] }
 0x383   : > { %v5528_v34 = vrot.slane %v5526_v1, 1  ;;  %v5700_v60 = vsel %vm1602_vm10, %v5698_v26, %v5699_v37  ;;  %v6002_v57 = vshll.u32 %v12629_v12, 16  ;;  %v5702_v49 = vrot.slane %v9924_v6, 1  ;;  %v9928_v37 = vld [vmem:[#allocation3 + $0x98] ss:$0 sps:$4 sm:$0x11]  }
 0x384   : > { %v5997_v55 = vrot.slane %v5995_v19, 1  ;;  %v5533_v51 = vrot.slane %v5531_v17, 1  ;;  %v12644_v29 = vcombine.low %v4765_v4, %v12456_v43  ;;  %v6000_v59 = vshrl.u32 %v12629_v12, 16  ;;  %v4767_v19 = vld [vmem:[#allocation3 + $0xa8] sm:$0xf] }
 0x385   : > { %7347 = vmatmul.mubr.bf16.gmra.mrb[252].mxu0 %v12574_v56  ;;  %v9981_v56 = vld [vmem:[#allocation3 + $0x88] sm:$0xf]  ;;  %v5529_v45 = vor.u32 %v5528_v34, %v5524_v7  ;;  %v6004_v63 = vrot.slane %v6002_v57, 1  ;;  %v6007_v1 = vshll.u32 %v12493_v15, 16  ;;  %v5540_v52 = vrot.slane %v5538_v58, 1  ;;  %v13287_v58 = vld [vmem:[#allocation30_spill] sm:$0xff] }
 0x386   : > { %7354 = vmatprep.mubr.bf16.mxu0 %v5986_v13  ;;  %v8245_v54 = vcombine.low %v4736_v42, %v9981_v56  ;;  %v5998_v25 = vsel %vm1345_vm5, %v5993_v3, %v5997_v55  ;;  %v8246_v26 = vcombine.low %v4737_v33, %v9982_v48  ;;  %v5536_v43 = vshrl.u32 %v12252_v18, 16  ;;  %v9932_v33 = vld [vmem:[#allocation3 + $0xa4] ss:$0 sps:$4 sm:$0x11]  }
 0x387   : > { %7194 = vmatmul.mubr.bf16.gmra.mrb[224].mxu1 %v5522_v20  ;;  %v5534_v61 = vsel %vm1345_vm5, %v5529_v45, %v5533_v51  ;;  %v6005_v22 = vor.u32 %v6004_v63, %v6000_v59  ;;  %v5543_v13 = vshll.u32 %v9924_v6, 16  ;;  %v6014_v47 = vshll.u32 %v12644_v29, 16  ;;  %v4738_v45 = vld [vmem:[#allocation3 + $0x9c] sm:$0xe] }
 0x388   : > { %7201 = vmatprep.mubr.bf16.mxu1 %v5700_v60  ;;  %v5701_v9 = vrot.slane %v8245_v54, 1  ;;  %v5550_v20 = vshll.u32 %v12277_v16, 16  ;;  %v6009_v41 = vrot.slane %v6007_v1, 1  ;;  %v5541_v15 = vor.u32 %v5540_v52, %v5536_v43 }
 0x389   : > { %v5704_v54 = vrot.slane %v8246_v26, 1  ;;  %v5705_v60 = vrot.slane %v9928_v37, 1  ;;  %v12654_v3 = vcombine.low %v4767_v19, %v12516_v8  ;;  %v5545_v6 = vrot.slane %v5543_v13, 1  ;;  %v13288_v8 = vld [vmem:[#allocation25_spill] sm:$0xff] }
 0x38a   : > { %v6010_v18 = vsel %vm1345_vm5, %v6005_v22, %v6009_v41  ;;  %v6016_v17 = vrot.slane %v6014_v47, 1  ;;  %v6019_v55 = vshll.u32 %v13287_v58, 16  ;;  %v5552_v4 = vrot.slane %v5550_v20, 1  ;;  %v13289_v22 = vld [vmem:[#allocation26_spill] sm:$0xff]  ;;  %v4769_v41 = vld [vmem:[#allocation3 + $0xb4] sm:$0xf] }
 0x38b   : > { %v8247_v51 = vcombine.low %v4738_v45, %v13288_v8  ;;  %v5555_v63 = vshll.u32 %v9928_v37, 16  ;;  %v5548_v52 = vshrl.u32 %v12277_v16, 16  ;;  %v5562_v43 = vshll.u32 %v13289_v22, 16 }
 0x38c   : > { %v6021_v13 = vrot.slane %v6019_v55, 1  ;;  %v6024_v55 = vshrl.u32 %v12654_v3, 16  ;;  %v6031_v45 = vshll.u32 %v12499_v21, 16 }
 0x38d   : > { %7355 = vmatmul.mubr.bf16.gmra.mrb[0].mxu0 %v12592_v31  ;;  %v5703_v31 = vsel %vm1602_vm10, %v5701_v9, %v5702_v49  ;;  %v5546_v9 = vsel %vm1345_vm5, %v5541_v15, %v5545_v6  ;;  %v6012_v49 = vshrl.u32 %v12644_v29, 16 }
 0x38e   : > { %7362 = vmatprep.mubr.bf16.mxu0 %v5998_v25 }
 0x38f   : > { %7202 = vmatmul.mubr.bf16.gmra.mrb[228].mxu1 %v5534_v61  ;;  %v6026_v61 = vshll.u32 %v12654_v3, 16  ;;  %v6017_v1 = vor.u32 %v6016_v17, %v6012_v49  ;;  %v13290_v17 = vld [vmem:[#allocation31_spill] sm:$0xff] }
 0x390   : > { %7209 = vmatprep.mubr.bf16.mxu1 %v5703_v31  ;;  %v12673_v58 = vcombine.low %v4769_v41, %v13290_v17 }
 0x393   : > { %v8906_v36 = vpop.f32.mrb[132].mxu1 }
 0x394   : > { %v8907_v42 = vpop.f32.mrb[133].mxu1 }
 0x395   : > { %v8908_v34 = vadd.f32 %v8907_v42, %v8906_v36  ;;  %v8909_v56 = vpop.f32.mrb[134].mxu1  ;;  %7363 = vmatmul.mubr.bf16.gmra.mrb[4].mxu0 %v12605_v28  ;;  %v5706_v28 = vsel %vm1602_vm10, %v5704_v54, %v5705_v60  ;;  %v5553_v42 = vor.u32 %v5552_v4, %v5548_v52  ;;  %v5707_v54 = vrot.slane %v8247_v51, 1  ;;  %v13291_v52 = vld [vmem:[#allocation27_spill] sm:$0xff] }
 0x396   : > { %v8910_v7 = vpop.f32.mrb[135].mxu1  ;;  %7370 = vmatprep.mubr.bf16.mxu0 %v6010_v18  ;;  %v5708_v60 = vrot.slane %v9932_v33, 1  ;;  %v6022_v18 = vsel %vm1345_vm5, %v6017_v1, %v6021_v13  ;;  %v5564_v4 = vrot.slane %v5562_v43, 1  ;;  %v5567_v51 = vshll.u32 %v9932_v33, 16 }
 0x397   : > { %v8911_v57 = vadd.f32 %v8910_v7, %v8909_v56  ;;  %7210 = vmatmul.mubr.bf16.gmra.mrb[232].mxu1 %v5546_v9  ;;  %v5557_v56 = vrot.slane %v5555_v63, 1  ;;  %v6028_v7 = vrot.slane %v6026_v61, 1  ;;  %v4739_v9 = vld [vmem:[#allocation3 + $0xa8] sm:$0xe]  ;;  %v5560_v63 = vshrl.u32 %v13289_v22, 16 }
 0x398   : > { %v9018_v25 = vpop.f32.mrb[164].mxu0  ;;  %7217 = vmatprep.mubr.bf16.mxu1 %v5706_v28  ;;  %v9936_v28 = vld [vmem:[#allocation3 + $0xb0] ss:$0 sps:$4 sm:$0x11]   ;;  %v6038_v61 = vshll.u32 %v12673_v58, 16  ;;  %v6033_v1 = vrot.slane %v6031_v45, 1 }
 0x399   : > { %v9019_v59 = vpop.f32.mrb[165].mxu0  ;;  %v5558_v49 = vsel %vm1345_vm5, %v5553_v42, %v5557_v56  ;;  %v5711_v42 = vrot.slane %v9936_v28, 1  ;;  %v9940_v45 = vld [vmem:[#allocation3 + $0xbc] ss:$0 sps:$4 sm:$0x11]  }
 0x39a   : > { %v9020_v48 = vadd.f32 %v9019_v59, %v9018_v25  ;;  %v9021_v26 = vpop.f32.mrb[166].mxu0  ;;  %v9983_v25 = vld [vmem:[#allocation3 + $0xac] sm:$0xf]  ;;  %v6040_v22 = vrot.slane %v6038_v61, 1 }
 0x39b   : > { %v8912_v31 = vpop.f32.mrb[136].mxu1  ;;  %v9022_v47 = vpop.f32.mrb[167].mxu0  ;;  %v8248_v8 = vcombine.low %v4739_v9, %v9983_v25  ;;  %v5572_v25 = vshrl.u32 %v13291_v52, 16 }
 0x39c   : > { %v8913_v36 = vpop.f32.mrb[137].mxu1  ;;  %v12666_v20 = vadd.f32 %v9020_v48, %v8908_v34  ;;  %v9023_v37 = vadd.f32 %v9022_v47, %v9021_v26  ;;  %v5574_v48 = vshll.u32 %v13291_v52, 16  ;;  %v5565_v26 = vor.u32 %v5564_v4, %v5560_v63  ;;  %v13292_v63 = vld [vmem:[#allocation28_spill] sm:$0xff] }
 0x39d   : > { %v8914_v15 = vadd.f32 %v8913_v36, %v8912_v31  ;;  %v8915_v19 = vpop.f32.mrb[138].mxu1  ;;  %7371 = vmatmul.mubr.bf16.gmra.mrb[8].mxu0 %v12629_v12  ;;  %v5709_v12 = vsel %vm1602_vm10, %v5707_v54, %v5708_v60  ;;  %v5569_v47 = vrot.slane %v5567_v51, 1  ;;  %v5710_v36 = vrot.slane %v8248_v8, 1  ;;  %v4740_v60 = vld [vmem:[#allocation3 + $0xb4] sm:$0xe] }
 0x39e   : > { %v8916_v16 = vpop.f32.mrb[139].mxu1  ;;  %v12670_v6 = vadd.f32 %v9023_v37, %v8911_v57  ;;  %7378 = vmatprep.mubr.bf16.mxu0 %v6022_v18  ;;  %v6029_v57 = vor.u32 %v6028_v7, %v6024_v55  ;;  %v4771_v37 = vld [vmem:[#allocation3 + $0xc0] sm:$0xf]  ;;  %v6036_v7 = vshrl.u32 %v12673_v58, 16  ;;  %v5586_v61 = vshll.u32 %v13292_v63, 16 }
 0x39f   : > { %v8917_v34 = vadd.f32 %v8916_v16, %v8915_v19  ;;  %7218 = vmatmul.mubr.bf16.gmra.mrb[236].mxu1 %v5558_v49  ;;  %v12687_v56 = vcombine.low %v4771_v37, %v12525_v24  ;;  %v6043_v16 = vshll.u32 %v12489_v38, 16  ;;  %v5570_v17 = vsel %vm1345_vm5, %v5565_v26, %v5569_v47  ;;  %v9984_v49 = vld [vmem:[#allocation3 + $0xb8] sm:$0xf] }
 0x3a0   : > { %7225 = vmatprep.mubr.bf16.mxu1 %v5709_v12  ;;  %v9024_v59 = vpop.f32.mrb[168].mxu0  ;;  %v6034_v13 = vsel %vm1345_vm5, %v6029_v57, %v6033_v1  ;;  %v8249_v4 = vcombine.low %v4740_v60, %v9984_v49  ;;  %v5712_v24 = vsel %vm1602_vm10, %v5710_v36, %v5711_v42  ;;  %v4773_v12 = vld [vmem:[#allocation3 + $0xcc] sm:$0xf]  ;;  %v6041_v38 = vor.u32 %v6040_v22, %v6036_v7 }
 0x3a1   : > { %v9025_v21 = vpop.f32.mrb[169].mxu0  ;;  %v5579_v57 = vshll.u32 %v9936_v28, 16  ;;  %v6050_v51 = vshll.u32 %v12687_v56, 16  ;;  %v5714_v26 = vrot.slane %v9940_v45, 1  ;;  %v6055_v28 = vshll.u32 %v12518_v53, 16 }
 0x3a2   : > { %v9026_v31 = vadd.f32 %v9025_v21, %v9024_v59  ;;  %v9027_v43 = vpop.f32.mrb[170].mxu0  ;;  %v6045_v59 = vrot.slane %v6043_v16, 1  ;;  %v12699_v21 = vcombine.low %v4773_v12, %v12610_v46  ;;  %v6048_v36 = vshrl.u32 %v12687_v56, 16  ;;  %v13293_v16 = vld [vmem:[#allocation29_spill] sm:$0xff] }
 0x3a3   : > { %v9028_v33 = vpop.f32.mrb[171].mxu0  ;;  %v5588_v42 = vrot.slane %v5586_v61, 1  ;;  %v5584_v53 = vshrl.u32 %v13292_v63, 16  ;;  %v5591_v7 = vshll.u32 %v9940_v45, 16  ;;  %v6067_v12 = vshll.u32 %v12620_v44, 16 }
 0x3a4   : > { %v12684_v41 = vadd.f32 %v9026_v31, %v8914_v15  ;;  %v9029_v19 = vadd.f32 %v9028_v33, %v9027_v43  ;;  %v6046_v52 = vsel %vm1345_vm5, %v6041_v38, %v6045_v59  ;;  %v5581_v31 = vrot.slane %v5579_v57, 1  ;;  %v9985_v33 = vld [vmem:[#allocation3 + $0xc4] sm:$0xf] }
 0x3a5   : > { %7379 = vmatmul.mubr.bf16.gmra.mrb[12].mxu0 %v12644_v29  ;;  %v5576_v29 = vrot.slane %v5574_v48, 1  ;;  %v5713_v48 = vrot.slane %v8249_v4, 1  ;;  %v6052_v43 = vrot.slane %v6050_v51, 1  ;;  %v6062_v46 = vshll.u32 %v12699_v21, 16 }
 0x3a6   : > { %v8918_v54 = vpop.f32.mrb[140].mxu1  ;;  %7386 = vmatprep.mubr.bf16.mxu0 %v6034_v13  ;;  %v12692_v55 = vadd.f32 %v9029_v19, %v8917_v34  ;;  %v4741_v13 = vld [vmem:[#allocation3 + $0xc0] sm:$0xe]  ;;  %v9944_v19 = vld [vmem:[#allocation3 + $0xc8] ss:$0 sps:$4 sm:$0x11]   ;;  %v5589_v4 = vor.u32 %v5588_v42, %v5584_v53 }
 0x3a7   : > { %v8919_v18 = vpop.f32.mrb[141].mxu1  ;;  %7226 = vmatmul.mubr.bf16.gmra.mrb[240].mxu1 %v5570_v17  ;;  %v5577_v1 = vor.u32 %v5576_v29, %v5572_v25  ;;  %v8250_v37 = vcombine.low %v4741_v13, %v9985_v33  ;;  %v6057_v17 = vrot.slane %v6055_v28, 1  ;;  %v6060_v25 = vshrl.u32 %v12699_v21, 16  ;;  %v4791_v13 = vld [vmem:[#allocation3 + $0x18] sm:$0xe] }
 0x3a8   : > { %v8920_v15 = vadd.f32 %v8919_v18, %v8918_v54  ;;  %v8921_v9 = vpop.f32.mrb[142].mxu1  ;;  %7233 = vmatprep.mubr.bf16.mxu1 %v5712_v24  ;;  %v6053_v54 = vor.u32 %v6052_v43, %v6048_v36  ;;  %v5598_v18 = vshll.u32 %v13293_v16, 16  ;;  %v5717_v61 = vrot.slane %v9944_v19, 1  ;;  %v4793_v53 = vld [vmem:[#allocation3 + $0x30] sm:$0xe] }
 0x3a9   : > { %v8922_v8 = vpop.f32.mrb[143].mxu1  ;;  %v5582_v47 = vsel %vm1345_vm5, %v5577_v1, %v5581_v31  ;;  %v5716_v51 = vrot.slane %v8250_v37, 1  ;;  %v5593_v59 = vrot.slane %v5591_v7, 1  ;;  %v6069_v28 = vrot.slane %v6067_v12, 1 }
 0x3aa   : > { %v8923_v34 = vadd.f32 %v8922_v8, %v8921_v9  ;;  %v6064_v8 = vrot.slane %v6062_v46, 1  ;;  %v6058_v45 = vsel %vm1345_vm5, %v6053_v54, %v6057_v17  ;;  %v5600_v31 = vrot.slane %v5598_v18, 1  ;;  %v9988_v17 = vld [vmem:[#allocation3 + $0x34] sm:$0xf] }
 0x3ab   : > { %v5594_v44 = vsel %vm1345_vm5, %v5589_v4, %v5593_v59  ;;  %v5596_v42 = vshrl.u32 %v13293_v16, 16  ;;  %v5603_v46 = vshll.u32 %v9944_v19, 16  ;;  %v8285_v16 = vcombine.low %v4793_v53, %v9988_v17  ;;  %v9989_v12 = vld [vmem:[#allocation3 + $0x38] ss:$0 sps:$4 sm:$0x11]  }
 0x3ac   : > { %v6065_v43 = vor.u32 %v6064_v8, %v6060_v25 }
 0x3ad   : > { %7387 = vmatmul.mubr.bf16.gmra.mrb[16].mxu0 %v12654_v3  ;;  %v5715_v3 = vsel %vm1602_vm10, %v5713_v48, %v5714_v26  ;;  %v5601_v33 = vor.u32 %v5600_v31, %v5596_v42  ;;  %v5605_v54 = vrot.slane %v5603_v46, 1  ;;  %v6141_v8 = vrot.slane %v8285_v16, 1 }
 0x3ae   : > { %7394 = vmatprep.mubr.bf16.mxu0 %v6046_v52 }
 0x3af   : > { %7234 = vmatmul.mubr.bf16.gmra.mrb[244].mxu1 %v5582_v47  ;;  %v5718_v47 = vsel %vm1602_vm10, %v5716_v51, %v5717_v61 }
 0x3b0   : > { %v9030_v22 = vpop.f32.mrb[172].mxu0  ;;  %7241 = vmatprep.mubr.bf16.mxu1 %v5715_v3  ;;  %v9987_v3 = vld [vmem:[#allocation3 + $0x20] ss:$0 sps:$4 sm:$0x11]  }
 0x3b1   : > { %v9031_v60 = vpop.f32.mrb[173].mxu0 }
 0x3b2   : > { %v9032_v29 = vadd.f32 %v9031_v60, %v9030_v22  ;;  %v9033_v9 = vpop.f32.mrb[174].mxu0  ;;  %v6136_v22 = vrot.slane %v9987_v3, 1  ;;  %v5606_v60 = vsel %vm1345_vm5, %v5601_v33, %v5605_v54 }
 0x3b3   : > { %v9034_v49 = vpop.f32.mrb[175].mxu0 }
 0x3b4   : > { %v8924_v24 = vpop.f32.mrb[144].mxu1  ;;  %v12712_v38 = vadd.f32 %v9032_v29, %v8920_v15  ;;  %v9035_v57 = vadd.f32 %v9034_v49, %v9033_v9 }
 0x3b5   : > { %v8925_v63 = vpop.f32.mrb[145].mxu1  ;;  %7395 = vmatmul.mubr.bf16.gmra.mrb[20].mxu0 %v12673_v58  ;;  %v9986_v58 = vld [vmem:[#allocation3 + $0x1c] sm:$0xf] }
 0x3b6   : > { %v8926_v1 = vadd.f32 %v8925_v63, %v8924_v24  ;;  %v8927_v48 = vpop.f32.mrb[146].mxu1  ;;  %7402 = vmatprep.mubr.bf16.mxu0 %v6058_v45  ;;  %v12716_v26 = vadd.f32 %v9035_v57, %v8923_v34  ;;  %v8283_v36 = vcombine.low %v4791_v13, %v9986_v58  ;;  %v6070_v34 = vsel %vm1345_vm5, %v6065_v43, %v6069_v28 }
 0x3b7   : > { %v8928_v52 = vpop.f32.mrb[147].mxu1  ;;  %7242 = vmatmul.mubr.bf16.gmra.mrb[248].mxu1 %v5594_v44  ;;  %v6142_v57 = vrot.slane %v9989_v12, 1 }
 0x3b8   : > { %v8929_v15 = vadd.f32 %v8928_v52, %v8927_v48  ;;  %7249 = vmatprep.mubr.bf16.mxu1 %v5718_v47  ;;  %v6135_v37 = vrot.slane %v8283_v36, 1  ;;  %v13294_v52 = vld [vmem:[#allocation24_spill] sm:$0xff] }
 0x3b9   : > { %v6143_v31 = vsel %vm1602_vm10, %v6141_v8, %v6142_v57 }
 0x3ba   : > { %v6137_v18 = vsel %vm1602_vm10, %v6135_v37, %v6136_v22 }
 0x3bd   : > { %7403 = vmatmul.mubr.bf16.gmra.mrb[24].mxu0 %v12687_v56 }
 0x3be   : > { %7410 = vmatprep.mubr.bf16.mxu0 %v6070_v34 }
 0x3bf   : > { %7250 = vmatmul.mubr.bf16.gmra.mrb[252].mxu1 %v5606_v60 }
 0x3c0   : > { %v9036_v7 = vpop.f32.mrb[176].mxu0  ;;  %9420 = vmatprep.mubr.bf16.mxu1 %v6137_v18 }
 0x3c1   : > { %v9037_v19 = vpop.f32.mrb[177].mxu0 }
 0x3c2   : > { %v9038_v29 = vadd.f32 %v9037_v19, %v9036_v7  ;;  %v9039_v9 = vpop.f32.mrb[178].mxu0  ;;  %v8930_v4 = vpop.f32.mrb[148].mxu1 }
 0x3c3   : > { %v9040_v49 = vpop.f32.mrb[179].mxu0  ;;  %v8931_v25 = vpop.f32.mrb[149].mxu1 }
 0x3c4   : > { %v12725_v24 = vadd.f32 %v9038_v29, %v8926_v1  ;;  %v9041_v56 = vadd.f32 %v9040_v49, %v9039_v9  ;;  %v8932_v51 = vadd.f32 %v8931_v25, %v8930_v4  ;;  %v8933_v61 = vpop.f32.mrb[150].mxu1 }
 0x3c5   : > { %7411 = vmatmul.mubr.bf16.gmra.mrb[28].mxu0 %v12699_v21  ;;  %v8934_v45 = vpop.f32.mrb[151].mxu1 }
 0x3c6   : > { %v12728_v63 = vadd.f32 %v9041_v56, %v8929_v15  ;;  %v8935_v59 = vadd.f32 %v8934_v45, %v8933_v61 }
 0x3c7   : > { %9421 = vmatmul.mubr.bf16.vlgmr.msra.gmra.mrb[0].mxu1 %v13294_v52 }
 0x3c8   : > { %v9042_v48 = vpop.f32.mrb[180].mxu0  ;;  %9424 = vmatprep.mubr.bf16.mxu1 %v6143_v31 }
 0x3c9   : > { %v9043_v1 = vpop.f32.mrb[181].mxu0 }
 0x3ca   : > { %v9044_v44 = vadd.f32 %v9043_v1, %v9042_v48  ;;  %v9045_v43 = vpop.f32.mrb[182].mxu0  ;;  %v8936_v13 = vpop.f32.mrb[152].mxu1 }
 0x3cb   : > { %v9046_v28 = vpop.f32.mrb[183].mxu0  ;;  %v8937_v58 = vpop.f32.mrb[153].mxu1 }
 0x3cc   : > { %v12732_v47 = vadd.f32 %v9044_v44, %v8932_v51  ;;  %v9047_v21 = vadd.f32 %v9046_v28, %v9045_v43  ;;  %v8938_v36 = vadd.f32 %v8937_v58, %v8936_v13  ;;  %v8939_v15 = vpop.f32.mrb[154].mxu1 }
 0x3cd   : > { %v8940_v46 = vpop.f32.mrb[155].mxu1 }
 0x3ce   : > { %v12734_v42 = vadd.f32 %v9047_v21, %v8935_v59  ;;  %v8941_v33 = vadd.f32 %v8940_v46, %v8939_v15 }
 0x3cf   : > { %9425 = vmatmul.mubr.bf16.gmra.mrb[4].mxu1 %v12505_v11 }
 0x3d0   : > { %v9048_v34 = vpop.f32.mrb[184].mxu0  ;;  %9428 = vmatprep.mubr.bf16.mxu1 %v12528_v0 }
 0x3d1   : > { %v9049_v37 = vpop.f32.mrb[185].mxu0 }
 0x3d2   : > { %v9050_v3 = vadd.f32 %v9049_v37, %v9048_v34  ;;  %v9051_v22 = vpop.f32.mrb[186].mxu0  ;;  %v8942_v60 = vpop.f32.mrb[156].mxu1 }
 0x3d3   : > { %v9052_v54 = vpop.f32.mrb[187].mxu0  ;;  %v8943_v18 = vpop.f32.mrb[157].mxu1 }
 0x3d4   : > { %v12738_v53 = vadd.f32 %v9050_v3, %v8938_v36  ;;  %v9053_v7 = vadd.f32 %v9052_v54, %v9051_v22  ;;  %v8944_v17 = vadd.f32 %v8943_v18, %v8942_v60  ;;  %v8945_v16 = vpop.f32.mrb[158].mxu1 }
 0x3d5   : > { %v8946_v29 = vpop.f32.mrb[159].mxu1 }
 0x3d6   : > { %v12740_v19 = vadd.f32 %v9053_v7, %v8941_v33  ;;  %v8947_v9 = vadd.f32 %v8946_v29, %v8945_v16 }
 0x3d7   : > { %9429 = vmatmul.mubr.bf16.gmra.mrb[8].mxu1 %v12510_v62 }
 0x3d8   : > { %v9054_v49 = vpop.f32.mrb[188].mxu0  ;;  %9432 = vmatprep.mubr.bf16.mxu1 %v12540_v32 }
 0x3d9   : > { %v9055_v11 = vpop.f32.mrb[189].mxu0 }
 0x3da   : > { %v9056_v0 = vadd.f32 %v9055_v11, %v9054_v49  ;;  %v9057_v4 = vpop.f32.mrb[190].mxu0  ;;  %v8948_v25 = vpop.f32.mrb[160].mxu1 }
 0x3db   : > { %v9058_v56 = vpop.f32.mrb[191].mxu0  ;;  %v8949_v57 = vpop.f32.mrb[161].mxu1 }
 0x3dc   : > { %v12744_v8 = vadd.f32 %v9056_v0, %v8944_v17  ;;  %v9059_v12 = vadd.f32 %v9058_v56, %v9057_v4  ;;  %v8950_v51 = vadd.f32 %v8949_v57, %v8948_v25  ;;  %v8951_v61 = vpop.f32.mrb[162].mxu1 }
 0x3dd   : > { %v8952_v59 = vpop.f32.mrb[163].mxu1 }
 0x3de   : > { %v12746_v45 = vadd.f32 %v9059_v12, %v8947_v9  ;;  %v8953_v48 = vadd.f32 %v8952_v59, %v8951_v61 }
 0x3df   : > { %9433 = vmatmul.mubr.bf16.gmra.mrb[12].mxu1 %v12521_v23 }
 0x3e0   : > { %v9060_v52 = vpop.f32.mrb[192].mxu0  ;;  %9436 = vmatprep.mubr.bf16.mxu1 %v12549_v10 }
 0x3e1   : > { %v9061_v62 = vpop.f32.mrb[193].mxu0 }
 0x3e2   : > { %v9062_v32 = vadd.f32 %v9061_v62, %v9060_v52  ;;  %v9063_v31 = vpop.f32.mrb[194].mxu0  ;;  %v8954_v44 = vpop.f32.mrb[164].mxu1 }
 0x3e3   : > { %v9064_v1 = vpop.f32.mrb[195].mxu0  ;;  %v8955_v13 = vpop.f32.mrb[165].mxu1 }
 0x3e4   : > { %v12750_v43 = vadd.f32 %v9062_v32, %v8950_v51  ;;  %v9065_v28 = vadd.f32 %v9064_v1, %v9063_v31  ;;  %v8956_v21 = vadd.f32 %v8955_v13, %v8954_v44  ;;  %v8957_v58 = vpop.f32.mrb[166].mxu1 }
 0x3e5   : > { %v8958_v15 = vpop.f32.mrb[167].mxu1 }
 0x3e6   : > { %v12752_v36 = vadd.f32 %v9065_v28, %v8953_v48  ;;  %v8959_v46 = vadd.f32 %v8958_v15, %v8957_v58 }
 0x3e7   : > { %9437 = vmatmul.mubr.bf16.gmra.mrb[16].mxu1 %v12532_v2 }
 0x3e8   : > { %v9066_v33 = vpop.f32.mrb[196].mxu0  ;;  %9440 = vmatprep.mubr.bf16.mxu1 %v12559_v30 }
 0x3e9   : > { %v9067_v23 = vpop.f32.mrb[197].mxu0 }
 0x3ea   : > { %v9068_v10 = vadd.f32 %v9067_v23, %v9066_v33  ;;  %v9069_v34 = vpop.f32.mrb[198].mxu0  ;;  %v8960_v3 = vpop.f32.mrb[168].mxu1 }
 0x3eb   : > { %v9070_v37 = vpop.f32.mrb[199].mxu0  ;;  %v8961_v60 = vpop.f32.mrb[169].mxu1 }
 0x3ec   : > { %v12756_v22 = vadd.f32 %v9068_v10, %v8956_v21  ;;  %v9071_v54 = vadd.f32 %v9070_v37, %v9069_v34  ;;  %v8962_v7 = vadd.f32 %v8961_v60, %v8960_v3  ;;  %v8963_v18 = vpop.f32.mrb[170].mxu1 }
 0x3ed   : > { %v8964_v16 = vpop.f32.mrb[171].mxu1 }
 0x3ee   : > { %v12758_v17 = vadd.f32 %v9071_v54, %v8959_v46  ;;  %v8965_v29 = vadd.f32 %v8964_v16, %v8963_v18 }
 0x3ef   : > { %9441 = vmatmul.mubr.bf16.gmra.mrb[20].mxu1 %v12537_v39 }
 0x3f0   : > { %v9072_v9 = vpop.f32.mrb[200].mxu0  ;;  %9444 = vmatprep.mubr.bf16.mxu1 %v12568_v5 }
 0x3f1   : > { %v9073_v2 = vpop.f32.mrb[201].mxu0 }
 0x3f2   : > { %v9074_v30 = vadd.f32 %v9073_v2, %v9072_v9  ;;  %v9075_v49 = vpop.f32.mrb[202].mxu0  ;;  %v8966_v0 = vpop.f32.mrb[172].mxu1 }
 0x3f3   : > { %v9076_v11 = vpop.f32.mrb[203].mxu0  ;;  %v8967_v25 = vpop.f32.mrb[173].mxu1 }
 0x3f4   : > { %v12762_v4 = vadd.f32 %v9074_v30, %v8962_v7  ;;  %v9077_v56 = vadd.f32 %v9076_v11, %v9075_v49  ;;  %v8968_v12 = vadd.f32 %v8967_v25, %v8966_v0  ;;  %v8969_v57 = vpop.f32.mrb[174].mxu1 }
 0x3f5   : > { %v8970_v61 = vpop.f32.mrb[175].mxu1 }
 0x3f6   : > { %v12764_v51 = vadd.f32 %v9077_v56, %v8965_v29  ;;  %v8971_v59 = vadd.f32 %v8970_v61, %v8969_v57 }
 0x3f7   : > { %9445 = vmatmul.mubr.bf16.gmra.mrb[24].mxu1 %v12545_v50 }
 0x3f8   : > { %v9078_v48 = vpop.f32.mrb[204].mxu0  ;;  %9448 = vmatprep.mubr.bf16.mxu1 %v12577_v14 }
 0x3f9   : > { %v9079_v39 = vpop.f32.mrb[205].mxu0 }
 0x3fa   : > { %v9080_v5 = vadd.f32 %v9079_v39, %v9078_v48  ;;  %v9081_v52 = vpop.f32.mrb[206].mxu0  ;;  %v8972_v32 = vpop.f32.mrb[176].mxu1 }
 0x3fb   : > { %v9082_v62 = vpop.f32.mrb[207].mxu0  ;;  %v8973_v44 = vpop.f32.mrb[177].mxu1 }
 0x3fc   : > { %v12768_v31 = vadd.f32 %v9080_v5, %v8968_v12  ;;  %v9083_v1 = vadd.f32 %v9082_v62, %v9081_v52  ;;  %v8974_v28 = vadd.f32 %v8973_v44, %v8972_v32  ;;  %v8975_v13 = vpop.f32.mrb[178].mxu1 }
 0x3fd   : > { %v8976_v58 = vpop.f32.mrb[179].mxu1 }
 0x3fe   : > { %v12770_v21 = vadd.f32 %v9083_v1, %v8971_v59  ;;  %v8977_v15 = vadd.f32 %v8976_v58, %v8975_v13 }
 0x3ff   : > { %9449 = vmatmul.mubr.bf16.gmra.mrb[28].mxu1 %v12632_v40 }
 0x400   : > { %v9084_v46 = vpop.f32.mrb[208].mxu0 }
 0x401   : > { %v9085_v50 = vpop.f32.mrb[209].mxu0 }
 0x402   : > { %v9086_v33 = vadd.f32 %v9085_v50, %v9084_v46  ;;  %v9087_v14 = vpop.f32.mrb[210].mxu0  ;;  %v8978_v10 = vpop.f32.mrb[180].mxu1 }
 0x403   : > { %v9088_v23 = vpop.f32.mrb[211].mxu0  ;;  %v8979_v3 = vpop.f32.mrb[181].mxu1 }
 0x404   : > { %v12773_v34 = vadd.f32 %v9086_v33, %v8974_v28  ;;  %v9089_v37 = vadd.f32 %v9088_v23, %v9087_v14  ;;  %v8980_v54 = vadd.f32 %v8979_v3, %v8978_v10  ;;  %v8981_v60 = vpop.f32.mrb[182].mxu1 }
 0x405   : > { %v8982_v18 = vpop.f32.mrb[183].mxu1 }
 0x406   : > { %v12775_v7 = vadd.f32 %v9089_v37, %v8977_v15  ;;  %v8983_v16 = vadd.f32 %v8982_v18, %v8981_v60 }
 0x408   : > { %v9090_v29 = vpop.f32.mrb[212].mxu0 }
 0x409   : > { %v9091_v9 = vpop.f32.mrb[213].mxu0 }
 0x40a   : > { %v9092_v2 = vadd.f32 %v9091_v9, %v9090_v29  ;;  %v9093_v30 = vpop.f32.mrb[214].mxu0  ;;  %v8984_v49 = vpop.f32.mrb[184].mxu1 }
 0x40b   : > { %v9094_v40 = vpop.f32.mrb[215].mxu0  ;;  %v8985_v56 = vpop.f32.mrb[185].mxu1 }
 0x40c   : > { %v12777_v11 = vadd.f32 %v9092_v2, %v8980_v54  ;;  %v9095_v0 = vadd.f32 %v9094_v40, %v9093_v30  ;;  %v8986_v25 = vadd.f32 %v8985_v56, %v8984_v49  ;;  %v8987_v12 = vpop.f32.mrb[186].mxu1 }
 0x40d   : > { %v8988_v61 = vpop.f32.mrb[187].mxu1 }
 0x40e   : > { %v12779_v57 = vadd.f32 %v9095_v0, %v8983_v16  ;;  %v8989_v59 = vadd.f32 %v8988_v61, %v8987_v12 }
 0x410   : > { %v9096_v48 = vpop.f32.mrb[216].mxu0 }
 0x411   : > { %v9097_v39 = vpop.f32.mrb[217].mxu0 }
 0x412   : > { %v9098_v5 = vadd.f32 %v9097_v39, %v9096_v48  ;;  %v9099_v52 = vpop.f32.mrb[218].mxu0  ;;  %v8990_v32 = vpop.f32.mrb[188].mxu1 }
 0x413   : > { %v9100_v62 = vpop.f32.mrb[219].mxu0  ;;  %v8991_v28 = vpop.f32.mrb[189].mxu1 }
 0x414   : > { %v12781_v1 = vadd.f32 %v9098_v5, %v8986_v25  ;;  %v9101_v44 = vadd.f32 %v9100_v62, %v9099_v52  ;;  %v8992_v13 = vadd.f32 %v8991_v28, %v8990_v32  ;;  %v8993_v58 = vpop.f32.mrb[190].mxu1 }
 0x415   : > { %v8994_v46 = vpop.f32.mrb[191].mxu1 }
 0x416   : > { %v12783_v15 = vadd.f32 %v9101_v44, %v8989_v59  ;;  %v8995_v50 = vadd.f32 %v8994_v46, %v8993_v58 }
 0x418   : > { %v9102_v33 = vpop.f32.mrb[220].mxu0 }
 0x419   : > { %v9103_v14 = vpop.f32.mrb[221].mxu0 }
 0x41a   : > { %v9104_v23 = vadd.f32 %v9103_v14, %v9102_v33  ;;  %v9105_v10 = vpop.f32.mrb[222].mxu0  ;;  %v9124_v3 = vpop.f32.mrb[192].mxu1 }
 0x41b   : > { %v9106_v37 = vpop.f32.mrb[223].mxu0  ;;  %v9125_v18 = vpop.f32.mrb[193].mxu1 }
 0x41c   : > { %v12785_v54 = vadd.f32 %v9104_v23, %v8992_v13  ;;  %v9107_v60 = vadd.f32 %v9106_v37, %v9105_v10  ;;  %v9126_v16 = vadd.f32 %v9125_v18, %v9124_v3  ;;  %v9127_v29 = vpop.f32.mrb[194].mxu1 }
 0x41d   : > { %v9128_v2 = vpop.f32.mrb[195].mxu1 }
 0x41e   : > { %v12787_v9 = vadd.f32 %v9107_v60, %v8995_v50  ;;  %v7132_v30 = vadd.f32 %v9126_v16, %v12608_v35  ;;  %v9129_v40 = vadd.f32 %v9128_v2, %v9127_v29 }
 0x420   : > { %v9236_v49 = vpop.f32.mrb[224].mxu0  ;;  %v7135_v56 = vadd.f32 %v9129_v40, %v12617_v27 }
 0x421   : > { %v9237_v0 = vpop.f32.mrb[225].mxu0 }
 0x422   : > { %v9238_v25 = vadd.f32 %v9237_v0, %v9236_v49  ;;  %v9239_v12 = vpop.f32.mrb[226].mxu0  ;;  %v9130_v59 = vpop.f32.mrb[196].mxu1 }
 0x423   : > { %v9240_v61 = vpop.f32.mrb[227].mxu0  ;;  %v9131_v39 = vpop.f32.mrb[197].mxu1 }
 0x424   : > { %v9241_v48 = vadd.f32 %v9240_v61, %v9239_v12  ;;  %v9132_v5 = vadd.f32 %v9131_v39, %v9130_v59  ;;  %v9133_v52 = vpop.f32.mrb[198].mxu1  ;;  %v12791_v32 = vadd.f32 %v9238_v25, %v7132_v30 }
 0x425   : > { %v9134_v62 = vpop.f32.mrb[199].mxu1 }
 0x426   : > { %v7140_v44 = vadd.f32 %v9132_v5, %v12666_v20  ;;  %v9135_v28 = vadd.f32 %v9134_v62, %v9133_v52  ;;  %v12794_v13 = vadd.f32 %v9241_v48, %v7135_v56 }
 0x428   : > { %v9242_v35 = vpop.f32.mrb[228].mxu0  ;;  %v7143_v27 = vadd.f32 %v9135_v28, %v12670_v6 }
 0x429   : > { %v9243_v58 = vpop.f32.mrb[229].mxu0 }
 0x42a   : > { %v9244_v46 = vadd.f32 %v9243_v58, %v9242_v35  ;;  %v9245_v50 = vpop.f32.mrb[230].mxu0  ;;  %v9136_v14 = vpop.f32.mrb[200].mxu1 }
 0x42b   : > { %v9246_v33 = vpop.f32.mrb[231].mxu0  ;;  %v9137_v10 = vpop.f32.mrb[201].mxu1 }
 0x42c   : > { %v9247_v23 = vadd.f32 %v9246_v33, %v9245_v50  ;;  %v12797_v37 = vadd.f32 %v9244_v46, %v7140_v44  ;;  %v9138_v3 = vadd.f32 %v9137_v10, %v9136_v14  ;;  %v9139_v60 = vpop.f32.mrb[202].mxu1 }
 0x42d   : > { %v9140_v18 = vpop.f32.mrb[203].mxu1 }
 0x42e   : > { %v12799_v16 = vadd.f32 %v9247_v23, %v7143_v27  ;;  %v7148_v20 = vadd.f32 %v9138_v3, %v12684_v41  ;;  %v9141_v29 = vadd.f32 %v9140_v18, %v9139_v60 }
 0x430   : > { %v9248_v2 = vpop.f32.mrb[232].mxu0  ;;  %v7151_v6 = vadd.f32 %v9141_v29, %v12692_v55 }
 0x431   : > { %v9249_v30 = vpop.f32.mrb[233].mxu0 }
 0x432   : > { %v9250_v40 = vadd.f32 %v9249_v30, %v9248_v2  ;;  %v9251_v49 = vpop.f32.mrb[234].mxu0  ;;  %v9142_v56 = vpop.f32.mrb[204].mxu1 }
 0x433   : > { %v9252_v0 = vpop.f32.mrb[235].mxu0  ;;  %v9143_v12 = vpop.f32.mrb[205].mxu1 }
 0x434   : > { %v9253_v25 = vadd.f32 %v9252_v0, %v9251_v49  ;;  %v12803_v61 = vadd.f32 %v9250_v40, %v7148_v20  ;;  %v9144_v59 = vadd.f32 %v9143_v12, %v9142_v56  ;;  %v9145_v48 = vpop.f32.mrb[206].mxu1 }
 0x435   : > { %v9146_v39 = vpop.f32.mrb[207].mxu1 }
 0x436   : > { %v12805_v5 = vadd.f32 %v9253_v25, %v7151_v6  ;;  %v7156_v41 = vadd.f32 %v9144_v59, %v12712_v38  ;;  %v9147_v52 = vadd.f32 %v9146_v39, %v9145_v48 }
 0x438   : > { %v9254_v62 = vpop.f32.mrb[236].mxu0  ;;  %v7159_v55 = vadd.f32 %v9147_v52, %v12716_v26 }
 0x439   : > { %v9255_v44 = vpop.f32.mrb[237].mxu0 }
 0x43a   : > { %v9256_v28 = vadd.f32 %v9255_v44, %v9254_v62  ;;  %v9257_v35 = vpop.f32.mrb[238].mxu0  ;;  %v9148_v27 = vpop.f32.mrb[208].mxu1 }
 0x43b   : > { %v9258_v58 = vpop.f32.mrb[239].mxu0  ;;  %v9149_v50 = vpop.f32.mrb[209].mxu1 }
 0x43c   : > { %v9259_v46 = vadd.f32 %v9258_v58, %v9257_v35  ;;  %v12809_v33 = vadd.f32 %v9256_v28, %v7156_v41  ;;  %v9150_v14 = vadd.f32 %v9149_v50, %v9148_v27  ;;  %v9151_v23 = vpop.f32.mrb[210].mxu1 }
 0x43d   : > { %v9152_v10 = vpop.f32.mrb[211].mxu1 }
 0x43e   : > { %v12811_v3 = vadd.f32 %v9259_v46, %v7159_v55  ;;  %v7164_v38 = vadd.f32 %v9150_v14, %v12725_v24  ;;  %v9153_v60 = vadd.f32 %v9152_v10, %v9151_v23 }
 0x440   : > { %v9260_v18 = vpop.f32.mrb[240].mxu0  ;;  %v7167_v26 = vadd.f32 %v9153_v60, %v12728_v63 }
 0x441   : > { %v9261_v20 = vpop.f32.mrb[241].mxu0 }
 0x442   : > { %v9262_v29 = vadd.f32 %v9261_v20, %v9260_v18  ;;  %v9263_v2 = vpop.f32.mrb[242].mxu0  ;;  %v9154_v6 = vpop.f32.mrb[212].mxu1 }
 0x443   : > { %v9264_v30 = vpop.f32.mrb[243].mxu0  ;;  %v9155_v49 = vpop.f32.mrb[213].mxu1 }
 0x444   : > { %v9265_v40 = vadd.f32 %v9264_v30, %v9263_v2  ;;  %v12815_v0 = vadd.f32 %v9262_v29, %v7164_v38  ;;  %v9156_v56 = vadd.f32 %v9155_v49, %v9154_v6  ;;  %v9157_v25 = vpop.f32.mrb[214].mxu1 }
 0x445   : > { %v9158_v12 = vpop.f32.mrb[215].mxu1 }
 0x446   : > { %v12817_v59 = vadd.f32 %v9265_v40, %v7167_v26  ;;  %v7172_v24 = vadd.f32 %v9156_v56, %v12732_v47  ;;  %v9159_v48 = vadd.f32 %v9158_v12, %v9157_v25 }
 0x448   : > { %v9266_v39 = vpop.f32.mrb[244].mxu0  ;;  %v7175_v63 = vadd.f32 %v9159_v48, %v12734_v42 }
 0x449   : > { %v9267_v41 = vpop.f32.mrb[245].mxu0 }
 0x44a   : > { %v9268_v52 = vadd.f32 %v9267_v41, %v9266_v39  ;;  %v9269_v62 = vpop.f32.mrb[246].mxu0  ;;  %v9160_v55 = vpop.f32.mrb[216].mxu1 }
 0x44b   : > { %v9270_v44 = vpop.f32.mrb[247].mxu0  ;;  %v9161_v35 = vpop.f32.mrb[217].mxu1 }
 0x44c   : > { %v9271_v28 = vadd.f32 %v9270_v44, %v9269_v62  ;;  %v12821_v58 = vadd.f32 %v9268_v52, %v7172_v24  ;;  %v9162_v27 = vadd.f32 %v9161_v35, %v9160_v55  ;;  %v9163_v46 = vpop.f32.mrb[218].mxu1 }
 0x44d   : > { %v9164_v50 = vpop.f32.mrb[219].mxu1 }
 0x44e   : > { %v12823_v14 = vadd.f32 %v9271_v28, %v7175_v63  ;;  %v7180_v47 = vadd.f32 %v9162_v27, %v12738_v53  ;;  %v9165_v23 = vadd.f32 %v9164_v50, %v9163_v46 }
 0x450   : > { %v9272_v10 = vpop.f32.mrb[248].mxu0  ;;  %v7183_v42 = vadd.f32 %v9165_v23, %v12740_v19 }
 0x451   : > { %v9273_v38 = vpop.f32.mrb[249].mxu0 }
 0x452   : > { %v9274_v60 = vadd.f32 %v9273_v38, %v9272_v10  ;;  %v9275_v18 = vpop.f32.mrb[250].mxu0  ;;  %v9166_v26 = vpop.f32.mrb[220].mxu1 }
 0x453   : > { %v9276_v20 = vpop.f32.mrb[251].mxu0  ;;  %v9167_v2 = vpop.f32.mrb[221].mxu1 }
 0x454   : > { %v9277_v29 = vadd.f32 %v9276_v20, %v9275_v18  ;;  %v12827_v30 = vadd.f32 %v9274_v60, %v7180_v47  ;;  %v9168_v6 = vadd.f32 %v9167_v2, %v9166_v26  ;;  %v9169_v40 = vpop.f32.mrb[222].mxu1 }
 0x455   : > { %v9170_v49 = vpop.f32.mrb[223].mxu1 }
 0x456   : > { %v12829_v56 = vadd.f32 %v9277_v29, %v7183_v42  ;;  %v7188_v53 = vadd.f32 %v9168_v6, %v12744_v8  ;;  %v9171_v25 = vadd.f32 %v9170_v49, %v9169_v40 }
 0x458   : > { %v9278_v12 = vpop.f32.mrb[252].mxu0  ;;  %v7191_v19 = vadd.f32 %v9171_v25, %v12746_v45 }
 0x459   : > { %v9279_v24 = vpop.f32.mrb[253].mxu0 }
 0x45a   : > { %v9280_v48 = vadd.f32 %v9279_v24, %v9278_v12  ;;  %v9281_v39 = vpop.f32.mrb[254].mxu0  ;;  %v9172_v63 = vpop.f32.mrb[224].mxu1 }
 0x45b   : > { %v9282_v41 = vpop.f32.mrb[255].mxu0  ;;  %v9173_v62 = vpop.f32.mrb[225].mxu1 }
 0x45c   : > { %v9283_v52 = vadd.f32 %v9282_v41, %v9281_v39  ;;  %v12833_v44 = vadd.f32 %v9280_v48, %v7188_v53  ;;  %v9174_v55 = vadd.f32 %v9173_v62, %v9172_v63  ;;  %v9175_v28 = vpop.f32.mrb[226].mxu1 }
 0x45d   : > { %v9176_v35 = vpop.f32.mrb[227].mxu1 }
 0x45e   : > { %v12835_v27 = vadd.f32 %v9283_v52, %v7191_v19  ;;  %v7196_v8 = vadd.f32 %v9174_v55, %v12750_v43  ;;  %v9177_v46 = vadd.f32 %v9176_v35, %v9175_v28 }
 0x460   : > { %v9284_v50 = vpop.f32.mrb[0].mxu0  ;;  %v7199_v45 = vadd.f32 %v9177_v46, %v12752_v36 }
 0x461   : > { %v9285_v47 = vpop.f32.mrb[1].mxu0 }
 0x462   : > { %v9286_v23 = vadd.f32 %v9285_v47, %v9284_v50  ;;  %v9287_v10 = vpop.f32.mrb[2].mxu0  ;;  %v9178_v42 = vpop.f32.mrb[228].mxu1 }
 0x463   : > { %v9288_v38 = vpop.f32.mrb[3].mxu0  ;;  %v9179_v18 = vpop.f32.mrb[229].mxu1 }
 0x464   : > { %v9289_v60 = vadd.f32 %v9288_v38, %v9287_v10  ;;  %v12839_v20 = vadd.f32 %v9286_v23, %v7196_v8  ;;  %v9180_v26 = vadd.f32 %v9179_v18, %v9178_v42  ;;  %v9181_v29 = vpop.f32.mrb[230].mxu1 }
 0x465   : > { %v9182_v2 = vpop.f32.mrb[231].mxu1 }
 0x466   : > { %v12841_v6 = vadd.f32 %v9289_v60, %v7199_v45  ;;  %v7204_v43 = vadd.f32 %v9180_v26, %v12756_v22  ;;  %v9183_v40 = vadd.f32 %v9182_v2, %v9181_v29 }
 0x468   : > { %v9290_v49 = vpop.f32.mrb[4].mxu0  ;;  %v7207_v36 = vadd.f32 %v9183_v40, %v12758_v17 }
 0x469   : > { %v9291_v53 = vpop.f32.mrb[5].mxu0 }
 0x46a   : > { %v9292_v25 = vadd.f32 %v9291_v53, %v9290_v49  ;;  %v9293_v12 = vpop.f32.mrb[6].mxu0  ;;  %v9184_v19 = vpop.f32.mrb[232].mxu1 }
 0x46b   : > { %v9294_v24 = vpop.f32.mrb[7].mxu0  ;;  %v9185_v39 = vpop.f32.mrb[233].mxu1 }
 0x46c   : > { %v9295_v48 = vadd.f32 %v9294_v24, %v9293_v12  ;;  %v12845_v41 = vadd.f32 %v9292_v25, %v7204_v43  ;;  %v9186_v63 = vadd.f32 %v9185_v39, %v9184_v19  ;;  %v9187_v52 = vpop.f32.mrb[234].mxu1 }
 0x46d   : > { %v9188_v62 = vpop.f32.mrb[235].mxu1 }
 0x46e   : > { %v12847_v55 = vadd.f32 %v9295_v48, %v7207_v36  ;;  %v7212_v22 = vadd.f32 %v9186_v63, %v12762_v4  ;;  %v9189_v28 = vadd.f32 %v9188_v62, %v9187_v52 }
 0x470   : > { %v9296_v35 = vpop.f32.mrb[8].mxu0  ;;  %v7215_v17 = vadd.f32 %v9189_v28, %v12764_v51 }
 0x471   : > { %v9297_v8 = vpop.f32.mrb[9].mxu0 }
 0x472   : > { %v9298_v46 = vadd.f32 %v9297_v8, %v9296_v35  ;;  %v9299_v50 = vpop.f32.mrb[10].mxu0  ;;  %v9190_v45 = vpop.f32.mrb[236].mxu1 }
 0x473   : > { %v9300_v47 = vpop.f32.mrb[11].mxu0  ;;  %v9191_v10 = vpop.f32.mrb[237].mxu1 }
 0x474   : > { %v9301_v23 = vadd.f32 %v9300_v47, %v9299_v50  ;;  %v12851_v38 = vadd.f32 %v9298_v46, %v7212_v22  ;;  %v9192_v42 = vadd.f32 %v9191_v10, %v9190_v45  ;;  %v9193_v60 = vpop.f32.mrb[238].mxu1 }
 0x475   : > { %v9194_v18 = vpop.f32.mrb[239].mxu1 }
 0x476   : > { %v12853_v26 = vadd.f32 %v9301_v23, %v7215_v17  ;;  %v7220_v4 = vadd.f32 %v9192_v42, %v12768_v31  ;;  %v9195_v29 = vadd.f32 %v9194_v18, %v9193_v60 }
 0x478   : > { %v9302_v2 = vpop.f32.mrb[12].mxu0  ;;  %v7223_v51 = vadd.f32 %v9195_v29, %v12770_v21 }
 0x479   : > { %v9303_v43 = vpop.f32.mrb[13].mxu0 }
 0x47a   : > { %v9304_v40 = vadd.f32 %v9303_v43, %v9302_v2  ;;  %v9305_v49 = vpop.f32.mrb[14].mxu0  ;;  %v9196_v36 = vpop.f32.mrb[240].mxu1 }
 0x47b   : > { %v9306_v53 = vpop.f32.mrb[15].mxu0  ;;  %v9197_v12 = vpop.f32.mrb[241].mxu1 }
 0x47c   : > { %v9307_v25 = vadd.f32 %v9306_v53, %v9305_v49  ;;  %v12857_v24 = vadd.f32 %v9304_v40, %v7220_v4  ;;  %v9198_v19 = vadd.f32 %v9197_v12, %v9196_v36  ;;  %v9199_v48 = vpop.f32.mrb[242].mxu1 }
 0x47d   : > { %v9200_v39 = vpop.f32.mrb[243].mxu1 }
 0x47e   : > { %v12859_v63 = vadd.f32 %v9307_v25, %v7223_v51  ;;  %v7228_v31 = vadd.f32 %v9198_v19, %v12773_v34  ;;  %v9201_v52 = vadd.f32 %v9200_v39, %v9199_v48 }
 0x480   : > { %v9308_v62 = vpop.f32.mrb[16].mxu0  ;;  %v7231_v21 = vadd.f32 %v9201_v52, %v12775_v7 }
 0x481   : > { %v9309_v22 = vpop.f32.mrb[17].mxu0 }
 0x482   : > { %v9310_v28 = vadd.f32 %v9309_v22, %v9308_v62  ;;  %v9311_v35 = vpop.f32.mrb[18].mxu0  ;;  %v9202_v17 = vpop.f32.mrb[244].mxu1 }
 0x483   : > { %v9312_v8 = vpop.f32.mrb[19].mxu0  ;;  %v9203_v50 = vpop.f32.mrb[245].mxu1 }
 0x484   : > { %v9313_v46 = vadd.f32 %v9312_v8, %v9311_v35  ;;  %v12863_v47 = vadd.f32 %v9310_v28, %v7228_v31  ;;  %v9204_v45 = vadd.f32 %v9203_v50, %v9202_v17  ;;  %v9205_v23 = vpop.f32.mrb[246].mxu1 }
 0x485   : > { %v9206_v10 = vpop.f32.mrb[247].mxu1 }
 0x486   : > { %v12865_v42 = vadd.f32 %v9313_v46, %v7231_v21  ;;  %v7236_v34 = vadd.f32 %v9204_v45, %v12777_v11  ;;  %v9207_v60 = vadd.f32 %v9206_v10, %v9205_v23 }
 0x488   : > { %v9314_v18 = vpop.f32.mrb[20].mxu0  ;;  %v7239_v7 = vadd.f32 %v9207_v60, %v12779_v57 }
 0x489   : > { %v9315_v4 = vpop.f32.mrb[21].mxu0 }
 0x48a   : > { %v9316_v29 = vadd.f32 %v9315_v4, %v9314_v18  ;;  %v9317_v2 = vpop.f32.mrb[22].mxu0  ;;  %v9208_v51 = vpop.f32.mrb[248].mxu1 }
 0x48b   : > { %v9318_v43 = vpop.f32.mrb[23].mxu0  ;;  %v9209_v49 = vpop.f32.mrb[249].mxu1 }
 0x48c   : > { %v9319_v40 = vadd.f32 %v9318_v43, %v9317_v2  ;;  %v12869_v53 = vadd.f32 %v9316_v29, %v7236_v34  ;;  %v9210_v36 = vadd.f32 %v9209_v49, %v9208_v51  ;;  %v9211_v25 = vpop.f32.mrb[250].mxu1  ;;  %v12884_v29 = vld [vmem:[%s13114_s5] ss:$0 sm:$0xff] }
 0x48d   : > { %v9212_v12 = vpop.f32.mrb[251].mxu1 }
 0x48e   : > { %v12871_v19 = vadd.f32 %v9319_v40, %v7239_v7  ;;  %v7244_v11 = vadd.f32 %v9210_v36, %v12781_v1  ;;  %v9213_v48 = vadd.f32 %v9212_v12, %v9211_v25  ;;  %v9990_v25 = vld [vmem:[%s10414_s19 + $0x8] sm:$0xf] }
 0x48f   : > { %v7660_v12 = vunpack.c.l.bf16 %v9990_v25 }
 0x490   : > { %v9320_v39 = vpop.f32.mrb[24].mxu0  ;;  %v7247_v57 = vadd.f32 %v9213_v48, %v12783_v15 }
 0x491   : > { %v9321_v31 = vpop.f32.mrb[25].mxu0 }
 0x492   : > { %v9322_v52 = vadd.f32 %v9321_v31, %v9320_v39  ;;  %v9323_v62 = vpop.f32.mrb[26].mxu0  ;;  %v9214_v21 = vpop.f32.mrb[252].mxu1  ;;  %v9991_v31 = vld [vmem:[%s10414_s19] sm:$0xf] }
 0x493   : > { %v9324_v22 = vpop.f32.mrb[27].mxu0  ;;  %v9215_v35 = vpop.f32.mrb[253].mxu1 }
 0x494   : > { %v9325_v28 = vadd.f32 %v9324_v22, %v9323_v62  ;;  %v12875_v8 = vadd.f32 %v9322_v52, %v7244_v11  ;;  %v9216_v17 = vadd.f32 %v9215_v35, %v9214_v21  ;;  %v9217_v46 = vpop.f32.mrb[254].mxu1  ;;  %v9992_v22 = vld [vmem:[%s10414_s19 + $0xc] sm:$0xf]  ;;  %v9993_v35 = vld [vmem:[%s10414_s19 + $0x4] sm:$0xf] }
 0x495   : > { %v9218_v50 = vpop.f32.mrb[255].mxu1  ;;  %v7661_v21 = vunpack.c.l.bf16 %v9992_v22 }
 0x496   : > { %v12877_v45 = vadd.f32 %v9325_v28, %v7247_v57  ;;  %v7252_v1 = vadd.f32 %v9216_v17, %v12785_v54  ;;  %v9219_v23 = vadd.f32 %v9218_v50, %v9217_v46  ;;  %v7658_v57 = vunpack.c.l.bf16 %v9991_v31 }
 0x497   : > { %v7659_v17 = vunpack.c.l.bf16 %v9993_v35 }
 0x498   : > { %v9326_v10 = vpop.f32.mrb[28].mxu0  ;;  %v7255_v15 = vadd.f32 %v9219_v23, %v12787_v9  ;;  %v12892_v9 = vld [vmem:[%s13115_s6] ss:$0 sm:$0xff] }
 0x499   : > { %v9327_v34 = vpop.f32.mrb[29].mxu0 }
 0x49a   : > { %v9328_v60 = vadd.f32 %v9327_v34, %v9326_v10  ;;  %v9329_v18 = vpop.f32.mrb[30].mxu0  ;;  %v9422_v7 = vpop.f32.mrb[0].mxu1 }
 0x49b   : > { %v9330_v4 = vpop.f32.mrb[31].mxu0  ;;  %v7462_v43 = vadd.f32 %v9422_v7, %v12797_v37  ;;  %v7453_v54 = vpop.f32.mrb[1].mxu1 }
 0x49c   : > { %v9331_v2 = vadd.f32 %v9330_v4, %v9329_v18  ;;  %v12887_v51 = vadd.f32 %v9328_v60, %v7252_v1  ;;  %v7454_v40 = vadd.f32 %v7453_v54, %v12791_v32  ;;  %v9423_v49 = vpop.f32.mrb[2].mxu1 }
 0x49d   : > { %v7589_v36 = vmul.f32 %v12884_v29, %v7462_v43  ;;  %v7465_v37 = vadd.f32 %v9423_v49, %v12799_v16  ;;  %v7456_v11 = vpop.f32.mrb[3].mxu1 }
 0x49e   : > { %v12898_v48 = vadd.f32 %v9331_v2, %v7255_v15  ;;  %v7587_v39 = vmul.f32 %v12884_v29, %v7454_v40  ;;  %v7457_v52 = vadd.f32 %v7456_v11, %v12794_v13  ;;  %v9994_v40 = vld [vmem:[%s10414_s19 + $0x18] sm:$0xf] }
 0x49f   : > { %v7628_v32 = vadd.f32 %v12892_v9, %v7589_v36  ;;  %v7590_v62 = vmul.f32 %v12884_v29, %v7465_v37 }
 0x4a0   : > { %v7626_v28 = vadd.f32 %v12892_v9, %v7587_v39  ;;  %v7588_v16 = vmul.f32 %v12884_v29, %v7457_v52 }
 0x4a1   : > { %v7692_v46 = vadd.f32 %v7660_v12, %v7628_v32  ;;  %v7629_v50 = vadd.f32 %v12892_v9, %v7590_v62  ;;  %v9995_v12 = vld [vmem:[%s10414_s19 + $0x10] sm:$0xf]  ;;  %v9997_v62 = vld [vmem:[%s10414_s19 + $0x14] sm:$0xf] }
 0x4a2   : > { %v7690_v1 = vadd.f32 %v7658_v57, %v7626_v28  ;;  %v7627_v13 = vadd.f32 %v12892_v9, %v7588_v16  ;;  %v9426_v23 = vpop.f32.mrb[4].mxu1  ;;  %v7662_v37 = vunpack.c.l.bf16 %v9995_v12  ;;  %v9996_v57 = vld [vmem:[%s10414_s19 + $0x1c] sm:$0xf]  ;;  %v7663_v22 = vunpack.c.l.bf16 %v9997_v62  ;;  %v10001_v12 = vld [vmem:[%s10414_s19 + $0x24] sm:$0xf] }
 0x4a3   : > { %v7724_v10 = vmax.f32 %v7692_v46, 0.0  ;;  %v7693_v15 = vadd.f32 %v7661_v21, %v7629_v50  ;;  %v7478_v34 = vadd.f32 %v9426_v23, %v12809_v33  ;;  %v7469_v60 = vpop.f32.mrb[5].mxu1  ;;  %v7664_v33 = vunpack.c.l.bf16 %v9994_v40 }
 0x4a4   : > { %v7722_v18 = vmax.f32 %v7690_v1, 0.0  ;;  %v7691_v4 = vadd.f32 %v7659_v17, %v7627_v13  ;;  %v7470_v7 = vadd.f32 %v7469_v60, %v12803_v61  ;;  %v9427_v2 = vpop.f32.mrb[6].mxu1  ;;  %v7665_v52 = vunpack.c.l.bf16 %v9996_v57 }
 0x4a5   : > { %7756 = vst [vmem:[%s12914_s9 + $0x10] sm:$0xff] %v7724_v10  ;;  %v7725_v43 = vmax.f32 %v7693_v15, 0.0  ;;  %v7593_v54 = vmul.f32 %v12884_v29, %v7478_v34  ;;  %v7481_v49 = vadd.f32 %v9427_v2, %v12811_v3  ;;  %v7472_v36 = vpop.f32.mrb[7].mxu1 }
 0x4a6   : > { %7754 = vst [vmem:[%s12914_s9] sm:$0xff] %v7722_v18  ;;  %v7723_v61 = vmax.f32 %v7691_v4, 0.0  ;;  %v7591_v25 = vmul.f32 %v12884_v29, %v7470_v7  ;;  %v7473_v11 = vadd.f32 %v7472_v36, %v12805_v5  ;;  %v9998_v18 = vld [vmem:[%s10414_s19 + $0x28] sm:$0xf]  ;;  %v10000_v36 = vld [vmem:[%s10414_s19 + $0x2c] sm:$0xf] }
 0x4a7   : > { %7757 = vst [vmem:[%s12914_s9 + $0x18] sm:$0xff] %v7725_v43  ;;  %v7632_v39 = vadd.f32 %v12892_v9, %v7593_v54  ;;  %v7594_v31 = vmul.f32 %v12884_v29, %v7481_v49  ;;  %v7668_v4 = vunpack.c.l.bf16 %v9998_v18  ;;  %v9999_v54 = vld [vmem:[%s10414_s19 + $0x20] sm:$0xf] }
 0x4a8   : > { %7755 = vst [vmem:[%s12914_s9 + $0x8] sm:$0xff] %v7723_v61  ;;  %v7630_v3 = vadd.f32 %v12892_v9, %v7591_v25  ;;  %v7592_v32 = vmul.f32 %v12884_v29, %v7473_v11  ;;  %v7666_v40 = vunpack.c.l.bf16 %v9999_v54  ;;  %v7669_v61 = vunpack.c.l.bf16 %v10000_v36 }
 0x4a9   : > { %v7696_v21 = vadd.f32 %v7664_v33, %v7632_v39  ;;  %v7633_v28 = vadd.f32 %v12892_v9, %v7594_v31 }
 0x4aa   : > { %v7694_v5 = vadd.f32 %v7662_v37, %v7630_v3  ;;  %v7631_v16 = vadd.f32 %v12892_v9, %v7592_v32  ;;  %v9430_v35 = vpop.f32.mrb[8].mxu1  ;;  %v7667_v37 = vunpack.c.l.bf16 %v10001_v12 }
 0x4ab   : > { %v7728_v17 = vmax.f32 %v7696_v21, 0.0  ;;  %v7697_v46 = vadd.f32 %v7665_v52, %v7633_v28  ;;  %v7494_v50 = vadd.f32 %v9430_v35, %v12821_v58  ;;  %v7485_v1 = vpop.f32.mrb[9].mxu1 }
 0x4ac   : > { %v7726_v13 = vmax.f32 %v7694_v5, 0.0  ;;  %v7695_v23 = vadd.f32 %v7663_v22, %v7631_v16  ;;  %v7486_v10 = vadd.f32 %v7485_v1, %v12815_v0  ;;  %v9431_v15 = vpop.f32.mrb[10].mxu1 }
 0x4ad   : > { %7760 = vst [vmem:[%s12914_s9 + $0x30] sm:$0xff] %v7728_v17  ;;  %v7729_v34 = vmax.f32 %v7697_v46, 0.0  ;;  %v7597_v60 = vmul.f32 %v12884_v29, %v7494_v50  ;;  %v7497_v7 = vadd.f32 %v9431_v15, %v12823_v14  ;;  %v7488_v58 = vpop.f32.mrb[11].mxu1  ;;  %v10002_v17 = vld [vmem:[%s10414_s19 + $0x38] sm:$0xf] }
 0x4ae   : > { %7758 = vst [vmem:[%s12914_s9 + $0x20] sm:$0xff] %v7726_v13  ;;  %v7727_v2 = vmax.f32 %v7695_v23, 0.0  ;;  %v7595_v43 = vmul.f32 %v12884_v29, %v7486_v10  ;;  %v7489_v0 = vadd.f32 %v7488_v58, %v12817_v59  ;;  %v7672_v46 = vunpack.c.l.bf16 %v10002_v17  ;;  %v10003_v23 = vld [vmem:[%s10414_s19 + $0x30] sm:$0xf] }
 0x4af   : > { %7761 = vst [vmem:[%s12914_s9 + $0x38] sm:$0xff] %v7729_v34  ;;  %v7636_v33 = vadd.f32 %v12892_v9, %v7597_v60  ;;  %v7598_v49 = vmul.f32 %v12884_v29, %v7497_v7  ;;  %v7670_v10 = vunpack.c.l.bf16 %v10003_v23  ;;  %v10004_v60 = vld [vmem:[%s10414_s19 + $0x3c] sm:$0xf]  ;;  %v10005_v7 = vld [vmem:[%s10414_s19 + $0x34] sm:$0xf] }
 0x4b0   : > { %7759 = vst [vmem:[%s12914_s9 + $0x28] sm:$0xff] %v7727_v2  ;;  %v7634_v14 = vadd.f32 %v12892_v9, %v7595_v43  ;;  %v7596_v25 = vmul.f32 %v12884_v29, %v7489_v0  ;;  %v7673_v18 = vunpack.c.l.bf16 %v10004_v60  ;;  %v7671_v58 = vunpack.c.l.bf16 %v10005_v7 }
 0x4b1   : > { %v7700_v11 = vadd.f32 %v7668_v4, %v7636_v33  ;;  %v7637_v39 = vadd.f32 %v12892_v9, %v7598_v49 }
 0x4b2   : > { %v7698_v59 = vadd.f32 %v7666_v40, %v7634_v14  ;;  %v7635_v31 = vadd.f32 %v12892_v9, %v7596_v25  ;;  %v9434_v57 = vpop.f32.mrb[12].mxu1 }
 0x4b3   : > { %v7732_v52 = vmax.f32 %v7700_v11, 0.0  ;;  %v7701_v3 = vadd.f32 %v7669_v61, %v7637_v39  ;;  %v7510_v32 = vadd.f32 %v9434_v57, %v12833_v44  ;;  %v7501_v62 = vpop.f32.mrb[13].mxu1  ;;  %v10006_v39 = vld [vmem:[%s10414_s19 + $0x48] sm:$0xf] }
 0x4b4   : > { %v7730_v22 = vmax.f32 %v7698_v59, 0.0  ;;  %v7699_v21 = vadd.f32 %v7667_v37, %v7635_v31  ;;  %v7502_v28 = vadd.f32 %v7501_v62, %v12827_v30  ;;  %v9435_v5 = vpop.f32.mrb[14].mxu1  ;;  %v7676_v59 = vunpack.c.l.bf16 %v10006_v39 }
 0x4b5   : > { %7764 = vst [vmem:[%s12914_s9 + $0x50] sm:$0xff] %v7732_v52  ;;  %v7733_v16 = vmax.f32 %v7701_v3, 0.0  ;;  %v7601_v35 = vmul.f32 %v12884_v29, %v7510_v32  ;;  %v7513_v50 = vadd.f32 %v9435_v5, %v12835_v27  ;;  %v7504_v44 = vpop.f32.mrb[15].mxu1  ;;  %v10007_v3 = vld [vmem:[%s10414_s19 + $0x40] sm:$0xf] }
 0x4b6   : > { %7762 = vst [vmem:[%s12914_s9 + $0x40] sm:$0xff] %v7730_v22  ;;  %v7731_v1 = vmax.f32 %v7699_v21, 0.0  ;;  %v7599_v13 = vmul.f32 %v12884_v29, %v7502_v28  ;;  %v7505_v30 = vadd.f32 %v7504_v44, %v12829_v56  ;;  %v7674_v32 = vunpack.c.l.bf16 %v10007_v3  ;;  %v10008_v21 = vld [vmem:[%s10414_s19 + $0x4c] sm:$0xf] }
 0x4b7   : > { %7765 = vst [vmem:[%s12914_s9 + $0x58] sm:$0xff] %v7733_v16  ;;  %v7640_v15 = vadd.f32 %v12892_v9, %v7601_v35  ;;  %v7602_v34 = vmul.f32 %v12884_v29, %v7513_v50  ;;  %v7677_v28 = vunpack.c.l.bf16 %v10008_v21  ;;  %v10009_v16 = vld [vmem:[%s10414_s19 + $0x44] sm:$0xf] }
 0x4b8   : > { %7763 = vst [vmem:[%s12914_s9 + $0x48] sm:$0xff] %v7731_v1  ;;  %v7638_v27 = vadd.f32 %v12892_v9, %v7599_v13  ;;  %v7600_v4 = vmul.f32 %v12884_v29, %v7505_v30  ;;  %v7675_v35 = vunpack.c.l.bf16 %v10009_v16  ;;  %v10015_v16 = vld [vmem:[%s10414_s19 + $0x60] sm:$0xf] }
 0x4b9   : > { %v7704_v2 = vadd.f32 %v7672_v46, %v7640_v15  ;;  %v7641_v43 = vadd.f32 %v12892_v9, %v7602_v34 }
 0x4ba   : > { %v7702_v56 = vadd.f32 %v7670_v10, %v7638_v27  ;;  %v7639_v54 = vadd.f32 %v12892_v9, %v7600_v4  ;;  %v9438_v40 = vpop.f32.mrb[16].mxu1  ;;  %v10010_v4 = vld [vmem:[%s10414_s19 + $0x58] sm:$0xf] }
 0x4bb   : > { %v7736_v0 = vmax.f32 %v7704_v2, 0.0  ;;  %v7705_v33 = vadd.f32 %v7673_v18, %v7641_v43  ;;  %v7526_v49 = vadd.f32 %v9438_v40, %v12845_v41  ;;  %v7517_v36 = vpop.f32.mrb[17].mxu1  ;;  %v7680_v7 = vunpack.c.l.bf16 %v10010_v4 }
 0x4bc   : > { %v7734_v61 = vmax.f32 %v7702_v56, 0.0  ;;  %v7703_v14 = vadd.f32 %v7671_v58, %v7639_v54  ;;  %v7518_v25 = vadd.f32 %v7517_v36, %v12839_v20  ;;  %v9439_v12 = vpop.f32.mrb[18].mxu1  ;;  %v10011_v56 = vld [vmem:[%s10414_s19 + $0x50] sm:$0xf] }
 0x4bd   : > { %7768 = vst [vmem:[%s12914_s9 + $0x70] sm:$0xff] %v7736_v0  ;;  %v7737_v37 = vmax.f32 %v7705_v33, 0.0  ;;  %v7605_v11 = vmul.f32 %v12884_v29, %v7526_v49  ;;  %v7529_v31 = vadd.f32 %v9439_v12, %v12847_v55  ;;  %v7520_v41 = vpop.f32.mrb[19].mxu1  ;;  %v7678_v54 = vunpack.c.l.bf16 %v10011_v56  ;;  %v10012_v33 = vld [vmem:[%s10414_s19 + $0x5c] sm:$0xf] }
 0x4be   : > { %7766 = vst [vmem:[%s12914_s9 + $0x60] sm:$0xff] %v7734_v61  ;;  %v7735_v57 = vmax.f32 %v7703_v14, 0.0  ;;  %v7603_v52 = vmul.f32 %v12884_v29, %v7518_v25  ;;  %v7521_v20 = vadd.f32 %v7520_v41, %v12841_v6  ;;  %v7681_v49 = vunpack.c.l.bf16 %v10012_v33  ;;  %v10013_v61 = vld [vmem:[%s10414_s19 + $0x54] sm:$0xf]  ;;  %v10018_v56 = vld [vmem:[%s10414_s19 + $0x78] sm:$0xf] }
 0x4bf   : > { %7769 = vst [vmem:[%s12914_s9 + $0x78] sm:$0xff] %v7737_v37  ;;  %v7644_v62 = vadd.f32 %v12892_v9, %v7605_v11  ;;  %v7606_v22 = vmul.f32 %v12884_v29, %v7529_v31  ;;  %v7679_v14 = vunpack.c.l.bf16 %v10013_v61  ;;  %v10019_v33 = vld [vmem:[%s10414_s19 + $0x70] sm:$0xf]  ;;  %v10020_v61 = vld [vmem:[%s10414_s19 + $0x7c] sm:$0xf] }
 0x4c0   : > { %7767 = vst [vmem:[%s12914_s9 + $0x68] sm:$0xff] %v7735_v57  ;;  %v7642_v55 = vadd.f32 %v12892_v9, %v7603_v52  ;;  %v7604_v5 = vmul.f32 %v12884_v29, %v7521_v20 }
 0x4c1   : > { %v7708_v17 = vadd.f32 %v7676_v59, %v7644_v62  ;;  %v7645_v46 = vadd.f32 %v12892_v9, %v7606_v22  ;;  %v10014_v22 = vld [vmem:[%s10414_s19 + $0x68] sm:$0xf] }
 0x4c2   : > { %v7706_v6 = vadd.f32 %v7674_v32, %v7642_v55  ;;  %v7643_v50 = vadd.f32 %v12892_v9, %v7604_v5  ;;  %v9442_v44 = vpop.f32.mrb[20].mxu1  ;;  %v7684_v21 = vunpack.c.l.bf16 %v10014_v22 }
 0x4c3   : > { %v7740_v1 = vmax.f32 %v7708_v17, 0.0  ;;  %v7709_v13 = vadd.f32 %v7677_v28, %v7645_v46  ;;  %v7542_v23 = vadd.f32 %v9442_v44, %v12857_v24  ;;  %v7533_v10 = vpop.f32.mrb[21].mxu1 }
 0x4c4   : > { %v7738_v30 = vmax.f32 %v7706_v6, 0.0  ;;  %v7707_v15 = vadd.f32 %v7675_v35, %v7643_v50  ;;  %v7534_v34 = vadd.f32 %v7533_v10, %v12851_v38  ;;  %v9443_v60 = vpop.f32.mrb[22].mxu1  ;;  %v7682_v35 = vunpack.c.l.bf16 %v10015_v16  ;;  %v10016_v6 = vld [vmem:[%s10414_s19 + $0x6c] sm:$0xf] }
 0x4c5   : > { %7772 = vst [vmem:[%s12914_s9 + $0x90] sm:$0xff] %v7740_v1  ;;  %v7741_v18 = vmax.f32 %v7709_v13, 0.0  ;;  %v7609_v27 = vmul.f32 %v12884_v29, %v7542_v23  ;;  %v7545_v58 = vadd.f32 %v9443_v60, %v12859_v63  ;;  %v7536_v24 = vpop.f32.mrb[23].mxu1  ;;  %v7685_v50 = vunpack.c.l.bf16 %v10016_v6  ;;  %v10017_v1 = vld [vmem:[%s10414_s19 + $0x64] sm:$0xf] }
 0x4c6   : > { %7770 = vst [vmem:[%s12914_s9 + $0x80] sm:$0xff] %v7738_v30  ;;  %v7739_v2 = vmax.f32 %v7707_v15, 0.0  ;;  %v7607_v43 = vmul.f32 %v12884_v29, %v7534_v34  ;;  %v7537_v38 = vadd.f32 %v7536_v24, %v12853_v26  ;;  %v7683_v13 = vunpack.c.l.bf16 %v10017_v1 }
 0x4c7   : > { %7773 = vst [vmem:[%s12914_s9 + $0x98] sm:$0xff] %v7741_v18  ;;  %v7648_v40 = vadd.f32 %v12892_v9, %v7609_v27  ;;  %v7610_v0 = vmul.f32 %v12884_v29, %v7545_v58 }
 0x4c8   : > { %7771 = vst [vmem:[%s12914_s9 + $0x88] sm:$0xff] %v7739_v2  ;;  %v7646_v63 = vadd.f32 %v12892_v9, %v7607_v43  ;;  %v7608_v36 = vmul.f32 %v12884_v29, %v7537_v38 }
 0x4c9   : > { %v7712_v25 = vadd.f32 %v7680_v7, %v7648_v40  ;;  %v7649_v12 = vadd.f32 %v12892_v9, %v7610_v0 }
 0x4ca   : > { %v7710_v26 = vadd.f32 %v7678_v54, %v7646_v63  ;;  %v7647_v37 = vadd.f32 %v12892_v9, %v7608_v36  ;;  %v9446_v11 = vpop.f32.mrb[24].mxu1  ;;  %v7688_v54 = vunpack.c.l.bf16 %v10018_v56 }
 0x4cb   : > { %v7744_v39 = vmax.f32 %v7712_v25, 0.0  ;;  %v7713_v59 = vadd.f32 %v7681_v49, %v7649_v12  ;;  %v7558_v31 = vadd.f32 %v9446_v11, %v12869_v53  ;;  %v7549_v41 = vpop.f32.mrb[25].mxu1  ;;  %v7686_v49 = vunpack.c.l.bf16 %v10019_v33  ;;  %v10021_v12 = vld [vmem:[%s10414_s19 + $0x74] sm:$0xf] }
 0x4cc   : > { %v7742_v57 = vmax.f32 %v7710_v26, 0.0  ;;  %v7711_v52 = vadd.f32 %v7679_v14, %v7647_v37  ;;  %v7550_v3 = vadd.f32 %v7549_v41, %v12863_v47  ;;  %v9447_v32 = vpop.f32.mrb[26].mxu1  ;;  %v7689_v14 = vunpack.c.l.bf16 %v10020_v61 }
 0x4cd   : > { %7776 = vst [vmem:[%s12914_s9 + $0xb0] sm:$0xff] %v7744_v39  ;;  %v7745_v20 = vmax.f32 %v7713_v59, 0.0  ;;  %v7613_v62 = vmul.f32 %v12884_v29, %v7558_v31  ;;  %v7561_v28 = vadd.f32 %v9447_v32, %v12871_v19  ;;  %v7552_v53 = vpop.f32.mrb[27].mxu1  ;;  %v7687_v26 = vunpack.c.l.bf16 %v10021_v12 }
 0x4ce   : > { %7774 = vst [vmem:[%s12914_s9 + $0xa0] sm:$0xff] %v7742_v57  ;;  %v7743_v55 = vmax.f32 %v7711_v52, 0.0  ;;  %v7611_v5 = vmul.f32 %v12884_v29, %v7550_v3  ;;  %v7553_v47 = vadd.f32 %v7552_v53, %v12865_v42 }
 0x4cf   : > { %7777 = vst [vmem:[%s12914_s9 + $0xb8] sm:$0xff] %v7745_v20  ;;  %v7652_v17 = vadd.f32 %v12892_v9, %v7613_v62  ;;  %v7614_v46 = vmul.f32 %v12884_v29, %v7561_v28 }
 0x4d0   : > { %7775 = vst [vmem:[%s12914_s9 + $0xa8] sm:$0xff] %v7743_v55  ;;  %v7650_v19 = vadd.f32 %v12892_v9, %v7611_v5  ;;  %v7612_v44 = vmul.f32 %v12884_v29, %v7553_v47 }
 0x4d1   : > { %v7716_v23 = vadd.f32 %v7684_v21, %v7652_v17  ;;  %v7653_v10 = vadd.f32 %v12892_v9, %v7614_v46 }
 0x4d2   : > { %v7714_v42 = vadd.f32 %v7682_v35, %v7650_v19  ;;  %v7651_v30 = vadd.f32 %v12892_v9, %v7612_v44  ;;  %v9450_v15 = vpop.f32.mrb[28].mxu1 }
 0x4d3   : > { %v7748_v34 = vmax.f32 %v7716_v23, 0.0  ;;  %v7717_v60 = vadd.f32 %v7685_v50, %v7653_v10  ;;  %v7574_v18 = vadd.f32 %v9450_v15, %v12887_v51  ;;  %v7565_v27 = vpop.f32.mrb[29].mxu1 }
 0x4d4   : > { %v7746_v4 = vmax.f32 %v7714_v42, 0.0  ;;  %v7715_v7 = vadd.f32 %v7683_v13, %v7651_v30  ;;  %v7566_v58 = vadd.f32 %v7565_v27, %v12875_v8  ;;  %v9451_v24 = vpop.f32.mrb[30].mxu1 }
 0x4d5   : > { %7780 = vst [vmem:[%s12914_s9 + $0xd0] sm:$0xff] %v7748_v34  ;;  %v7749_v2 = vmax.f32 %v7717_v60, 0.0  ;;  %v7617_v43 = vmul.f32 %v12884_v29, %v7574_v18  ;;  %v7577_v38 = vadd.f32 %v9451_v24, %v12898_v48  ;;  %v7568_v51 = vpop.f32.mrb[31].mxu1 }
 0x4d6   : > { %7778 = vst [vmem:[%s12914_s9 + $0xc0] sm:$0xff] %v7746_v4  ;;  %v7747_v40 = vmax.f32 %v7715_v7, 0.0  ;;  %v7615_v0 = vmul.f32 %v12884_v29, %v7566_v58  ;;  %v7569_v8 = vadd.f32 %v7568_v51, %v12877_v45 }
 0x4d7   : > { %7781 = vst [vmem:[%s12914_s9 + $0xd8] sm:$0xff] %v7749_v2  ;;  %v7656_v63 = vadd.f32 %v12892_v9, %v7617_v43  ;;  %v7618_v36 = vmul.f32 %v12884_v29, %v7577_v38 }
 0x4d8   : > { %7779 = vst [vmem:[%s12914_s9 + $0xc8] sm:$0xff] %v7747_v40  ;;  %v7654_v48 = vadd.f32 %v12892_v9, %v7615_v0  ;;  %v7616_v25 = vmul.f32 %v12884_v29, %v7569_v8 }
 0x4d9   : > { %v7720_v37 = vadd.f32 %v7688_v54, %v7656_v63  ;;  %v7657_v45 = vadd.f32 %v12892_v9, %v7618_v36 }
 0x4da   : > { %v7718_v11 = vadd.f32 %v7686_v49, %v7654_v48  ;;  %v7655_v39 = vadd.f32 %v12892_v9, %v7616_v25 }
 0x4db   : > { %v7752_v59 = vmax.f32 %v7720_v37, 0.0  ;;  %v7721_v31 = vadd.f32 %v7689_v14, %v7657_v45 }
 0x4dc   : > { %v7750_v41 = vmax.f32 %v7718_v11, 0.0  ;;  %v7719_v57 = vadd.f32 %v7687_v26, %v7655_v39 }
 0x4dd   : > { %7784 = vst [vmem:[%s12914_s9 + $0xf0] sm:$0xff] %v7752_v59  ;;  %v7753_v29 = vmax.f32 %v7721_v31, 0.0 }
 0x4de   : > { %7782 = vst [vmem:[%s12914_s9 + $0xe0] sm:$0xff] %v7750_v41  ;;  %v7751_v9 = vmax.f32 %v7719_v57, 0.0 }
 0x4df   : > { %7785 = vst [vmem:[%s12914_s9 + $0xf8] sm:$0xff] %v7753_v29 }
 0x4e0   : > { %7783 = vst [vmem:[%s12914_s9 + $0xe8] sm:$0xff] %v7751_v9 }
 0x4e1   : > { %10121 = shalt.err (!%p10118_p1)
}
 0x4e2   : > { %s10122_s22 = scalar_lea.hbm %s13060_s13, 4096  ;;  %s10126_s9 = scalar_lea.hbm %s13116_s7, 8192 }
 0x4e3   : > { %p10123_p13 = scmp.ne.s32.totalorder %s13060_s13, %s10122_s22  ;;  %p10127_p4 = scmp.lt.u32.totalorder %s13060_s13, %s13116_s7 }
 0x4e4   : > { %p10128_p5 = scmp.lt.u32.totalorder %s10126_s9, %s10122_s22  ;;  %p10130_p11 = scmp.lt.u32.totalorder %s10122_s22, %s13060_s13 }
 0x4e5   : > { %p10124_p6 = pnand %p10123_p13, %p13295_p0 }
 0x4e6   : > { %p10129_p8 = por %p10128_p5, %p10127_p4 }
 0x4e7   : > { %p10125_p10 = pneg %p10124_p6 }
 0x4e8   : > { %p10131_p2 = por %p10130_p11, %p10129_p8 }
 0x4ea   : > { %p10132_p3 = pnand %p10131_p2, %p10125_p10 }
 0x4ec   : > { %10135 = shalt.err (!%p10132_p3)
}
 0x4ed   : > { %s10187_s10 = smov 128   ;;  %s10188_s15 = smov 8  }
 0x4ee   : > { %9462 = dma.vmem_to_hbm [thread:$0]  (%p13295_p0), %s13062_s11, 4096, %s13060_s13, %s7787_s28, %s10187_s10, %s10187_s10, %s10188_s15  }
 0x4ef PF: > { %s7815_s14 = sand.u32 1, %s10166_s24   ;;  %p13296_p7 = scmp.ne.s32.totalorder %s13159_s8, 0 }
 0x4f0   : > { %p13297_p9 = scmp.ge.s32.totalorder %s10178_s27, 2  ;;  %s7816_s21 = scalar_lea.sflag [#allocation6], %s7815_s14 }
 0x4f2   : > { %p9476_p12 = pnand %p13297_p9, %p13296_p7 }
 0x4f4   : > { %10161 = dma.done.wait (!%p9476_p12), %s7816_s21, 4096  }
 0x4f5   : > { %10163 = vsyncadd (!%p9476_p12), %s7816_s21, 4294963200  ;;  %p21_p1 = scmp.ge.s32.totalorder %s10345_s12, 4   ;;  %s13298_s24 = smov %s10170_s25 }
 0x4f6   : > { %s13299_s25 = smov %s10174_s26  ;;  %s13300_s26 = smov %s10361_s17 }
 0x4f7   : > { %s13301_s27 = smov %s10345_s12  ;;  %23 = sbr.rel (!%p21_p1) target bundleno = 6 (0x6), region = 107 }
 0x4fe   :  { %7821 = vsyncpa [#allocation5], 1 }
 0x4ff   :  { %7823 = vsyncpa [#allocation5 + $0x1], 1 }
 0x500   :  { %7824 = vsyncpa [#allocation8], 1 }
 0x501   :  { %7825 = vsyncpa [#allocation6], 1 }
 0x502   :  { %7827 = vsyncpa [#allocation6 + $0x1], 1 }

</bundles_post_ra>
